<compile_context>
chip_gen: v7x
topology: tpu7x:2x2x1
jax: 0.10.0
libtpu: 0.0.40
codegen_flags: <defaults>
</compile_context>

<pallas_src>
import functools

import jax
import jax.numpy as jnp
from jax.experimental import pallas as pl
from jax.experimental.pallas import tpu as pltpu

_VMEM_LIMIT = 32 * 1024 * 1024  # safe on v5e/v6e (128 MiB) and v7x (64 MiB)


# ----------------------------------------------------------------------------
# Pallas kernel: fused Conv2d(kxk, stride 1) + BatchNorm(eval) + ReLU +
# MaxPool2d(2,2).  One grid step == one sample.
# ----------------------------------------------------------------------------
def _conv_bn_relu_pool_kernel(x_ref, w_ref, s_ref, b_ref, o_ref, *, chunk, n_chunks):
    # x_ref : (4, K, Mp)  bf16  quadrant-major im2col columns (one sample)
    #                           K = Cin*k*k, Mp = (Ho/2)*(Wo/2)
    # w_ref : (Cout, K)   bf16  flattened conv weight
    # s_ref : (Cout, 1)   f32   folded BN scale
    # b_ref : (Cout, 1)   f32   folded BN bias (conv bias included)
    # o_ref : (Cout, Mp)  bf16  pooled, lane-dense output
    s = s_ref[...]
    b = b_ref[...]
    for c in range(n_chunks):                 # static unroll over lane chunks
        lo = c * chunk                        # chunk is a multiple of 128 when chunked
        y = None
        for q in range(4):                    # static unroll over 2x2 pool quadrants
            rhs = x_ref[q, :, lo:lo + chunk]  # leading-dim index + aligned slice: free views
            part = jnp.dot(w_ref[...], rhs, preferred_element_type=jnp.float32)
            zq = jnp.maximum(part * s + b, 0.0)            # BN + ReLU (per quadrant)
            y = zq if y is None else jnp.maximum(y, zq)    # 2x2 max-pool
        o_ref[:, lo:lo + chunk] = y.astype(o_ref.dtype)


def _pick_chunk(mp, max_chunk=1024):
    """Largest 128-multiple divisor of mp that is <= max_chunk (else mp itself)."""
    if mp <= max_chunk:
        return mp
    c = max_chunk - (max_chunk % 128)
    while c >= 128:
        if mp % c == 0:
            return c
        c -= 128
    return mp


def conv_bn_relu_pool(a, w2d, scale, bias, k=5):
    """a: (N, Cin, H, W) bf16 -> (N, Cout, Ho/2, Wo/2) bf16."""
    n, cin, h, w = a.shape
    cout = w2d.shape[0]
    kk = k * k
    ho, wo = h - k + 1, w - k + 1
    hp, wp = ho // 2, wo // 2
    mp = hp * wp

    # Quadrant-major im2col (XLA glue; strided slices + concat, fused by XLA):
    #   xq[n, 2*qh+qw, ci*kk + di*k + dj, ph*Wp + pw] = a[n, ci, 2*ph+qh+di, 2*pw+qw+dj]
    quads = []
    for qh in range(2):
        for qw in range(2):
            taps = []
            for di in range(k):
                for dj in range(k):
                    taps.append(a[:, :,
                                  di + qh: di + qh + 2 * hp: 2,
                                  dj + qw: dj + qw + 2 * wp: 2])
            quads.append(jnp.stack(taps, axis=2))           # (N, Cin, kk, Hp, Wp)
    xq = jnp.stack(quads, axis=1).reshape(n, 4, cin * kk, mp)

    chunk = _pick_chunk(mp)
    kernel = functools.partial(_conv_bn_relu_pool_kernel,
                               chunk=chunk, n_chunks=mp // chunk)
    out = pl.pallas_call(
        kernel,
        out_shape=jax.ShapeDtypeStruct((n, cout, mp), jnp.bfloat16),
        grid=(n,),
        in_specs=[
            pl.BlockSpec((None, 4, cin * kk, mp), lambda i: (i, 0, 0, 0)),
            pl.BlockSpec((cout, cin * kk), lambda i: (0, 0)),
            pl.BlockSpec((cout, 1), lambda i: (0, 0)),
            pl.BlockSpec((cout, 1), lambda i: (0, 0)),
        ],
        out_specs=pl.BlockSpec((None, cout, mp), lambda i: (i, 0, 0)),
        compiler_params=pltpu.CompilerParams(
            dimension_semantics=("parallel",),
            vmem_limit_bytes=_VMEM_LIMIT),
    )(xq, w2d, scale, bias)
    return out.reshape(n, cout, hp, wp)


# ----------------------------------------------------------------------------
# Pallas kernel: fused fc1 + BatchNorm1d(eval) + ReLU + fc2.
# ----------------------------------------------------------------------------
def _fc_block_kernel(x_ref, w1_ref, s1_ref, b1_ref, w2_ref, b2_ref, o_ref):
    h = jnp.dot(x_ref[...], w1_ref[...], preferred_element_type=jnp.float32)
    h = jnp.maximum(h * s1_ref[...] + b1_ref[...], 0.0)      # fc1 + BN1d + ReLU
    y = jnp.dot(h.astype(jnp.bfloat16), w2_ref[...],
                preferred_element_type=jnp.float32)
    o_ref[...] = (y + b2_ref[...]).astype(o_ref.dtype)       # fc2


def fc_block(x, w1, s1, b1, w2, b2):
    n = x.shape[0]
    e = w2.shape[1]

    def spec2(shp):                       # all operands here are 2-D, full-array blocks
        return pl.BlockSpec(shp, lambda i: (0, 0))

    return pl.pallas_call(
        _fc_block_kernel,
        out_shape=jax.ShapeDtypeStruct((n, e), jnp.float32),
        grid=(1,),
        in_specs=[spec2(x.shape), spec2(w1.shape), spec2(s1.shape),
                  spec2(b1.shape), spec2(w2.shape), spec2(b2.shape)],
        out_specs=spec2((n, e)),
        compiler_params=pltpu.CompilerParams(
            dimension_semantics=("arbitrary",),
            vmem_limit_bytes=_VMEM_LIMIT),
    )(x, w1, s1, b1, w2, b2)


# ----------------------------------------------------------------------------
# Parameters (PyTorch-shaped) and inference-time folding.
# ----------------------------------------------------------------------------
def make_params(key, embedding_dim=128):
    keys = iter(jax.random.split(key, 32))

    def nrm(shape, fan_in):
        return jax.random.normal(next(keys), shape, jnp.float32) / jnp.sqrt(float(fan_in))

    def bn_stats(c):
        gamma = 1.0 + 0.1 * jax.random.normal(next(keys), (c,), jnp.float32)
        beta = 0.1 * jax.random.normal(next(keys), (c,), jnp.float32)
        mean = 0.1 * jax.random.normal(next(keys), (c,), jnp.float32)
        var = jax.random.uniform(next(keys), (c,), jnp.float32, minval=0.5, maxval=1.5)
        return gamma, beta, mean, var

    p = {}
    p["w1"], p["b1"], p["bn1"] = nrm((16, 3, 5, 5), 75), 0.01 * nrm((16,), 1), bn_stats(16)
    p["w2"], p["b2"], p["bn2"] = nrm((32, 16, 5, 5), 400), 0.01 * nrm((32,), 1), bn_stats(32)
    p["w3"], p["b3"], p["bn3"] = nrm((64, 32, 5, 5), 800), 0.01 * nrm((64,), 1), bn_stats(64)
    flat = 64 * 9 * 9  # from the 100x100 probe in the module's __init__
    p["fcw1"], p["fcb1"], p["bnf"] = nrm((128, flat), flat), 0.01 * nrm((128,), 1), bn_stats(128)
    p["fcw2"], p["fcb2"] = nrm((embedding_dim, 128), 128), 0.01 * nrm((embedding_dim,), 1)
    return p


def _fold_conv(w, b, gamma, beta, mean, var, eps=1e-5):
    cout = w.shape[0]
    scale = gamma / jnp.sqrt(var + eps)
    bias = beta + (b - mean) * scale
    # (Cout, Cin, kh, kw) -> (Cout, Cin*k*k); row order (ci, di, dj) matches xq's K axis.
    w2d = w.reshape(cout, -1).astype(jnp.bfloat16)
    return (w2d,
            scale.reshape(cout, 1).astype(jnp.float32),
            bias.reshape(cout, 1).astype(jnp.float32))


def fold_params(p, eps=1e-5):
    """Fold eval-mode BatchNorm into per-channel scale/bias; cast weights to bf16."""
    convs = tuple(_fold_conv(p[f"w{i}"], p[f"b{i}"], *p[f"bn{i}"], eps=eps)
                  for i in (1, 2, 3))
    g, be, mu, var = p["bnf"]
    s1 = g / jnp.sqrt(var + eps)
    b1 = be + (p["fcb1"] - mu) * s1
    fc = (p["fcw1"].T.astype(jnp.bfloat16),          # (5184, 128)
          s1.reshape(1, -1).astype(jnp.float32),
          b1.reshape(1, -1).astype(jnp.float32),
          p["fcw2"].T.astype(jnp.bfloat16),          # (128, embedding_dim)
          p["fcb2"].reshape(1, -1).astype(jnp.float32))
    return {"convs": convs, "fc": fc}


# ----------------------------------------------------------------------------
# Full forward pass (eval mode).
# ----------------------------------------------------------------------------
def siamese_forward(x, fp):
    a = x.astype(jnp.bfloat16)                       # NCHW, bf16 activations
    for w2d, scale, bias in fp["convs"]:
        # Conv + BN + ReLU + MaxPool fused in one Pallas kernel;
        # Dropout(0.2) = identity in eval mode.
        a = conv_bn_relu_pool(a, w2d, scale, bias)
    n = a.shape[0]
    flat = a.reshape(n, -1)                          # PyTorch NCHW flatten order
    w1, s1, b1, w2, b2 = fp["fc"]
    return fc_block(flat, w1, s1, b1, w2, b2)        # Dropout(0.5) = identity (eval)


if __name__ == "__main__":
    key = jax.random.PRNGKey(0)
    k_params, k_x = jax.random.split(key)

    params = make_params(k_params, embedding_dim=128)
    folded = fold_params(params)

    # Input must be (N, 3, 100, 100): the module's fc size (5184) is derived
    # from a 100x100 probe in __init__.
    x = jax.random.normal(k_x, (2, 3, 100, 100), jnp.float32)

    fwd = jax.jit(siamese_forward)
    out = jax.block_until_ready(fwd(x, folded))

    assert out.shape == (2, 128), out.shape
    assert bool(jnp.all(jnp.isfinite(out)))
    print("KERNEL_OK")
</pallas_src>

<mosaic_0001>
module attributes {stable_mosaic.version = 11 : i64} {
  func.func @_conv_bn_relu_pool_kernel(%arg0: i32, %arg1: memref<1x4x75x2304xbf16, #tpu.memory_space<vmem>>, %arg2: memref<16x75xbf16, #tpu.memory_space<vmem>>, %arg3: memref<16x1xf32, #tpu.memory_space<vmem>>, %arg4: memref<16x1xf32, #tpu.memory_space<vmem>>, %arg5: memref<1x16x2304xbf16, #tpu.memory_space<vmem>>) attributes {dimension_semantics = [#tpu.dimension_semantics<parallel>], iteration_bounds = array<i64: 2>, scalar_prefetch = 0 : i64, scratch_operands = 0 : i64, tpu.core_type = #tpu.core_type<tc>, window_params = [{transform_indices = @transform_0, window_bounds = array<i64: 1, 4, 75, 2304>}, {pipeline_mode = #tpu.pipeline_mode<synchronous>, transform_indices = @transform_1, window_bounds = array<i64: 16, 75>}, {pipeline_mode = #tpu.pipeline_mode<synchronous>, transform_indices = @transform_2, window_bounds = array<i64: 16, 1>}, {pipeline_mode = #tpu.pipeline_mode<synchronous>, transform_indices = @transform_3, window_bounds = array<i64: 16, 1>}, {transform_indices = @transform_4, window_bounds = array<i64: 1, 16, 2304>}]} {
    %c0 = arith.constant 0 : index
    %c0_0 = arith.constant 0 : index
    %0 = vector.load %arg3[%c0, %c0_0] : memref<16x1xf32, #tpu.memory_space<vmem>>, vector<16x1xf32>
    %c0_1 = arith.constant 0 : index
    %c0_2 = arith.constant 0 : index
    %1 = vector.load %arg4[%c0_1, %c0_2] : memref<16x1xf32, #tpu.memory_space<vmem>>, vector<16x1xf32>
    %c0_3 = arith.constant 0 : index
    %c0_4 = arith.constant 0 : index
    %c0_5 = arith.constant 0 : index
    %c0_6 = arith.constant 0 : index
    %2 = vector.load %arg1[%c0_3, %c0_4, %c0_5, %c0_6] : memref<1x4x75x2304xbf16, #tpu.memory_space<vmem>>, vector<1x1x75x768xbf16>
    %3 = vector.shape_cast %2 : vector<1x1x75x768xbf16> to vector<75x768xbf16>
    %c0_7 = arith.constant 0 : index
    %c0_8 = arith.constant 0 : index
    %4 = vector.load %arg2[%c0_7, %c0_8] : memref<16x75xbf16, #tpu.memory_space<vmem>>, vector<16x75xbf16>
    %cst = arith.constant dense<0.000000e+00> : vector<16x768xf32>
    %5 = tpu.matmul %4, %3, %cst {dimension_numbers = #tpu.dot_dimension_numbers<[1], [0], [0], [1], [0, 0, 1, 1], [], []>} : vector<16x75xbf16>, vector<75x768xbf16>, vector<16x768xf32> -> vector<16x768xf32>
    %6 = vector.broadcast %0 : vector<16x1xf32> to vector<16x768xf32>
    %7 = arith.mulf %5, %6 : vector<16x768xf32>
    %8 = vector.broadcast %1 : vector<16x1xf32> to vector<16x768xf32>
    %9 = arith.addf %7, %8 : vector<16x768xf32>
    %cst_9 = arith.constant 0.000000e+00 : f32
    %10 = vector.broadcast %cst_9 : f32 to vector<16x768xf32>
    %11 = arith.maximumf %9, %10 : vector<16x768xf32>
    %c0_10 = arith.constant 0 : index
    %c1 = arith.constant 1 : index
    %c0_11 = arith.constant 0 : index
    %c0_12 = arith.constant 0 : index
    %12 = vector.load %arg1[%c0_10, %c1, %c0_11, %c0_12] : memref<1x4x75x2304xbf16, #tpu.memory_space<vmem>>, vector<1x1x75x768xbf16>
    %13 = vector.shape_cast %12 : vector<1x1x75x768xbf16> to vector<75x768xbf16>
    %c0_13 = arith.constant 0 : index
    %c0_14 = arith.constant 0 : index
    %14 = vector.load %arg2[%c0_13, %c0_14] : memref<16x75xbf16, #tpu.memory_space<vmem>>, vector<16x75xbf16>
    %cst_15 = arith.constant dense<0.000000e+00> : vector<16x768xf32>
    %15 = tpu.matmul %14, %13, %cst_15 {dimension_numbers = #tpu.dot_dimension_numbers<[1], [0], [0], [1], [0, 0, 1, 1], [], []>} : vector<16x75xbf16>, vector<75x768xbf16>, vector<16x768xf32> -> vector<16x768xf32>
    %16 = vector.broadcast %0 : vector<16x1xf32> to vector<16x768xf32>
    %17 = arith.mulf %15, %16 : vector<16x768xf32>
    %18 = vector.broadcast %1 : vector<16x1xf32> to vector<16x768xf32>
    %19 = arith.addf %17, %18 : vector<16x768xf32>
    %cst_16 = arith.constant 0.000000e+00 : f32
    %20 = vector.broadcast %cst_16 : f32 to vector<16x768xf32>
    %21 = arith.maximumf %19, %20 : vector<16x768xf32>
    %22 = arith.maximumf %11, %21 : vector<16x768xf32>
    %c0_17 = arith.constant 0 : index
    %c2 = arith.constant 2 : index
    %c0_18 = arith.constant 0 : index
    %c0_19 = arith.constant 0 : index
    %23 = vector.load %arg1[%c0_17, %c2, %c0_18, %c0_19] : memref<1x4x75x2304xbf16, #tpu.memory_space<vmem>>, vector<1x1x75x768xbf16>
    %24 = vector.shape_cast %23 : vector<1x1x75x768xbf16> to vector<75x768xbf16>
    %c0_20 = arith.constant 0 : index
    %c0_21 = arith.constant 0 : index
    %25 = vector.load %arg2[%c0_20, %c0_21] : memref<16x75xbf16, #tpu.memory_space<vmem>>, vector<16x75xbf16>
    %cst_22 = arith.constant dense<0.000000e+00> : vector<16x768xf32>
    %26 = tpu.matmul %25, %24, %cst_22 {dimension_numbers = #tpu.dot_dimension_numbers<[1], [0], [0], [1], [0, 0, 1, 1], [], []>} : vector<16x75xbf16>, vector<75x768xbf16>, vector<16x768xf32> -> vector<16x768xf32>
    %27 = vector.broadcast %0 : vector<16x1xf32> to vector<16x768xf32>
    %28 = arith.mulf %26, %27 : vector<16x768xf32>
    %29 = vector.broadcast %1 : vector<16x1xf32> to vector<16x768xf32>
    %30 = arith.addf %28, %29 : vector<16x768xf32>
    %cst_23 = arith.constant 0.000000e+00 : f32
    %31 = vector.broadcast %cst_23 : f32 to vector<16x768xf32>
    %32 = arith.maximumf %30, %31 : vector<16x768xf32>
    %33 = arith.maximumf %22, %32 : vector<16x768xf32>
    %c0_24 = arith.constant 0 : index
    %c3 = arith.constant 3 : index
    %c0_25 = arith.constant 0 : index
    %c0_26 = arith.constant 0 : index
    %34 = vector.load %arg1[%c0_24, %c3, %c0_25, %c0_26] : memref<1x4x75x2304xbf16, #tpu.memory_space<vmem>>, vector<1x1x75x768xbf16>
    %35 = vector.shape_cast %34 : vector<1x1x75x768xbf16> to vector<75x768xbf16>
    %c0_27 = arith.constant 0 : index
    %c0_28 = arith.constant 0 : index
    %36 = vector.load %arg2[%c0_27, %c0_28] : memref<16x75xbf16, #tpu.memory_space<vmem>>, vector<16x75xbf16>
    %cst_29 = arith.constant dense<0.000000e+00> : vector<16x768xf32>
    %37 = tpu.matmul %36, %35, %cst_29 {dimension_numbers = #tpu.dot_dimension_numbers<[1], [0], [0], [1], [0, 0, 1, 1], [], []>} : vector<16x75xbf16>, vector<75x768xbf16>, vector<16x768xf32> -> vector<16x768xf32>
    %38 = vector.broadcast %0 : vector<16x1xf32> to vector<16x768xf32>
    %39 = arith.mulf %37, %38 : vector<16x768xf32>
    %40 = vector.broadcast %1 : vector<16x1xf32> to vector<16x768xf32>
    %41 = arith.addf %39, %40 : vector<16x768xf32>
    %cst_30 = arith.constant 0.000000e+00 : f32
    %42 = vector.broadcast %cst_30 : f32 to vector<16x768xf32>
    %43 = arith.maximumf %41, %42 : vector<16x768xf32>
    %44 = arith.maximumf %33, %43 : vector<16x768xf32>
    %45 = arith.truncf %44 : vector<16x768xf32> to vector<16x768xbf16>
    %c0_31 = arith.constant 0 : index
    %c0_32 = arith.constant 0 : index
    %c0_33 = arith.constant 0 : index
    %46 = vector.load %arg5[%c0_31, %c0_32, %c0_33] : memref<1x16x2304xbf16, #tpu.memory_space<vmem>>, vector<1x16x768xbf16>
    %47 = vector.shape_cast %46 : vector<1x16x768xbf16> to vector<16x768xbf16>
    %48 = vector.shape_cast %45 : vector<16x768xbf16> to vector<1x16x768xbf16>
    tpu.vector_store %arg5[%c0_31, %c0_32, %c0_33], %48 {strides = array<i32>} : memref<1x16x2304xbf16, #tpu.memory_space<vmem>>, vector<1x16x768xbf16>,
    %c0_34 = arith.constant 0 : index
    %c0_35 = arith.constant 0 : index
    %c0_36 = arith.constant 0 : index
    %c768 = arith.constant 768 : index
    %49 = vector.load %arg1[%c0_34, %c0_35, %c0_36, %c768] : memref<1x4x75x2304xbf16, #tpu.memory_space<vmem>>, vector<1x1x75x768xbf16>
    %50 = vector.shape_cast %49 : vector<1x1x75x768xbf16> to vector<75x768xbf16>
    %c0_37 = arith.constant 0 : index
    %c0_38 = arith.constant 0 : index
    %51 = vector.load %arg2[%c0_37, %c0_38] : memref<16x75xbf16, #tpu.memory_space<vmem>>, vector<16x75xbf16>
    %cst_39 = arith.constant dense<0.000000e+00> : vector<16x768xf32>
    %52 = tpu.matmul %51, %50, %cst_39 {dimension_numbers = #tpu.dot_dimension_numbers<[1], [0], [0], [1], [0, 0, 1, 1], [], []>} : vector<16x75xbf16>, vector<75x768xbf16>, vector<16x768xf32> -> vector<16x768xf32>
    %53 = vector.broadcast %0 : vector<16x1xf32> to vector<16x768xf32>
    %54 = arith.mulf %52, %53 : vector<16x768xf32>
    %55 = vector.broadcast %1 : vector<16x1xf32> to vector<16x768xf32>
    %56 = arith.addf %54, %55 : vector<16x768xf32>
    %cst_40 = arith.constant 0.000000e+00 : f32
    %57 = vector.broadcast %cst_40 : f32 to vector<16x768xf32>
    %58 = arith.maximumf %56, %57 : vector<16x768xf32>
    %c0_41 = arith.constant 0 : index
    %c1_42 = arith.constant 1 : index
    %c0_43 = arith.constant 0 : index
    %c768_44 = arith.constant 768 : index
    %59 = vector.load %arg1[%c0_41, %c1_42, %c0_43, %c768_44] : memref<1x4x75x2304xbf16, #tpu.memory_space<vmem>>, vector<1x1x75x768xbf16>
    %60 = vector.shape_cast %59 : vector<1x1x75x768xbf16> to vector<75x768xbf16>
    %c0_45 = arith.constant 0 : index
    %c0_46 = arith.constant 0 : index
    %61 = vector.load %arg2[%c0_45, %c0_46] : memref<16x75xbf16, #tpu.memory_space<vmem>>, vector<16x75xbf16>
    %cst_47 = arith.constant dense<0.000000e+00> : vector<16x768xf32>
    %62 = tpu.matmul %61, %60, %cst_47 {dimension_numbers = #tpu.dot_dimension_numbers<[1], [0], [0], [1], [0, 0, 1, 1], [], []>} : vector<16x75xbf16>, vector<75x768xbf16>, vector<16x768xf32> -> vector<16x768xf32>
    %63 = vector.broadcast %0 : vector<16x1xf32> to vector<16x768xf32>
    %64 = arith.mulf %62, %63 : vector<16x768xf32>
    %65 = vector.broadcast %1 : vector<16x1xf32> to vector<16x768xf32>
    %66 = arith.addf %64, %65 : vector<16x768xf32>
    %cst_48 = arith.constant 0.000000e+00 : f32
    %67 = vector.broadcast %cst_48 : f32 to vector<16x768xf32>
    %68 = arith.maximumf %66, %67 : vector<16x768xf32>
    %69 = arith.maximumf %58, %68 : vector<16x768xf32>
    %c0_49 = arith.constant 0 : index
    %c2_50 = arith.constant 2 : index
    %c0_51 = arith.constant 0 : index
    %c768_52 = arith.constant 768 : index
    %70 = vector.load %arg1[%c0_49, %c2_50, %c0_51, %c768_52] : memref<1x4x75x2304xbf16, #tpu.memory_space<vmem>>, vector<1x1x75x768xbf16>
    %71 = vector.shape_cast %70 : vector<1x1x75x768xbf16> to vector<75x768xbf16>
    %c0_53 = arith.constant 0 : index
    %c0_54 = arith.constant 0 : index
    %72 = vector.load %arg2[%c0_53, %c0_54] : memref<16x75xbf16, #tpu.memory_space<vmem>>, vector<16x75xbf16>
    %cst_55 = arith.constant dense<0.000000e+00> : vector<16x768xf32>
    %73 = tpu.matmul %72, %71, %cst_55 {dimension_numbers = #tpu.dot_dimension_numbers<[1], [0], [0], [1], [0, 0, 1, 1], [], []>} : vector<16x75xbf16>, vector<75x768xbf16>, vector<16x768xf32> -> vector<16x768xf32>
    %74 = vector.broadcast %0 : vector<16x1xf32> to vector<16x768xf32>
    %75 = arith.mulf %73, %74 : vector<16x768xf32>
    %76 = vector.broadcast %1 : vector<16x1xf32> to vector<16x768xf32>
    %77 = arith.addf %75, %76 : vector<16x768xf32>
    %cst_56 = arith.constant 0.000000e+00 : f32
    %78 = vector.broadcast %cst_56 : f32 to vector<16x768xf32>
    %79 = arith.maximumf %77, %78 : vector<16x768xf32>
    %80 = arith.maximumf %69, %79 : vector<16x768xf32>
    %c0_57 = arith.constant 0 : index
    %c3_58 = arith.constant 3 : index
    %c0_59 = arith.constant 0 : index
    %c768_60 = arith.constant 768 : index
    %81 = vector.load %arg1[%c0_57, %c3_58, %c0_59, %c768_60] : memref<1x4x75x2304xbf16, #tpu.memory_space<vmem>>, vector<1x1x75x768xbf16>
    %82 = vector.shape_cast %81 : vector<1x1x75x768xbf16> to vector<75x768xbf16>
    %c0_61 = arith.constant 0 : index
    %c0_62 = arith.constant 0 : index
    %83 = vector.load %arg2[%c0_61, %c0_62] : memref<16x75xbf16, #tpu.memory_space<vmem>>, vector<16x75xbf16>
    %cst_63 = arith.constant dense<0.000000e+00> : vector<16x768xf32>
    %84 = tpu.matmul %83, %82, %cst_63 {dimension_numbers = #tpu.dot_dimension_numbers<[1], [0], [0], [1], [0, 0, 1, 1], [], []>} : vector<16x75xbf16>, vector<75x768xbf16>, vector<16x768xf32> -> vector<16x768xf32>
    %85 = vector.broadcast %0 : vector<16x1xf32> to vector<16x768xf32>
    %86 = arith.mulf %84, %85 : vector<16x768xf32>
    %87 = vector.broadcast %1 : vector<16x1xf32> to vector<16x768xf32>
    %88 = arith.addf %86, %87 : vector<16x768xf32>
    %cst_64 = arith.constant 0.000000e+00 : f32
    %89 = vector.broadcast %cst_64 : f32 to vector<16x768xf32>
    %90 = arith.maximumf %88, %89 : vector<16x768xf32>
    %91 = arith.maximumf %80, %90 : vector<16x768xf32>
    %92 = arith.truncf %91 : vector<16x768xf32> to vector<16x768xbf16>
    %c0_65 = arith.constant 0 : index
    %c0_66 = arith.constant 0 : index
    %c768_67 = arith.constant 768 : index
    %93 = vector.load %arg5[%c0_65, %c0_66, %c768_67] : memref<1x16x2304xbf16, #tpu.memory_space<vmem>>, vector<1x16x768xbf16>
    %94 = vector.shape_cast %93 : vector<1x16x768xbf16> to vector<16x768xbf16>
    %95 = vector.shape_cast %92 : vector<16x768xbf16> to vector<1x16x768xbf16>
    tpu.vector_store %arg5[%c0_65, %c0_66, %c768_67], %95 {strides = array<i32>} : memref<1x16x2304xbf16, #tpu.memory_space<vmem>>, vector<1x16x768xbf16>,
    %c0_68 = arith.constant 0 : index
    %c0_69 = arith.constant 0 : index
    %c0_70 = arith.constant 0 : index
    %c1536 = arith.constant 1536 : index
    %96 = vector.load %arg1[%c0_68, %c0_69, %c0_70, %c1536] : memref<1x4x75x2304xbf16, #tpu.memory_space<vmem>>, vector<1x1x75x768xbf16>
    %97 = vector.shape_cast %96 : vector<1x1x75x768xbf16> to vector<75x768xbf16>
    %c0_71 = arith.constant 0 : index
    %c0_72 = arith.constant 0 : index
    %98 = vector.load %arg2[%c0_71, %c0_72] : memref<16x75xbf16, #tpu.memory_space<vmem>>, vector<16x75xbf16>
    %cst_73 = arith.constant dense<0.000000e+00> : vector<16x768xf32>
    %99 = tpu.matmul %98, %97, %cst_73 {dimension_numbers = #tpu.dot_dimension_numbers<[1], [0], [0], [1], [0, 0, 1, 1], [], []>} : vector<16x75xbf16>, vector<75x768xbf16>, vector<16x768xf32> -> vector<16x768xf32>
    %100 = vector.broadcast %0 : vector<16x1xf32> to vector<16x768xf32>
    %101 = arith.mulf %99, %100 : vector<16x768xf32>
    %102 = vector.broadcast %1 : vector<16x1xf32> to vector<16x768xf32>
    %103 = arith.addf %101, %102 : vector<16x768xf32>
    %cst_74 = arith.constant 0.000000e+00 : f32
    %104 = vector.broadcast %cst_74 : f32 to vector<16x768xf32>
    %105 = arith.maximumf %103, %104 : vector<16x768xf32>
    %c0_75 = arith.constant 0 : index
    %c1_76 = arith.constant 1 : index
    %c0_77 = arith.constant 0 : index
    %c1536_78 = arith.constant 1536 : index
    %106 = vector.load %arg1[%c0_75, %c1_76, %c0_77, %c1536_78] : memref<1x4x75x2304xbf16, #tpu.memory_space<vmem>>, vector<1x1x75x768xbf16>
    %107 = vector.shape_cast %106 : vector<1x1x75x768xbf16> to vector<75x768xbf16>
    %c0_79 = arith.constant 0 : index
    %c0_80 = arith.constant 0 : index
    %108 = vector.load %arg2[%c0_79, %c0_80] : memref<16x75xbf16, #tpu.memory_space<vmem>>, vector<16x75xbf16>
    %cst_81 = arith.constant dense<0.000000e+00> : vector<16x768xf32>
    %109 = tpu.matmul %108, %107, %cst_81 {dimension_numbers = #tpu.dot_dimension_numbers<[1], [0], [0], [1], [0, 0, 1, 1], [], []>} : vector<16x75xbf16>, vector<75x768xbf16>, vector<16x768xf32> -> vector<16x768xf32>
    %110 = vector.broadcast %0 : vector<16x1xf32> to vector<16x768xf32>
    %111 = arith.mulf %109, %110 : vector<16x768xf32>
    %112 = vector.broadcast %1 : vector<16x1xf32> to vector<16x768xf32>
    %113 = arith.addf %111, %112 : vector<16x768xf32>
    %cst_82 = arith.constant 0.000000e+00 : f32
    %114 = vector.broadcast %cst_82 : f32 to vector<16x768xf32>
    %115 = arith.maximumf %113, %114 : vector<16x768xf32>
    %116 = arith.maximumf %105, %115 : vector<16x768xf32>
    %c0_83 = arith.constant 0 : index
    %c2_84 = arith.constant 2 : index
    %c0_85 = arith.constant 0 : index
    %c1536_86 = arith.constant 1536 : index
    %117 = vector.load %arg1[%c0_83, %c2_84, %c0_85, %c1536_86] : memref<1x4x75x2304xbf16, #tpu.memory_space<vmem>>, vector<1x1x75x768xbf16>
    %118 = vector.shape_cast %117 : vector<1x1x75x768xbf16> to vector<75x768xbf16>
    %c0_87 = arith.constant 0 : index
    %c0_88 = arith.constant 0 : index
    %119 = vector.load %arg2[%c0_87, %c0_88] : memref<16x75xbf16, #tpu.memory_space<vmem>>, vector<16x75xbf16>
    %cst_89 = arith.constant dense<0.000000e+00> : vector<16x768xf32>
    %120 = tpu.matmul %119, %118, %cst_89 {dimension_numbers = #tpu.dot_dimension_numbers<[1], [0], [0], [1], [0, 0, 1, 1], [], []>} : vector<16x75xbf16>, vector<75x768xbf16>, vector<16x768xf32> -> vector<16x768xf32>
    %121 = vector.broadcast %0 : vector<16x1xf32> to vector<16x768xf32>
    %122 = arith.mulf %120, %121 : vector<16x768xf32>
    %123 = vector.broadcast %1 : vector<16x1xf32> to vector<16x768xf32>
    %124 = arith.addf %122, %123 : vector<16x768xf32>
    %cst_90 = arith.constant 0.000000e+00 : f32
    %125 = vector.broadcast %cst_90 : f32 to vector<16x768xf32>
    %126 = arith.maximumf %124, %125 : vector<16x768xf32>
    %127 = arith.maximumf %116, %126 : vector<16x768xf32>
    %c0_91 = arith.constant 0 : index
    %c3_92 = arith.constant 3 : index
    %c0_93 = arith.constant 0 : index
    %c1536_94 = arith.constant 1536 : index
    %128 = vector.load %arg1[%c0_91, %c3_92, %c0_93, %c1536_94] : memref<1x4x75x2304xbf16, #tpu.memory_space<vmem>>, vector<1x1x75x768xbf16>
    %129 = vector.shape_cast %128 : vector<1x1x75x768xbf16> to vector<75x768xbf16>
    %c0_95 = arith.constant 0 : index
    %c0_96 = arith.constant 0 : index
    %130 = vector.load %arg2[%c0_95, %c0_96] : memref<16x75xbf16, #tpu.memory_space<vmem>>, vector<16x75xbf16>
    %cst_97 = arith.constant dense<0.000000e+00> : vector<16x768xf32>
    %131 = tpu.matmul %130, %129, %cst_97 {dimension_numbers = #tpu.dot_dimension_numbers<[1], [0], [0], [1], [0, 0, 1, 1], [], []>} : vector<16x75xbf16>, vector<75x768xbf16>, vector<16x768xf32> -> vector<16x768xf32>
    %132 = vector.broadcast %0 : vector<16x1xf32> to vector<16x768xf32>
    %133 = arith.mulf %131, %132 : vector<16x768xf32>
    %134 = vector.broadcast %1 : vector<16x1xf32> to vector<16x768xf32>
    %135 = arith.addf %133, %134 : vector<16x768xf32>
    %cst_98 = arith.constant 0.000000e+00 : f32
    %136 = vector.broadcast %cst_98 : f32 to vector<16x768xf32>
    %137 = arith.maximumf %135, %136 : vector<16x768xf32>
    %138 = arith.maximumf %127, %137 : vector<16x768xf32>
    %139 = arith.truncf %138 : vector<16x768xf32> to vector<16x768xbf16>
    %c0_99 = arith.constant 0 : index
    %c0_100 = arith.constant 0 : index
    %c1536_101 = arith.constant 1536 : index
    %140 = vector.load %arg5[%c0_99, %c0_100, %c1536_101] : memref<1x16x2304xbf16, #tpu.memory_space<vmem>>, vector<1x16x768xbf16>
    %141 = vector.shape_cast %140 : vector<1x16x768xbf16> to vector<16x768xbf16>
    %142 = vector.shape_cast %139 : vector<16x768xbf16> to vector<1x16x768xbf16>
    tpu.vector_store %arg5[%c0_99, %c0_100, %c1536_101], %142 {strides = array<i32>} : memref<1x16x2304xbf16, #tpu.memory_space<vmem>>, vector<1x16x768xbf16>,
    return
  }
  func.func @transform_0(%arg0: i32) -> (i32, i32, i32, i32) {
    %c0_i32 = arith.constant 0 : i32
    %c0_i32_0 = arith.constant 0 : i32
    %c0_i32_1 = arith.constant 0 : i32
    %c0_i32_2 = arith.constant 0 : i32
    return %arg0, %c0_i32, %c0_i32_0, %c0_i32_1 : i32, i32, i32, i32
  }
  func.func @transform_1(%arg0: i32) -> (i32, i32) {
    %c0_i32 = arith.constant 0 : i32
    %c0_i32_0 = arith.constant 0 : i32
    %c0_i32_1 = arith.constant 0 : i32
    return %c0_i32, %c0_i32_0 : i32, i32
  }
  func.func @transform_2(%arg0: i32) -> (i32, i32) {
    %c0_i32 = arith.constant 0 : i32
    %c0_i32_0 = arith.constant 0 : i32
    %c0_i32_1 = arith.constant 0 : i32
    return %c0_i32, %c0_i32_0 : i32, i32
  }
  func.func @transform_3(%arg0: i32) -> (i32, i32) {
    %c0_i32 = arith.constant 0 : i32
    %c0_i32_0 = arith.constant 0 : i32
    %c0_i32_1 = arith.constant 0 : i32
    return %c0_i32, %c0_i32_0 : i32, i32
  }
  func.func @transform_4(%arg0: i32) -> (i32, i32, i32) {
    %c0_i32 = arith.constant 0 : i32
    %c0_i32_0 = arith.constant 0 : i32
    %c0_i32_1 = arith.constant 0 : i32
    return %arg0, %c0_i32, %c0_i32_0 : i32, i32, i32
  }
}

module attributes {stable_mosaic.version = 11 : i64} {
  func.func @_conv_bn_relu_pool_kernel(%arg0: i32, %arg1: memref<1x4x400x484xbf16, #tpu.memory_space<vmem>>, %arg2: memref<32x400xbf16, #tpu.memory_space<vmem>>, %arg3: memref<32x1xf32, #tpu.memory_space<vmem>>, %arg4: memref<32x1xf32, #tpu.memory_space<vmem>>, %arg5: memref<1x32x484xbf16, #tpu.memory_space<vmem>>) attributes {dimension_semantics = [#tpu.dimension_semantics<parallel>], iteration_bounds = array<i64: 2>, scalar_prefetch = 0 : i64, scratch_operands = 0 : i64, tpu.core_type = #tpu.core_type<tc>, window_params = [{transform_indices = @transform_0, window_bounds = array<i64: 1, 4, 400, 484>}, {pipeline_mode = #tpu.pipeline_mode<synchronous>, transform_indices = @transform_1, window_bounds = array<i64: 32, 400>}, {pipeline_mode = #tpu.pipeline_mode<synchronous>, transform_indices = @transform_2, window_bounds = array<i64: 32, 1>}, {pipeline_mode = #tpu.pipeline_mode<synchronous>, transform_indices = @transform_3, window_bounds = array<i64: 32, 1>}, {transform_indices = @transform_4, window_bounds = array<i64: 1, 32, 484>}]} {
    %c0 = arith.constant 0 : index
    %c0_0 = arith.constant 0 : index
    %0 = vector.load %arg3[%c0, %c0_0] : memref<32x1xf32, #tpu.memory_space<vmem>>, vector<32x1xf32>
    %c0_1 = arith.constant 0 : index
    %c0_2 = arith.constant 0 : index
    %1 = vector.load %arg4[%c0_1, %c0_2] : memref<32x1xf32, #tpu.memory_space<vmem>>, vector<32x1xf32>
    %c0_3 = arith.constant 0 : index
    %c0_4 = arith.constant 0 : index
    %c0_5 = arith.constant 0 : index
    %c0_6 = arith.constant 0 : index
    %2 = vector.load %arg1[%c0_3, %c0_4, %c0_5, %c0_6] : memref<1x4x400x484xbf16, #tpu.memory_space<vmem>>, vector<1x1x400x484xbf16>
    %3 = vector.shape_cast %2 : vector<1x1x400x484xbf16> to vector<400x484xbf16>
    %c0_7 = arith.constant 0 : index
    %c0_8 = arith.constant 0 : index
    %4 = vector.load %arg2[%c0_7, %c0_8] : memref<32x400xbf16, #tpu.memory_space<vmem>>, vector<32x400xbf16>
    %cst = arith.constant dense<0.000000e+00> : vector<32x484xf32>
    %5 = tpu.matmul %4, %3, %cst {dimension_numbers = #tpu.dot_dimension_numbers<[1], [0], [0], [1], [0, 0, 1, 1], [], []>} : vector<32x400xbf16>, vector<400x484xbf16>, vector<32x484xf32> -> vector<32x484xf32>
    %6 = vector.broadcast %0 : vector<32x1xf32> to vector<32x484xf32>
    %7 = arith.mulf %5, %6 : vector<32x484xf32>
    %8 = vector.broadcast %1 : vector<32x1xf32> to vector<32x484xf32>
    %9 = arith.addf %7, %8 : vector<32x484xf32>
    %cst_9 = arith.constant 0.000000e+00 : f32
    %10 = vector.broadcast %cst_9 : f32 to vector<32x484xf32>
    %11 = arith.maximumf %9, %10 : vector<32x484xf32>
    %c0_10 = arith.constant 0 : index
    %c1 = arith.constant 1 : index
    %c0_11 = arith.constant 0 : index
    %c0_12 = arith.constant 0 : index
    %12 = vector.load %arg1[%c0_10, %c1, %c0_11, %c0_12] : memref<1x4x400x484xbf16, #tpu.memory_space<vmem>>, vector<1x1x400x484xbf16>
    %13 = vector.shape_cast %12 : vector<1x1x400x484xbf16> to vector<400x484xbf16>
    %c0_13 = arith.constant 0 : index
    %c0_14 = arith.constant 0 : index
    %14 = vector.load %arg2[%c0_13, %c0_14] : memref<32x400xbf16, #tpu.memory_space<vmem>>, vector<32x400xbf16>
    %cst_15 = arith.constant dense<0.000000e+00> : vector<32x484xf32>
    %15 = tpu.matmul %14, %13, %cst_15 {dimension_numbers = #tpu.dot_dimension_numbers<[1], [0], [0], [1], [0, 0, 1, 1], [], []>} : vector<32x400xbf16>, vector<400x484xbf16>, vector<32x484xf32> -> vector<32x484xf32>
    %16 = vector.broadcast %0 : vector<32x1xf32> to vector<32x484xf32>
    %17 = arith.mulf %15, %16 : vector<32x484xf32>
    %18 = vector.broadcast %1 : vector<32x1xf32> to vector<32x484xf32>
    %19 = arith.addf %17, %18 : vector<32x484xf32>
    %cst_16 = arith.constant 0.000000e+00 : f32
    %20 = vector.broadcast %cst_16 : f32 to vector<32x484xf32>
    %21 = arith.maximumf %19, %20 : vector<32x484xf32>
    %22 = arith.maximumf %11, %21 : vector<32x484xf32>
    %c0_17 = arith.constant 0 : index
    %c2 = arith.constant 2 : index
    %c0_18 = arith.constant 0 : index
    %c0_19 = arith.constant 0 : index
    %23 = vector.load %arg1[%c0_17, %c2, %c0_18, %c0_19] : memref<1x4x400x484xbf16, #tpu.memory_space<vmem>>, vector<1x1x400x484xbf16>
    %24 = vector.shape_cast %23 : vector<1x1x400x484xbf16> to vector<400x484xbf16>
    %c0_20 = arith.constant 0 : index
    %c0_21 = arith.constant 0 : index
    %25 = vector.load %arg2[%c0_20, %c0_21] : memref<32x400xbf16, #tpu.memory_space<vmem>>, vector<32x400xbf16>
    %cst_22 = arith.constant dense<0.000000e+00> : vector<32x484xf32>
    %26 = tpu.matmul %25, %24, %cst_22 {dimension_numbers = #tpu.dot_dimension_numbers<[1], [0], [0], [1], [0, 0, 1, 1], [], []>} : vector<32x400xbf16>, vector<400x484xbf16>, vector<32x484xf32> -> vector<32x484xf32>
    %27 = vector.broadcast %0 : vector<32x1xf32> to vector<32x484xf32>
    %28 = arith.mulf %26, %27 : vector<32x484xf32>
    %29 = vector.broadcast %1 : vector<32x1xf32> to vector<32x484xf32>
    %30 = arith.addf %28, %29 : vector<32x484xf32>
    %cst_23 = arith.constant 0.000000e+00 : f32
    %31 = vector.broadcast %cst_23 : f32 to vector<32x484xf32>
    %32 = arith.maximumf %30, %31 : vector<32x484xf32>
    %33 = arith.maximumf %22, %32 : vector<32x484xf32>
    %c0_24 = arith.constant 0 : index
    %c3 = arith.constant 3 : index
    %c0_25 = arith.constant 0 : index
    %c0_26 = arith.constant 0 : index
    %34 = vector.load %arg1[%c0_24, %c3, %c0_25, %c0_26] : memref<1x4x400x484xbf16, #tpu.memory_space<vmem>>, vector<1x1x400x484xbf16>
    %35 = vector.shape_cast %34 : vector<1x1x400x484xbf16> to vector<400x484xbf16>
    %c0_27 = arith.constant 0 : index
    %c0_28 = arith.constant 0 : index
    %36 = vector.load %arg2[%c0_27, %c0_28] : memref<32x400xbf16, #tpu.memory_space<vmem>>, vector<32x400xbf16>
    %cst_29 = arith.constant dense<0.000000e+00> : vector<32x484xf32>
    %37 = tpu.matmul %36, %35, %cst_29 {dimension_numbers = #tpu.dot_dimension_numbers<[1], [0], [0], [1], [0, 0, 1, 1], [], []>} : vector<32x400xbf16>, vector<400x484xbf16>, vector<32x484xf32> -> vector<32x484xf32>
    %38 = vector.broadcast %0 : vector<32x1xf32> to vector<32x484xf32>
    %39 = arith.mulf %37, %38 : vector<32x484xf32>
    %40 = vector.broadcast %1 : vector<32x1xf32> to vector<32x484xf32>
    %41 = arith.addf %39, %40 : vector<32x484xf32>
    %cst_30 = arith.constant 0.000000e+00 : f32
    %42 = vector.broadcast %cst_30 : f32 to vector<32x484xf32>
    %43 = arith.maximumf %41, %42 : vector<32x484xf32>
    %44 = arith.maximumf %33, %43 : vector<32x484xf32>
    %45 = arith.truncf %44 : vector<32x484xf32> to vector<32x484xbf16>
    %c0_31 = arith.constant 0 : index
    %c0_32 = arith.constant 0 : index
    %c0_33 = arith.constant 0 : index
    %46 = vector.load %arg5[%c0_31, %c0_32, %c0_33] : memref<1x32x484xbf16, #tpu.memory_space<vmem>>, vector<1x32x484xbf16>
    %47 = vector.shape_cast %46 : vector<1x32x484xbf16> to vector<32x484xbf16>
    %48 = vector.shape_cast %45 : vector<32x484xbf16> to vector<1x32x484xbf16>
    tpu.vector_store %arg5[%c0_31, %c0_32, %c0_33], %48 {strides = array<i32>} : memref<1x32x484xbf16, #tpu.memory_space<vmem>>, vector<1x32x484xbf16>,
    return
  }
  func.func @transform_0(%arg0: i32) -> (i32, i32, i32, i32) {
    %c0_i32 = arith.constant 0 : i32
    %c0_i32_0 = arith.constant 0 : i32
    %c0_i32_1 = arith.constant 0 : i32
    %c0_i32_2 = arith.constant 0 : i32
    return %arg0, %c0_i32, %c0_i32_0, %c0_i32_1 : i32, i32, i32, i32
  }
  func.func @transform_1(%arg0: i32) -> (i32, i32) {
    %c0_i32 = arith.constant 0 : i32
    %c0_i32_0 = arith.constant 0 : i32
    %c0_i32_1 = arith.constant 0 : i32
    return %c0_i32, %c0_i32_0 : i32, i32
  }
  func.func @transform_2(%arg0: i32) -> (i32, i32) {
    %c0_i32 = arith.constant 0 : i32
    %c0_i32_0 = arith.constant 0 : i32
    %c0_i32_1 = arith.constant 0 : i32
    return %c0_i32, %c0_i32_0 : i32, i32
  }
  func.func @transform_3(%arg0: i32) -> (i32, i32) {
    %c0_i32 = arith.constant 0 : i32
    %c0_i32_0 = arith.constant 0 : i32
    %c0_i32_1 = arith.constant 0 : i32
    return %c0_i32, %c0_i32_0 : i32, i32
  }
  func.func @transform_4(%arg0: i32) -> (i32, i32, i32) {
    %c0_i32 = arith.constant 0 : i32
    %c0_i32_0 = arith.constant 0 : i32
    %c0_i32_1 = arith.constant 0 : i32
    return %arg0, %c0_i32, %c0_i32_0 : i32, i32, i32
  }
}

module attributes {stable_mosaic.version = 11 : i64} {
  func.func @_conv_bn_relu_pool_kernel(%arg0: i32, %arg1: memref<1x4x800x81xbf16, #tpu.memory_space<vmem>>, %arg2: memref<64x800xbf16, #tpu.memory_space<vmem>>, %arg3: memref<64x1xf32, #tpu.memory_space<vmem>>, %arg4: memref<64x1xf32, #tpu.memory_space<vmem>>, %arg5: memref<1x64x81xbf16, #tpu.memory_space<vmem>>) attributes {dimension_semantics = [#tpu.dimension_semantics<parallel>], iteration_bounds = array<i64: 2>, scalar_prefetch = 0 : i64, scratch_operands = 0 : i64, tpu.core_type = #tpu.core_type<tc>, window_params = [{transform_indices = @transform_0, window_bounds = array<i64: 1, 4, 800, 81>}, {pipeline_mode = #tpu.pipeline_mode<synchronous>, transform_indices = @transform_1, window_bounds = array<i64: 64, 800>}, {pipeline_mode = #tpu.pipeline_mode<synchronous>, transform_indices = @transform_2, window_bounds = array<i64: 64, 1>}, {pipeline_mode = #tpu.pipeline_mode<synchronous>, transform_indices = @transform_3, window_bounds = array<i64: 64, 1>}, {transform_indices = @transform_4, window_bounds = array<i64: 1, 64, 81>}]} {
    %c0 = arith.constant 0 : index
    %c0_0 = arith.constant 0 : index
    %0 = vector.load %arg3[%c0, %c0_0] : memref<64x1xf32, #tpu.memory_space<vmem>>, vector<64x1xf32>
    %c0_1 = arith.constant 0 : index
    %c0_2 = arith.constant 0 : index
    %1 = vector.load %arg4[%c0_1, %c0_2] : memref<64x1xf32, #tpu.memory_space<vmem>>, vector<64x1xf32>
    %c0_3 = arith.constant 0 : index
    %c0_4 = arith.constant 0 : index
    %c0_5 = arith.constant 0 : index
    %c0_6 = arith.constant 0 : index
    %2 = vector.load %arg1[%c0_3, %c0_4, %c0_5, %c0_6] : memref<1x4x800x81xbf16, #tpu.memory_space<vmem>>, vector<1x1x800x81xbf16>
    %3 = vector.shape_cast %2 : vector<1x1x800x81xbf16> to vector<800x81xbf16>
    %c0_7 = arith.constant 0 : index
    %c0_8 = arith.constant 0 : index
    %4 = vector.load %arg2[%c0_7, %c0_8] : memref<64x800xbf16, #tpu.memory_space<vmem>>, vector<64x800xbf16>
    %cst = arith.constant dense<0.000000e+00> : vector<64x81xf32>
    %5 = tpu.matmul %4, %3, %cst {dimension_numbers = #tpu.dot_dimension_numbers<[1], [0], [0], [1], [0, 0, 1, 1], [], []>} : vector<64x800xbf16>, vector<800x81xbf16>, vector<64x81xf32> -> vector<64x81xf32>
    %6 = vector.broadcast %0 : vector<64x1xf32> to vector<64x81xf32>
    %7 = arith.mulf %5, %6 : vector<64x81xf32>
    %8 = vector.broadcast %1 : vector<64x1xf32> to vector<64x81xf32>
    %9 = arith.addf %7, %8 : vector<64x81xf32>
    %cst_9 = arith.constant 0.000000e+00 : f32
    %10 = vector.broadcast %cst_9 : f32 to vector<64x81xf32>
    %11 = arith.maximumf %9, %10 : vector<64x81xf32>
    %c0_10 = arith.constant 0 : index
    %c1 = arith.constant 1 : index
    %c0_11 = arith.constant 0 : index
    %c0_12 = arith.constant 0 : index
    %12 = vector.load %arg1[%c0_10, %c1, %c0_11, %c0_12] : memref<1x4x800x81xbf16, #tpu.memory_space<vmem>>, vector<1x1x800x81xbf16>
    %13 = vector.shape_cast %12 : vector<1x1x800x81xbf16> to vector<800x81xbf16>
    %c0_13 = arith.constant 0 : index
    %c0_14 = arith.constant 0 : index
    %14 = vector.load %arg2[%c0_13, %c0_14] : memref<64x800xbf16, #tpu.memory_space<vmem>>, vector<64x800xbf16>
    %cst_15 = arith.constant dense<0.000000e+00> : vector<64x81xf32>
    %15 = tpu.matmul %14, %13, %cst_15 {dimension_numbers = #tpu.dot_dimension_numbers<[1], [0], [0], [1], [0, 0, 1, 1], [], []>} : vector<64x800xbf16>, vector<800x81xbf16>, vector<64x81xf32> -> vector<64x81xf32>
    %16 = vector.broadcast %0 : vector<64x1xf32> to vector<64x81xf32>
    %17 = arith.mulf %15, %16 : vector<64x81xf32>
    %18 = vector.broadcast %1 : vector<64x1xf32> to vector<64x81xf32>
    %19 = arith.addf %17, %18 : vector<64x81xf32>
    %cst_16 = arith.constant 0.000000e+00 : f32
    %20 = vector.broadcast %cst_16 : f32 to vector<64x81xf32>
    %21 = arith.maximumf %19, %20 : vector<64x81xf32>
    %22 = arith.maximumf %11, %21 : vector<64x81xf32>
    %c0_17 = arith.constant 0 : index
    %c2 = arith.constant 2 : index
    %c0_18 = arith.constant 0 : index
    %c0_19 = arith.constant 0 : index
    %23 = vector.load %arg1[%c0_17, %c2, %c0_18, %c0_19] : memref<1x4x800x81xbf16, #tpu.memory_space<vmem>>, vector<1x1x800x81xbf16>
    %24 = vector.shape_cast %23 : vector<1x1x800x81xbf16> to vector<800x81xbf16>
    %c0_20 = arith.constant 0 : index
    %c0_21 = arith.constant 0 : index
    %25 = vector.load %arg2[%c0_20, %c0_21] : memref<64x800xbf16, #tpu.memory_space<vmem>>, vector<64x800xbf16>
    %cst_22 = arith.constant dense<0.000000e+00> : vector<64x81xf32>
    %26 = tpu.matmul %25, %24, %cst_22 {dimension_numbers = #tpu.dot_dimension_numbers<[1], [0], [0], [1], [0, 0, 1, 1], [], []>} : vector<64x800xbf16>, vector<800x81xbf16>, vector<64x81xf32> -> vector<64x81xf32>
    %27 = vector.broadcast %0 : vector<64x1xf32> to vector<64x81xf32>
    %28 = arith.mulf %26, %27 : vector<64x81xf32>
    %29 = vector.broadcast %1 : vector<64x1xf32> to vector<64x81xf32>
    %30 = arith.addf %28, %29 : vector<64x81xf32>
    %cst_23 = arith.constant 0.000000e+00 : f32
    %31 = vector.broadcast %cst_23 : f32 to vector<64x81xf32>
    %32 = arith.maximumf %30, %31 : vector<64x81xf32>
    %33 = arith.maximumf %22, %32 : vector<64x81xf32>
    %c0_24 = arith.constant 0 : index
    %c3 = arith.constant 3 : index
    %c0_25 = arith.constant 0 : index
    %c0_26 = arith.constant 0 : index
    %34 = vector.load %arg1[%c0_24, %c3, %c0_25, %c0_26] : memref<1x4x800x81xbf16, #tpu.memory_space<vmem>>, vector<1x1x800x81xbf16>
    %35 = vector.shape_cast %34 : vector<1x1x800x81xbf16> to vector<800x81xbf16>
    %c0_27 = arith.constant 0 : index
    %c0_28 = arith.constant 0 : index
    %36 = vector.load %arg2[%c0_27, %c0_28] : memref<64x800xbf16, #tpu.memory_space<vmem>>, vector<64x800xbf16>
    %cst_29 = arith.constant dense<0.000000e+00> : vector<64x81xf32>
    %37 = tpu.matmul %36, %35, %cst_29 {dimension_numbers = #tpu.dot_dimension_numbers<[1], [0], [0], [1], [0, 0, 1, 1], [], []>} : vector<64x800xbf16>, vector<800x81xbf16>, vector<64x81xf32> -> vector<64x81xf32>
    %38 = vector.broadcast %0 : vector<64x1xf32> to vector<64x81xf32>
    %39 = arith.mulf %37, %38 : vector<64x81xf32>
    %40 = vector.broadcast %1 : vector<64x1xf32> to vector<64x81xf32>
    %41 = arith.addf %39, %40 : vector<64x81xf32>
    %cst_30 = arith.constant 0.000000e+00 : f32
    %42 = vector.broadcast %cst_30 : f32 to vector<64x81xf32>
    %43 = arith.maximumf %41, %42 : vector<64x81xf32>
    %44 = arith.maximumf %33, %43 : vector<64x81xf32>
    %45 = arith.truncf %44 : vector<64x81xf32> to vector<64x81xbf16>
    %c0_31 = arith.constant 0 : index
    %c0_32 = arith.constant 0 : index
    %c0_33 = arith.constant 0 : index
    %46 = vector.load %arg5[%c0_31, %c0_32, %c0_33] : memref<1x64x81xbf16, #tpu.memory_space<vmem>>, vector<1x64x81xbf16>
    %47 = vector.shape_cast %46 : vector<1x64x81xbf16> to vector<64x81xbf16>
    %48 = vector.shape_cast %45 : vector<64x81xbf16> to vector<1x64x81xbf16>
    tpu.vector_store %arg5[%c0_31, %c0_32, %c0_33], %48 {strides = array<i32>} : memref<1x64x81xbf16, #tpu.memory_space<vmem>>, vector<1x64x81xbf16>,
    return
  }
  func.func @transform_0(%arg0: i32) -> (i32, i32, i32, i32) {
    %c0_i32 = arith.constant 0 : i32
    %c0_i32_0 = arith.constant 0 : i32
    %c0_i32_1 = arith.constant 0 : i32
    %c0_i32_2 = arith.constant 0 : i32
    return %arg0, %c0_i32, %c0_i32_0, %c0_i32_1 : i32, i32, i32, i32
  }
  func.func @transform_1(%arg0: i32) -> (i32, i32) {
    %c0_i32 = arith.constant 0 : i32
    %c0_i32_0 = arith.constant 0 : i32
    %c0_i32_1 = arith.constant 0 : i32
    return %c0_i32, %c0_i32_0 : i32, i32
  }
  func.func @transform_2(%arg0: i32) -> (i32, i32) {
    %c0_i32 = arith.constant 0 : i32
    %c0_i32_0 = arith.constant 0 : i32
    %c0_i32_1 = arith.constant 0 : i32
    return %c0_i32, %c0_i32_0 : i32, i32
  }
  func.func @transform_3(%arg0: i32) -> (i32, i32) {
    %c0_i32 = arith.constant 0 : i32
    %c0_i32_0 = arith.constant 0 : i32
    %c0_i32_1 = arith.constant 0 : i32
    return %c0_i32, %c0_i32_0 : i32, i32
  }
  func.func @transform_4(%arg0: i32) -> (i32, i32, i32) {
    %c0_i32 = arith.constant 0 : i32
    %c0_i32_0 = arith.constant 0 : i32
    %c0_i32_1 = arith.constant 0 : i32
    return %arg0, %c0_i32, %c0_i32_0 : i32, i32, i32
  }
}

module attributes {stable_mosaic.version = 11 : i64} {
  func.func @_fc_block_kernel(%arg0: i32, %arg1: memref<2x5184xbf16, #tpu.memory_space<vmem>>, %arg2: memref<5184x128xbf16, #tpu.memory_space<vmem>>, %arg3: memref<1x128xf32, #tpu.memory_space<vmem>>, %arg4: memref<1x128xf32, #tpu.memory_space<vmem>>, %arg5: memref<128x128xbf16, #tpu.memory_space<vmem>>, %arg6: memref<1x128xf32, #tpu.memory_space<vmem>>, %arg7: memref<2x128xf32, #tpu.memory_space<vmem>>) attributes {dimension_semantics = [#tpu.dimension_semantics<arbitrary>], iteration_bounds = array<i64: 1>, scalar_prefetch = 0 : i64, scratch_operands = 0 : i64, tpu.core_type = #tpu.core_type<tc>, window_params = [{pipeline_mode = #tpu.pipeline_mode<synchronous>, transform_indices = @transform_0, window_bounds = array<i64: 2, 5184>}, {pipeline_mode = #tpu.pipeline_mode<synchronous>, transform_indices = @transform_1, window_bounds = array<i64: 5184, 128>}, {pipeline_mode = #tpu.pipeline_mode<synchronous>, transform_indices = @transform_2, window_bounds = array<i64: 1, 128>}, {pipeline_mode = #tpu.pipeline_mode<synchronous>, transform_indices = @transform_3, window_bounds = array<i64: 1, 128>}, {pipeline_mode = #tpu.pipeline_mode<synchronous>, transform_indices = @transform_4, window_bounds = array<i64: 128, 128>}, {pipeline_mode = #tpu.pipeline_mode<synchronous>, transform_indices = @transform_5, window_bounds = array<i64: 1, 128>}, {pipeline_mode = #tpu.pipeline_mode<synchronous>, transform_indices = @transform_6, window_bounds = array<i64: 2, 128>}]} {
    %c0 = arith.constant 0 : index
    %c0_0 = arith.constant 0 : index
    %0 = vector.load %arg1[%c0, %c0_0] : memref<2x5184xbf16, #tpu.memory_space<vmem>>, vector<2x5184xbf16>
    %c0_1 = arith.constant 0 : index
    %c0_2 = arith.constant 0 : index
    %1 = vector.load %arg2[%c0_1, %c0_2] : memref<5184x128xbf16, #tpu.memory_space<vmem>>, vector<5184x128xbf16>
    %cst = arith.constant dense<0.000000e+00> : vector<2x128xf32>
    %2 = tpu.matmul %0, %1, %cst {dimension_numbers = #tpu.dot_dimension_numbers<[1], [0], [0], [1], [0, 0, 1, 1], [], []>} : vector<2x5184xbf16>, vector<5184x128xbf16>, vector<2x128xf32> -> vector<2x128xf32>
    %c0_3 = arith.constant 0 : index
    %c0_4 = arith.constant 0 : index
    %3 = vector.load %arg3[%c0_3, %c0_4] : memref<1x128xf32, #tpu.memory_space<vmem>>, vector<1x128xf32>
    %4 = vector.broadcast %3 : vector<1x128xf32> to vector<2x128xf32>
    %5 = arith.mulf %2, %4 : vector<2x128xf32>
    %c0_5 = arith.constant 0 : index
    %c0_6 = arith.constant 0 : index
    %6 = vector.load %arg4[%c0_5, %c0_6] : memref<1x128xf32, #tpu.memory_space<vmem>>, vector<1x128xf32>
    %7 = vector.broadcast %6 : vector<1x128xf32> to vector<2x128xf32>
    %8 = arith.addf %5, %7 : vector<2x128xf32>
    %cst_7 = arith.constant 0.000000e+00 : f32
    %9 = vector.broadcast %cst_7 : f32 to vector<2x128xf32>
    %10 = arith.maximumf %8, %9 : vector<2x128xf32>
    %11 = arith.truncf %10 : vector<2x128xf32> to vector<2x128xbf16>
    %c0_8 = arith.constant 0 : index
    %c0_9 = arith.constant 0 : index
    %12 = vector.load %arg5[%c0_8, %c0_9] : memref<128x128xbf16, #tpu.memory_space<vmem>>, vector<128x128xbf16>
    %cst_10 = arith.constant dense<0.000000e+00> : vector<2x128xf32>
    %13 = tpu.matmul %11, %12, %cst_10 {dimension_numbers = #tpu.dot_dimension_numbers<[1], [0], [0], [1], [0, 0, 1, 1], [], []>} : vector<2x128xbf16>, vector<128x128xbf16>, vector<2x128xf32> -> vector<2x128xf32>
    %c0_11 = arith.constant 0 : index
    %c0_12 = arith.constant 0 : index
    %14 = vector.load %arg6[%c0_11, %c0_12] : memref<1x128xf32, #tpu.memory_space<vmem>>, vector<1x128xf32>
    %15 = vector.broadcast %14 : vector<1x128xf32> to vector<2x128xf32>
    %16 = arith.addf %13, %15 : vector<2x128xf32>
    %c0_13 = arith.constant 0 : index
    %c0_14 = arith.constant 0 : index
    %17 = vector.load %arg7[%c0_13, %c0_14] : memref<2x128xf32, #tpu.memory_space<vmem>>, vector<2x128xf32>
    tpu.vector_store %arg7[%c0_13, %c0_14], %16 {strides = array<i32>} : memref<2x128xf32, #tpu.memory_space<vmem>>, vector<2x128xf32>,
    return
  }
  func.func @transform_0(%arg0: i32) -> (i32, i32) {
    %c0_i32 = arith.constant 0 : i32
    %c0_i32_0 = arith.constant 0 : i32
    %c0_i32_1 = arith.constant 0 : i32
    return %c0_i32, %c0_i32_0 : i32, i32
  }
  func.func @transform_1(%arg0: i32) -> (i32, i32) {
    %c0_i32 = arith.constant 0 : i32
    %c0_i32_0 = arith.constant 0 : i32
    %c0_i32_1 = arith.constant 0 : i32
    return %c0_i32, %c0_i32_0 : i32, i32
  }
  func.func @transform_2(%arg0: i32) -> (i32, i32) {
    %c0_i32 = arith.constant 0 : i32
    %c0_i32_0 = arith.constant 0 : i32
    %c0_i32_1 = arith.constant 0 : i32
    return %c0_i32, %c0_i32_0 : i32, i32
  }
  func.func @transform_3(%arg0: i32) -> (i32, i32) {
    %c0_i32 = arith.constant 0 : i32
    %c0_i32_0 = arith.constant 0 : i32
    %c0_i32_1 = arith.constant 0 : i32
    return %c0_i32, %c0_i32_0 : i32, i32
  }
  func.func @transform_4(%arg0: i32) -> (i32, i32) {
    %c0_i32 = arith.constant 0 : i32
    %c0_i32_0 = arith.constant 0 : i32
    %c0_i32_1 = arith.constant 0 : i32
    return %c0_i32, %c0_i32_0 : i32, i32
  }
  func.func @transform_5(%arg0: i32) -> (i32, i32) {
    %c0_i32 = arith.constant 0 : i32
    %c0_i32_0 = arith.constant 0 : i32
    %c0_i32_1 = arith.constant 0 : i32
    return %c0_i32, %c0_i32_0 : i32, i32
  }
  func.func @transform_6(%arg0: i32) -> (i32, i32) {
    %c0_i32 = arith.constant 0 : i32
    %c0_i32_0 = arith.constant 0 : i32
    %c0_i32_1 = arith.constant 0 : i32
    return %c0_i32, %c0_i32_0 : i32, i32
  }
}

</mosaic_0001>

<bundles_post_ra>
// kernel: siamese_forward.4
= control target key start
LH: loop header
LB: loop body
LE: loop exit
PB: predicated region body
PF: predicated region fallthrough
CT: control target
= control target key end

     0   :  { %s6140_s15 = smov 0   ;;  %s7239_s0 = inlined_call_operand.vmem [shape: bf16[2,4,75,2304], index: 0, kind: input, shape index: {}]   ;;  %s7240_s1 = inlined_call_operand.vmem [shape: bf16[16,75], index: 1, kind: input, shape index: {}]   ;;  %s7241_s2 = inlined_call_operand.vmem [shape: f32[16,1], index: 2, kind: input, shape index: {}]   ;;  %s7242_s3 = inlined_call_operand.vmem [shape: f32[16,1], index: 3, kind: input, shape index: {}]   ;;  %s7243_s4 = inlined_call_operand.vmem [shape: bf16[2,16,2304], index: 4, kind: output, shape index: {}]  }
   0x1 LB: > { %s4834_s16 = sadd.s32 4294967295, %s6111_s15   ;;  %p4838_p0 = scmp.ge.s32.totalorder %s6111_s15, 1  ;;  %s6111_s15 = sphi %s6140_s15, %s14_s15  }
   0x2   : > { %p162_p1 = scmp.lt.s32.totalorder %s6111_s15, 3 }
   0x4   : > { %p163_p2 = pnand %p4838_p0, %p162_p1 }
   0x5   : > { %p188_p3 = scmp.lt.s32.totalorder (!%p163_p2), %s4834_s16, 1  ;;  %v6113_v0 = vmov (!%p163_p2), 0   ;;  %v199_v1 = vld [vmem:[%s7241_s2] sm:$0xff] (!%p163_p2)  ;;  %v200_v3 = vld [vmem:[%s7241_s2 + $0x8] sm:$0xff] (!%p163_p2)  ;;  %vm388_vm0 = vcmask (!%p163_p2), 1044480   ;;  %vm389_vm1 = vcmask (!%p163_p2), 1045504  }
   0x6   : > { %166 = sbr.rel (%p163_p2) target bundleno = 605 (0x25d), region = 36  ;;  %442 = vmatprep.mubr.bf16.mxu0 (!%p163_p2), %v6113_v0  ;;  %485 = vmatprep.mubr.bf16.mxu1 (!%p163_p2), %v6113_v0  ;;  %v201_v2 = vld [vmem:[%s7242_s3] sm:$0xff] (!%p163_p2)  ;;  %v202_v4 = vld [vmem:[%s7242_s3 + $0x8] sm:$0xff] (!%p163_p2)  ;;  %v6114_v14 = vmov (!%p163_p2), 65535   ;;  %vm384_vm2 = vcmask (!%p163_p2), 613376  }
   0x7   : > { %5560 = vset.pattern.permute.xlu0 (!%p163_p2), %v6113_v0  ;;  %5561 = vset.pattern.permute.xlu1 (!%p163_p2), %v6113_v0  ;;  %v390_v15 = vsel (!%p163_p2), %vm388_vm0, 4294967295, %v6114_v14  ;;  %v6203_v34 = vld [vmem:[%s7240_s1] sm:$0xff] (!%p163_p2)  }
   0x8   : > { %541 = vperm.xlu0 (!%p163_p2), %5560, %v199_v1   ;;  %563 = vperm.xlu1 (!%p163_p2), %5561, %v201_v2   ;;  %v6188_v23 = vsel (!%p163_p2), %vm389_vm1, %v390_v15, 0 }
   0xc   : > { %546 = vperm.xlu0 (!%p163_p2), %5560, %v200_v3   ;;  %568 = vperm.xlu1 (!%p163_p2), %5561, %v202_v4  }
   0xd   : > { %s7245_s16 = smov (!%p188_p3, %s4834_s16), 1 }
   0xe   : > { %s5548_s23 = smul.u32 2880, %s7245_s16 }
   0xf   : > { %s5549_s9 = smul.u32 144, %s7245_s16 }
  0x10   : > { %s6170_s28 = scalar_lea.vmem %s7239_s0, %s5548_s23 }
  0x11   : > { %v5562_v5 = vld [vmem:[%s6170_s28 + $0x4] ss:$72 sps:$4 sm:$0xff]   ;;  %v5566_v7 = vld [vmem:[%s6170_s28] ss:$72 sps:$4 sm:$0xff]   ;;  %v5568_v9 = vld [vmem:[%s6170_s28 + $0x94] ss:$72 sps:$4 sm:$0xff]   ;;  %s6862_s12 = scalar_lea.vmem %s7243_s4, %s5549_s9 }
  0x12   : > { %v5564_v6 = vld [vmem:[%s6170_s28 + $0xc] ss:$72 sps:$4 sm:$0xff]   ;;  %410 = vmatprep.subr.bf16.mxu0 %v5562_v5  ;;  %v5567_v8 = vld [vmem:[%s6170_s28 + $0x8] ss:$72 sps:$4 sm:$0xff]   ;;  %v5570_v10 = vld [vmem:[%s6170_s28 + $0x9c] ss:$72 sps:$4 sm:$0xff]  }
  0x13   : > { %453 = vmatprep.subr.bf16.mxu1 %v5564_v6  ;;  %411 = vmatpush1.bf16.msra.mxu0 %v5566_v7  ;;  %v5572_v11 = vld [vmem:[%s6170_s28 + $0x90] ss:$72 sps:$4 sm:$0xff]   ;;  %v5574_v13 = vld [vmem:[%s6170_s28 + $0x124] ss:$72 sps:$4 sm:$0xff]   ;;  %v5578_v17 = vld [vmem:[%s6170_s28 + $0x120] ss:$72 sps:$4 sm:$0xff]  }
  0x14   : > { %454 = vmatpush1.bf16.msra.mxu1 %v5567_v8  ;;  %412 = vmatprep.subr.bf16.mxu0 %v5568_v9  ;;  %v5573_v12 = vld [vmem:[%s6170_s28 + $0x98] ss:$72 sps:$4 sm:$0xff]   ;;  %v5576_v16 = vld [vmem:[%s6170_s28 + $0x12c] ss:$72 sps:$4 sm:$0xff]   ;;  %v5579_v18 = vld [vmem:[%s6170_s28 + $0x128] ss:$72 sps:$4 sm:$0xff]  }
  0x15   : > { %455 = vmatprep.subr.bf16.mxu1 %v5570_v10  ;;  %v5580_v19 = vld [vmem:[%s6170_s28 + $0x1b4] ss:$72 sps:$4 sm:$0xff]   ;;  %v5584_v21 = vld [vmem:[%s6170_s28 + $0x1b0] ss:$72 sps:$4 sm:$0xff]   ;;  %v5601_v37 = vld [vmem:[%s6170_s28 + $0xa4] ss:$72 sps:$4 sm:$0xff]  }
  0x16   : > { %v5582_v20 = vld [vmem:[%s6170_s28 + $0x1bc] ss:$72 sps:$4 sm:$0xff]   ;;  %v5585_v22 = vld [vmem:[%s6170_s28 + $0x1b8] ss:$72 sps:$4 sm:$0xff]   ;;  %v5631_v61 = vld [vmem:[%s6170_s28 + $0x36c] ss:$72 sps:$4 sm:$0xff]  }
  0x17   : > { %413 = vmatpush1.bf16.msra.mxu0 %v5572_v11  ;;  %v5586_v24 = vld [vmem:[%s6170_s28 + $0x244] ss:$72 sps:$4 sm:$0x3f]   ;;  %v5590_v27 = vld [vmem:[%s6170_s28 + $0x240] ss:$72 sps:$4 sm:$0x3f]  }
  0x18   : > { %456 = vmatpush1.bf16.msra.mxu1 %v5573_v12  ;;  %414 = vmatprep.subr.bf16.mxu0 %v5574_v13  ;;  %v5588_v25 = vld [vmem:[%s6170_s28 + $0x24c] ss:$72 sps:$4 sm:$0x3f]   ;;  %v396_v26 = vand.u32 %v5586_v24, %v6188_v23  ;;  %v5591_v28 = vld [vmem:[%s6170_s28 + $0x248] ss:$72 sps:$4 sm:$0x3f]   ;;  %v393_v30 = vand.u32 %v5590_v27, %v6188_v23 }
  0x19   : > { %457 = vmatprep.subr.bf16.mxu1 %v5576_v16  ;;  %v402_v29 = vand.u32 %v5588_v25, %v6188_v23  ;;  %v399_v31 = vand.u32 %v5591_v28, %v6188_v23  ;;  %v5595_v32 = vld [vmem:[%s6170_s28 + $0x14] ss:$72 sps:$4 sm:$0xff]   ;;  %v5593_v35 = vld [vmem:[%s6170_s28 + $0x10] ss:$72 sps:$4 sm:$0xff]   ;;  %v5604_v38 = vld [vmem:[%s6170_s28 + $0x364] ss:$72 sps:$4 sm:$0xff]  }
  0x1a   : > { %v5598_v33 = vld [vmem:[%s6170_s28 + $0x2d4] ss:$72 sps:$4 sm:$0xff]   ;;  %v5596_v36 = vld [vmem:[%s6170_s28 + $0x2d0] ss:$72 sps:$4 sm:$0xff]   ;;  %v5599_v39 = vld [vmem:[%s6170_s28 + $0xa0] ss:$72 sps:$4 sm:$0xff]  }
  0x1b   : > { %415 = vmatpush1.bf16.msra.mxu0 %v5578_v17  ;;  %v5602_v40 = vld [vmem:[%s6170_s28 + $0x360] ss:$72 sps:$4 sm:$0xff]   ;;  %v5607_v41 = vld [vmem:[%s6170_s28 + $0x134] ss:$72 sps:$4 sm:$0xff]   ;;  %v5605_v43 = vld [vmem:[%s6170_s28 + $0x130] ss:$72 sps:$4 sm:$0xff]  }
  0x1c   : > { %458 = vmatpush1.bf16.msra.mxu1 %v5579_v18  ;;  %416 = vmatprep.subr.bf16.mxu0 %v5580_v19  ;;  %v5610_v42 = vld [vmem:[%s6170_s28 + $0x3f4] ss:$72 sps:$4 sm:$0xff]   ;;  %v5608_v44 = vld [vmem:[%s6170_s28 + $0x3f0] ss:$72 sps:$4 sm:$0xff]   ;;  %v5613_v45 = vld [vmem:[%s6170_s28 + $0x1c4] ss:$72 sps:$4 sm:$0xff]  }
  0x1d   : > { %459 = vmatprep.subr.bf16.mxu1 %v5582_v20  ;;  %v5619_v46 = vld [vmem:[%s6170_s28 + $0x254] ss:$72 sps:$4 sm:$0x3f]   ;;  %v5616_v47 = vld [vmem:[%s6170_s28 + $0x484] ss:$72 sps:$4 sm:$0xff]  }
  0x1e   : > { %v5622_v48 = vld [vmem:[%s6170_s28 + $0x514] ss:$72 sps:$4 sm:$0x3f]   ;;  %v5611_v49 = vld [vmem:[%s6170_s28 + $0x1c0] ss:$72 sps:$4 sm:$0xff]   ;;  %v408_v53 = vand.u32 %v5619_v46, %v6188_v23 }
  0x1f   : > { %417 = vmatpush1.bf16.msra.mxu0 %v5584_v21  ;;  %v5617_v50 = vld [vmem:[%s6170_s28 + $0x250] ss:$72 sps:$4 sm:$0x3f]   ;;  %v5614_v51 = vld [vmem:[%s6170_s28 + $0x480] ss:$72 sps:$4 sm:$0xff]   ;;  %v774_v54 = vand.u32 %v5622_v48, %v6188_v23 }
  0x20   : > { %460 = vmatpush1.bf16.msra.mxu1 %v5585_v22  ;;  %418 = vmatprep.subr.bf16.mxu0 %v396_v26  ;;  %v5620_v52 = vld [vmem:[%s6170_s28 + $0x510] ss:$72 sps:$4 sm:$0x3f]   ;;  %v405_v55 = vand.u32 %v5617_v50, %v6188_v23  ;;  %v5625_v57 = vld [vmem:[%s6170_s28 + $0x2dc] ss:$72 sps:$4 sm:$0xff]  }
  0x21   : > { %461 = vmatprep.subr.bf16.mxu1 %v402_v29  ;;  %v771_v56 = vand.u32 %v5620_v52, %v6188_v23  ;;  %v5628_v58 = vld [vmem:[%s6170_s28 + $0x2e4] ss:$72 sps:$4 sm:$0xff]   ;;  %v5623_v59 = vld [vmem:[%s6170_s28 + $0x2d8] ss:$72 sps:$4 sm:$0xff]   ;;  %v5634_v62 = vld [vmem:[%s6170_s28 + $0x374] ss:$72 sps:$4 sm:$0xff]  }
  0x22   : > { %v5626_v60 = vld [vmem:[%s6170_s28 + $0x2e0] ss:$72 sps:$4 sm:$0xff]   ;;  %v5632_v1 = vld [vmem:[%s6170_s28 + $0x370] ss:$72 sps:$4 sm:$0xff]   ;;  %v5637_v2 = vld [vmem:[%s6170_s28 + $0x3fc] ss:$72 sps:$4 sm:$0xff]  }
  0x23   : > { %419 = vmatpush1.bf16.msra.mxu0 %v393_v30  ;;  %v5629_v63 = vld [vmem:[%s6170_s28 + $0x368] ss:$72 sps:$4 sm:$0xff]   ;;  %v5640_v3 = vld [vmem:[%s6170_s28 + $0x404] ss:$72 sps:$4 sm:$0xff]   ;;  %v5635_v4 = vld [vmem:[%s6170_s28 + $0x3f8] ss:$72 sps:$4 sm:$0xff]  }
  0x24   : > { %462 = vmatpush1.bf16.msra.mxu1 %v399_v31  ;;  %496 = vmatprep.subr.bf16.mxu0 %v5595_v32  ;;  %v5638_v5 = vld [vmem:[%s6170_s28 + $0x400] ss:$72 sps:$4 sm:$0xff]   ;;  %v5643_v6 = vld [vmem:[%s6170_s28 + $0x48c] ss:$72 sps:$4 sm:$0xff]   ;;  %v5644_v11 = vld [vmem:[%s6170_s28 + $0x490] ss:$72 sps:$4 sm:$0xff]  }
  0x25   : > { %788 = vmatprep.subr.bf16.mxu1 %v5598_v33  ;;  %v5646_v7 = vld [vmem:[%s6170_s28 + $0x494] ss:$72 sps:$4 sm:$0xff]   ;;  %v5652_v9 = vld [vmem:[%s6170_s28 + $0x524] ss:$72 sps:$4 sm:$0x3f]  }
  0x26   : > { %4872 = vmatmul.mubr.msk.bf16.vlgmr.msra.gmra.mrb[0].mxu0 %vm384_vm2, %v6203_v34  ;;  %v5649_v8 = vld [vmem:[%s6170_s28 + $0x51c] ss:$72 sps:$4 sm:$0x3f]   ;;  %v5641_v10 = vld [vmem:[%s6170_s28 + $0x488] ss:$72 sps:$4 sm:$0xff]   ;;  %v786_v15 = vand.u32 %v5652_v9, %v6188_v23 }
  0x27   : > { %4873 = vmatmul.mubr.msk.bf16.vlgmr.msra.gmra.mrb[0].mxu1 %vm384_vm2, %v6203_v34  ;;  %497 = vmatpush1.bf16.msra.mxu0 %v5593_v35  ;;  %v5647_v12 = vld [vmem:[%s6170_s28 + $0x518] ss:$72 sps:$4 sm:$0x3f]   ;;  %v780_v14 = vand.u32 %v5649_v8, %v6188_v23  ;;  %v5655_v18 = vld [vmem:[%s6170_s28 + $0x5a4] ss:$72 sps:$4 sm:$0xff]  }
  0x28   : > { %789 = vmatpush1.bf16.msra.mxu1 %v5596_v36  ;;  %498 = vmatprep.subr.bf16.mxu0 %v5601_v37  ;;  %v5650_v13 = vld [vmem:[%s6170_s28 + $0x520] ss:$72 sps:$4 sm:$0x3f]   ;;  %v777_v16 = vand.u32 %v5647_v12, %v6188_v23  ;;  %v5658_v19 = vld [vmem:[%s6170_s28 + $0x5ac] ss:$72 sps:$4 sm:$0xff]  }
  0x29   : > { %790 = vmatprep.subr.bf16.mxu1 %v5604_v38  ;;  %528 = vmatprep.mubr.bf16.mxu0 %v6113_v0  ;;  %v783_v17 = vand.u32 %v5650_v13, %v6188_v23  ;;  %v5653_v20 = vld [vmem:[%s6170_s28 + $0x5a0] ss:$72 sps:$4 sm:$0xff]   ;;  %v5661_v22 = vld [vmem:[%s6170_s28 + $0x634] ss:$72 sps:$4 sm:$0xff]   ;;  %v5659_v25 = vld [vmem:[%s6170_s28 + $0x630] ss:$72 sps:$4 sm:$0xff]  }
  0x2a   : > { %820 = vmatprep.mubr.bf16.mxu1 %v6113_v0  ;;  %v5656_v21 = vld [vmem:[%s6170_s28 + $0x5a8] ss:$72 sps:$4 sm:$0xff]   ;;  %v5664_v24 = vld [vmem:[%s6170_s28 + $0x63c] ss:$72 sps:$4 sm:$0xff]   ;;  %v5662_v26 = vld [vmem:[%s6170_s28 + $0x638] ss:$72 sps:$4 sm:$0xff]  }
  0x2b   : > { %499 = vmatpush1.bf16.msra.mxu0 %v5599_v39  ;;  %v5667_v27 = vld [vmem:[%s6170_s28 + $0x6c4] ss:$72 sps:$4 sm:$0xff]   ;;  %v5665_v29 = vld [vmem:[%s6170_s28 + $0x6c0] ss:$72 sps:$4 sm:$0xff]   ;;  %v5673_v31 = vld [vmem:[%s6170_s28 + $0x754] ss:$72 sps:$4 sm:$0xff]  }
  0x2c   : > { %791 = vmatpush1.bf16.msra.mxu1 %v5602_v40  ;;  %500 = vmatprep.subr.bf16.mxu0 %v5607_v41  ;;  %v5670_v28 = vld [vmem:[%s6170_s28 + $0x6cc] ss:$72 sps:$4 sm:$0xff]   ;;  %v5668_v30 = vld [vmem:[%s6170_s28 + $0x6c8] ss:$72 sps:$4 sm:$0xff]   ;;  %v5676_v33 = vld [vmem:[%s6170_s28 + $0x75c] ss:$72 sps:$4 sm:$0xff]  }
  0x2d   : > { %792 = vmatprep.subr.bf16.mxu1 %v5610_v42  ;;  %v5679_v32 = vld [vmem:[%s6170_s28 + $0x7e4] ss:$72 sps:$4 sm:$0x3f]   ;;  %v5671_v36 = vld [vmem:[%s6170_s28 + $0x750] ss:$72 sps:$4 sm:$0xff]  }
  0x2e   : > { %v5682_v35 = vld [vmem:[%s6170_s28 + $0x7ec] ss:$72 sps:$4 sm:$0x3f]   ;;  %v5674_v37 = vld [vmem:[%s6170_s28 + $0x758] ss:$72 sps:$4 sm:$0xff]   ;;  %v1144_v40 = vand.u32 %v5679_v32, %v6188_v23 }
  0x2f   : > { %501 = vmatpush1.bf16.msra.mxu0 %v5605_v43  ;;  %v5677_v38 = vld [vmem:[%s6170_s28 + $0x7e0] ss:$72 sps:$4 sm:$0x3f]   ;;  %v1150_v41 = vand.u32 %v5682_v35, %v6188_v23  ;;  %v5683_v46 = vld [vmem:[%s6170_s28 + $0x5b0] ss:$72 sps:$4 sm:$0xff]  }
  0x30   : > { %793 = vmatpush1.bf16.msra.mxu1 %v5608_v44  ;;  %502 = vmatprep.subr.bf16.mxu0 %v5613_v45  ;;  %v5680_v39 = vld [vmem:[%s6170_s28 + $0x7e8] ss:$72 sps:$4 sm:$0x3f]   ;;  %v1141_v42 = vand.u32 %v5677_v38, %v6188_v23  ;;  %v5685_v44 = vld [vmem:[%s6170_s28 + $0x5b4] ss:$72 sps:$4 sm:$0xff]  }
  0x31   : > { %794 = vmatprep.subr.bf16.mxu1 %v5616_v47  ;;  %v1147_v43 = vand.u32 %v5680_v39, %v6188_v23  ;;  %v5688_v45 = vld [vmem:[%s6170_s28 + $0x874] ss:$72 sps:$4 sm:$0xff]   ;;  %v5686_v47 = vld [vmem:[%s6170_s28 + $0x870] ss:$72 sps:$4 sm:$0xff]   ;;  %v5691_v48 = vld [vmem:[%s6170_s28 + $0x644] ss:$72 sps:$4 sm:$0xff]  }
  0x32   : > { %v5689_v50 = vld [vmem:[%s6170_s28 + $0x640] ss:$72 sps:$4 sm:$0xff]   ;;  %v5697_v52 = vld [vmem:[%s6170_s28 + $0x6d4] ss:$72 sps:$4 sm:$0xff]   ;;  %v5722_v12 = vld [vmem:[%s6170_s28 + $0x910] ss:$72 sps:$4 sm:$0xff]  }
  0x33   : > { %503 = vmatpush1.bf16.msra.mxu0 %v5611_v49  ;;  %v5694_v49 = vld [vmem:[%s6170_s28 + $0x904] ss:$72 sps:$4 sm:$0xff]   ;;  %v5716_v8 = vld [vmem:[%s6170_s28 + $0x880] ss:$72 sps:$4 sm:$0xff]   ;;  %v5752_v38 = vld [vmem:[%s6170_s28 + $0xb0] ss:$72 sps:$4 sm:$0xff]  }
  0x34   : > { %795 = vmatpush1.bf16.msra.mxu1 %v5614_v51  ;;  %504 = vmatprep.subr.bf16.mxu0 %v408_v53  ;;  %v5692_v51 = vld [vmem:[%s6170_s28 + $0x900] ss:$72 sps:$4 sm:$0xff]   ;;  %v5700_v53 = vld [vmem:[%s6170_s28 + $0x994] ss:$72 sps:$4 sm:$0xff]  }
  0x35   : > { %796 = vmatprep.subr.bf16.mxu1 %v774_v54  ;;  %v5695_v54 = vld [vmem:[%s6170_s28 + $0x6d0] ss:$72 sps:$4 sm:$0xff]   ;;  %v5721_v9 = vld [vmem:[%s6170_s28 + $0x90c] ss:$72 sps:$4 sm:$0xff]   ;;  %v5727_v13 = vld [vmem:[%s6170_s28 + $0x99c] ss:$72 sps:$4 sm:$0xff]  }
  0x36   : > { %v5743_v32 = vld [vmem:[%s6170_s28 + $0x18] ss:$72 sps:$4 sm:$0xff]   ;;  %v5751_v35 = vld [vmem:[%s6170_s28 + $0xac] ss:$72 sps:$4 sm:$0xff]   ;;  %v5757_v39 = vld [vmem:[%s6170_s28 + $0x13c] ss:$72 sps:$4 sm:$0xff]  }
  0x37   : > { %505 = vmatpush1.bf16.msra.mxu0 %v405_v55  ;;  %v5698_v55 = vld [vmem:[%s6170_s28 + $0x990] ss:$72 sps:$4 sm:$0xff]  }
  0x38   : > { %797 = vmatpush1.bf16.msra.mxu1 %v771_v56  ;;  %831 = vmatprep.subr.bf16.mxu0 %v5625_v57  ;;  %v5703_v56 = vld [vmem:[%s6170_s28 + $0x764] ss:$72 sps:$4 sm:$0xff]   ;;  %v5709_v57 = vld [vmem:[%s6170_s28 + $0x7f4] ss:$72 sps:$4 sm:$0x3f]  }
  0x39   : > { %874 = vmatprep.subr.bf16.mxu1 %v5628_v58  ;;  %v5706_v58 = vld [vmem:[%s6170_s28 + $0xa24] ss:$72 sps:$4 sm:$0xff]  }
  0x3a   : > { %4874 = vmatmul.mubr.msk.bf16.vlgmr.msra.gmra.mrb[4].mxu0 %vm384_vm2, %v6203_v34 }
  0x3b   : > { %4935 = vmatmul.mubr.msk.bf16.vlgmr.msra.gmra.mrb[4].mxu1 %vm384_vm2, %v6203_v34  ;;  %832 = vmatpush1.bf16.msra.mxu0 %v5623_v59  ;;  %v5712_v59 = vld [vmem:[%s6170_s28 + $0xab4] ss:$72 sps:$4 sm:$0x3f]  }
  0x3c   : > { %875 = vmatpush1.bf16.msra.mxu1 %v5626_v60  ;;  %833 = vmatprep.subr.bf16.mxu0 %v5631_v61  ;;  %v5701_v60 = vld [vmem:[%s6170_s28 + $0x760] ss:$72 sps:$4 sm:$0xff]   ;;  %v5707_v61 = vld [vmem:[%s6170_s28 + $0x7f0] ss:$72 sps:$4 sm:$0x3f]  }
  0x3d   : > { %876 = vmatprep.subr.bf16.mxu1 %v5634_v62  ;;  %863 = vmatprep.mubr.bf16.mxu0 %v6113_v0  ;;  %v5704_v62 = vld [vmem:[%s6170_s28 + $0xa20] ss:$72 sps:$4 sm:$0xff]  }
  0x3e   : > { %906 = vmatprep.mubr.bf16.mxu1 %v6113_v0 }
  0x3f   : > { %834 = vmatpush1.bf16.msra.mxu0 %v5629_v63  ;;  %v5710_v63 = vld [vmem:[%s6170_s28 + $0xab0] ss:$72 sps:$4 sm:$0x3f]  }
  0x40   : > { %877 = vmatpush1.bf16.msra.mxu1 %v5632_v1  ;;  %835 = vmatprep.subr.bf16.mxu0 %v5637_v2  ;;  %v1156_v1 = vand.u32 %v5709_v57, %v6188_v23  ;;  %v1514_v2 = vand.u32 %v5712_v59, %v6188_v23  ;;  %v5774_v57 = vld [vmem:[%s6170_s28 + $0x28] ss:$72 sps:$4 sm:$0xff]   ;;  %v5782_v59 = vld [vmem:[%s6170_s28 + $0xbc] ss:$72 sps:$4 sm:$0xff]  }
  0x41   : > { %878 = vmatprep.subr.bf16.mxu1 %v5640_v3  ;;  %v1153_v3 = vand.u32 %v5707_v61, %v6188_v23  ;;  %v5780_v61 = vld [vmem:[%s6170_s28 + $0xb8] ss:$72 sps:$4 sm:$0xff]  }
  0x43   : > { %836 = vmatpush1.bf16.msra.mxu0 %v5635_v4  ;;  %v1511_v4 = vand.u32 %v5710_v63, %v6188_v23  ;;  %v5788_v63 = vld [vmem:[%s6170_s28 + $0x14c] ss:$72 sps:$4 sm:$0xff]  }
  0x44   : > { %879 = vmatpush1.bf16.msra.mxu1 %v5638_v5  ;;  %837 = vmatprep.subr.bf16.mxu0 %v5643_v6  ;;  %v5715_v5 = vld [vmem:[%s6170_s28 + $0x87c] ss:$72 sps:$4 sm:$0xff]  }
  0x45   : > { %880 = vmatprep.subr.bf16.mxu1 %v5646_v7  ;;  %v5718_v6 = vld [vmem:[%s6170_s28 + $0x884] ss:$72 sps:$4 sm:$0xff]   ;;  %v5713_v7 = vld [vmem:[%s6170_s28 + $0x878] ss:$72 sps:$4 sm:$0xff]  }
  0x47   : > { %838 = vmatpush1.bf16.msra.mxu0 %v5641_v10  ;;  %v5724_v10 = vld [vmem:[%s6170_s28 + $0x914] ss:$72 sps:$4 sm:$0xff]  }
  0x48   : > { %881 = vmatpush1.bf16.msra.mxu1 %v5644_v11  ;;  %839 = vmatprep.subr.bf16.mxu0 %v780_v14  ;;  %v5719_v11 = vld [vmem:[%s6170_s28 + $0x908] ss:$72 sps:$4 sm:$0xff]   ;;  %v5730_v14 = vld [vmem:[%s6170_s28 + $0x9a4] ss:$72 sps:$4 sm:$0xff]  }
  0x49   : > { %882 = vmatprep.subr.bf16.mxu1 %v786_v15  ;;  %v5725_v15 = vld [vmem:[%s6170_s28 + $0x998] ss:$72 sps:$4 sm:$0xff]  }
  0x4b   : > { %840 = vmatpush1.bf16.msra.mxu0 %v777_v16  ;;  %v5728_v16 = vld [vmem:[%s6170_s28 + $0x9a0] ss:$72 sps:$4 sm:$0xff]  }
  0x4c   : > { %883 = vmatpush1.bf16.msra.mxu1 %v783_v17  ;;  %1158 = vmatprep.subr.bf16.mxu0 %v5655_v18  ;;  %v5733_v17 = vld [vmem:[%s6170_s28 + $0xa2c] ss:$72 sps:$4 sm:$0xff]  }
  0x4d   : > { %1201 = vmatprep.subr.bf16.mxu1 %v5658_v19  ;;  %v5736_v18 = vld [vmem:[%s6170_s28 + $0xa34] ss:$72 sps:$4 sm:$0xff]  }
  0x4e   : > { %4936 = vmatmul.mubr.msk.bf16.vlgmr.msra.gmra.mrb[8].mxu0 %vm384_vm2, %v6203_v34  ;;  %v5739_v19 = vld [vmem:[%s6170_s28 + $0xabc] ss:$72 sps:$4 sm:$0x3f]  }
  0x4f   : > { %4937 = vmatmul.mubr.msk.bf16.vlgmr.msra.gmra.mrb[8].mxu1 %vm384_vm2, %v6203_v34  ;;  %1159 = vmatpush1.bf16.msra.mxu0 %v5653_v20  ;;  %v5742_v20 = vld [vmem:[%s6170_s28 + $0xac4] ss:$72 sps:$4 sm:$0x3f]  }
  0x50   : > { %1202 = vmatpush1.bf16.msra.mxu1 %v5656_v21  ;;  %1160 = vmatprep.subr.bf16.mxu0 %v5661_v22  ;;  %v5731_v21 = vld [vmem:[%s6170_s28 + $0xa28] ss:$72 sps:$4 sm:$0xff]  }
  0x51   : > { %1203 = vmatprep.subr.bf16.mxu1 %v5664_v24  ;;  %1190 = vmatprep.mubr.bf16.mxu0 %v6113_v0  ;;  %v5734_v22 = vld [vmem:[%s6170_s28 + $0xa30] ss:$72 sps:$4 sm:$0xff]  }
  0x52   : > { %1233 = vmatprep.mubr.bf16.mxu1 %v6113_v0  ;;  %v5737_v24 = vld [vmem:[%s6170_s28 + $0xab8] ss:$72 sps:$4 sm:$0x3f]  }
  0x53   : > { %1161 = vmatpush1.bf16.msra.mxu0 %v5659_v25  ;;  %v5740_v25 = vld [vmem:[%s6170_s28 + $0xac0] ss:$72 sps:$4 sm:$0x3f]  }
  0x54   : > { %1204 = vmatpush1.bf16.msra.mxu1 %v5662_v26  ;;  %1162 = vmatprep.subr.bf16.mxu0 %v5667_v27  ;;  %v1520_v26 = vand.u32 %v5739_v19, %v6188_v23  ;;  %v1526_v27 = vand.u32 %v5742_v20, %v6188_v23  ;;  %v5807_v19 = vld [vmem:[%s6170_s28 + $0x2f8] ss:$72 sps:$4 sm:$0xff]   ;;  %v5812_v20 = vld [vmem:[%s6170_s28 + $0x384] ss:$72 sps:$4 sm:$0xff]  }
  0x55   : > { %1205 = vmatprep.subr.bf16.mxu1 %v5670_v28  ;;  %v1517_v28 = vand.u32 %v5737_v24, %v6188_v23  ;;  %v5813_v24 = vld [vmem:[%s6170_s28 + $0x388] ss:$72 sps:$4 sm:$0xff]  }
  0x57   : > { %1163 = vmatpush1.bf16.msra.mxu0 %v5665_v29  ;;  %v1523_v29 = vand.u32 %v5740_v25, %v6188_v23  ;;  %v5818_v25 = vld [vmem:[%s6170_s28 + $0x414] ss:$72 sps:$4 sm:$0xff]  }
  0x58   : > { %1206 = vmatpush1.bf16.msra.mxu1 %v5668_v30  ;;  %1164 = vmatprep.subr.bf16.mxu0 %v5673_v31  ;;  %v5745_v30 = vld [vmem:[%s6170_s28 + $0x1c] ss:$72 sps:$4 sm:$0xff]  }
  0x59   : > { %1207 = vmatprep.subr.bf16.mxu1 %v5676_v33  ;;  %v5748_v31 = vld [vmem:[%s6170_s28 + $0x24] ss:$72 sps:$4 sm:$0xff]   ;;  %v5746_v33 = vld [vmem:[%s6170_s28 + $0x20] ss:$72 sps:$4 sm:$0xff]  }
  0x5b   : > { %1165 = vmatpush1.bf16.msra.mxu0 %v5671_v36  ;;  %v5754_v36 = vld [vmem:[%s6170_s28 + $0xb4] ss:$72 sps:$4 sm:$0xff]  }
  0x5c   : > { %1208 = vmatpush1.bf16.msra.mxu1 %v5674_v37  ;;  %1166 = vmatprep.subr.bf16.mxu0 %v1144_v40  ;;  %v5749_v37 = vld [vmem:[%s6170_s28 + $0xa8] ss:$72 sps:$4 sm:$0xff]   ;;  %v5760_v40 = vld [vmem:[%s6170_s28 + $0x144] ss:$72 sps:$4 sm:$0xff]  }
  0x5d   : > { %1209 = vmatprep.subr.bf16.mxu1 %v1150_v41  ;;  %v5755_v41 = vld [vmem:[%s6170_s28 + $0x138] ss:$72 sps:$4 sm:$0xff]  }
  0x5f   : > { %1167 = vmatpush1.bf16.msra.mxu0 %v1141_v42  ;;  %v5763_v42 = vld [vmem:[%s6170_s28 + $0x1cc] ss:$72 sps:$4 sm:$0xff]  }
  0x60   : > { %1210 = vmatpush1.bf16.msra.mxu1 %v1147_v43  ;;  %1244 = vmatprep.subr.bf16.mxu0 %v5685_v44  ;;  %v5769_v43 = vld [vmem:[%s6170_s28 + $0x25c] ss:$72 sps:$4 sm:$0x3f]  }
  0x61   : > { %1528 = vmatprep.subr.bf16.mxu1 %v5688_v45  ;;  %v5766_v44 = vld [vmem:[%s6170_s28 + $0x1d4] ss:$72 sps:$4 sm:$0xff]   ;;  %v5772_v45 = vld [vmem:[%s6170_s28 + $0x264] ss:$72 sps:$4 sm:$0x3f]  }
  0x62   : > { %4998 = vmatmul.mubr.msk.bf16.vlgmr.msra.gmra.mrb[12].mxu0 %vm384_vm2, %v6203_v34 }
  0x63   : > { %4999 = vmatmul.mubr.msk.bf16.vlgmr.msra.gmra.mrb[12].mxu1 %vm384_vm2, %v6203_v34  ;;  %1245 = vmatpush1.bf16.msra.mxu0 %v5683_v46  ;;  %v5761_v46 = vld [vmem:[%s6170_s28 + $0x1c8] ss:$72 sps:$4 sm:$0xff]  }
  0x64   : > { %1529 = vmatpush1.bf16.msra.mxu1 %v5686_v47  ;;  %1246 = vmatprep.subr.bf16.mxu0 %v5691_v48  ;;  %v5767_v47 = vld [vmem:[%s6170_s28 + $0x258] ss:$72 sps:$4 sm:$0x3f]  }
  0x65   : > { %1530 = vmatprep.subr.bf16.mxu1 %v5694_v49  ;;  %1276 = vmatprep.mubr.bf16.mxu0 %v6113_v0  ;;  %v5764_v48 = vld [vmem:[%s6170_s28 + $0x1d0] ss:$72 sps:$4 sm:$0xff]   ;;  %v5770_v49 = vld [vmem:[%s6170_s28 + $0x260] ss:$72 sps:$4 sm:$0x3f]  }
  0x66   : > { %1560 = vmatprep.mubr.bf16.mxu1 %v6113_v0 }
  0x67   : > { %1247 = vmatpush1.bf16.msra.mxu0 %v5689_v50  ;;  %v1935_v50 = vand.u32 %v5769_v43, %v6188_v23  ;;  %v5834_v43 = vld [vmem:[%s6170_s28 + $0x5b8] ss:$72 sps:$4 sm:$0xff]  }
  0x68   : > { %1531 = vmatpush1.bf16.msra.mxu1 %v5692_v51  ;;  %1248 = vmatprep.subr.bf16.mxu0 %v5697_v52  ;;  %v1941_v51 = vand.u32 %v5772_v45, %v6188_v23  ;;  %v1932_v52 = vand.u32 %v5767_v47, %v6188_v23  ;;  %v5842_v45 = vld [vmem:[%s6170_s28 + $0x64c] ss:$72 sps:$4 sm:$0xff]   ;;  %v5840_v47 = vld [vmem:[%s6170_s28 + $0x648] ss:$72 sps:$4 sm:$0xff]  }
  0x69   : > { %1532 = vmatprep.subr.bf16.mxu1 %v5700_v53  ;;  %v1938_v53 = vand.u32 %v5770_v49, %v6188_v23  ;;  %v5848_v49 = vld [vmem:[%s6170_s28 + $0x6dc] ss:$72 sps:$4 sm:$0xff]  }
  0x6b   : > { %1249 = vmatpush1.bf16.msra.mxu0 %v5695_v54  ;;  %v5776_v54 = vld [vmem:[%s6170_s28 + $0x2c] ss:$72 sps:$4 sm:$0xff]  }
  0x6c   : > { %1533 = vmatpush1.bf16.msra.mxu1 %v5698_v55  ;;  %1250 = vmatprep.subr.bf16.mxu0 %v5703_v56  ;;  %v5779_v55 = vld [vmem:[%s6170_s28 + $0x2ec] ss:$72 sps:$4 sm:$0xff]   ;;  %v6388_v56 = vld [vmem:[%s7240_s1] sm:$0xff]  }
  0x6d   : > { %1534 = vmatprep.subr.bf16.mxu1 %v5706_v58  ;;  %v5777_v58 = vld [vmem:[%s6170_s28 + $0x2e8] ss:$72 sps:$4 sm:$0xff]  }
  0x6f   : > { %1251 = vmatpush1.bf16.msra.mxu0 %v5701_v60  ;;  %v5785_v60 = vld [vmem:[%s6170_s28 + $0x37c] ss:$72 sps:$4 sm:$0xff]  }
  0x70   : > { %1535 = vmatpush1.bf16.msra.mxu1 %v5704_v62  ;;  %1252 = vmatprep.subr.bf16.mxu0 %v1156_v1  ;;  %v5783_v62 = vld [vmem:[%s6170_s28 + $0x378] ss:$72 sps:$4 sm:$0xff]   ;;  %v5791_v1 = vld [vmem:[%s6170_s28 + $0x40c] ss:$72 sps:$4 sm:$0xff]  }
  0x71   : > { %1536 = vmatprep.subr.bf16.mxu1 %v1514_v2  ;;  %v5786_v2 = vld [vmem:[%s6170_s28 + $0x148] ss:$72 sps:$4 sm:$0xff]  }
  0x73   : > { %1253 = vmatpush1.bf16.msra.mxu0 %v1153_v3  ;;  %v5789_v3 = vld [vmem:[%s6170_s28 + $0x408] ss:$72 sps:$4 sm:$0xff]  }
  0x74   : > { %1537 = vmatpush1.bf16.msra.mxu1 %v1511_v4  ;;  %1571 = vmatprep.subr.bf16.mxu0 %v5715_v5  ;;  %v5794_v4 = vld [vmem:[%s6170_s28 + $0x1dc] ss:$72 sps:$4 sm:$0xff]  }
  0x75   : > { %1614 = vmatprep.subr.bf16.mxu1 %v5718_v6  ;;  %v5797_v5 = vld [vmem:[%s6170_s28 + $0x49c] ss:$72 sps:$4 sm:$0xff]   ;;  %v5800_v6 = vld [vmem:[%s6170_s28 + $0x26c] ss:$72 sps:$4 sm:$0x3f]  }
  0x76   : > { %5000 = vmatmul.mubr.msk.bf16.vlgmr.msra.gmra.mrb[16].mxu0 %vm384_vm2, %v6203_v34 }
  0x77   : > { %5061 = vmatmul.mubr.msk.bf16.vlgmr.msra.gmra.mrb[16].mxu1 %vm384_vm2, %v6203_v34  ;;  %1572 = vmatpush1.bf16.msra.mxu0 %v5713_v7  ;;  %v5803_v7 = vld [vmem:[%s6170_s28 + $0x52c] ss:$72 sps:$4 sm:$0x3f]  }
  0x78   : > { %1615 = vmatpush1.bf16.msra.mxu1 %v5716_v8  ;;  %1573 = vmatprep.subr.bf16.mxu0 %v5721_v9  ;;  %v5792_v8 = vld [vmem:[%s6170_s28 + $0x1d8] ss:$72 sps:$4 sm:$0xff]  }
  0x79   : > { %1616 = vmatprep.subr.bf16.mxu1 %v5724_v10  ;;  %1603 = vmatprep.mubr.bf16.mxu0 %v6113_v0  ;;  %v5795_v9 = vld [vmem:[%s6170_s28 + $0x498] ss:$72 sps:$4 sm:$0xff]   ;;  %v5798_v10 = vld [vmem:[%s6170_s28 + $0x268] ss:$72 sps:$4 sm:$0x3f]  }
  0x7a   : > { %1646 = vmatprep.mubr.bf16.mxu1 %v6113_v0 }
  0x7b   : > { %1574 = vmatpush1.bf16.msra.mxu0 %v5719_v11  ;;  %v5801_v11 = vld [vmem:[%s6170_s28 + $0x528] ss:$72 sps:$4 sm:$0x3f]  }
  0x7c   : > { %1617 = vmatpush1.bf16.msra.mxu1 %v5722_v12  ;;  %1575 = vmatprep.subr.bf16.mxu0 %v5727_v13  ;;  %v1947_v12 = vand.u32 %v5800_v6, %v6188_v23  ;;  %v2292_v13 = vand.u32 %v5803_v7, %v6188_v23  ;;  %v5867_v6 = vld [vmem:[%s6170_s28 + $0x888] ss:$72 sps:$4 sm:$0xff]   ;;  %v5872_v7 = vld [vmem:[%s6170_s28 + $0x65c] ss:$72 sps:$4 sm:$0xff]  }
  0x7d   : > { %1618 = vmatprep.subr.bf16.mxu1 %v5730_v14  ;;  %v1944_v14 = vand.u32 %v5798_v10, %v6188_v23  ;;  %v5873_v10 = vld [vmem:[%s6170_s28 + $0x918] ss:$72 sps:$4 sm:$0xff]  }
  0x7f   : > { %1576 = vmatpush1.bf16.msra.mxu0 %v5725_v15  ;;  %v2289_v15 = vand.u32 %v5801_v11, %v6188_v23  ;;  %v5878_v11 = vld [vmem:[%s6170_s28 + $0x6ec] ss:$72 sps:$4 sm:$0xff]  }
  0x80   : > { %1619 = vmatpush1.bf16.msra.mxu1 %v5728_v16  ;;  %1577 = vmatprep.subr.bf16.mxu0 %v5733_v17  ;;  %v5806_v16 = vld [vmem:[%s6170_s28 + $0x2f4] ss:$72 sps:$4 sm:$0xff]  }
  0x81   : > { %1620 = vmatprep.subr.bf16.mxu1 %v5736_v18  ;;  %v5809_v17 = vld [vmem:[%s6170_s28 + $0x2fc] ss:$72 sps:$4 sm:$0xff]   ;;  %v5804_v18 = vld [vmem:[%s6170_s28 + $0x2f0] ss:$72 sps:$4 sm:$0xff]  }
  0x83   : > { %1578 = vmatpush1.bf16.msra.mxu0 %v5731_v21  ;;  %v5815_v21 = vld [vmem:[%s6170_s28 + $0x38c] ss:$72 sps:$4 sm:$0xff]  }
  0x84   : > { %1621 = vmatpush1.bf16.msra.mxu1 %v5734_v22  ;;  %1579 = vmatprep.subr.bf16.mxu0 %v1520_v26  ;;  %v5810_v22 = vld [vmem:[%s6170_s28 + $0x380] ss:$72 sps:$4 sm:$0xff]   ;;  %v5821_v26 = vld [vmem:[%s6170_s28 + $0x41c] ss:$72 sps:$4 sm:$0xff]  }
  0x85   : > { %1622 = vmatprep.subr.bf16.mxu1 %v1526_v27  ;;  %v5816_v27 = vld [vmem:[%s6170_s28 + $0x410] ss:$72 sps:$4 sm:$0xff]  }
  0x87   : > { %1580 = vmatpush1.bf16.msra.mxu0 %v1517_v28  ;;  %v5819_v28 = vld [vmem:[%s6170_s28 + $0x418] ss:$72 sps:$4 sm:$0xff]  }
  0x88   : > { %1623 = vmatpush1.bf16.msra.mxu1 %v1523_v29  ;;  %1949 = vmatprep.subr.bf16.mxu0 %v5745_v30  ;;  %v5824_v29 = vld [vmem:[%s6170_s28 + $0x4a4] ss:$72 sps:$4 sm:$0xff]   ;;  %v5830_v30 = vld [vmem:[%s6170_s28 + $0x534] ss:$72 sps:$4 sm:$0x3f]  }
  0x89   : > { %1992 = vmatprep.subr.bf16.mxu1 %v5748_v31  ;;  %v5827_v31 = vld [vmem:[%s6170_s28 + $0x4ac] ss:$72 sps:$4 sm:$0xff]  }
  0x8a   : > { %5062 = vmatmul.mubr.msk.bf16.vlgmr.msra.gmra.mrb[20].mxu0 %vm384_vm2, %v6203_v34 }
  0x8b   : > { %5063 = vmatmul.mubr.msk.bf16.vlgmr.msra.gmra.mrb[20].mxu1 %vm384_vm2, %v6203_v34  ;;  %1950 = vmatpush1.bf16.msra.mxu0 %v5743_v32  ;;  %v5758_v34 = vld [vmem:[%s6170_s28 + $0x140] ss:$72 sps:$4 sm:$0xff]   ;;  %v5833_v32 = vld [vmem:[%s6170_s28 + $0x53c] ss:$72 sps:$4 sm:$0x3f]  }
  0x8c   : > { %1993 = vmatpush1.bf16.msra.mxu1 %v5746_v33  ;;  %1951 = vmatprep.subr.bf16.mxu0 %v5751_v35  ;;  %v5822_v33 = vld [vmem:[%s6170_s28 + $0x4a0] ss:$72 sps:$4 sm:$0xff]  }
  0x8d   : > { %1994 = vmatprep.subr.bf16.mxu1 %v5754_v36  ;;  %1981 = vmatprep.mubr.bf16.mxu0 %v6113_v0  ;;  %v5825_v35 = vld [vmem:[%s6170_s28 + $0x4a8] ss:$72 sps:$4 sm:$0xff]  }
  0x8e   : > { %2024 = vmatprep.mubr.bf16.mxu1 %v6113_v0  ;;  %v5828_v36 = vld [vmem:[%s6170_s28 + $0x530] ss:$72 sps:$4 sm:$0x3f]  }
  0x8f   : > { %1952 = vmatpush1.bf16.msra.mxu0 %v5749_v37  ;;  %v5831_v37 = vld [vmem:[%s6170_s28 + $0x538] ss:$72 sps:$4 sm:$0x3f]  }
  0x90   : > { %1995 = vmatpush1.bf16.msra.mxu1 %v5752_v38  ;;  %1953 = vmatprep.subr.bf16.mxu0 %v5757_v39  ;;  %v2298_v38 = vand.u32 %v5830_v30, %v6188_v23  ;;  %v2304_v39 = vand.u32 %v5833_v32, %v6188_v23  ;;  %v5894_v30 = vld [vmem:[%s6170_s28 + $0x890] ss:$72 sps:$4 sm:$0xff]   ;;  %v5902_v32 = vld [vmem:[%s6170_s28 + $0x924] ss:$72 sps:$4 sm:$0xff]  }
  0x91   : > { %1996 = vmatprep.subr.bf16.mxu1 %v5760_v40  ;;  %v2295_v40 = vand.u32 %v5828_v36, %v6188_v23  ;;  %v5903_v36 = vld [vmem:[%s6170_s28 + $0x928] ss:$72 sps:$4 sm:$0xff]  }
  0x93   : > { %1954 = vmatpush1.bf16.msra.mxu0 %v5755_v41  ;;  %v2301_v41 = vand.u32 %v5831_v37, %v6188_v23  ;;  %v5908_v37 = vld [vmem:[%s6170_s28 + $0x9b4] ss:$72 sps:$4 sm:$0xff]  }
  0x94   : > { %1997 = vmatpush1.bf16.msra.mxu1 %v5758_v34  ;;  %1955 = vmatprep.subr.bf16.mxu0 %v5763_v42  ;;  %v5836_v34 = vld [vmem:[%s6170_s28 + $0x5bc] ss:$72 sps:$4 sm:$0xff]  }
  0x95   : > { %1998 = vmatprep.subr.bf16.mxu1 %v5766_v44  ;;  %v5839_v42 = vld [vmem:[%s6170_s28 + $0x5c4] ss:$72 sps:$4 sm:$0xff]   ;;  %v5837_v44 = vld [vmem:[%s6170_s28 + $0x5c0] ss:$72 sps:$4 sm:$0xff]  }
  0x97   : > { %1956 = vmatpush1.bf16.msra.mxu0 %v5761_v46  ;;  %v5845_v46 = vld [vmem:[%s6170_s28 + $0x654] ss:$72 sps:$4 sm:$0xff]  }
  0x98   : > { %1999 = vmatpush1.bf16.msra.mxu1 %v5764_v48  ;;  %1957 = vmatprep.subr.bf16.mxu0 %v1935_v50  ;;  %v5843_v48 = vld [vmem:[%s6170_s28 + $0x650] ss:$72 sps:$4 sm:$0xff]   ;;  %v5851_v50 = vld [vmem:[%s6170_s28 + $0x6e4] ss:$72 sps:$4 sm:$0xff]  }
  0x99   : > { %2000 = vmatprep.subr.bf16.mxu1 %v1941_v51  ;;  %v5846_v51 = vld [vmem:[%s6170_s28 + $0x6d8] ss:$72 sps:$4 sm:$0xff]  }
  0x9b   : > { %1958 = vmatpush1.bf16.msra.mxu0 %v1932_v52  ;;  %v5849_v52 = vld [vmem:[%s6170_s28 + $0x6e0] ss:$72 sps:$4 sm:$0xff]  }
  0x9c   : > { %2001 = vmatpush1.bf16.msra.mxu1 %v1938_v53  ;;  %2035 = vmatprep.subr.bf16.mxu0 %v5776_v54  ;;  %v5854_v53 = vld [vmem:[%s6170_s28 + $0x76c] ss:$72 sps:$4 sm:$0xff]  }
  0x9d   : > { %2306 = vmatprep.subr.bf16.mxu1 %v5779_v55  ;;  %v5857_v54 = vld [vmem:[%s6170_s28 + $0x774] ss:$72 sps:$4 sm:$0xff]  }
  0x9e   : > { %5101 = vmatmul.mubr.msk.bf16.vlgmr.msra.gmra.mrb[24].mxu0 %vm384_vm2, %v6388_v56  ;;  %v5860_v55 = vld [vmem:[%s6170_s28 + $0x7fc] ss:$72 sps:$4 sm:$0x3f]  }
  0x9f   : > { %5102 = vmatmul.mubr.msk.bf16.vlgmr.msra.gmra.mrb[24].mxu1 %vm384_vm2, %v6388_v56  ;;  %2036 = vmatpush1.bf16.msra.mxu0 %v5774_v57  ;;  %v5863_v57 = vld [vmem:[%s6170_s28 + $0x804] ss:$72 sps:$4 sm:$0x3f]  }
  0xa0   : > { %2307 = vmatpush1.bf16.msra.mxu1 %v5777_v58  ;;  %2037 = vmatprep.subr.bf16.mxu0 %v5782_v59  ;;  %v5852_v58 = vld [vmem:[%s6170_s28 + $0x768] ss:$72 sps:$4 sm:$0xff]  }
  0xa1   : > { %2308 = vmatprep.subr.bf16.mxu1 %v5785_v60  ;;  %2067 = vmatprep.mubr.bf16.mxu0 %v6113_v0  ;;  %v5855_v59 = vld [vmem:[%s6170_s28 + $0x770] ss:$72 sps:$4 sm:$0xff]  }
  0xa2   : > { %2338 = vmatprep.mubr.bf16.mxu1 %v6113_v0  ;;  %v5858_v60 = vld [vmem:[%s6170_s28 + $0x7f8] ss:$72 sps:$4 sm:$0x3f]  }
  0xa3   : > { %2038 = vmatpush1.bf16.msra.mxu0 %v5780_v61  ;;  %v5861_v61 = vld [vmem:[%s6170_s28 + $0x800] ss:$72 sps:$4 sm:$0x3f]  }
  0xa4   : > { %2309 = vmatpush1.bf16.msra.mxu1 %v5783_v62  ;;  %2039 = vmatprep.subr.bf16.mxu0 %v5788_v63  ;;  %v2661_v62 = vand.u32 %v5860_v55, %v6188_v23  ;;  %v2667_v63 = vand.u32 %v5863_v57, %v6188_v23 }
  0xa5   : > { %2310 = vmatprep.subr.bf16.mxu1 %v5791_v1  ;;  %v2658_v1 = vand.u32 %v5858_v60, %v6188_v23 }
  0xa7   : > { %2040 = vmatpush1.bf16.msra.mxu0 %v5786_v2  ;;  %v2664_v2 = vand.u32 %v5861_v61, %v6188_v23 }
  0xa8   : > { %2311 = vmatpush1.bf16.msra.mxu1 %v5789_v3  ;;  %2041 = vmatprep.subr.bf16.mxu0 %v5794_v4  ;;  %v5866_v3 = vld [vmem:[%s6170_s28 + $0x5cc] ss:$72 sps:$4 sm:$0xff]  }
  0xa9   : > { %2312 = vmatprep.subr.bf16.mxu1 %v5797_v5  ;;  %v5869_v4 = vld [vmem:[%s6170_s28 + $0x88c] ss:$72 sps:$4 sm:$0xff]   ;;  %v5864_v5 = vld [vmem:[%s6170_s28 + $0x5c8] ss:$72 sps:$4 sm:$0xff]  }
  0xab   : > { %2042 = vmatpush1.bf16.msra.mxu0 %v5792_v8  ;;  %v5875_v8 = vld [vmem:[%s6170_s28 + $0x91c] ss:$72 sps:$4 sm:$0xff]  }
  0xac   : > { %2313 = vmatpush1.bf16.msra.mxu1 %v5795_v9  ;;  %2043 = vmatprep.subr.bf16.mxu0 %v1947_v12  ;;  %v5870_v9 = vld [vmem:[%s6170_s28 + $0x658] ss:$72 sps:$4 sm:$0xff]   ;;  %v5881_v12 = vld [vmem:[%s6170_s28 + $0x9ac] ss:$72 sps:$4 sm:$0xff]  }
  0xad   : > { %2314 = vmatprep.subr.bf16.mxu1 %v2292_v13  ;;  %v5876_v13 = vld [vmem:[%s6170_s28 + $0x6e8] ss:$72 sps:$4 sm:$0xff]  }
  0xaf   : > { %2044 = vmatpush1.bf16.msra.mxu0 %v1944_v14  ;;  %v5879_v14 = vld [vmem:[%s6170_s28 + $0x9a8] ss:$72 sps:$4 sm:$0xff]  }
  0xb0   : > { %2315 = vmatpush1.bf16.msra.mxu1 %v2289_v15  ;;  %2349 = vmatprep.subr.bf16.mxu0 %v5806_v16  ;;  %v5884_v15 = vld [vmem:[%s6170_s28 + $0x77c] ss:$72 sps:$4 sm:$0xff]   ;;  %v5890_v16 = vld [vmem:[%s6170_s28 + $0x80c] ss:$72 sps:$4 sm:$0x3f]  }
  0xb1   : > { %2392 = vmatprep.subr.bf16.mxu1 %v5809_v17  ;;  %v5887_v17 = vld [vmem:[%s6170_s28 + $0xa3c] ss:$72 sps:$4 sm:$0xff]  }
  0xb2   : > { %5103 = vmatmul.mubr.msk.bf16.vlgmr.msra.gmra.mrb[28].mxu0 %vm384_vm2, %v6388_v56 }
  0xb3   : > { %5164 = vmatmul.mubr.msk.bf16.vlgmr.msra.gmra.mrb[28].mxu1 %vm384_vm2, %v6388_v56  ;;  %2350 = vmatpush1.bf16.msra.mxu0 %v5804_v18  ;;  %v5893_v18 = vld [vmem:[%s6170_s28 + $0xacc] ss:$72 sps:$4 sm:$0x3f]  }
  0xb4   : > { %2393 = vmatpush1.bf16.msra.mxu1 %v5807_v19  ;;  %2351 = vmatprep.subr.bf16.mxu0 %v5812_v20  ;;  %v5882_v19 = vld [vmem:[%s6170_s28 + $0x778] ss:$72 sps:$4 sm:$0xff]  }
  0xb5   : > { %2394 = vmatprep.subr.bf16.mxu1 %v5815_v21  ;;  %2381 = vmatprep.mubr.bf16.mxu0 %v6113_v0  ;;  %v5885_v20 = vld [vmem:[%s6170_s28 + $0xa38] ss:$72 sps:$4 sm:$0xff]   ;;  %v5888_v21 = vld [vmem:[%s6170_s28 + $0x808] ss:$72 sps:$4 sm:$0x3f]  }
  0xb6   : > { %2424 = vmatprep.mubr.bf16.mxu1 %v6113_v0 }
  0xb7   : > { %2352 = vmatpush1.bf16.msra.mxu0 %v5810_v22  ;;  %v5891_v22 = vld [vmem:[%s6170_s28 + $0xac8] ss:$72 sps:$4 sm:$0x3f]  }
  0xb8   : > { %2395 = vmatpush1.bf16.msra.mxu1 %v5813_v24  ;;  %2353 = vmatprep.subr.bf16.mxu0 %v5818_v25  ;;  %v2673_v24 = vand.u32 %v5890_v16, %v6188_v23  ;;  %v3030_v25 = vand.u32 %v5893_v18, %v6188_v23  ;;  %v5948_v18 = vld [vmem:[%s6170_s28 + $0x270] ss:$72 sps:$4 sm:$0x3f]  }
  0xb9   : > { %2396 = vmatprep.subr.bf16.mxu1 %v5821_v26  ;;  %v2670_v26 = vand.u32 %v5888_v21, %v6188_v23  ;;  %v5951_v21 = vld [vmem:[%s6170_s28 + $0x278] ss:$72 sps:$4 sm:$0x3f]  }
  0xbb   : > { %2354 = vmatpush1.bf16.msra.mxu0 %v5816_v27  ;;  %v3027_v27 = vand.u32 %v5891_v22, %v6188_v23 }
  0xbc   : > { %2397 = vmatpush1.bf16.msra.mxu1 %v5819_v28  ;;  %2355 = vmatprep.subr.bf16.mxu0 %v5824_v29  ;;  %v5896_v28 = vld [vmem:[%s6170_s28 + $0x894] ss:$72 sps:$4 sm:$0xff]  }
  0xbd   : > { %2398 = vmatprep.subr.bf16.mxu1 %v5827_v31  ;;  %v5899_v29 = vld [vmem:[%s6170_s28 + $0x89c] ss:$72 sps:$4 sm:$0xff]   ;;  %v5897_v31 = vld [vmem:[%s6170_s28 + $0x898] ss:$72 sps:$4 sm:$0xff]  }
  0xbf   : > { %2356 = vmatpush1.bf16.msra.mxu0 %v5822_v33  ;;  %v5905_v33 = vld [vmem:[%s6170_s28 + $0x92c] ss:$72 sps:$4 sm:$0xff]  }
  0xc0   : > { %2399 = vmatpush1.bf16.msra.mxu1 %v5825_v35  ;;  %2357 = vmatprep.subr.bf16.mxu0 %v2298_v38  ;;  %v5900_v35 = vld [vmem:[%s6170_s28 + $0x920] ss:$72 sps:$4 sm:$0xff]   ;;  %v5911_v38 = vld [vmem:[%s6170_s28 + $0x9bc] ss:$72 sps:$4 sm:$0xff]  }
  0xc1   : > { %2400 = vmatprep.subr.bf16.mxu1 %v2304_v39  ;;  %v5906_v39 = vld [vmem:[%s6170_s28 + $0x9b0] ss:$72 sps:$4 sm:$0xff]  }
  0xc3   : > { %2358 = vmatpush1.bf16.msra.mxu0 %v2295_v40  ;;  %v5909_v40 = vld [vmem:[%s6170_s28 + $0x9b8] ss:$72 sps:$4 sm:$0xff]  }
  0xc4   : > { %2401 = vmatpush1.bf16.msra.mxu1 %v2301_v41  ;;  %2675 = vmatprep.subr.bf16.mxu0 %v5836_v34  ;;  %v5914_v41 = vld [vmem:[%s6170_s28 + $0xa44] ss:$72 sps:$4 sm:$0xff]  }
  0xc5   : > { %2718 = vmatprep.subr.bf16.mxu1 %v5839_v42  ;;  %v5917_v34 = vld [vmem:[%s6170_s28 + $0xa4c] ss:$72 sps:$4 sm:$0xff]  }
  0xc6   : > { %5165 = vmatmul.mubr.msk.bf16.vlgmr.msra.gmra.mrb[32].mxu0 %vm384_vm2, %v6388_v56  ;;  %v5920_v42 = vld [vmem:[%s6170_s28 + $0xad4] ss:$72 sps:$4 sm:$0x3f]  }
  0xc7   : > { %5166 = vmatmul.mubr.msk.bf16.vlgmr.msra.gmra.mrb[32].mxu1 %vm384_vm2, %v6388_v56  ;;  %2676 = vmatpush1.bf16.msra.mxu0 %v5834_v43  ;;  %v5912_v43 = vld [vmem:[%s6170_s28 + $0xa40] ss:$72 sps:$4 sm:$0xff]  }
  0xc8   : > { %2719 = vmatpush1.bf16.msra.mxu1 %v5837_v44  ;;  %2677 = vmatprep.subr.bf16.mxu0 %v5842_v45  ;;  %v5923_v44 = vld [vmem:[%s6170_s28 + $0xadc] ss:$72 sps:$4 sm:$0x3f]   ;;  %v5915_v45 = vld [vmem:[%s6170_s28 + $0xa48] ss:$72 sps:$4 sm:$0xff]  }
  0xc9   : > { %2720 = vmatprep.subr.bf16.mxu1 %v5845_v46  ;;  %2707 = vmatprep.mubr.bf16.mxu0 %v6113_v0  ;;  %v5918_v46 = vld [vmem:[%s6170_s28 + $0xad0] ss:$72 sps:$4 sm:$0x3f]  }
  0xca   : > { %2750 = vmatprep.mubr.bf16.mxu1 %v6113_v0  ;;  %v3033_v57 = vand.u32 %v5918_v46, %v6188_v23  ;;  %v5960_v46 = vld [vmem:[%s6170_s28 + $0x304] ss:$72 sps:$4 sm:$0xff]  }
  0xcb   : > { %2678 = vmatpush1.bf16.msra.mxu0 %v5840_v47  ;;  %v5921_v47 = vld [vmem:[%s6170_s28 + $0xad8] ss:$72 sps:$4 sm:$0x3f]  }
  0xcc   : > { %2721 = vmatpush1.bf16.msra.mxu1 %v5843_v48  ;;  %2679 = vmatprep.subr.bf16.mxu0 %v5848_v49  ;;  %v3036_v48 = vand.u32 %v5920_v42, %v6188_v23 }
  0xcd   : > { %2722 = vmatprep.subr.bf16.mxu1 %v5851_v50 }
  0xcf   : > { %2680 = vmatpush1.bf16.msra.mxu0 %v5846_v51  ;;  %v3042_v51 = vand.u32 %v5923_v44, %v6188_v23 }
  0xd0   : > { %2723 = vmatpush1.bf16.msra.mxu1 %v5849_v52  ;;  %2681 = vmatprep.subr.bf16.mxu0 %v5854_v53 }
  0xd1   : > { %2724 = vmatprep.subr.bf16.mxu1 %v5857_v54 }
  0xd3   : > { %2682 = vmatpush1.bf16.msra.mxu0 %v5852_v58  ;;  %v3039_v58 = vand.u32 %v5921_v47, %v6188_v23 }
  0xd4   : > { %2725 = vmatpush1.bf16.msra.mxu1 %v5855_v59  ;;  %2683 = vmatprep.subr.bf16.mxu0 %v2661_v62  ;;  %v5926_v59 = vld [vmem:[%s6170_s28 + $0x34] ss:$72 sps:$4 sm:$0xff]  }
  0xd5   : > { %2726 = vmatprep.subr.bf16.mxu1 %v2667_v63  ;;  %v5929_v62 = vld [vmem:[%s6170_s28 + $0x3c] ss:$72 sps:$4 sm:$0xff]   ;;  %v5924_v63 = vld [vmem:[%s6170_s28 + $0x30] ss:$72 sps:$4 sm:$0xff]  }
  0xd7   : > { %2684 = vmatpush1.bf16.msra.mxu0 %v2658_v1  ;;  %v5927_v1 = vld [vmem:[%s6170_s28 + $0x38] ss:$72 sps:$4 sm:$0xff]  }
  0xd8   : > { %2727 = vmatpush1.bf16.msra.mxu1 %v2664_v2  ;;  %2761 = vmatprep.subr.bf16.mxu0 %v5866_v3  ;;  %v5932_v2 = vld [vmem:[%s6170_s28 + $0xc4] ss:$72 sps:$4 sm:$0xff]  }
  0xd9   : > { %3044 = vmatprep.subr.bf16.mxu1 %v5869_v4  ;;  %v5935_v3 = vld [vmem:[%s6170_s28 + $0xcc] ss:$72 sps:$4 sm:$0xff]   ;;  %v5930_v4 = vld [vmem:[%s6170_s28 + $0xc0] ss:$72 sps:$4 sm:$0xff]  }
  0xda   : > { %5227 = vmatmul.mubr.msk.bf16.vlgmr.msra.gmra.mrb[36].mxu0 %vm384_vm2, %v6388_v56 }
  0xdb   : > { %5228 = vmatmul.mubr.msk.bf16.vlgmr.msra.gmra.mrb[36].mxu1 %vm384_vm2, %v6388_v56  ;;  %2762 = vmatpush1.bf16.msra.mxu0 %v5864_v5  ;;  %v6557_v5 = vpop.permute.xlu0 %541 }
  0xdc   : > { %3045 = vmatpush1.bf16.msra.mxu1 %v5867_v6  ;;  %2763 = vmatprep.subr.bf16.mxu0 %v5872_v7  ;;  %v5933_v6 = vld [vmem:[%s6170_s28 + $0xc8] ss:$72 sps:$4 sm:$0xff]   ;;  %v5938_v7 = vld [vmem:[%s6170_s28 + $0x154] ss:$72 sps:$4 sm:$0xff]  }
  0xdd   : > { %3046 = vmatprep.subr.bf16.mxu1 %v5875_v8  ;;  %2793 = vmatprep.mubr.bf16.mxu0 %v6113_v0  ;;  %v5941_v8 = vld [vmem:[%s6170_s28 + $0x15c] ss:$72 sps:$4 sm:$0xff]  }
  0xde   : > { %3076 = vmatprep.mubr.bf16.mxu1 %v6113_v0 }
  0xdf   : > { %2764 = vmatpush1.bf16.msra.mxu0 %v5870_v9  ;;  %v5936_v9 = vld [vmem:[%s6170_s28 + $0x150] ss:$72 sps:$4 sm:$0xff]  }
  0xe0   : > { %3047 = vmatpush1.bf16.msra.mxu1 %v5873_v10  ;;  %2765 = vmatprep.subr.bf16.mxu0 %v5878_v11  ;;  %v5939_v10 = vld [vmem:[%s6170_s28 + $0x158] ss:$72 sps:$4 sm:$0xff]   ;;  %v5944_v11 = vld [vmem:[%s6170_s28 + $0x1e4] ss:$72 sps:$4 sm:$0xff]  }
  0xe1   : > { %3048 = vmatprep.subr.bf16.mxu1 %v5881_v12  ;;  %v5947_v12 = vld [vmem:[%s6170_s28 + $0x1ec] ss:$72 sps:$4 sm:$0xff]  }
  0xe3   : > { %2766 = vmatpush1.bf16.msra.mxu0 %v5876_v13  ;;  %v5950_v13 = vld [vmem:[%s6170_s28 + $0x274] ss:$72 sps:$4 sm:$0x3f]  }
  0xe4   : > { %3049 = vmatpush1.bf16.msra.mxu1 %v5879_v14  ;;  %2767 = vmatprep.subr.bf16.mxu0 %v5884_v15  ;;  %v6571_v14 = vpop.permute.xlu0 %546  ;;  %v5953_v15 = vld [vmem:[%s6170_s28 + $0x27c] ss:$72 sps:$4 sm:$0x3f]  }
  0xe5   : > { %3050 = vmatprep.subr.bf16.mxu1 %v5887_v17  ;;  %v5942_v17 = vld [vmem:[%s6170_s28 + $0x1e0] ss:$72 sps:$4 sm:$0xff]  }
  0xe7   : > { %2768 = vmatpush1.bf16.msra.mxu0 %v5882_v19 }
  0xe8   : > { %3051 = vmatpush1.bf16.msra.mxu1 %v5885_v20  ;;  %2769 = vmatprep.subr.bf16.mxu0 %v2673_v24  ;;  %v5945_v20 = vld [vmem:[%s6170_s28 + $0x1e8] ss:$72 sps:$4 sm:$0xff]  }
  0xe9   : > { %3052 = vmatprep.subr.bf16.mxu1 %v3030_v25  ;;  %v3451_v25 = vand.u32 %v5950_v13, %v6188_v23  ;;  %v5964_v13 = vld [vmem:[%s6170_s28 + $0x390] ss:$72 sps:$4 sm:$0xff]  }
  0xeb   : > { %2770 = vmatpush1.bf16.msra.mxu0 %v2670_v26 }
  0xec   : > { %3053 = vmatpush1.bf16.msra.mxu1 %v3027_v27  ;;  %3087 = vmatprep.subr.bf16.mxu0 %v5896_v28 }
  0xed   : > { %3130 = vmatprep.subr.bf16.mxu1 %v5899_v29  ;;  %v3457_v29 = vand.u32 %v5953_v15, %v6188_v23 }
  0xee   : > { %5229 = vmatmul.mubr.msk.bf16.vlgmr.msra.gmra.mrb[40].mxu0 %vm384_vm2, %v6388_v56 }
  0xef   : > { %5290 = vmatmul.mubr.msk.bf16.vlgmr.msra.gmra.mrb[40].mxu1 %vm384_vm2, %v6388_v56  ;;  %3088 = vmatpush1.bf16.msra.mxu0 %v5894_v30 }
  0xf0   : > { %3131 = vmatpush1.bf16.msra.mxu1 %v5897_v31  ;;  %3089 = vmatprep.subr.bf16.mxu0 %v5902_v32 }
  0xf1   : > { %3132 = vmatprep.subr.bf16.mxu1 %v5905_v33  ;;  %3119 = vmatprep.mubr.bf16.mxu0 %v6113_v0 }
  0xf2   : > { %3162 = vmatprep.mubr.bf16.mxu1 %v6113_v0 }
  0xf3   : > { %3090 = vmatpush1.bf16.msra.mxu0 %v5900_v35  ;;  %v3448_v35 = vand.u32 %v5948_v18, %v6188_v23 }
  0xf4   : > { %3133 = vmatpush1.bf16.msra.mxu1 %v5903_v36  ;;  %3091 = vmatprep.subr.bf16.mxu0 %v5908_v37 }
  0xf5   : > { %3134 = vmatprep.subr.bf16.mxu1 %v5911_v38 }
  0xf7   : > { %3092 = vmatpush1.bf16.msra.mxu0 %v5906_v39 }
  0xf8   : > { %3135 = vmatpush1.bf16.msra.mxu1 %v5909_v40  ;;  %3093 = vmatprep.subr.bf16.mxu0 %v5914_v41  ;;  %v3454_v40 = vand.u32 %v5951_v21, %v6188_v23  ;;  %v5967_v21 = vld [vmem:[%s6170_s28 + $0x160] ss:$72 sps:$4 sm:$0xff]  }
  0xf9   : > { %3136 = vmatprep.subr.bf16.mxu1 %v5917_v34  ;;  %v444_v49 = vpop.f32.mrb[0].mxu0 }
  0xfa   : > { %v6535_v50 = vpop.f32.mrb[0].mxu1  ;;  %v446_v52 = vpop.f32.mrb[1].mxu0  ;;  %v549_v16 = vmul.f32 %v6557_v5, %v444_v49 }
  0xfb   : > { %v6538_v53 = vpop.f32.mrb[1].mxu1  ;;  %v448_v54 = vpop.f32.mrb[2].mxu0  ;;  %3094 = vmatpush1.bf16.msra.mxu0 %v5912_v43  ;;  %v550_v19 = vmul.f32 %v6557_v5, %v446_v52  ;;  %v551_v15 = vmul.f32 %v6557_v5, %v6535_v50 }
  0xfc   : > { %v6540_v55 = vpop.f32.mrb[2].mxu1  ;;  %3137 = vmatpush1.bf16.msra.mxu1 %v5915_v45  ;;  %v450_v60 = vpop.f32.mrb[3].mxu0  ;;  %3095 = vmatprep.subr.bf16.mxu0 %v3036_v48  ;;  %v555_v22 = vmul.f32 %v6571_v14, %v448_v54  ;;  %v5957_v45 = vld [vmem:[%s6170_s28 + $0x44] ss:$72 sps:$4 sm:$0xff]   ;;  %v552_v18 = vmul.f32 %v6557_v5, %v6538_v53 }
  0xfd   : > { %v6545_v61 = vpop.f32.mrb[3].mxu1  ;;  %3138 = vmatprep.subr.bf16.mxu1 %v3042_v51  ;;  %v556_v26 = vmul.f32 %v6571_v14, %v450_v60 }
  0xff   : > { %3096 = vmatpush1.bf16.msra.mxu0 %v3033_v57  ;;  %v6608_v57 = vld [vmem:[%s7240_s1] sm:$0xff]  }
 0x100   : > { %3139 = vmatpush1.bf16.msra.mxu1 %v3039_v58  ;;  %3465 = vmatprep.subr.bf16.mxu0 %v5926_v59 }
 0x101   : > { %3508 = vmatprep.subr.bf16.mxu1 %v5929_v62  ;;  %v5955_v62 = vld [vmem:[%s6170_s28 + $0x40] ss:$72 sps:$4 sm:$0xff]  }
 0x102   : > { %5291 = vmatmul.mubr.msk.bf16.vlgmr.msra.gmra.mrb[44].mxu0 %vm384_vm2, %v6388_v56 }
 0x103   : > { %5292 = vmatmul.mubr.msk.bf16.vlgmr.msra.gmra.mrb[44].mxu1 %vm384_vm2, %v6388_v56  ;;  %3466 = vmatpush1.bf16.msra.mxu0 %v5924_v63  ;;  %v6564_v56 = vpop.permute.xlu1 %563  ;;  %v5958_v63 = vld [vmem:[%s6170_s28 + $0x300] ss:$72 sps:$4 sm:$0xff]  }
 0x104   : > { %3509 = vmatpush1.bf16.msra.mxu1 %v5927_v1  ;;  %3467 = vmatprep.subr.bf16.mxu0 %v5932_v2  ;;  %v571_v30 = vadd.f32 %v6564_v56, %v549_v16  ;;  %v572_v36 = vadd.f32 %v6564_v56, %v550_v19  ;;  %v5969_v16 = vld [vmem:[%s6170_s28 + $0x164] ss:$72 sps:$4 sm:$0xff]   ;;  %v557_v19 = vmul.f32 %v6571_v14, %v6540_v55 }
 0x105   : > { %3510 = vmatprep.subr.bf16.mxu1 %v5935_v3  ;;  %3497 = vmatprep.mubr.bf16.mxu0 %v6113_v0 }
 0x106   : > { %3540 = vmatprep.mubr.bf16.mxu1 %v6113_v0  ;;  %v583_v51 = vmax.f32 %v571_v30, 0.0  ;;  %v584_v58 = vmax.f32 %v572_v36, 0.0  ;;  %v5984_v30 = vld [vmem:[%s6170_s28 + $0x544] ss:$72 sps:$4 sm:$0x3f]  }
 0x107   : > { %3468 = vmatpush1.bf16.msra.mxu0 %v5930_v4  ;;  %v6581_v24 = vpop.permute.xlu1 %568  ;;  %v5963_v4 = vld [vmem:[%s6170_s28 + $0xd4] ss:$72 sps:$4 sm:$0xff]  }
 0x108   : > { %3511 = vmatpush1.bf16.msra.mxu1 %v5933_v6  ;;  %3469 = vmatprep.subr.bf16.mxu0 %v5938_v7  ;;  %v577_v34 = vadd.f32 %v6581_v24, %v555_v22  ;;  %v578_v48 = vadd.f32 %v6581_v24, %v556_v26  ;;  %v5966_v6 = vld [vmem:[%s6170_s28 + $0x394] ss:$72 sps:$4 sm:$0xff]   ;;  %v5970_v22 = vld [vmem:[%s6170_s28 + $0x420] ss:$72 sps:$4 sm:$0xff]  }
 0x109   : > { %3512 = vmatprep.subr.bf16.mxu1 %v5941_v8  ;;  %v5978_v26 = vld [vmem:[%s6170_s28 + $0x4b4] ss:$72 sps:$4 sm:$0xff]  }
 0x10a   : > { %v589_v2 = vmax.f32 %v577_v34, 0.0  ;;  %v590_v8 = vmax.f32 %v578_v48, 0.0 }
 0x10b   : > { %3470 = vmatpush1.bf16.msra.mxu0 %v5936_v9 }
 0x10c   : > { %3513 = vmatpush1.bf16.msra.mxu1 %v5939_v10  ;;  %3471 = vmatprep.subr.bf16.mxu0 %v5944_v11 }
 0x10d   : > { %3514 = vmatprep.subr.bf16.mxu1 %v5947_v12  ;;  %v6585_v27 = vpop.f32.mrb[4].mxu0  ;;  %v5961_v12 = vld [vmem:[%s6170_s28 + $0xd0] ss:$72 sps:$4 sm:$0xff]  }
 0x10e   : > { %v822_v28 = vpop.f32.mrb[4].mxu1  ;;  %v6590_v32 = vpop.f32.mrb[5].mxu0  ;;  %v553_v50 = vmul.f32 %v6557_v5, %v6585_v27  ;;  %v6656_v27 = vld [vmem:[%s6170_s28 + $0x540] ss:$72 sps:$4 sm:$0x3f]  }
 0x10f   : > { %v917_v31 = vmul.f32 %v822_v28, %v6557_v5  ;;  %v824_v33 = vpop.f32.mrb[5].mxu1  ;;  %v534_v38 = vpop.f32.mrb[6].mxu0  ;;  %3472 = vmatpush1.bf16.msra.mxu0 %v5942_v17  ;;  %v5972_v17 = vld [vmem:[%s6170_s28 + $0x424] ss:$72 sps:$4 sm:$0xff]   ;;  %v554_v53 = vmul.f32 %v6557_v5, %v6590_v32  ;;  %v6663_v32 = vadd.f32 %v6564_v56, %v552_v18 }
 0x110   : > { %v918_v37 = vmul.f32 %v824_v33, %v6557_v5  ;;  %v826_v39 = vpop.f32.mrb[6].mxu1  ;;  %3515 = vmatpush1.bf16.msra.mxu1 %v5945_v20  ;;  %v536_v43 = vpop.f32.mrb[7].mxu0  ;;  %3473 = vmatprep.subr.bf16.mxu0 %v3451_v25  ;;  %v558_v20 = vmul.f32 %v6571_v14, %v6545_v61  ;;  %v5975_v25 = vld [vmem:[%s6170_s28 + $0x1f4] ss:$72 sps:$4 sm:$0xff]   ;;  %v559_v55 = vmul.f32 %v6571_v14, %v534_v38 }
 0x111   : > { %v929_v41 = vadd.f32 %v917_v31, %v6564_v56  ;;  %v923_v42 = vmul.f32 %v826_v39, %v6571_v14  ;;  %v828_v44 = vpop.f32.mrb[7].mxu1  ;;  %3516 = vmatprep.subr.bf16.mxu1 %v3457_v29  ;;  %v560_v61 = vmul.f32 %v6571_v14, %v536_v43  ;;  %v6652_v28 = vld [vmem:[%s6170_s28 + $0x280] ss:$72 sps:$4 sm:$0x3f]   ;;  %v6660_v31 = vadd.f32 %v6564_v56, %v551_v15  ;;  %v5987_v18 = vld [vmem:[%s6170_s28 + $0x30c] ss:$72 sps:$4 sm:$0xff]  }
 0x112   : > { %v930_v47 = vadd.f32 %v918_v37, %v6564_v56  ;;  %v924_v49 = vmul.f32 %v828_v44, %v6571_v14  ;;  %v5981_v29 = vld [vmem:[%s6170_s28 + $0x284] ss:$72 sps:$4 sm:$0x3f]   ;;  %v6666_v33 = vadd.f32 %v6581_v24, %v557_v19  ;;  %v575_v36 = vadd.f32 %v6564_v56, %v553_v50  ;;  %v5990_v19 = vld [vmem:[%s6170_s28 + $0x314] ss:$72 sps:$4 sm:$0xff]  }
 0x113   : > { %v941_v52 = vmax.f32 %v929_v41, 0.0  ;;  %v935_v54 = vadd.f32 %v923_v42, %v6581_v24  ;;  %3474 = vmatpush1.bf16.msra.mxu0 %v3448_v35  ;;  %v6669_v35 = vadd.f32 %v6581_v24, %v558_v20  ;;  %v6673_v37 = vadd.f32 %v6564_v56, %v554_v53  ;;  %v5976_v41 = vld [vmem:[%s6170_s28 + $0x4b0] ss:$72 sps:$4 sm:$0xff]  }
 0x114   : > { %v942_v59 = vmax.f32 %v930_v47, 0.0  ;;  %v936_v60 = vadd.f32 %v924_v49, %v6581_v24  ;;  %3517 = vmatpush1.bf16.msra.mxu1 %v3454_v40  ;;  %3551 = vmatprep.subr.bf16.mxu0 %v5957_v45  ;;  %v6676_v38 = vadd.f32 %v6581_v24, %v559_v55  ;;  %v6679_v39 = vadd.f32 %v6581_v24, %v560_v61  ;;  %v5973_v40 = vld [vmem:[%s6170_s28 + $0x1f0] ss:$72 sps:$4 sm:$0xff]  }
 0x115   : > { %v6613_v1 = vmax.f32 %v583_v51, %v941_v52  ;;  %v947_v3 = vmax.f32 %v935_v54, 0.0  ;;  %3822 = vmatprep.subr.bf16.mxu1 %v5960_v46  ;;  %v3460_v34 = vand.u32 %v6652_v28, %v6188_v23  ;;  %v3463_v42 = vand.u32 %v5981_v29, %v6188_v23 }
 0x116   : > { %v6617_v7 = vmax.f32 %v584_v58, %v942_v59  ;;  %v948_v9 = vmax.f32 %v936_v60, 0.0  ;;  %5330 = vmatmul.mubr.msk.bf16.vlgmr.msra.gmra.mrb[48].mxu0 %vm384_vm2, %v6608_v57  ;;  %v3808_v43 = vand.u32 %v5984_v30, %v6188_v23  ;;  %v3805_v44 = vand.u32 %v6656_v27, %v6188_v23  ;;  %v5985_v30 = vld [vmem:[%s6170_s28 + $0x308] ss:$72 sps:$4 sm:$0xff]  }
 0x117   : > { %v6619_v10 = vmax.f32 %v589_v2, %v947_v3  ;;  %5331 = vmatmul.mubr.msk.bf16.vlgmr.msra.gmra.mrb[48].mxu1 %vm384_vm2, %v6608_v57  ;;  %3552 = vmatpush1.bf16.msra.mxu0 %v5955_v62  ;;  %v585_v45 = vmax.f32 %v6660_v31, 0.0  ;;  %v586_v46 = vmax.f32 %v6663_v32, 0.0  ;;  %v591_v49 = vmax.f32 %v6666_v33, 0.0  ;;  %v5988_v31 = vld [vmem:[%s6170_s28 + $0x310] ss:$72 sps:$4 sm:$0xff]  }
 0x118   : > { %v6625_v11 = vmax.f32 %v590_v8, %v948_v9  ;;  %3823 = vmatpush1.bf16.msra.mxu1 %v5958_v63  ;;  %3553 = vmatprep.subr.bf16.mxu0 %v5963_v4  ;;  %v592_v51 = vmax.f32 %v6669_v35, 0.0  ;;  %v587_v52 = vmax.f32 %v575_v36, 0.0  ;;  %v588_v54 = vmax.f32 %v6673_v37, 0.0  ;;  %v5993_v37 = vld [vmem:[%s6170_s28 + $0x39c] ss:$72 sps:$4 sm:$0xff]  }
 0x119   : > { %3824 = vmatprep.subr.bf16.mxu1 %v5966_v6  ;;  %3583 = vmatprep.mubr.bf16.mxu0 %v6113_v0  ;;  %v593_v63 = vmax.f32 %v6676_v38, 0.0  ;;  %v594_v2 = vmax.f32 %v6679_v39, 0.0  ;;  %v5996_v38 = vld [vmem:[%s6170_s28 + $0x3a4] ss:$72 sps:$4 sm:$0xff]  }
 0x11a   : > { %3854 = vmatprep.mubr.bf16.mxu1 %v6113_v0 }
 0x11b   : > { %3554 = vmatpush1.bf16.msra.mxu0 %v5961_v12 }
 0x11c   : > { %3825 = vmatpush1.bf16.msra.mxu1 %v5964_v13  ;;  %3555 = vmatprep.subr.bf16.mxu0 %v5969_v16 }
 0x11d   : > { %3826 = vmatprep.subr.bf16.mxu1 %v5972_v17 }
 0x11f   : > { %3556 = vmatpush1.bf16.msra.mxu0 %v5967_v21 }
 0x120   : > { %3827 = vmatpush1.bf16.msra.mxu1 %v5970_v22  ;;  %3557 = vmatprep.subr.bf16.mxu0 %v5975_v25 }
 0x121   : > { %3828 = vmatprep.subr.bf16.mxu1 %v5978_v26  ;;  %v865_v47 = vpop.f32.mrb[8].mxu0 }
 0x122   : > { %v908_v48 = vpop.f32.mrb[8].mxu1  ;;  %v919_v58 = vmul.f32 %v865_v47, %v6557_v5  ;;  %v867_v60 = vpop.f32.mrb[9].mxu0  ;;  %v5994_v47 = vld [vmem:[%s6170_s28 + $0x3a0] ss:$72 sps:$4 sm:$0xff]  }
 0x123   : > { %v921_v59 = vmul.f32 %v908_v48, %v6557_v5  ;;  %v910_v62 = vpop.f32.mrb[9].mxu1  ;;  %v920_v3 = vmul.f32 %v867_v60, %v6557_v5  ;;  %v869_v6 = vpop.f32.mrb[10].mxu0  ;;  %3558 = vmatpush1.bf16.msra.mxu0 %v5973_v40  ;;  %v5999_v48 = vld [vmem:[%s6170_s28 + $0x42c] ss:$72 sps:$4 sm:$0xff]  }
 0x124   : > { %v922_v4 = vmul.f32 %v910_v62, %v6557_v5  ;;  %v912_v8 = vpop.f32.mrb[10].mxu1  ;;  %3829 = vmatpush1.bf16.msra.mxu1 %v5976_v41  ;;  %v931_v9 = vadd.f32 %v919_v58, %v6564_v56  ;;  %v925_v13 = vmul.f32 %v869_v6, %v6571_v14  ;;  %v871_v16 = vpop.f32.mrb[11].mxu0  ;;  %3559 = vmatprep.subr.bf16.mxu0 %v3463_v42  ;;  %v6008_v58 = vld [vmem:[%s6170_s28 + $0x4c4] ss:$72 sps:$4 sm:$0xff]   ;;  %v6003_v62 = vld [vmem:[%s6170_s28 + $0x4b8] ss:$72 sps:$4 sm:$0xff]  }
 0x125   : > { %v933_v12 = vadd.f32 %v921_v59, %v6564_v56  ;;  %v927_v15 = vmul.f32 %v912_v8, %v6571_v14  ;;  %v914_v17 = vpop.f32.mrb[11].mxu1  ;;  %v932_v20 = vadd.f32 %v920_v3, %v6564_v56  ;;  %v926_v50 = vmul.f32 %v871_v16, %v6571_v14  ;;  %3830 = vmatprep.subr.bf16.mxu1 %v3808_v43  ;;  %v6011_v59 = vld [vmem:[%s6170_s28 + $0x54c] ss:$72 sps:$4 sm:$0x3f]  }
 0x126   : > { %v934_v21 = vadd.f32 %v922_v4, %v6564_v56  ;;  %v928_v53 = vmul.f32 %v914_v17, %v6571_v14  ;;  %v943_v22 = vmax.f32 %v931_v9, 0.0  ;;  %v937_v26 = vadd.f32 %v925_v13, %v6581_v24  ;;  %v6014_v60 = vld [vmem:[%s6170_s28 + $0x554] ss:$72 sps:$4 sm:$0x3f]  }
 0x127   : > { %v945_v25 = vmax.f32 %v933_v12, 0.0  ;;  %v939_v55 = vadd.f32 %v927_v15, %v6581_v24  ;;  %v944_v61 = vmax.f32 %v932_v20, 0.0  ;;  %v938_v29 = vadd.f32 %v926_v50, %v6581_v24  ;;  %3560 = vmatpush1.bf16.msra.mxu0 %v3460_v34  ;;  %v6012_v3 = vld [vmem:[%s6170_s28 + $0x550] ss:$72 sps:$4 sm:$0x3f]  }
 0x128   : > { %v946_v28 = vmax.f32 %v934_v21, 0.0  ;;  %v940_v27 = vadd.f32 %v928_v53, %v6581_v24  ;;  %3831 = vmatpush1.bf16.msra.mxu1 %v3805_v44  ;;  %v6716_v32 = vmax.f32 %v585_v45, %v943_v22  ;;  %v949_v35 = vmax.f32 %v937_v26, 0.0  ;;  %3865 = vmatprep.subr.bf16.mxu0 %v5987_v18 }
 0x129   : > { %v6718_v33 = vmax.f32 %v587_v52, %v945_v25  ;;  %v951_v36 = vmax.f32 %v939_v55, 0.0  ;;  %3908 = vmatprep.subr.bf16.mxu1 %v5990_v19  ;;  %v6722_v39 = vmax.f32 %v586_v46, %v944_v61  ;;  %v950_v41 = vmax.f32 %v938_v29, 0.0  ;;  %v5991_v46 = vld [vmem:[%s6170_s28 + $0x398] ss:$72 sps:$4 sm:$0xff]   ;;  %v6020_v29 = vld [vmem:[%s6170_s28 + $0x5dc] ss:$72 sps:$4 sm:$0xff]  }
 0x12a   : > { %v6724_v40 = vmax.f32 %v588_v54, %v946_v28  ;;  %v952_v34 = vmax.f32 %v940_v27, 0.0  ;;  %v6726_v42 = vmax.f32 %v591_v49, %v949_v35  ;;  %5332 = vmatmul.mubr.msk.bf16.vlgmr.msra.gmra.mrb[52].mxu0 %vm384_vm2, %v6608_v57  ;;  %v6002_v49 = vld [vmem:[%s6170_s28 + $0x434] ss:$72 sps:$4 sm:$0xff]   ;;  %v6000_v52 = vld [vmem:[%s6170_s28 + $0x430] ss:$72 sps:$4 sm:$0xff]   ;;  %v3814_v4 = vand.u32 %v6011_v59, %v6188_v23 }
 0x12b   : > { %v6728_v43 = vmax.f32 %v593_v63, %v951_v36  ;;  %5393 = vmatmul.mubr.msk.bf16.vlgmr.msra.gmra.mrb[52].mxu1 %vm384_vm2, %v6608_v57  ;;  %v6734_v44 = vmax.f32 %v592_v51, %v950_v41  ;;  %3866 = vmatpush1.bf16.msra.mxu0 %v5985_v30  ;;  %v5997_v51 = vld [vmem:[%s6170_s28 + $0x428] ss:$72 sps:$4 sm:$0xff]   ;;  %v6005_v54 = vld [vmem:[%s6170_s28 + $0x4bc] ss:$72 sps:$4 sm:$0xff]   ;;  %v3820_v9 = vand.u32 %v6014_v60, %v6188_v23 }
 0x12c   : > { %v6736_v45 = vmax.f32 %v594_v2, %v952_v34  ;;  %3909 = vmatpush1.bf16.msra.mxu1 %v5988_v31  ;;  %3867 = vmatprep.subr.bf16.mxu0 %v5993_v37  ;;  %v6009_v63 = vld [vmem:[%s6170_s28 + $0x548] ss:$72 sps:$4 sm:$0x3f]   ;;  %v3817_v50 = vand.u32 %v6012_v3, %v6188_v23  ;;  %v6017_v28 = vld [vmem:[%s6170_s28 + $0x5d4] ss:$72 sps:$4 sm:$0xff]  }
 0x12d   : > { %3910 = vmatprep.subr.bf16.mxu1 %v5996_v38  ;;  %3897 = vmatprep.mubr.bf16.mxu0 %v6113_v0  ;;  %v6006_v2 = vld [vmem:[%s6170_s28 + $0x4c0] ss:$72 sps:$4 sm:$0xff]   ;;  %v3811_v17 = vand.u32 %v6009_v63, %v6188_v23  ;;  %v6023_v60 = vld [vmem:[%s6170_s28 + $0x664] ss:$72 sps:$4 sm:$0xff]  }
 0x12e   : > { %3940 = vmatprep.mubr.bf16.mxu1 %v6113_v0 }
 0x12f   : > { %3868 = vmatpush1.bf16.msra.mxu0 %v5991_v46 }
 0x130   : > { %3911 = vmatpush1.bf16.msra.mxu1 %v5994_v47  ;;  %3869 = vmatprep.subr.bf16.mxu0 %v5999_v48 }
 0x131   : > { %3912 = vmatprep.subr.bf16.mxu1 %v6002_v49  ;;  %v6015_v49 = vld [vmem:[%s6170_s28 + $0x5d0] ss:$72 sps:$4 sm:$0xff]  }
 0x133   : > { %3870 = vmatpush1.bf16.msra.mxu0 %v5997_v51  ;;  %v6018_v51 = vld [vmem:[%s6170_s28 + $0x5d8] ss:$72 sps:$4 sm:$0xff]  }
 0x134   : > { %3913 = vmatpush1.bf16.msra.mxu1 %v6000_v52  ;;  %3871 = vmatprep.subr.bf16.mxu0 %v6005_v54 }
 0x135   : > { %3914 = vmatprep.subr.bf16.mxu1 %v6008_v58  ;;  %v1192_v6 = vpop.f32.mrb[12].mxu0 }
 0x136   : > { %v1235_v8 = vpop.f32.mrb[12].mxu1  ;;  %v1287_v12 = vmul.f32 %v1192_v6, %v6557_v5  ;;  %v1194_v15 = vpop.f32.mrb[13].mxu0  ;;  %v6029_v6 = vld [vmem:[%s6170_s28 + $0x6f4] ss:$72 sps:$4 sm:$0xff]  }
 0x137   : > { %v1289_v13 = vmul.f32 %v1235_v8, %v6557_v5  ;;  %v1237_v16 = vpop.f32.mrb[13].mxu1  ;;  %v1288_v18 = vmul.f32 %v1194_v15, %v6557_v5  ;;  %v1196_v20 = vpop.f32.mrb[14].mxu0  ;;  %3872 = vmatpush1.bf16.msra.mxu0 %v6003_v62  ;;  %v6026_v62 = vld [vmem:[%s6170_s28 + $0x66c] ss:$72 sps:$4 sm:$0xff]   ;;  %v6032_v8 = vld [vmem:[%s6170_s28 + $0x6fc] ss:$72 sps:$4 sm:$0xff]  }
 0x138   : > { %v1290_v19 = vmul.f32 %v1237_v16, %v6557_v5  ;;  %v1239_v21 = vpop.f32.mrb[14].mxu1  ;;  %3915 = vmatpush1.bf16.msra.mxu1 %v6006_v2  ;;  %v1299_v53 = vadd.f32 %v1287_v12, %v6564_v56  ;;  %v1293_v25 = vmul.f32 %v1196_v20, %v6571_v14  ;;  %v1198_v55 = vpop.f32.mrb[15].mxu0  ;;  %3873 = vmatprep.subr.bf16.mxu0 %v3814_v4  ;;  %v6038_v12 = vld [vmem:[%s6170_s28 + $0x78c] ss:$72 sps:$4 sm:$0xff]   ;;  %v6033_v16 = vld [vmem:[%s6170_s28 + $0x780] ss:$72 sps:$4 sm:$0xff]  }
 0x139   : > { %v1301_v22 = vadd.f32 %v1289_v13, %v6564_v56  ;;  %v1295_v26 = vmul.f32 %v1239_v21, %v6571_v14  ;;  %v1241_v61 = vpop.f32.mrb[15].mxu1  ;;  %v1300_v27 = vadd.f32 %v1288_v18, %v6564_v56  ;;  %v1294_v31 = vmul.f32 %v1198_v55, %v6571_v14  ;;  %3916 = vmatprep.subr.bf16.mxu1 %v3820_v9  ;;  %v6035_v9 = vld [vmem:[%s6170_s28 + $0x784] ss:$72 sps:$4 sm:$0xff]   ;;  %v6041_v13 = vld [vmem:[%s6170_s28 + $0x814] ss:$72 sps:$4 sm:$0x3f]  }
 0x13a   : > { %v1302_v30 = vadd.f32 %v1290_v19, %v6564_v56  ;;  %v1296_v35 = vmul.f32 %v1241_v61, %v6571_v14  ;;  %v1311_v36 = vmax.f32 %v1299_v53, 0.0  ;;  %v1305_v38 = vadd.f32 %v1293_v25, %v6581_v24  ;;  %v6044_v15 = vld [vmem:[%s6170_s28 + $0x81c] ss:$72 sps:$4 sm:$0x3f]   ;;  %v6036_v18 = vld [vmem:[%s6170_s28 + $0x788] ss:$72 sps:$4 sm:$0xff]  }
 0x13b   : > { %v1313_v37 = vmax.f32 %v1301_v22, 0.0  ;;  %v1307_v41 = vadd.f32 %v1295_v26, %v6581_v24  ;;  %v1312_v34 = vmax.f32 %v1300_v27, 0.0  ;;  %v1306_v47 = vadd.f32 %v1294_v31, %v6581_v24  ;;  %3874 = vmatpush1.bf16.msra.mxu0 %v3811_v17  ;;  %v6039_v17 = vld [vmem:[%s6170_s28 + $0x810] ss:$72 sps:$4 sm:$0x3f]  }
 0x13c   : > { %v1314_v46 = vmax.f32 %v1302_v30, 0.0  ;;  %v1308_v48 = vadd.f32 %v1296_v35, %v6581_v24  ;;  %3917 = vmatpush1.bf16.msra.mxu1 %v3817_v50  ;;  %v6779_v52 = vmax.f32 %v6613_v1, %v1311_v36  ;;  %v1317_v58 = vmax.f32 %v1305_v38, 0.0  ;;  %4191 = vmatprep.subr.bf16.mxu0 %v6017_v28  ;;  %v6042_v19 = vld [vmem:[%s6170_s28 + $0x818] ss:$72 sps:$4 sm:$0x3f]  }
 0x13d   : > { %v6782_v54 = vmax.f32 %v6716_v32, %v1313_v37  ;;  %v1319_v59 = vmax.f32 %v1307_v41, 0.0  ;;  %4234 = vmatprep.subr.bf16.mxu1 %v6020_v29  ;;  %v6787_v63 = vmax.f32 %v6617_v7, %v1312_v34  ;;  %v1318_v1 = vmax.f32 %v1306_v47, 0.0  ;;  %v6050_v47 = vld [vmem:[%s6170_s28 + $0x8a4] ss:$72 sps:$4 sm:$0xff]  }
 0x13e   : > { %v6790_v2 = vmax.f32 %v6722_v39, %v1314_v46  ;;  %v1320_v3 = vmax.f32 %v1308_v48, 0.0  ;;  %v6793_v32 = vmax.f32 %v6619_v10, %v1317_v58  ;;  %5394 = vmatmul.mubr.msk.bf16.vlgmr.msra.gmra.mrb[56].mxu0 %vm384_vm2, %v6608_v57  ;;  %v6021_v10 = vld [vmem:[%s6170_s28 + $0x660] ss:$72 sps:$4 sm:$0xff]   ;;  %v4177_v20 = vand.u32 %v6041_v13, %v6188_v23  ;;  %v6047_v46 = vld [vmem:[%s6170_s28 + $0x5e4] ss:$72 sps:$4 sm:$0xff]  }
 0x13f   : > { %v6796_v4 = vmax.f32 %v6726_v42, %v1319_v59  ;;  %5395 = vmatmul.mubr.msk.bf16.vlgmr.msra.gmra.mrb[56].mxu1 %vm384_vm2, %v6608_v57  ;;  %v6803_v7 = vmax.f32 %v6625_v11, %v1318_v1  ;;  %4192 = vmatpush1.bf16.msra.mxu0 %v6015_v49  ;;  %v6024_v42 = vld [vmem:[%s6170_s28 + $0x668] ss:$72 sps:$4 sm:$0xff]   ;;  %v4183_v53 = vand.u32 %v6044_v15, %v6188_v23  ;;  %v6053_v15 = vld [vmem:[%s6170_s28 + $0x674] ss:$72 sps:$4 sm:$0xff]  }
 0x140   : > { %v6806_v39 = vmax.f32 %v6734_v44, %v1320_v3  ;;  %4235 = vmatpush1.bf16.msra.mxu1 %v6018_v51  ;;  %4193 = vmatprep.subr.bf16.mxu0 %v6023_v60  ;;  %v6027_v11 = vld [vmem:[%s6170_s28 + $0x6f0] ss:$72 sps:$4 sm:$0xff]   ;;  %v4174_v61 = vand.u32 %v6039_v17, %v6188_v23  ;;  %v4180_v31 = vand.u32 %v6042_v19, %v6188_v23 }
 0x141   : > { %4236 = vmatprep.subr.bf16.mxu1 %v6026_v62  ;;  %4223 = vmatprep.mubr.bf16.mxu0 %v6113_v0  ;;  %v6030_v44 = vld [vmem:[%s6170_s28 + $0x6f8] ss:$72 sps:$4 sm:$0xff]  }
 0x142   : > { %4266 = vmatprep.mubr.bf16.mxu1 %v6113_v0 }
 0x143   : > { %4194 = vmatpush1.bf16.msra.mxu0 %v6021_v10 }
 0x144   : > { %4237 = vmatpush1.bf16.msra.mxu1 %v6024_v42  ;;  %4195 = vmatprep.subr.bf16.mxu0 %v6029_v6 }
 0x145   : > { %4238 = vmatprep.subr.bf16.mxu1 %v6032_v8  ;;  %v6045_v8 = vld [vmem:[%s6170_s28 + $0x5e0] ss:$72 sps:$4 sm:$0xff]  }
 0x147   : > { %4196 = vmatpush1.bf16.msra.mxu0 %v6027_v11  ;;  %v6048_v11 = vld [vmem:[%s6170_s28 + $0x8a0] ss:$72 sps:$4 sm:$0xff]  }
 0x148   : > { %4239 = vmatpush1.bf16.msra.mxu1 %v6030_v44  ;;  %4197 = vmatprep.subr.bf16.mxu0 %v6035_v9 }
 0x149   : > { %4240 = vmatprep.subr.bf16.mxu1 %v6038_v12  ;;  %v1278_v21 = vpop.f32.mrb[16].mxu0 }
 0x14a   : > { %v1562_v50 = vpop.f32.mrb[16].mxu1  ;;  %v1291_v22 = vmul.f32 %v1278_v21, %v6557_v5  ;;  %v1280_v26 = vpop.f32.mrb[17].mxu0 }
 0x14b   : > { %v1657_v25 = vmul.f32 %v1562_v50, %v6557_v5  ;;  %v1564_v55 = vpop.f32.mrb[17].mxu1  ;;  %v1292_v28 = vmul.f32 %v1280_v26, %v6557_v5  ;;  %v1282_v27 = vpop.f32.mrb[18].mxu0  ;;  %4198 = vmatpush1.bf16.msra.mxu0 %v6033_v16  ;;  %v6056_v16 = vld [vmem:[%s6170_s28 + $0x934] ss:$72 sps:$4 sm:$0xff]   ;;  %v6059_v50 = vld [vmem:[%s6170_s28 + $0x704] ss:$72 sps:$4 sm:$0xff]  }
 0x14c   : > { %v1658_v29 = vmul.f32 %v1564_v55, %v6557_v5  ;;  %v1566_v30 = vpop.f32.mrb[18].mxu1  ;;  %4241 = vmatpush1.bf16.msra.mxu1 %v6036_v18  ;;  %v1303_v35 = vadd.f32 %v1291_v22, %v6564_v56  ;;  %v1297_v37 = vmul.f32 %v1282_v27, %v6571_v14  ;;  %v1284_v41 = vpop.f32.mrb[19].mxu0  ;;  %4199 = vmatprep.subr.bf16.mxu0 %v4177_v20  ;;  %v6060_v22 = vld [vmem:[%s6170_s28 + $0x9c0] ss:$72 sps:$4 sm:$0xff]   ;;  %v6068_v26 = vld [vmem:[%s6170_s28 + $0xa54] ss:$72 sps:$4 sm:$0xff]  }
 0x14d   : > { %v1669_v36 = vadd.f32 %v1657_v25, %v6564_v56  ;;  %v1663_v38 = vmul.f32 %v1566_v30, %v6571_v14  ;;  %v1568_v34 = vpop.f32.mrb[19].mxu1  ;;  %v1304_v48 = vadd.f32 %v1292_v28, %v6564_v56  ;;  %v1298_v51 = vmul.f32 %v1284_v41, %v6571_v14  ;;  %4242 = vmatprep.subr.bf16.mxu1 %v4183_v53  ;;  %v6062_v53 = vld [vmem:[%s6170_s28 + $0x9c4] ss:$72 sps:$4 sm:$0xff]   ;;  %v6065_v25 = vld [vmem:[%s6170_s28 + $0x794] ss:$72 sps:$4 sm:$0xff]  }
 0x14e   : > { %v1670_v49 = vadd.f32 %v1658_v29, %v6564_v56  ;;  %v1664_v58 = vmul.f32 %v1568_v34, %v6571_v14  ;;  %v1315_v59 = vmax.f32 %v1303_v35, 0.0  ;;  %v1309_v62 = vadd.f32 %v1297_v37, %v6581_v24  ;;  %v6071_v55 = vld [vmem:[%s6170_s28 + $0x824] ss:$72 sps:$4 sm:$0x3f]   ;;  %v6063_v28 = vld [vmem:[%s6170_s28 + $0x790] ss:$72 sps:$4 sm:$0xff]  }
 0x14f   : > { %v1681_v60 = vmax.f32 %v1669_v36, 0.0  ;;  %v1675_v1 = vadd.f32 %v1663_v38, %v6581_v24  ;;  %v1316_v3 = vmax.f32 %v1304_v48, 0.0  ;;  %v1310_v42 = vadd.f32 %v1298_v51, %v6581_v24  ;;  %4200 = vmatpush1.bf16.msra.mxu0 %v4174_v61  ;;  %v6074_v61 = vld [vmem:[%s6170_s28 + $0xae4] ss:$72 sps:$4 sm:$0x3f]  }
 0x150   : > { %v1682_v10 = vmax.f32 %v1670_v49, 0.0  ;;  %v1676_v6 = vadd.f32 %v1664_v58, %v6581_v24  ;;  %4243 = vmatpush1.bf16.msra.mxu1 %v4180_v31  ;;  %v6850_v44 = vmax.f32 %v6718_v33, %v1315_v59  ;;  %v1321_v12 = vmax.f32 %v1309_v62, 0.0  ;;  %4277 = vmatprep.subr.bf16.mxu0 %v6047_v46  ;;  %v6069_v29 = vld [vmem:[%s6170_s28 + $0x820] ss:$72 sps:$4 sm:$0x3f]  }
 0x151   : > { %v1693_v9 = vmax.f32 %v6779_v52, %v1681_v60  ;;  %v1687_v13 = vmax.f32 %v1675_v1, 0.0  ;;  %4560 = vmatprep.subr.bf16.mxu1 %v6050_v47  ;;  %v6856_v17 = vmax.f32 %v6724_v40, %v1316_v3  ;;  %v1322_v19 = vmax.f32 %v1310_v42, 0.0  ;;  %v6066_v27 = vld [vmem:[%s6170_s28 + $0xa50] ss:$72 sps:$4 sm:$0xff]  }
 0x152   : > { %v1694_v18 = vmax.f32 %v6787_v63, %v1682_v10  ;;  %v1688_v20 = vmax.f32 %v1676_v6, 0.0  ;;  %v6865_v33 = vmax.f32 %v6728_v43, %v1321_v12  ;;  %5456 = vmatmul.mubr.msk.bf16.vlgmr.msra.gmra.mrb[60].mxu0 %vm384_vm2, %v6608_v57  ;;  %v6051_v43 = vld [vmem:[%s6170_s28 + $0x670] ss:$72 sps:$4 sm:$0xff]   ;;  %v6072_v30 = vld [vmem:[%s6170_s28 + $0xae0] ss:$72 sps:$4 sm:$0x3f]   ;;  %v4189_v31 = vand.u32 %v6071_v55, %v6188_v23 }
 0x153   : > { %v1699_v52 = vmax.f32 %v6793_v32, %v1687_v13  ;;  %5457 = vmatmul.mubr.msk.bf16.vlgmr.msra.gmra.mrb[60].mxu1 %vm384_vm2, %v6608_v57  ;;  %v6873_v63 = vmax.f32 %v6736_v45, %v1322_v19  ;;  %4278 = vmatpush1.bf16.msra.mxu0 %v6045_v8  ;;  %v6054_v32 = vld [vmem:[%s6170_s28 + $0x930] ss:$72 sps:$4 sm:$0xff]   ;;  %v4546_v37 = vand.u32 %v6074_v61, %v6188_v23  ;;  %v6077_v6 = vld [vmem:[%s6170_s28 + $0x8ac] ss:$72 sps:$4 sm:$0xff]  }
 0x154   : > { %v5530_v40 = vpack.c.bf16 %v1694_v18, %v1693_v9  ;;  %v1700_v21 = vmax.f32 %v6803_v7, %v1688_v20  ;;  %4561 = vmatpush1.bf16.msra.mxu1 %v6048_v11  ;;  %4279 = vmatprep.subr.bf16.mxu0 %v6053_v15  ;;  %v6057_v7 = vld [vmem:[%s6170_s28 + $0x700] ss:$72 sps:$4 sm:$0xff]   ;;  %v4186_v47 = vand.u32 %v6069_v29, %v6188_v23  ;;  %v6080_v8 = vld [vmem:[%s6170_s28 + $0x8b4] ss:$72 sps:$4 sm:$0xff]  }
 0x155   : > { %4562 = vmatprep.subr.bf16.mxu1 %v6056_v16  ;;  %4309 = vmatprep.mubr.bf16.mxu0 %v6113_v0  ;;  %v4543_v59 = vand.u32 %v6072_v30, %v6188_v23  ;;  %v6081_v30 = vld [vmem:[%s6170_s28 + $0x938] ss:$72 sps:$4 sm:$0xff]  }
 0x156   : > { %1741 = vst [vmem:[%s6862_s12] sm:$0xff] %v5530_v40  ;;  %v5533_v45 = vpack.c.bf16 %v1700_v21, %v1699_v52  ;;  %4592 = vmatprep.mubr.bf16.mxu1 %v6113_v0 }
 0x157   : > { %4280 = vmatpush1.bf16.msra.mxu0 %v6051_v43  ;;  %v6075_v43 = vld [vmem:[%s6170_s28 + $0x8a8] ss:$72 sps:$4 sm:$0xff]  }
 0x158   : > { %1744 = vst [vmem:[%s6862_s12 + $0x48] sm:$0xff] %v5533_v45  ;;  %4563 = vmatpush1.bf16.msra.mxu1 %v6054_v32  ;;  %4281 = vmatprep.subr.bf16.mxu0 %v6059_v50 }
 0x159   : > { %4564 = vmatprep.subr.bf16.mxu1 %v6062_v53 }
 0x15b   : > { %4282 = vmatpush1.bf16.msra.mxu0 %v6057_v7  ;;  %v6078_v7 = vld [vmem:[%s6170_s28 + $0x8b0] ss:$72 sps:$4 sm:$0xff]  }
 0x15c   : > { %4565 = vmatpush1.bf16.msra.mxu1 %v6060_v22  ;;  %4283 = vmatprep.subr.bf16.mxu0 %v6065_v25  ;;  %v6083_v22 = vld [vmem:[%s6170_s28 + $0x93c] ss:$72 sps:$4 sm:$0xff]  }
 0x15d   : > { %4566 = vmatprep.subr.bf16.mxu1 %v6068_v26  ;;  %v1605_v35 = vpop.f32.mrb[20].mxu0 }
 0x15e   : > { %v1648_v36 = vpop.f32.mrb[20].mxu1  ;;  %v1659_v38 = vmul.f32 %v1605_v35, %v6557_v5  ;;  %v1607_v34 = vpop.f32.mrb[21].mxu0 }
 0x15f   : > { %v1661_v41 = vmul.f32 %v1648_v36, %v6557_v5  ;;  %v1650_v46 = vpop.f32.mrb[21].mxu1  ;;  %v1660_v48 = vmul.f32 %v1607_v34, %v6557_v5  ;;  %v1609_v51 = vpop.f32.mrb[22].mxu0  ;;  %4284 = vmatpush1.bf16.msra.mxu0 %v6063_v28  ;;  %v6086_v28 = vld [vmem:[%s6170_s28 + $0x944] ss:$72 sps:$4 sm:$0xff]   ;;  %v6090_v36 = vld [vmem:[%s6170_s28 + $0x9d0] ss:$72 sps:$4 sm:$0xff]  }
 0x160   : > { %v1662_v49 = vmul.f32 %v1650_v46, %v6557_v5  ;;  %v1652_v58 = vpop.f32.mrb[22].mxu1  ;;  %4567 = vmatpush1.bf16.msra.mxu1 %v6066_v27  ;;  %v1671_v60 = vadd.f32 %v1659_v38, %v6564_v56  ;;  %v1665_v1 = vmul.f32 %v1609_v51, %v6571_v14  ;;  %v1611_v10 = vpop.f32.mrb[23].mxu0  ;;  %4285 = vmatprep.subr.bf16.mxu0 %v4189_v31  ;;  %v6098_v38 = vld [vmem:[%s6170_s28 + $0xa64] ss:$72 sps:$4 sm:$0xff]   ;;  %v6093_v46 = vld [vmem:[%s6170_s28 + $0xa58] ss:$72 sps:$4 sm:$0xff]  }
 0x161   : > { %v1673_v62 = vadd.f32 %v1661_v41, %v6564_v56  ;;  %v1667_v3 = vmul.f32 %v1652_v58, %v6571_v14  ;;  %v1654_v42 = vpop.f32.mrb[23].mxu1  ;;  %v1672_v11 = vadd.f32 %v1660_v48, %v6564_v56  ;;  %v1666_v12 = vmul.f32 %v1611_v10, %v6571_v14  ;;  %4568 = vmatprep.subr.bf16.mxu1 %v4546_v37  ;;  %v6095_v37 = vld [vmem:[%s6170_s28 + $0xa5c] ss:$72 sps:$4 sm:$0xff]   ;;  %v6101_v41 = vld [vmem:[%s6170_s28 + $0xaec] ss:$72 sps:$4 sm:$0x3f]  }
 0x162   : > { %v1674_v9 = vadd.f32 %v1662_v49, %v6564_v56  ;;  %v1668_v13 = vmul.f32 %v1654_v42, %v6571_v14  ;;  %v1683_v15 = vmax.f32 %v1671_v60, 0.0  ;;  %v1677_v18 = vadd.f32 %v1665_v1, %v6581_v24  ;;  %v6104_v34 = vld [vmem:[%s6170_s28 + $0xaf4] ss:$72 sps:$4 sm:$0x3f]  }
 0x163   : > { %v1685_v16 = vmax.f32 %v1673_v62, 0.0  ;;  %v1679_v19 = vadd.f32 %v1667_v3, %v6581_v24  ;;  %v1684_v20 = vmax.f32 %v1672_v11, 0.0  ;;  %v1678_v40 = vadd.f32 %v1666_v12, %v6581_v24  ;;  %4286 = vmatpush1.bf16.msra.mxu0 %v4186_v47  ;;  %v6099_v47 = vld [vmem:[%s6170_s28 + $0xae8] ss:$72 sps:$4 sm:$0x3f]  }
 0x164   : > { %v1686_v52 = vmax.f32 %v1674_v9, 0.0  ;;  %v1680_v21 = vadd.f32 %v1668_v13, %v6581_v24  ;;  %4569 = vmatpush1.bf16.msra.mxu1 %v4543_v59  ;;  %v1695_v32 = vmax.f32 %v6782_v54, %v1683_v15  ;;  %v1689_v53 = vmax.f32 %v1677_v18, 0.0  ;;  %4603 = vmatprep.subr.bf16.mxu0 %v6077_v6  ;;  %v6102_v48 = vld [vmem:[%s6170_s28 + $0xaf0] ss:$72 sps:$4 sm:$0x3f]  }
 0x165   : > { %v1697_v50 = vmax.f32 %v6850_v44, %v1685_v16  ;;  %v1691_v45 = vmax.f32 %v1679_v19, 0.0  ;;  %4646 = vmatprep.subr.bf16.mxu1 %v6080_v8  ;;  %v1696_v25 = vmax.f32 %v6790_v2, %v1684_v20  ;;  %v1690_v55 = vmax.f32 %v1678_v40, 0.0 }
 0x166   : > { %v1698_v26 = vmax.f32 %v6856_v17, %v1686_v52  ;;  %v1692_v61 = vmax.f32 %v1680_v21, 0.0  ;;  %v1701_v54 = vmax.f32 %v6796_v4, %v1689_v53  ;;  %5458 = vmatmul.mubr.msk.bf16.vlgmr.msra.gmra.mrb[64].mxu0 %vm384_vm2, %v6608_v57  ;;  %v6084_v4 = vld [vmem:[%s6170_s28 + $0x940] ss:$72 sps:$4 sm:$0xff]   ;;  %v4552_v58 = vand.u32 %v6101_v41, %v6188_v23 }
 0x167   : > { %v1703_v44 = vmax.f32 %v6865_v33, %v1691_v45  ;;  %5519 = vmatmul.mubr.msk.bf16.vlgmr.msra.gmra.mrb[64].mxu1 %vm384_vm2, %v6608_v57  ;;  %v5531_v2 = vpack.c.bf16 %v1696_v25, %v1695_v32  ;;  %v1702_v29 = vmax.f32 %v6806_v39, %v1690_v55  ;;  %4604 = vmatpush1.bf16.msra.mxu0 %v6075_v43  ;;  %v6089_v33 = vld [vmem:[%s6170_s28 + $0x9cc] ss:$72 sps:$4 sm:$0xff]  }
 0x168   : > { %v5532_v17 = vpack.c.bf16 %v1698_v26, %v1697_v50  ;;  %v1704_v27 = vmax.f32 %v6873_v63, %v1692_v61  ;;  %4647 = vmatpush1.bf16.msra.mxu1 %v6078_v7  ;;  %4605 = vmatprep.subr.bf16.mxu0 %v6083_v22  ;;  %v6092_v39 = vld [vmem:[%s6170_s28 + $0x9d4] ss:$72 sps:$4 sm:$0xff]   ;;  %v6087_v63 = vld [vmem:[%s6170_s28 + $0x9c8] ss:$72 sps:$4 sm:$0xff]   ;;  %v4558_v62 = vand.u32 %v6104_v34, %v6188_v23 }
 0x169   : > { %1742 = vst [vmem:[%s6862_s12 + $0x8] sm:$0xff] %v5531_v2  ;;  %v5534_v31 = vpack.c.bf16 %v1702_v29, %v1701_v54  ;;  %4648 = vmatprep.subr.bf16.mxu1 %v6086_v28  ;;  %4635 = vmatprep.mubr.bf16.mxu0 %v6113_v0  ;;  %v4549_v10 = vand.u32 %v6099_v47, %v6188_v23 }
 0x16a   : > { %1743 = vst [vmem:[%s6862_s12 + $0x10] sm:$0xff] %v5532_v17  ;;  %v5535_v35 = vpack.c.bf16 %v1704_v27, %v1703_v44  ;;  %4678 = vmatprep.mubr.bf16.mxu1 %v6113_v0  ;;  %v6096_v0 = vld [vmem:[%s6170_s28 + $0xa60] ss:$72 sps:$4 sm:$0xff]   ;;  %v4555_v8 = vand.u32 %v6102_v48, %v6188_v23 }
 0x16b   : > { %1745 = vst [vmem:[%s6862_s12 + $0x50] sm:$0xff] %v5534_v31  ;;  %4606 = vmatpush1.bf16.msra.mxu0 %v6081_v30 }
 0x16c   : > { %1746 = vst [vmem:[%s6862_s12 + $0x58] sm:$0xff] %v5535_v35  ;;  %4649 = vmatpush1.bf16.msra.mxu1 %v6084_v4  ;;  %4607 = vmatprep.subr.bf16.mxu0 %v6089_v33 }
 0x16d   : > { %4650 = vmatprep.subr.bf16.mxu1 %v6092_v39 }
 0x16f   : > { %4608 = vmatpush1.bf16.msra.mxu0 %v6087_v63 }
 0x170   : > { %4651 = vmatpush1.bf16.msra.mxu1 %v6090_v36  ;;  %4609 = vmatprep.subr.bf16.mxu0 %v6095_v37 }
 0x171   : > { %v1983_v49 = vpop.f32.mrb[24].mxu0  ;;  %4652 = vmatprep.subr.bf16.mxu1 %v6098_v38 }
 0x172   : > { %v2026_v51 = vpop.f32.mrb[24].mxu1  ;;  %v1985_v59 = vpop.f32.mrb[25].mxu0  ;;  %v2078_v11 = vmul.f32 %v1983_v49, %v6557_v5 }
 0x173   : > { %v2028_v60 = vpop.f32.mrb[25].mxu1  ;;  %v1987_v1 = vpop.f32.mrb[26].mxu0  ;;  %4610 = vmatpush1.bf16.msra.mxu0 %v6093_v46  ;;  %v2079_v9 = vmul.f32 %v1985_v59, %v6557_v5  ;;  %v2080_v35 = vmul.f32 %v2026_v51, %v6557_v5 }
 0x174   : > { %v2030_v3 = vpop.f32.mrb[26].mxu1  ;;  %4653 = vmatpush1.bf16.msra.mxu1 %v6096_v0  ;;  %v1989_v42 = vpop.f32.mrb[27].mxu0  ;;  %4611 = vmatprep.subr.bf16.mxu0 %v4552_v58  ;;  %v2084_v12 = vmul.f32 %v1987_v1, %v6571_v14  ;;  %v2090_v16 = vadd.f32 %v2078_v11, %v6564_v56  ;;  %v2081_v39 = vmul.f32 %v2028_v60, %v6557_v5 }
 0x175   : > { %v2032_v6 = vpop.f32.mrb[27].mxu1  ;;  %4654 = vmatprep.subr.bf16.mxu1 %v4558_v62  ;;  %v2085_v13 = vmul.f32 %v1989_v42, %v6571_v14  ;;  %v2091_v52 = vadd.f32 %v2079_v9, %v6564_v56  ;;  %v2086_v63 = vmul.f32 %v2030_v3, %v6571_v14  ;;  %v2092_v46 = vadd.f32 %v2080_v35, %v6564_v56 }
 0x176   : > { %v2096_v43 = vadd.f32 %v2084_v12, %v6581_v24  ;;  %v2102_v26 = vmax.f32 %v2090_v16, 0.0  ;;  %v2087_v36 = vmul.f32 %v2032_v6, %v6571_v14  ;;  %v2093_v47 = vadd.f32 %v2081_v39, %v6564_v56 }
 0x177   : > { %4612 = vmatpush1.bf16.msra.mxu0 %v4549_v10  ;;  %v2097_v7 = vadd.f32 %v2085_v13, %v6581_v24  ;;  %v2103_v28 = vmax.f32 %v2091_v52, 0.0  ;;  %v2098_v0 = vadd.f32 %v2086_v63, %v6581_v24  ;;  %v2104_v60 = vmax.f32 %v2092_v46, 0.0 }
 0x178   : > { %4655 = vmatpush1.bf16.msra.mxu1 %v4555_v8  ;;  %v2108_v2 = vmax.f32 %v2096_v43, 0.0  ;;  %v2099_v48 = vadd.f32 %v2087_v36, %v6581_v24  ;;  %v2105_v62 = vmax.f32 %v2093_v47, 0.0 }
 0x179   : > { %v2109_v27 = vmax.f32 %v2097_v7, 0.0  ;;  %v2110_v1 = vmax.f32 %v2098_v0, 0.0 }
 0x17a   : > { %5520 = vmatmul.mubr.msk.bf16.vlgmr.msra.gmra.mrb[68].mxu0 %vm384_vm2, %v6608_v57  ;;  %v2111_v3 = vmax.f32 %v2099_v48, 0.0 }
 0x17b   : > { %5521 = vmatmul.mubr.msk.bf16.vlgmr.msra.gmra.mrb[68].mxu1 %vm384_vm2, %v6608_v57 }
 0x185   : > { %v2069_v15 = vpop.f32.mrb[28].mxu0 }
 0x186   : > { %v2340_v23 = vpop.f32.mrb[28].mxu1  ;;  %v2071_v19 = vpop.f32.mrb[29].mxu0  ;;  %v2082_v37 = vmul.f32 %v2069_v15, %v6557_v5 }
 0x187   : > { %v2435_v18 = vmul.f32 %v2340_v23, %v6557_v5  ;;  %v2342_v20 = vpop.f32.mrb[29].mxu1  ;;  %v2073_v40 = vpop.f32.mrb[30].mxu0  ;;  %v2083_v38 = vmul.f32 %v2071_v19, %v6557_v5 }
 0x188   : > { %v2436_v57 = vmul.f32 %v2342_v20, %v6557_v5  ;;  %v2344_v21 = vpop.f32.mrb[30].mxu1  ;;  %v2075_v53 = vpop.f32.mrb[31].mxu0  ;;  %v2088_v41 = vmul.f32 %v2073_v40, %v6571_v14  ;;  %v2094_v49 = vadd.f32 %v2082_v37, %v6564_v56 }
 0x189   : > { %v2447_v32 = vadd.f32 %v2435_v18, %v6564_v56  ;;  %v2441_v50 = vmul.f32 %v2344_v21, %v6571_v14  ;;  %v2346_v45 = vpop.f32.mrb[31].mxu1  ;;  %v2089_v34 = vmul.f32 %v2075_v53, %v6571_v14  ;;  %v2095_v51 = vadd.f32 %v2083_v38, %v6564_v56 }
 0x18a   : > { %v2448_v22 = vadd.f32 %v2436_v57, %v6564_v56  ;;  %v2442_v25 = vmul.f32 %v2346_v45, %v6571_v14  ;;  %v2100_v58 = vadd.f32 %v2088_v41, %v6581_v24  ;;  %v2106_v6 = vmax.f32 %v2094_v49, 0.0 }
 0x18b   : > { %v2459_v55 = vmax.f32 %v2447_v32, 0.0  ;;  %v2453_v61 = vadd.f32 %v2441_v50, %v6581_v24  ;;  %v2101_v59 = vadd.f32 %v2089_v34, %v6581_v24  ;;  %v2107_v8 = vmax.f32 %v2095_v51, 0.0 }
 0x18c   : > { %v2460_v54 = vmax.f32 %v2448_v22, 0.0  ;;  %v2454_v44 = vadd.f32 %v2442_v25, %v6581_v24  ;;  %v2112_v15 = vmax.f32 %v2100_v58, 0.0 }
 0x18d   : > { %v6976_v17 = vmax.f32 %v2102_v26, %v2459_v55  ;;  %v2465_v29 = vmax.f32 %v2453_v61, 0.0  ;;  %v2113_v23 = vmax.f32 %v2101_v59, 0.0 }
 0x18e   : > { %v6978_v30 = vmax.f32 %v2103_v28, %v2460_v54  ;;  %v2466_v4 = vmax.f32 %v2454_v44, 0.0 }
 0x18f   : > { %v6980_v33 = vmax.f32 %v2108_v2, %v2465_v29 }
 0x190   : > { %v6982_v31 = vmax.f32 %v2109_v27, %v2466_v4 }
 0x199   : > { %v2383_v10 = vpop.f32.mrb[32].mxu0 }
 0x19a   : > { %v2426_v42 = vpop.f32.mrb[32].mxu1  ;;  %v2437_v11 = vmul.f32 %v2383_v10, %v6557_v5  ;;  %v2385_v12 = vpop.f32.mrb[33].mxu0 }
 0x19b   : > { %v2439_v9 = vmul.f32 %v2426_v42, %v6557_v5  ;;  %v2428_v13 = vpop.f32.mrb[33].mxu1  ;;  %v2438_v16 = vmul.f32 %v2385_v12, %v6557_v5  ;;  %v2387_v19 = vpop.f32.mrb[34].mxu0 }
 0x19c   : > { %v2440_v18 = vmul.f32 %v2428_v13, %v6557_v5  ;;  %v2430_v20 = vpop.f32.mrb[34].mxu1  ;;  %v2449_v52 = vadd.f32 %v2437_v11, %v6564_v56  ;;  %v2443_v40 = vmul.f32 %v2387_v19, %v6571_v14  ;;  %v2389_v43 = vpop.f32.mrb[35].mxu0 }
 0x19d   : > { %v2451_v57 = vadd.f32 %v2439_v9, %v6564_v56  ;;  %v2445_v21 = vmul.f32 %v2430_v20, %v6571_v14  ;;  %v2432_v32 = vpop.f32.mrb[35].mxu1  ;;  %v2450_v50 = vadd.f32 %v2438_v16, %v6564_v56  ;;  %v2444_v45 = vmul.f32 %v2389_v43, %v6571_v14 }
 0x19e   : > { %v2452_v53 = vadd.f32 %v2440_v18, %v6564_v56  ;;  %v2446_v7 = vmul.f32 %v2432_v32, %v6571_v14  ;;  %v2461_v22 = vmax.f32 %v2449_v52, 0.0  ;;  %v2455_v26 = vadd.f32 %v2443_v40, %v6581_v24 }
 0x19f   : > { %v2463_v25 = vmax.f32 %v2451_v57, 0.0  ;;  %v2457_v55 = vadd.f32 %v2445_v21, %v6581_v24  ;;  %v2462_v61 = vmax.f32 %v2450_v50, 0.0  ;;  %v2456_v54 = vadd.f32 %v2444_v45, %v6581_v24 }
 0x1a0   : > { %v2464_v28 = vmax.f32 %v2452_v53, 0.0  ;;  %v2458_v44 = vadd.f32 %v2446_v7, %v6581_v24  ;;  %v2473_v2 = vmax.f32 %v2104_v60, %v2461_v22  ;;  %v2467_v27 = vmax.f32 %v2455_v26, 0.0 }
 0x1a1   : > { %v7016_v29 = vmax.f32 %v2106_v6, %v2463_v25  ;;  %v2469_v4 = vmax.f32 %v2457_v55, 0.0  ;;  %v2474_v35 = vmax.f32 %v2105_v62, %v2462_v61  ;;  %v2468_v63 = vmax.f32 %v2456_v54, 0.0 }
 0x1a2   : > { %v7018_v39 = vmax.f32 %v2107_v8, %v2464_v28  ;;  %v2470_v36 = vmax.f32 %v2458_v44, 0.0  ;;  %v2479_v37 = vmax.f32 %v2110_v1, %v2467_v27 }
 0x1a3   : > { %v7020_v38 = vmax.f32 %v2112_v15, %v2469_v4  ;;  %v2480_v41 = vmax.f32 %v2111_v3, %v2468_v63 }
 0x1a4   : > { %v7022_v34 = vmax.f32 %v2113_v23, %v2470_v36 }
 0x1ad   : > { %v2709_v46 = vpop.f32.mrb[36].mxu0 }
 0x1ae   : > { %v2752_v47 = vpop.f32.mrb[36].mxu1  ;;  %v2804_v0 = vmul.f32 %v2709_v46, %v6557_v5  ;;  %v2711_v49 = vpop.f32.mrb[37].mxu0 }
 0x1af   : > { %v2806_v48 = vmul.f32 %v2752_v47, %v6557_v5  ;;  %v2754_v51 = vpop.f32.mrb[37].mxu1  ;;  %v2805_v58 = vmul.f32 %v2711_v49, %v6557_v5  ;;  %v2713_v60 = vpop.f32.mrb[38].mxu0 }
 0x1b0   : > { %v2807_v59 = vmul.f32 %v2754_v51, %v6557_v5  ;;  %v2756_v62 = vpop.f32.mrb[38].mxu1  ;;  %v2816_v1 = vadd.f32 %v2804_v0, %v6564_v56  ;;  %v2810_v10 = vmul.f32 %v2713_v60, %v6571_v14  ;;  %v2715_v6 = vpop.f32.mrb[39].mxu0 }
 0x1b1   : > { %v2818_v3 = vadd.f32 %v2806_v48, %v6564_v56  ;;  %v2812_v42 = vmul.f32 %v2756_v62, %v6571_v14  ;;  %v2758_v8 = vpop.f32.mrb[39].mxu1  ;;  %v2817_v11 = vadd.f32 %v2805_v58, %v6564_v56  ;;  %v2811_v12 = vmul.f32 %v2715_v6, %v6571_v14 }
 0x1b2   : > { %v2819_v9 = vadd.f32 %v2807_v59, %v6564_v56  ;;  %v2813_v13 = vmul.f32 %v2758_v8, %v6571_v14  ;;  %v2828_v15 = vmax.f32 %v2816_v1, 0.0  ;;  %v2822_v16 = vadd.f32 %v2810_v10, %v6581_v24 }
 0x1b3   : > { %v2830_v23 = vmax.f32 %v2818_v3, 0.0  ;;  %v2824_v18 = vadd.f32 %v2812_v42, %v6581_v24  ;;  %v2829_v19 = vmax.f32 %v2817_v11, 0.0  ;;  %v2823_v52 = vadd.f32 %v2811_v12, %v6581_v24 }
 0x1b4   : > { %v2831_v20 = vmax.f32 %v2819_v9, 0.0  ;;  %v2825_v57 = vadd.f32 %v2813_v13, %v6581_v24  ;;  %v2840_v40 = vmax.f32 %v6976_v17, %v2828_v15  ;;  %v2834_v43 = vmax.f32 %v2822_v16, 0.0 }
 0x1b5   : > { %v7041_v21 = vmax.f32 %v2473_v2, %v2830_v23  ;;  %v2836_v32 = vmax.f32 %v2824_v18, 0.0  ;;  %v2841_v50 = vmax.f32 %v6978_v30, %v2829_v19  ;;  %v2835_v45 = vmax.f32 %v2823_v52, 0.0 }
 0x1b6   : > { %v7044_v53 = vmax.f32 %v2474_v35, %v2831_v20  ;;  %v2837_v7 = vmax.f32 %v2825_v57, 0.0  ;;  %v2846_v22 = vmax.f32 %v6980_v33, %v2834_v43 }
 0x1b7   : > { %v7047_v25 = vmax.f32 %v2479_v37, %v2836_v32  ;;  %v2847_v26 = vmax.f32 %v6982_v31, %v2835_v45 }
 0x1b8   : > { %v7050_v55 = vmax.f32 %v2480_v41, %v2837_v7 }
 0x1c1   : > { %v2795_v61 = vpop.f32.mrb[40].mxu0 }
 0x1c2   : > { %v3078_v17 = vpop.f32.mrb[40].mxu1  ;;  %v2808_v28 = vmul.f32 %v2795_v61, %v6557_v5  ;;  %v2797_v44 = vpop.f32.mrb[41].mxu0 }
 0x1c3   : > { %v3173_v54 = vmul.f32 %v3078_v17, %v6557_v5  ;;  %v3080_v30 = vpop.f32.mrb[41].mxu1  ;;  %v2809_v2 = vmul.f32 %v2797_v44, %v6557_v5  ;;  %v2799_v4 = vpop.f32.mrb[42].mxu0 }
 0x1c4   : > { %v3174_v27 = vmul.f32 %v3080_v30, %v6557_v5  ;;  %v3082_v33 = vpop.f32.mrb[42].mxu1  ;;  %v2820_v35 = vadd.f32 %v2808_v28, %v6564_v56  ;;  %v2814_v63 = vmul.f32 %v2799_v4, %v6571_v14  ;;  %v2801_v37 = vpop.f32.mrb[43].mxu0 }
 0x1c5   : > { %v3185_v31 = vadd.f32 %v3173_v54, %v6564_v56  ;;  %v3179_v36 = vmul.f32 %v3082_v33, %v6571_v14  ;;  %v3084_v41 = vpop.f32.mrb[43].mxu1  ;;  %v2821_v46 = vadd.f32 %v2809_v2, %v6564_v56  ;;  %v2815_v0 = vmul.f32 %v2801_v37, %v6571_v14 }
 0x1c6   : > { %v3186_v47 = vadd.f32 %v3174_v27, %v6564_v56  ;;  %v3180_v48 = vmul.f32 %v3084_v41, %v6571_v14  ;;  %v2832_v49 = vmax.f32 %v2820_v35, 0.0  ;;  %v2826_v58 = vadd.f32 %v2814_v63, %v6581_v24 }
 0x1c7   : > { %v3197_v51 = vmax.f32 %v3185_v31, 0.0  ;;  %v3191_v59 = vadd.f32 %v3179_v36, %v6581_v24  ;;  %v2833_v60 = vmax.f32 %v2821_v46, 0.0  ;;  %v2827_v1 = vadd.f32 %v2815_v0, %v6581_v24 }
 0x1c8   : > { %v3198_v62 = vmax.f32 %v3186_v47, 0.0  ;;  %v3192_v3 = vadd.f32 %v3180_v48, %v6581_v24  ;;  %v2844_v10 = vmax.f32 %v7016_v29, %v2832_v49  ;;  %v2838_v6 = vmax.f32 %v2826_v58, 0.0 }
 0x1c9   : > { %v3209_v42 = vmax.f32 %v2840_v40, %v3197_v51  ;;  %v3203_v8 = vmax.f32 %v3191_v59, 0.0  ;;  %v2845_v11 = vmax.f32 %v7018_v39, %v2833_v60  ;;  %v2839_v12 = vmax.f32 %v2827_v1, 0.0 }
 0x1ca   : > { %v3210_v9 = vmax.f32 %v2841_v50, %v3198_v62  ;;  %v3204_v13 = vmax.f32 %v3192_v3, 0.0  ;;  %v2850_v15 = vmax.f32 %v7020_v38, %v2838_v6 }
 0x1cb   : > { %v3215_v23 = vmax.f32 %v2846_v22, %v3203_v8  ;;  %v2851_v18 = vmax.f32 %v7022_v34, %v2839_v12 }
 0x1cc   : > { %v5536_v16 = vpack.c.bf16 %v3210_v9, %v3209_v42  ;;  %v3216_v19 = vmax.f32 %v2847_v26, %v3204_v13 }
 0x1ce   : > { %3257 = vst [vmem:[%s6862_s12 + $0x18] sm:$0xff] %v5536_v16  ;;  %v5539_v20 = vpack.c.bf16 %v3216_v19, %v3215_v23 }
 0x1d0   : > { %3260 = vst [vmem:[%s6862_s12 + $0x60] sm:$0xff] %v5539_v20 }
 0x1d5   : > { %v3121_v52 = vpop.f32.mrb[44].mxu0 }
 0x1d6   : > { %v3164_v29 = vpop.f32.mrb[44].mxu1  ;;  %v3175_v57 = vmul.f32 %v3121_v52, %v6557_v5  ;;  %v3123_v39 = vpop.f32.mrb[45].mxu0 }
 0x1d7   : > { %v3177_v40 = vmul.f32 %v3164_v29, %v6557_v5  ;;  %v3166_v43 = vpop.f32.mrb[45].mxu1  ;;  %v3176_v32 = vmul.f32 %v3123_v39, %v6557_v5  ;;  %v3125_v50 = vpop.f32.mrb[46].mxu0 }
 0x1d8   : > { %v3178_v38 = vmul.f32 %v3166_v43, %v6557_v5  ;;  %v3168_v45 = vpop.f32.mrb[46].mxu1  ;;  %v3187_v34 = vadd.f32 %v3175_v57, %v6564_v56  ;;  %v3181_v22 = vmul.f32 %v3125_v50, %v6571_v14  ;;  %v3127_v61 = vpop.f32.mrb[47].mxu0 }
 0x1d9   : > { %v3189_v7 = vadd.f32 %v3177_v40, %v6564_v56  ;;  %v3183_v26 = vmul.f32 %v3168_v45, %v6571_v14  ;;  %v3170_v17 = vpop.f32.mrb[47].mxu1  ;;  %v3188_v28 = vadd.f32 %v3176_v32, %v6564_v56  ;;  %v3182_v44 = vmul.f32 %v3127_v61, %v6571_v14 }
 0x1da   : > { %v3190_v54 = vadd.f32 %v3178_v38, %v6564_v56  ;;  %v3184_v30 = vmul.f32 %v3170_v17, %v6571_v14  ;;  %v3199_v2 = vmax.f32 %v3187_v34, 0.0  ;;  %v3193_v4 = vadd.f32 %v3181_v22, %v6581_v24 }
 0x1db   : > { %v3201_v27 = vmax.f32 %v3189_v7, 0.0  ;;  %v3195_v33 = vadd.f32 %v3183_v26, %v6581_v24  ;;  %v3200_v35 = vmax.f32 %v3188_v28, 0.0  ;;  %v3194_v63 = vadd.f32 %v3182_v44, %v6581_v24 }
 0x1dc   : > { %v3202_v31 = vmax.f32 %v3190_v54, 0.0  ;;  %v3196_v36 = vadd.f32 %v3184_v30, %v6581_v24  ;;  %v3211_v37 = vmax.f32 %v7041_v21, %v3199_v2  ;;  %v3205_v46 = vmax.f32 %v3193_v4, 0.0 }
 0x1dd   : > { %v3213_v41 = vmax.f32 %v2844_v10, %v3201_v27  ;;  %v3207_v47 = vmax.f32 %v3195_v33, 0.0  ;;  %v3212_v0 = vmax.f32 %v7044_v53, %v3200_v35  ;;  %v3206_v49 = vmax.f32 %v3194_v63, 0.0 }
 0x1de   : > { %v3214_v48 = vmax.f32 %v2845_v11, %v3202_v31  ;;  %v3208_v51 = vmax.f32 %v3196_v36, 0.0  ;;  %v3217_v58 = vmax.f32 %v7047_v25, %v3205_v46 }
 0x1df   : > { %v3219_v59 = vmax.f32 %v2850_v15, %v3207_v47  ;;  %v5537_v60 = vpack.c.bf16 %v3212_v0, %v3211_v37  ;;  %v3218_v1 = vmax.f32 %v7050_v55, %v3206_v49 }
 0x1e0   : > { %v5538_v62 = vpack.c.bf16 %v3214_v48, %v3213_v41  ;;  %v3220_v3 = vmax.f32 %v2851_v18, %v3208_v51 }
 0x1e1   : > { %3258 = vst [vmem:[%s6862_s12 + $0x20] sm:$0xff] %v5537_v60  ;;  %v5540_v21 = vpack.c.bf16 %v3218_v1, %v3217_v58 }
 0x1e2   : > { %3259 = vst [vmem:[%s6862_s12 + $0x28] sm:$0xff] %v5538_v62  ;;  %v5541_v10 = vpack.c.bf16 %v3220_v3, %v3219_v59 }
 0x1e3   : > { %3261 = vst [vmem:[%s6862_s12 + $0x68] sm:$0xff] %v5540_v21 }
 0x1e4   : > { %3262 = vst [vmem:[%s6862_s12 + $0x70] sm:$0xff] %v5541_v10 }
 0x1e9   : > { %v3499_v42 = vpop.f32.mrb[48].mxu0 }
 0x1ea   : > { %v3542_v6 = vpop.f32.mrb[48].mxu1  ;;  %v3501_v53 = vpop.f32.mrb[49].mxu0  ;;  %v3594_v13 = vmul.f32 %v3499_v42, %v6557_v5 }
 0x1eb   : > { %v3544_v8 = vpop.f32.mrb[49].mxu1  ;;  %v3503_v11 = vpop.f32.mrb[50].mxu0  ;;  %v3595_v15 = vmul.f32 %v3501_v53, %v6557_v5  ;;  %v3596_v37 = vmul.f32 %v3542_v6, %v6557_v5 }
 0x1ec   : > { %v3546_v9 = vpop.f32.mrb[50].mxu1  ;;  %v3505_v12 = vpop.f32.mrb[51].mxu0  ;;  %v3600_v55 = vmul.f32 %v3503_v11, %v6571_v14  ;;  %v3606_v19 = vadd.f32 %v3594_v13, %v6564_v56  ;;  %v3597_v41 = vmul.f32 %v3544_v8, %v6557_v5 }
 0x1ed   : > { %v3548_v25 = vpop.f32.mrb[51].mxu1  ;;  %v3601_v23 = vmul.f32 %v3505_v12, %v6571_v14  ;;  %v3607_v57 = vadd.f32 %v3595_v15, %v6564_v56  ;;  %v3602_v46 = vmul.f32 %v3546_v9, %v6571_v14  ;;  %v3608_v58 = vadd.f32 %v3596_v37, %v6564_v56 }
 0x1ee   : > { %v3612_v32 = vadd.f32 %v3600_v55, %v6581_v24  ;;  %v3618_v61 = vmax.f32 %v3606_v19, 0.0  ;;  %v3603_v47 = vmul.f32 %v3548_v25, %v6571_v14  ;;  %v3609_v59 = vadd.f32 %v3597_v41, %v6564_v56 }
 0x1ef   : > { %v3613_v7 = vadd.f32 %v3601_v23, %v6581_v24  ;;  %v3619_v54 = vmax.f32 %v3607_v57, 0.0  ;;  %v3614_v60 = vadd.f32 %v3602_v46, %v6581_v24  ;;  %v3620_v42 = vmax.f32 %v3608_v58, 0.0 }
 0x1f0   : > { %v3624_v2 = vmax.f32 %v3612_v32, 0.0  ;;  %v3615_v62 = vadd.f32 %v3603_v47, %v6581_v24  ;;  %v3621_v6 = vmax.f32 %v3609_v59, 0.0 }
 0x1f1   : > { %v3625_v33 = vmax.f32 %v3613_v7, 0.0  ;;  %v3626_v53 = vmax.f32 %v3614_v60, 0.0 }
 0x1f2   : > { %v3627_v8 = vmax.f32 %v3615_v62, 0.0 }
 0x1fd   : > { %v3585_v16 = vpop.f32.mrb[52].mxu0 }
 0x1fe   : > { %v3856_v18 = vpop.f32.mrb[52].mxu1  ;;  %v3587_v52 = vpop.f32.mrb[53].mxu0  ;;  %v3598_v0 = vmul.f32 %v3585_v16, %v6557_v5 }
 0x1ff   : > { %v3951_v20 = vmul.f32 %v3856_v18, %v6557_v5  ;;  %v3858_v29 = vpop.f32.mrb[53].mxu1  ;;  %v3589_v39 = vpop.f32.mrb[54].mxu0  ;;  %v3599_v48 = vmul.f32 %v3587_v52, %v6557_v5 }
 0x200   : > { %v3952_v40 = vmul.f32 %v3858_v29, %v6557_v5  ;;  %v3860_v43 = vpop.f32.mrb[54].mxu1  ;;  %v3591_v45 = vpop.f32.mrb[55].mxu0  ;;  %v3604_v49 = vmul.f32 %v3589_v39, %v6571_v14  ;;  %v3610_v1 = vadd.f32 %v3598_v0, %v6564_v56 }
 0x201   : > { %v3963_v38 = vadd.f32 %v3951_v20, %v6564_v56  ;;  %v3957_v50 = vmul.f32 %v3860_v43, %v6571_v14  ;;  %v3862_v34 = vpop.f32.mrb[55].mxu1  ;;  %v3605_v51 = vmul.f32 %v3591_v45, %v6571_v14  ;;  %v3611_v3 = vadd.f32 %v3599_v48, %v6564_v56 }
 0x202   : > { %v3964_v22 = vadd.f32 %v3952_v40, %v6564_v56  ;;  %v3958_v26 = vmul.f32 %v3862_v34, %v6571_v14  ;;  %v3616_v21 = vadd.f32 %v3604_v49, %v6581_v24  ;;  %v3622_v12 = vmax.f32 %v3610_v1, 0.0 }
 0x203   : > { %v3975_v17 = vmax.f32 %v3963_v38, 0.0  ;;  %v3969_v28 = vadd.f32 %v3957_v50, %v6581_v24  ;;  %v3617_v10 = vadd.f32 %v3605_v51, %v6581_v24  ;;  %v3623_v25 = vmax.f32 %v3611_v3, 0.0 }
 0x204   : > { %v3976_v44 = vmax.f32 %v3964_v22, 0.0  ;;  %v3970_v30 = vadd.f32 %v3958_v26, %v6581_v24  ;;  %v3628_v16 = vmax.f32 %v3616_v21, 0.0 }
 0x205   : > { %v7114_v27 = vmax.f32 %v3618_v61, %v3975_v17  ;;  %v3981_v4 = vmax.f32 %v3969_v28, 0.0  ;;  %v3629_v18 = vmax.f32 %v3617_v10, 0.0 }
 0x206   : > { %v7116_v35 = vmax.f32 %v3619_v54, %v3976_v44  ;;  %v3982_v31 = vmax.f32 %v3970_v30, 0.0 }
 0x207   : > { %v7118_v63 = vmax.f32 %v3624_v2, %v3981_v4 }
 0x208   : > { %v7120_v36 = vmax.f32 %v3625_v33, %v3982_v31 }
 0x211   : > { %v3899_v11 = vpop.f32.mrb[56].mxu0 }
 0x212   : > { %v3942_v9 = vpop.f32.mrb[56].mxu1  ;;  %v3953_v13 = vmul.f32 %v3899_v11, %v6557_v5  ;;  %v3901_v55 = vpop.f32.mrb[57].mxu0 }
 0x213   : > { %v3955_v15 = vmul.f32 %v3942_v9, %v6557_v5  ;;  %v3944_v23 = vpop.f32.mrb[57].mxu1  ;;  %v3954_v19 = vmul.f32 %v3901_v55, %v6557_v5  ;;  %v3903_v52 = vpop.f32.mrb[58].mxu0 }
 0x214   : > { %v3956_v20 = vmul.f32 %v3944_v23, %v6557_v5  ;;  %v3946_v29 = vpop.f32.mrb[58].mxu1  ;;  %v3965_v57 = vadd.f32 %v3953_v13, %v6564_v56  ;;  %v3959_v39 = vmul.f32 %v3903_v52, %v6571_v14  ;;  %v3905_v32 = vpop.f32.mrb[59].mxu0 }
 0x215   : > { %v3967_v40 = vadd.f32 %v3955_v15, %v6564_v56  ;;  %v3961_v43 = vmul.f32 %v3946_v29, %v6571_v14  ;;  %v3948_v38 = vpop.f32.mrb[59].mxu1  ;;  %v3966_v50 = vadd.f32 %v3954_v19, %v6564_v56  ;;  %v3960_v34 = vmul.f32 %v3905_v32, %v6571_v14 }
 0x216   : > { %v3968_v45 = vadd.f32 %v3956_v20, %v6564_v56  ;;  %v3962_v7 = vmul.f32 %v3948_v38, %v6571_v14  ;;  %v3977_v22 = vmax.f32 %v3965_v57, 0.0  ;;  %v3971_v61 = vadd.f32 %v3959_v39, %v6581_v24 }
 0x217   : > { %v3979_v26 = vmax.f32 %v3967_v40, 0.0  ;;  %v3973_v17 = vadd.f32 %v3961_v43, %v6581_v24  ;;  %v3978_v28 = vmax.f32 %v3966_v50, 0.0  ;;  %v3972_v44 = vadd.f32 %v3960_v34, %v6581_v24 }
 0x218   : > { %v3980_v54 = vmax.f32 %v3968_v45, 0.0  ;;  %v3974_v30 = vadd.f32 %v3962_v7, %v6581_v24  ;;  %v3989_v2 = vmax.f32 %v3620_v42, %v3977_v22  ;;  %v3983_v33 = vmax.f32 %v3971_v61, 0.0 }
 0x219   : > { %v7154_v4 = vmax.f32 %v3622_v12, %v3979_v26  ;;  %v3985_v31 = vmax.f32 %v3973_v17, 0.0  ;;  %v3990_v37 = vmax.f32 %v3621_v6, %v3978_v28  ;;  %v3984_v46 = vmax.f32 %v3972_v44, 0.0 }
 0x21a   : > { %v7156_v41 = vmax.f32 %v3623_v25, %v3980_v54  ;;  %v3986_v47 = vmax.f32 %v3974_v30, 0.0  ;;  %v3995_v0 = vmax.f32 %v3626_v53, %v3983_v33 }
 0x21b   : > { %v7158_v48 = vmax.f32 %v3628_v16, %v3985_v31  ;;  %v3996_v49 = vmax.f32 %v3627_v8, %v3984_v46 }
 0x21c   : > { %v7160_v51 = vmax.f32 %v3629_v18, %v3986_v47 }
 0x225   : > { %v4225_v58 = vpop.f32.mrb[60].mxu0 }
 0x226   : > { %v4268_v59 = vpop.f32.mrb[60].mxu1  ;;  %v4320_v60 = vmul.f32 %v4225_v58, %v6557_v5  ;;  %v4227_v1 = vpop.f32.mrb[61].mxu0 }
 0x227   : > { %v4322_v62 = vmul.f32 %v4268_v59, %v6557_v5  ;;  %v4270_v3 = vpop.f32.mrb[61].mxu1  ;;  %v4321_v21 = vmul.f32 %v4227_v1, %v6557_v5  ;;  %v4229_v42 = vpop.f32.mrb[62].mxu0 }
 0x228   : > { %v4323_v10 = vmul.f32 %v4270_v3, %v6557_v5  ;;  %v4272_v6 = vpop.f32.mrb[62].mxu1  ;;  %v4332_v53 = vadd.f32 %v4320_v60, %v6564_v56  ;;  %v4326_v11 = vmul.f32 %v4229_v42, %v6571_v14  ;;  %v4231_v12 = vpop.f32.mrb[63].mxu0 }
 0x229   : > { %v4334_v8 = vadd.f32 %v4322_v62, %v6564_v56  ;;  %v4328_v9 = vmul.f32 %v4272_v6, %v6571_v14  ;;  %v4274_v25 = vpop.f32.mrb[63].mxu1  ;;  %v4333_v13 = vadd.f32 %v4321_v21, %v6564_v56  ;;  %v4327_v55 = vmul.f32 %v4231_v12, %v6571_v14 }
 0x22a   : > { %v4335_v15 = vadd.f32 %v4323_v10, %v6564_v56  ;;  %v4329_v23 = vmul.f32 %v4274_v25, %v6571_v14  ;;  %v4344_v16 = vmax.f32 %v4332_v53, 0.0  ;;  %v4338_v19 = vadd.f32 %v4326_v11, %v6581_v24 }
 0x22b   : > { %v4346_v18 = vmax.f32 %v4334_v8, 0.0  ;;  %v4340_v20 = vadd.f32 %v4328_v9, %v6581_v24  ;;  %v4345_v52 = vmax.f32 %v4333_v13, 0.0  ;;  %v4339_v57 = vadd.f32 %v4327_v55, %v6581_v24 }
 0x22c   : > { %v4347_v29 = vmax.f32 %v4335_v15, 0.0  ;;  %v4341_v40 = vadd.f32 %v4329_v23, %v6581_v24  ;;  %v4356_v39 = vmax.f32 %v7114_v27, %v4344_v16  ;;  %v4350_v32 = vmax.f32 %v4338_v19, 0.0 }
 0x22d   : > { %v7179_v43 = vmax.f32 %v3989_v2, %v4346_v18  ;;  %v4352_v38 = vmax.f32 %v4340_v20, 0.0  ;;  %v4357_v50 = vmax.f32 %v7116_v35, %v4345_v52  ;;  %v4351_v34 = vmax.f32 %v4339_v57, 0.0 }
 0x22e   : > { %v7182_v45 = vmax.f32 %v3990_v37, %v4347_v29  ;;  %v4353_v7 = vmax.f32 %v4341_v40, 0.0  ;;  %v4362_v22 = vmax.f32 %v7118_v63, %v4350_v32 }
 0x22f   : > { %v7185_v26 = vmax.f32 %v3995_v0, %v4352_v38  ;;  %v4363_v61 = vmax.f32 %v7120_v36, %v4351_v34 }
 0x230   : > { %v7188_v17 = vmax.f32 %v3996_v49, %v4353_v7 }
 0x239   : > { %v4311_v28 = vpop.f32.mrb[64].mxu0 }
 0x23a   : > { %v4594_v27 = vpop.f32.mrb[64].mxu1  ;;  %v4324_v54 = vmul.f32 %v4311_v28, %v6557_v5  ;;  %v4313_v30 = vpop.f32.mrb[65].mxu0 }
 0x23b   : > { %v4689_v44 = vmul.f32 %v4594_v27, %v6557_v5  ;;  %v4596_v35 = vpop.f32.mrb[65].mxu1  ;;  %v4325_v2 = vmul.f32 %v4313_v30, %v6557_v5  ;;  %v4315_v31 = vpop.f32.mrb[66].mxu0 }
 0x23c   : > { %v4690_v33 = vmul.f32 %v4596_v35, %v6557_v5  ;;  %v4598_v63 = vpop.f32.mrb[66].mxu1  ;;  %v4336_v37 = vadd.f32 %v4324_v54, %v6564_v56  ;;  %v4330_v46 = vmul.f32 %v4315_v31, %v6571_v14  ;;  %v4317_v0 = vpop.f32.mrb[67].mxu0 }
 0x23d   : > { %v4701_v36 = vadd.f32 %v4689_v44, %v6564_v56  ;;  %v4695_v47 = vmul.f32 %v4598_v63, %v6571_v14  ;;  %v4600_v49 = vpop.f32.mrb[67].mxu1  ;;  %v4337_v58 = vadd.f32 %v4325_v2, %v6564_v56  ;;  %v4331_v60 = vmul.f32 %v4317_v0, %v6571_v14 }
 0x23e   : > { %v4702_v59 = vadd.f32 %v4690_v33, %v6564_v56  ;;  %v4696_v62 = vmul.f32 %v4600_v49, %v6571_v14  ;;  %v4348_v1 = vmax.f32 %v4336_v37, 0.0  ;;  %v4342_v21 = vadd.f32 %v4330_v46, %v6581_v24 }
 0x23f   : > { %v4713_v3 = vmax.f32 %v4701_v36, 0.0  ;;  %v4707_v10 = vadd.f32 %v4695_v47, %v6581_v24  ;;  %v4349_v42 = vmax.f32 %v4337_v58, 0.0  ;;  %v4343_v53 = vadd.f32 %v4331_v60, %v6581_v24 }
 0x240   : > { %v4714_v6 = vmax.f32 %v4702_v59, 0.0  ;;  %v4708_v8 = vadd.f32 %v4696_v62, %v6581_v24  ;;  %v4360_v11 = vmax.f32 %v7154_v4, %v4348_v1  ;;  %v4354_v12 = vmax.f32 %v4342_v21, 0.0 }
 0x241   : > { %v4725_v9 = vmax.f32 %v4356_v39, %v4713_v3  ;;  %v4719_v25 = vmax.f32 %v4707_v10, 0.0  ;;  %v4361_v13 = vmax.f32 %v7156_v41, %v4349_v42  ;;  %v4355_v55 = vmax.f32 %v4343_v53, 0.0 }
 0x242   : > { %v4726_v15 = vmax.f32 %v4357_v50, %v4714_v6  ;;  %v4720_v23 = vmax.f32 %v4708_v8, 0.0  ;;  %v4366_v16 = vmax.f32 %v7158_v48, %v4354_v12 }
 0x243   : > { %v4731_v18 = vmax.f32 %v4362_v22, %v4719_v25  ;;  %v4367_v20 = vmax.f32 %v7160_v51, %v4355_v55 }
 0x244   : > { %v5542_v19 = vpack.c.bf16 %v4726_v15, %v4725_v9  ;;  %v4732_v52 = vmax.f32 %v4363_v61, %v4720_v23 }
 0x246   : > { %4773 = vst [vmem:[%s6862_s12 + $0x30] sm:$0xff] %v5542_v19  ;;  %v5545_v29 = vpack.c.bf16 %v4732_v52, %v4731_v18 }
 0x248   : > { %4776 = vst [vmem:[%s6862_s12 + $0x78] sm:$0xff] %v5545_v29 }
 0x24d   : > { %v4637_v57 = vpop.f32.mrb[68].mxu0 }
 0x24e   : > { %v4691_v4 = vmul.f32 %v4637_v57, %v6557_v5  ;;  %v4680_v40 = vpop.f32.mrb[68].mxu1  ;;  %v4639_v39 = vpop.f32.mrb[69].mxu0 }
 0x24f   : > { %v4693_v41 = vmul.f32 %v4680_v40, %v6557_v5  ;;  %v4692_v32 = vmul.f32 %v4639_v39, %v6557_v5  ;;  %v4682_v38 = vpop.f32.mrb[69].mxu1  ;;  %v4641_v50 = vpop.f32.mrb[70].mxu0 }
 0x250   : > { %v4703_v48 = vadd.f32 %v4691_v4, %v6564_v56  ;;  %v4694_v34 = vmul.f32 %v4682_v38, %v6557_v5  ;;  %v4697_v51 = vmul.f32 %v4641_v50, %v6571_v14  ;;  %v4684_v7 = vpop.f32.mrb[70].mxu1  ;;  %v4643_v22 = vpop.f32.mrb[71].mxu0 }
 0x251   : > { %v4705_v61 = vadd.f32 %v4693_v41, %v6564_v56  ;;  %v4704_v28 = vadd.f32 %v4692_v32, %v6564_v56  ;;  %v4699_v27 = vmul.f32 %v4684_v7, %v6571_v14  ;;  %v4698_v54 = vmul.f32 %v4643_v22, %v6571_v14  ;;  %v4686_v44 = vpop.f32.mrb[71].mxu1 }
 0x252   : > { %v4715_v30 = vmax.f32 %v4703_v48, 0.0  ;;  %v4706_v35 = vadd.f32 %v4694_v34, %v6564_v56  ;;  %v4709_v2 = vadd.f32 %v4697_v51, %v6581_v24  ;;  %v4700_v5 = vmul.f32 %v4686_v44, %v6571_v14 }
 0x253   : > { %v4717_v33 = vmax.f32 %v4705_v61, 0.0  ;;  %v4716_v31 = vmax.f32 %v4704_v28, 0.0  ;;  %v4711_v63 = vadd.f32 %v4699_v27, %v6581_v24  ;;  %v4710_v37 = vadd.f32 %v4698_v54, %v6581_v24 }
 0x254   : > { %v4727_v36 = vmax.f32 %v7179_v43, %v4715_v30  ;;  %v4718_v46 = vmax.f32 %v4706_v35, 0.0  ;;  %v4721_v47 = vmax.f32 %v4709_v2, 0.0  ;;  %v4712_v0 = vadd.f32 %v4700_v5, %v6581_v24 }
 0x255   : > { %v4729_v49 = vmax.f32 %v4360_v11, %v4717_v33  ;;  %v4728_v56 = vmax.f32 %v7182_v45, %v4716_v31  ;;  %v4723_v14 = vmax.f32 %v4711_v63, 0.0  ;;  %v4722_v58 = vmax.f32 %v4710_v37, 0.0 }
 0x256   : > { %v4730_v59 = vmax.f32 %v4361_v13, %v4718_v46  ;;  %v4733_v60 = vmax.f32 %v7185_v26, %v4721_v47  ;;  %v4724_v62 = vmax.f32 %v4712_v0, 0.0 }
 0x257   : > { %v5543_v1 = vpack.c.bf16 %v4728_v56, %v4727_v36  ;;  %v4735_v3 = vmax.f32 %v4366_v16, %v4723_v14  ;;  %v4734_v43 = vmax.f32 %v7188_v17, %v4722_v58 }
 0x258   : > { %v5544_v21 = vpack.c.bf16 %v4730_v59, %v4729_v49  ;;  %v4736_v10 = vmax.f32 %v4367_v20, %v4724_v62 }
 0x259   : > { %4774 = vst [vmem:[%s6862_s12 + $0x38] sm:$0xff] %v5543_v1  ;;  %v5546_v42 = vpack.c.bf16 %v4734_v43, %v4733_v60 }
 0x25a   : > { %4775 = vst [vmem:[%s6862_s12 + $0x40] sm:$0xff] %v5544_v21  ;;  %v5547_v24 = vpack.c.bf16 %v4736_v10, %v4735_v3 }
 0x25b   : > { %4777 = vst [vmem:[%s6862_s12 + $0x80] sm:$0xff] %v5546_v42 }
 0x25c   : > { %4778 = vst [vmem:[%s6862_s12 + $0x88] sm:$0xff] %v5547_v24 }
 0x25d PF: > { %s14_s15 = sadd.s32 1, %s6111_s15  }
 0x25e   : > { %p11_p4 = scmp.ge.s32.totalorder %s14_s15, 4  }
 0x260   :  { %13 = sbr.rel (!%p11_p4) target bundleno = 1 (0x1), region = 69 }

// kernel: siamese_forward.5
= control target key start
LH: loop header
LB: loop body
LE: loop exit
PB: predicated region body
PF: predicated region fallthrough
CT: control target
= control target key end

     0   :  { %s5386_s15 = smov 0   ;;  %s6369_s0 = inlined_call_operand.vmem [shape: bf16[2,4,400,484], index: 0, kind: input, shape index: {}]   ;;  %s6370_s1 = inlined_call_operand.vmem [shape: bf16[32,400], index: 1, kind: input, shape index: {}]   ;;  %s6371_s2 = inlined_call_operand.vmem [shape: f32[32,1], index: 2, kind: input, shape index: {}]   ;;  %s6372_s3 = inlined_call_operand.vmem [shape: f32[32,1], index: 3, kind: input, shape index: {}]   ;;  %s6373_s4 = inlined_call_operand.vmem [shape: bf16[2,32,484], index: 4, kind: output, shape index: {}]  }
   0x1 LB: > { %s3905_s16 = sadd.s32 4294967295, %s5358_s15   ;;  %p3909_p0 = scmp.ge.s32.totalorder %s5358_s15, 1  ;;  %s5358_s15 = sphi %s5386_s15, %s14_s15  }
   0x2   : > { %p162_p1 = scmp.lt.s32.totalorder %s5358_s15, 3 }
   0x4   : > { %p163_p2 = pnand %p3909_p0, %p162_p1 }
   0x5   : > { %p188_p3 = scmp.lt.s32.totalorder (!%p163_p2), %s3905_s16, 1  ;;  %v5397_v0 = vld [vmem:[%s6370_s1 + $0x4] ss:$16 sps:$4 sm:$0xff] (!%p163_p2)   ;;  %v5360_v55 = vmov (!%p163_p2), 0   ;;  %vm853_vm0 = vcmask (!%p163_p2), 130048   ;;  %vm3840_vm1 = vcmask (!%p163_p2), 1043456  }
   0x6   : > { %166 = sbr.rel (%p163_p2) target bundleno = 655 (0x28f), region = 36  ;;  %892 = vmatprep.mubr.bf16.mxu0 (!%p163_p2), %v5397_v0  ;;  %998 = vmatprep.mubr.bf16.mxu1 (!%p163_p2), %v5397_v0  ;;  %vm3841_vm2 = vcmask (!%p163_p2), 818180  }
   0x7   : > { %4730 = vset.pattern.permute.xlu0 (!%p163_p2), %v5360_v55  ;;  %4731 = vset.pattern.permute.xlu1 (!%p163_p2), %v5360_v55  ;;  %v5568_v55 = vld [vmem:[%s6370_s1 + $0x28] ss:$16 sps:$4 sm:$0xff] (!%p163_p2)   ;;  %vm6318_vm3 = vmor (!%p163_p2), %vm3841_vm2, %vm3840_vm1 }
   0xd   : > { %s6377_s16 = smov (!%p188_p3, %s3905_s16), 1 }
   0xe   : > { %s4720_s19 = smul.u32 3200, %s6377_s16 }
  0x10   : > { %s5407_s22 = scalar_lea.vmem %s6369_s0, %s4720_s19 }
  0x11   : > { %v4732_v1 = vld [vmem:[%s5407_s22 + $0x4] ss:$16 sps:$4 sm:$0xff]   ;;  %v4734_v2 = vld [vmem:[%s5407_s22 + $0xc] ss:$16 sps:$4 sm:$0xff]   ;;  %v4736_v3 = vld [vmem:[%s5407_s22] ss:$16 sps:$4 sm:$0xff]  }
  0x12   : > { %860 = vmatprep.subr.bf16.mxu0 %v4732_v1  ;;  %v4737_v4 = vld [vmem:[%s5407_s22 + $0x8] ss:$16 sps:$4 sm:$0xff]   ;;  %966 = vmatprep.subr.bf16.mxu1 %v4734_v2  ;;  %v4738_v5 = vld [vmem:[%s5407_s22 + $0x24] ss:$16 sps:$4 sm:$0xff]   ;;  %v4740_v6 = vld [vmem:[%s5407_s22 + $0x2c] ss:$16 sps:$4 sm:$0xff]  }
  0x13   : > { %861 = vmatpush1.bf16.msra.mxu0 %v4736_v3  ;;  %967 = vmatpush1.bf16.msra.mxu1 %v4737_v4  ;;  %v4742_v7 = vld [vmem:[%s5407_s22 + $0x20] ss:$16 sps:$4 sm:$0xff]   ;;  %v4743_v8 = vld [vmem:[%s5407_s22 + $0x28] ss:$16 sps:$4 sm:$0xff]   ;;  %v4744_v9 = vld [vmem:[%s5407_s22 + $0x44] ss:$16 sps:$4 sm:$0xff]  }
  0x14   : > { %862 = vmatprep.subr.bf16.mxu0 %v4738_v5  ;;  %968 = vmatprep.subr.bf16.mxu1 %v4740_v6  ;;  %v4746_v10 = vld [vmem:[%s5407_s22 + $0x4c] ss:$16 sps:$4 sm:$0xff]   ;;  %v4748_v11 = vld [vmem:[%s5407_s22 + $0x40] ss:$16 sps:$4 sm:$0xff]   ;;  %v4749_v12 = vld [vmem:[%s5407_s22 + $0x48] ss:$16 sps:$4 sm:$0xff]  }
  0x15   : > { %v4750_v13 = vld [vmem:[%s5407_s22 + $0x64] ss:$16 sps:$4 sm:$0xff]   ;;  %v4752_v14 = vld [vmem:[%s5407_s22 + $0x6c] ss:$16 sps:$4 sm:$0xff]   ;;  %v4754_v15 = vld [vmem:[%s5407_s22 + $0x60] ss:$16 sps:$4 sm:$0xff]  }
  0x16   : > { %v4755_v16 = vld [vmem:[%s5407_s22 + $0x68] ss:$16 sps:$4 sm:$0xff]   ;;  %v4756_v17 = vld [vmem:[%s5407_s22 + $0x84] ss:$16 sps:$4 sm:$0xff]   ;;  %v4758_v18 = vld [vmem:[%s5407_s22 + $0x8c] ss:$16 sps:$4 sm:$0xff]  }
  0x17   : > { %863 = vmatpush1.bf16.msra.mxu0 %v4742_v7  ;;  %969 = vmatpush1.bf16.msra.mxu1 %v4743_v8  ;;  %v4760_v19 = vld [vmem:[%s5407_s22 + $0x80] ss:$16 sps:$4 sm:$0xff]   ;;  %v4761_v20 = vld [vmem:[%s5407_s22 + $0x88] ss:$16 sps:$4 sm:$0xff]   ;;  %v4762_v21 = vld [vmem:[%s5407_s22 + $0xa4] ss:$16 sps:$4 sm:$0xff]  }
  0x18   : > { %864 = vmatprep.subr.bf16.mxu0 %v4744_v9  ;;  %970 = vmatprep.subr.bf16.mxu1 %v4746_v10  ;;  %v4764_v22 = vld [vmem:[%s5407_s22 + $0xac] ss:$16 sps:$4 sm:$0xff]   ;;  %v4766_v23 = vld [vmem:[%s5407_s22 + $0xa0] ss:$16 sps:$4 sm:$0xff]   ;;  %v4767_v24 = vld [vmem:[%s5407_s22 + $0xa8] ss:$16 sps:$4 sm:$0xff]  }
  0x19   : > { %v4768_v25 = vld [vmem:[%s5407_s22 + $0xc4] ss:$16 sps:$4 sm:$0xff]   ;;  %v4770_v26 = vld [vmem:[%s5407_s22 + $0xcc] ss:$16 sps:$4 sm:$0xff]   ;;  %v4772_v27 = vld [vmem:[%s5407_s22 + $0xc0] ss:$16 sps:$4 sm:$0xff]  }
  0x1a   : > { %v4773_v28 = vld [vmem:[%s5407_s22 + $0xc8] ss:$16 sps:$4 sm:$0xff]   ;;  %v4774_v29 = vld [vmem:[%s5407_s22 + $0xe4] ss:$16 sps:$4 sm:$0xff]   ;;  %v4776_v30 = vld [vmem:[%s5407_s22 + $0xec] ss:$16 sps:$4 sm:$0xff]  }
  0x1b   : > { %865 = vmatpush1.bf16.msra.mxu0 %v4748_v11  ;;  %971 = vmatpush1.bf16.msra.mxu1 %v4749_v12  ;;  %v4778_v31 = vld [vmem:[%s5407_s22 + $0xe0] ss:$16 sps:$4 sm:$0xff]   ;;  %v4779_v32 = vld [vmem:[%s5407_s22 + $0xe8] ss:$16 sps:$4 sm:$0xff]   ;;  %v4780_v33 = vld [vmem:[%s5407_s22 + $0x104] ss:$16 sps:$4 sm:$0xff]  }
  0x1c   : > { %866 = vmatprep.subr.bf16.mxu0 %v4750_v13  ;;  %972 = vmatprep.subr.bf16.mxu1 %v4752_v14  ;;  %v4782_v34 = vld [vmem:[%s5407_s22 + $0x10c] ss:$16 sps:$4 sm:$0xff]   ;;  %v4784_v35 = vld [vmem:[%s5407_s22 + $0x100] ss:$16 sps:$4 sm:$0xff]   ;;  %v4785_v36 = vld [vmem:[%s5407_s22 + $0x108] ss:$16 sps:$4 sm:$0xff]  }
  0x1d   : > { %v4786_v37 = vld [vmem:[%s5407_s22 + $0x124] ss:$16 sps:$4 sm:$0xff]   ;;  %v4788_v38 = vld [vmem:[%s5407_s22 + $0x12c] ss:$16 sps:$4 sm:$0xff]   ;;  %v4790_v39 = vld [vmem:[%s5407_s22 + $0x120] ss:$16 sps:$4 sm:$0xff]  }
  0x1e   : > { %v4791_v40 = vld [vmem:[%s5407_s22 + $0x128] ss:$16 sps:$4 sm:$0xff]   ;;  %v4792_v41 = vld [vmem:[%s5407_s22 + $0x144] ss:$16 sps:$4 sm:$0xff]   ;;  %v4794_v42 = vld [vmem:[%s5407_s22 + $0x14c] ss:$16 sps:$4 sm:$0xff]  }
  0x1f   : > { %867 = vmatpush1.bf16.msra.mxu0 %v4754_v15  ;;  %973 = vmatpush1.bf16.msra.mxu1 %v4755_v16  ;;  %v4796_v43 = vld [vmem:[%s5407_s22 + $0x140] ss:$16 sps:$4 sm:$0xff]   ;;  %v4797_v44 = vld [vmem:[%s5407_s22 + $0x148] ss:$16 sps:$4 sm:$0xff]   ;;  %v4798_v45 = vld [vmem:[%s5407_s22 + $0x164] ss:$16 sps:$4 sm:$0xff]  }
  0x20   : > { %868 = vmatprep.subr.bf16.mxu0 %v4756_v17  ;;  %974 = vmatprep.subr.bf16.mxu1 %v4758_v18  ;;  %v4800_v46 = vld [vmem:[%s5407_s22 + $0x16c] ss:$16 sps:$4 sm:$0xff]   ;;  %v4802_v47 = vld [vmem:[%s5407_s22 + $0x160] ss:$16 sps:$4 sm:$0xff]   ;;  %v4803_v48 = vld [vmem:[%s5407_s22 + $0x168] ss:$16 sps:$4 sm:$0xff]  }
  0x21   : > { %v4804_v49 = vld [vmem:[%s5407_s22 + $0x184] ss:$16 sps:$4 sm:$0xff]   ;;  %v4806_v50 = vld [vmem:[%s5407_s22 + $0x18c] ss:$16 sps:$4 sm:$0xff]   ;;  %v4808_v51 = vld [vmem:[%s5407_s22 + $0x180] ss:$16 sps:$4 sm:$0xff]  }
  0x22   : > { %v4809_v52 = vld [vmem:[%s5407_s22 + $0x188] ss:$16 sps:$4 sm:$0xff]   ;;  %v4810_v53 = vld [vmem:[%s5407_s22 + $0x1a4] ss:$16 sps:$4 sm:$0xff]   ;;  %v4812_v54 = vld [vmem:[%s5407_s22 + $0x1ac] ss:$16 sps:$4 sm:$0xff]  }
  0x23   : > { %869 = vmatpush1.bf16.msra.mxu0 %v4760_v19  ;;  %975 = vmatpush1.bf16.msra.mxu1 %v4761_v20  ;;  %v4814_v56 = vld [vmem:[%s5407_s22 + $0x1a0] ss:$16 sps:$4 sm:$0xff]   ;;  %v4815_v57 = vld [vmem:[%s5407_s22 + $0x1a8] ss:$16 sps:$4 sm:$0xff]   ;;  %v4816_v58 = vld [vmem:[%s5407_s22 + $0x1c4] ss:$16 sps:$4 sm:$0xff]  }
  0x24   : > { %870 = vmatprep.subr.bf16.mxu0 %v4762_v21  ;;  %976 = vmatprep.subr.bf16.mxu1 %v4764_v22  ;;  %v4818_v59 = vld [vmem:[%s5407_s22 + $0x1cc] ss:$16 sps:$4 sm:$0xff]   ;;  %v4820_v60 = vld [vmem:[%s5407_s22 + $0x1c0] ss:$16 sps:$4 sm:$0xff]   ;;  %v4821_v61 = vld [vmem:[%s5407_s22 + $0x1c8] ss:$16 sps:$4 sm:$0xff]  }
  0x25   : > { %v4822_v62 = vld [vmem:[%s5407_s22 + $0x1e4] ss:$16 sps:$4 sm:$0xff]   ;;  %v4824_v63 = vld [vmem:[%s5407_s22 + $0x1ec] ss:$16 sps:$4 sm:$0xff]   ;;  %v4826_v1 = vld [vmem:[%s5407_s22 + $0x1e0] ss:$16 sps:$4 sm:$0xff]  }
  0x26   : > { %v4827_v2 = vld [vmem:[%s5407_s22 + $0x1e8] ss:$16 sps:$4 sm:$0xff]   ;;  %v4832_v3 = vld [vmem:[%s5407_s22 + $0x204] ss:$16 sps:$4 sm:$0xff]   ;;  %v4835_v4 = vld [vmem:[%s5407_s22 + $0x20c] ss:$16 sps:$4 sm:$0xff]  }
  0x27   : > { %871 = vmatpush1.bf16.msra.mxu0 %v4766_v23  ;;  %977 = vmatpush1.bf16.msra.mxu1 %v4767_v24  ;;  %v5478_v5 = vld [vmem:[%s6370_s1] ss:$16 sps:$4 sm:$0xff]   ;;  %v4833_v7 = vld [vmem:[%s5407_s22 + $0x208] ss:$16 sps:$4 sm:$0xff]   ;;  %v4839_v8 = vld [vmem:[%s5407_s22 + $0x224] ss:$16 sps:$4 sm:$0xff]  }
  0x28   : > { %872 = vmatprep.subr.bf16.mxu0 %v4768_v25  ;;  %978 = vmatprep.subr.bf16.mxu1 %v4770_v26  ;;  %v4830_v6 = vld [vmem:[%s5407_s22 + $0x200] ss:$16 sps:$4 sm:$0xff]   ;;  %v4842_v9 = vld [vmem:[%s5407_s22 + $0x22c] ss:$16 sps:$4 sm:$0xff]   ;;  %v5487_v10 = vld [vmem:[%s6370_s1 + $0x24] ss:$16 sps:$4 sm:$0xff]  }
  0x29   : > { %v4837_v11 = vld [vmem:[%s5407_s22 + $0x220] ss:$16 sps:$4 sm:$0xff]   ;;  %v4840_v12 = vld [vmem:[%s5407_s22 + $0x228] ss:$16 sps:$4 sm:$0xff]   ;;  %v4845_v13 = vld [vmem:[%s5407_s22 + $0x244] ss:$16 sps:$4 sm:$0xff]  }
  0x2a   : > { %v4848_v14 = vld [vmem:[%s5407_s22 + $0x24c] ss:$16 sps:$4 sm:$0xff]   ;;  %v5500_v15 = vld [vmem:[%s6370_s1 + $0x20] ss:$16 sps:$4 sm:$0xff]   ;;  %v4846_v17 = vld [vmem:[%s5407_s22 + $0x248] ss:$16 sps:$4 sm:$0xff]  }
  0x2b   : > { %873 = vmatpush1.bf16.msra.mxu0 %v4772_v27  ;;  %979 = vmatpush1.bf16.msra.mxu1 %v4773_v28  ;;  %v4843_v16 = vld [vmem:[%s5407_s22 + $0x240] ss:$16 sps:$4 sm:$0xff]   ;;  %v4851_v18 = vld [vmem:[%s5407_s22 + $0x264] ss:$16 sps:$4 sm:$0xff]   ;;  %v4854_v19 = vld [vmem:[%s5407_s22 + $0x26c] ss:$16 sps:$4 sm:$0xff]  }
  0x2c   : > { %874 = vmatprep.subr.bf16.mxu0 %v4774_v29  ;;  %980 = vmatprep.subr.bf16.mxu1 %v4776_v30  ;;  %v5509_v20 = vld [vmem:[%s6370_s1 + $0xc] ss:$16 sps:$4 sm:$0xff]   ;;  %v4849_v21 = vld [vmem:[%s5407_s22 + $0x260] ss:$16 sps:$4 sm:$0xff]   ;;  %v4852_v22 = vld [vmem:[%s5407_s22 + $0x268] ss:$16 sps:$4 sm:$0xff]  }
  0x2d   : > { %v4857_v23 = vld [vmem:[%s5407_s22 + $0x284] ss:$16 sps:$4 sm:$0xff]   ;;  %v4860_v24 = vld [vmem:[%s5407_s22 + $0x28c] ss:$16 sps:$4 sm:$0xff]   ;;  %v4855_v25 = vld [vmem:[%s5407_s22 + $0x280] ss:$16 sps:$4 sm:$0xff]  }
  0x2e   : > { %v4858_v26 = vld [vmem:[%s5407_s22 + $0x288] ss:$16 sps:$4 sm:$0xff]   ;;  %v4863_v27 = vld [vmem:[%s5407_s22 + $0x2a4] ss:$16 sps:$4 sm:$0xff]   ;;  %v4866_v28 = vld [vmem:[%s5407_s22 + $0x2ac] ss:$16 sps:$4 sm:$0xff]  }
  0x2f   : > { %875 = vmatpush1.bf16.msra.mxu0 %v4778_v31  ;;  %981 = vmatpush1.bf16.msra.mxu1 %v4779_v32  ;;  %v4861_v29 = vld [vmem:[%s5407_s22 + $0x2a0] ss:$16 sps:$4 sm:$0xff]   ;;  %v4864_v30 = vld [vmem:[%s5407_s22 + $0x2a8] ss:$16 sps:$4 sm:$0xff]   ;;  %v4869_v31 = vld [vmem:[%s5407_s22 + $0x2c4] ss:$16 sps:$4 sm:$0xff]  }
  0x30   : > { %876 = vmatprep.subr.bf16.mxu0 %v4780_v33  ;;  %982 = vmatprep.subr.bf16.mxu1 %v4782_v34  ;;  %v4872_v32 = vld [vmem:[%s5407_s22 + $0x2cc] ss:$16 sps:$4 sm:$0xff]   ;;  %v4867_v33 = vld [vmem:[%s5407_s22 + $0x2c0] ss:$16 sps:$4 sm:$0xff]   ;;  %v4870_v34 = vld [vmem:[%s5407_s22 + $0x2c8] ss:$16 sps:$4 sm:$0xff]  }
  0x33   : > { %877 = vmatpush1.bf16.msra.mxu0 %v4784_v35  ;;  %983 = vmatpush1.bf16.msra.mxu1 %v4785_v36  ;;  %v4878_v35 = vld [vmem:[%s5407_s22 + $0x2e4] ss:$16 sps:$4 sm:$0xff]   ;;  %v4881_v36 = vld [vmem:[%s5407_s22 + $0x2ec] ss:$16 sps:$4 sm:$0xff]  }
  0x34   : > { %878 = vmatprep.subr.bf16.mxu0 %v4786_v37  ;;  %984 = vmatprep.subr.bf16.mxu1 %v4788_v38  ;;  %v4876_v37 = vld [vmem:[%s5407_s22 + $0x2e0] ss:$16 sps:$4 sm:$0xff]   ;;  %v4879_v38 = vld [vmem:[%s5407_s22 + $0x2e8] ss:$16 sps:$4 sm:$0xff]  }
  0x37   : > { %879 = vmatpush1.bf16.msra.mxu0 %v4790_v39  ;;  %985 = vmatpush1.bf16.msra.mxu1 %v4791_v40  ;;  %v4884_v39 = vld [vmem:[%s5407_s22 + $0x304] ss:$16 sps:$4 sm:$0xff]   ;;  %v4887_v40 = vld [vmem:[%s5407_s22 + $0x30c] ss:$16 sps:$4 sm:$0xff]  }
  0x38   : > { %880 = vmatprep.subr.bf16.mxu0 %v4792_v41  ;;  %986 = vmatprep.subr.bf16.mxu1 %v4794_v42  ;;  %v4882_v41 = vld [vmem:[%s5407_s22 + $0x300] ss:$16 sps:$4 sm:$0xff]   ;;  %v4885_v42 = vld [vmem:[%s5407_s22 + $0x308] ss:$16 sps:$4 sm:$0xff]  }
  0x3b   : > { %881 = vmatpush1.bf16.msra.mxu0 %v4796_v43  ;;  %987 = vmatpush1.bf16.msra.mxu1 %v4797_v44  ;;  %v4893_v43 = vld [vmem:[%s5407_s22 + $0x324] ss:$16 sps:$4 sm:$0xff]   ;;  %v4896_v44 = vld [vmem:[%s5407_s22 + $0x32c] ss:$16 sps:$4 sm:$0xff]  }
  0x3c   : > { %882 = vmatprep.subr.bf16.mxu0 %v4798_v45  ;;  %988 = vmatprep.subr.bf16.mxu1 %v4800_v46  ;;  %v5544_v45 = vld [vmem:[%s6370_s1 + $0x8] ss:$16 sps:$4 sm:$0xff]   ;;  %v4891_v46 = vld [vmem:[%s5407_s22 + $0x320] ss:$16 sps:$4 sm:$0xff]  }
  0x3f   : > { %883 = vmatpush1.bf16.msra.mxu0 %v4802_v47  ;;  %989 = vmatpush1.bf16.msra.mxu1 %v4803_v48  ;;  %v4894_v47 = vld [vmem:[%s5407_s22 + $0x328] ss:$16 sps:$4 sm:$0xff]   ;;  %v4899_v48 = vld [vmem:[%s5407_s22 + $0x344] ss:$16 sps:$4 sm:$0xff]  }
  0x40   : > { %884 = vmatprep.subr.bf16.mxu0 %v4804_v49  ;;  %990 = vmatprep.subr.bf16.mxu1 %v4806_v50  ;;  %v4902_v49 = vld [vmem:[%s5407_s22 + $0x34c] ss:$16 sps:$4 sm:$0xff]  }
  0x41   : > { %v5553_v50 = vld [vmem:[%s6370_s1 + $0x2c] ss:$16 sps:$4 sm:$0xff]  }
  0x43   : > { %885 = vmatpush1.bf16.msra.mxu0 %v4808_v51  ;;  %991 = vmatpush1.bf16.msra.mxu1 %v4809_v52  ;;  %v4897_v51 = vld [vmem:[%s5407_s22 + $0x340] ss:$16 sps:$4 sm:$0xff]   ;;  %v4900_v52 = vld [vmem:[%s5407_s22 + $0x348] ss:$16 sps:$4 sm:$0xff]  }
  0x44   : > { %886 = vmatprep.subr.bf16.mxu0 %v4810_v53  ;;  %992 = vmatprep.subr.bf16.mxu1 %v4812_v54  ;;  %v4908_v53 = vld [vmem:[%s5407_s22 + $0x364] ss:$16 sps:$4 sm:$0xff]   ;;  %v4911_v54 = vld [vmem:[%s5407_s22 + $0x36c] ss:$16 sps:$4 sm:$0xff]  }
  0x47   : > { %887 = vmatpush1.bf16.msra.mxu0 %v4814_v56  ;;  %993 = vmatpush1.bf16.msra.mxu1 %v4815_v57  ;;  %v4906_v56 = vld [vmem:[%s5407_s22 + $0x360] ss:$16 sps:$4 sm:$0xff]   ;;  %v4909_v57 = vld [vmem:[%s5407_s22 + $0x368] ss:$16 sps:$4 sm:$0xff]  }
  0x48   : > { %888 = vmatprep.subr.bf16.mxu0 %v4816_v58  ;;  %994 = vmatprep.subr.bf16.mxu1 %v4818_v59  ;;  %v4914_v58 = vld [vmem:[%s5407_s22 + $0x384] ss:$16 sps:$4 sm:$0xff]   ;;  %v4917_v59 = vld [vmem:[%s5407_s22 + $0x38c] ss:$16 sps:$4 sm:$0xff]  }
  0x4b   : > { %889 = vmatpush1.bf16.msra.mxu0 %v4820_v60  ;;  %995 = vmatpush1.bf16.msra.mxu1 %v4821_v61  ;;  %v4912_v60 = vld [vmem:[%s5407_s22 + $0x380] ss:$16 sps:$4 sm:$0xff]   ;;  %v4915_v61 = vld [vmem:[%s5407_s22 + $0x388] ss:$16 sps:$4 sm:$0xff]  }
  0x4c   : > { %890 = vmatprep.subr.bf16.mxu0 %v4822_v62  ;;  %996 = vmatprep.subr.bf16.mxu1 %v4824_v63  ;;  %v4920_v62 = vld [vmem:[%s5407_s22 + $0x3a4] ss:$16 sps:$4 sm:$0xff]   ;;  %v4923_v63 = vld [vmem:[%s5407_s22 + $0x3ac] ss:$16 sps:$4 sm:$0xff]  }
  0x4f   : > { %891 = vmatpush1.bf16.msra.mxu0 %v4826_v1  ;;  %997 = vmatpush1.bf16.msra.mxu1 %v4827_v2  ;;  %v4918_v1 = vld [vmem:[%s5407_s22 + $0x3a0] ss:$16 sps:$4 sm:$0xff]   ;;  %v4921_v2 = vld [vmem:[%s5407_s22 + $0x3a8] ss:$16 sps:$4 sm:$0xff]  }
  0x50   : > { %913 = vmatprep.subr.bf16.mxu0 %v4832_v3  ;;  %1019 = vmatprep.subr.bf16.mxu1 %v4835_v4  ;;  %v4926_v3 = vld [vmem:[%s5407_s22 + $0x3c4] ss:$16 sps:$4 sm:$0xff]   ;;  %v4929_v4 = vld [vmem:[%s5407_s22 + $0x3cc] ss:$16 sps:$4 sm:$0xff]  }
  0x52   : > { %893 = vmatmul.mubr.bf16.vlgmr.msra.gmra.mrb[0].mxu0 %v5478_v5  ;;  %999 = vmatmul.mubr.bf16.vlgmr.msra.gmra.mrb[0].mxu1 %v5478_v5 }
  0x53   : > { %914 = vmatpush1.bf16.msra.mxu0 %v4830_v6  ;;  %1020 = vmatpush1.bf16.msra.mxu1 %v4833_v7  ;;  %v4924_v6 = vld [vmem:[%s5407_s22 + $0x3c0] ss:$16 sps:$4 sm:$0xff]   ;;  %v4927_v7 = vld [vmem:[%s5407_s22 + $0x3c8] ss:$16 sps:$4 sm:$0xff]  }
  0x54   : > { %915 = vmatprep.subr.bf16.mxu0 %v4839_v8  ;;  %1021 = vmatprep.subr.bf16.mxu1 %v4842_v9  ;;  %v201_v8 = vld [vmem:[%s6371_s2 + $0x10] sm:$0xff] }
  0x55   : > { %902 = vmatprep.mubr.bf16.mxu0 %v5487_v10  ;;  %1008 = vmatprep.mubr.bf16.mxu1 %v5487_v10  ;;  %v4932_v9 = vld [vmem:[%s5407_s22 + $0x3e4] ss:$16 sps:$4 sm:$0xff]  }
  0x56   : > { %1084 = vperm.xlu1 %4731, %v201_v8   ;;  %v5002_v8 = vld [vmem:[%s5407_s22 + $0x560] ss:$16 sps:$4 sm:$0xff]  }
  0x57   : > { %916 = vmatpush1.bf16.msra.mxu0 %v4837_v11  ;;  %1022 = vmatpush1.bf16.msra.mxu1 %v4840_v12  ;;  %v4935_v11 = vld [vmem:[%s5407_s22 + $0x3ec] ss:$16 sps:$4 sm:$0xff]   ;;  %v4930_v12 = vld [vmem:[%s5407_s22 + $0x3e0] ss:$16 sps:$4 sm:$0xff]  }
  0x58   : > { %917 = vmatprep.subr.bf16.mxu0 %v4845_v13  ;;  %1023 = vmatprep.subr.bf16.mxu1 %v4848_v14  ;;  %v4933_v13 = vld [vmem:[%s5407_s22 + $0x3e8] ss:$16 sps:$4 sm:$0xff]  }
  0x59   : > { %v200_v14 = vld [vmem:[%s6371_s2 + $0x8] sm:$0xff] }
  0x5a   : > { %903 = vmatmul.mubr.bf16.gmra.mrb[4].mxu0 %v5500_v15  ;;  %1009 = vmatmul.mubr.bf16.gmra.mrb[4].mxu1 %v5500_v15 }
  0x5b   : > { %918 = vmatpush1.bf16.msra.mxu0 %v4843_v16  ;;  %1024 = vmatpush1.bf16.msra.mxu1 %v4846_v17  ;;  %v202_v16 = vld [vmem:[%s6371_s2 + $0x18] sm:$0xff]  ;;  %v4938_v17 = vld [vmem:[%s5407_s22 + $0x404] ss:$16 sps:$4 sm:$0xff]  }
  0x5c   : > { %919 = vmatprep.subr.bf16.mxu0 %v4851_v18  ;;  %1025 = vmatprep.subr.bf16.mxu1 %v4854_v19  ;;  %v4941_v18 = vld [vmem:[%s5407_s22 + $0x40c] ss:$16 sps:$4 sm:$0xff]   ;;  %v203_v19 = vld [vmem:[%s6372_s3] sm:$0xff] }
  0x5d   : > { %4021 = vmatprep.mubr.msk.bf16.mxu0 %vm853_vm0, %v5509_v20  ;;  %4023 = vmatprep.mubr.msk.bf16.mxu1 %vm853_vm0, %v5509_v20 }
  0x5e   : > { %1089 = vperm.xlu1 %4731, %v202_v16   ;;  %v5014_v16 = vld [vmem:[%s5407_s22 + $0x5a0] ss:$16 sps:$4 sm:$0xff]  }
  0x5f   : > { %920 = vmatpush1.bf16.msra.mxu0 %v4849_v21  ;;  %1026 = vmatpush1.bf16.msra.mxu1 %v4852_v22  ;;  %v204_v21 = vld [vmem:[%s6372_s3 + $0x8] sm:$0xff]  ;;  %v4936_v22 = vld [vmem:[%s5407_s22 + $0x400] ss:$16 sps:$4 sm:$0xff]  }
  0x60   : > { %921 = vmatprep.subr.bf16.mxu0 %v4857_v23  ;;  %1027 = vmatprep.subr.bf16.mxu1 %v4860_v24  ;;  %v4939_v23 = vld [vmem:[%s5407_s22 + $0x408] ss:$16 sps:$4 sm:$0xff]   ;;  %v4944_v24 = vld [vmem:[%s5407_s22 + $0x424] ss:$16 sps:$4 sm:$0xff]  }
  0x62   : > { %1115 = vperm.xlu1 %4731, %v204_v21   ;;  %v5023_v21 = vld [vmem:[%s5407_s22 + $0x5c8] ss:$16 sps:$4 sm:$0xff]  }
  0x63   : > { %922 = vmatpush1.bf16.msra.mxu0 %v4855_v25  ;;  %1028 = vmatpush1.bf16.msra.mxu1 %v4858_v26  ;;  %v4947_v25 = vld [vmem:[%s5407_s22 + $0x42c] ss:$16 sps:$4 sm:$0xff]   ;;  %v4942_v26 = vld [vmem:[%s5407_s22 + $0x420] ss:$16 sps:$4 sm:$0xff]  }
  0x64   : > { %923 = vmatprep.subr.bf16.mxu0 %v4863_v27  ;;  %1029 = vmatprep.subr.bf16.mxu1 %v4866_v28  ;;  %v4945_v27 = vld [vmem:[%s5407_s22 + $0x428] ss:$16 sps:$4 sm:$0xff]   ;;  %v4950_v28 = vld [vmem:[%s5407_s22 + $0x444] ss:$16 sps:$4 sm:$0xff]  }
  0x67   : > { %924 = vmatpush1.bf16.msra.mxu0 %v4861_v29  ;;  %1030 = vmatpush1.bf16.msra.mxu1 %v4864_v30  ;;  %v4953_v29 = vld [vmem:[%s5407_s22 + $0x44c] ss:$16 sps:$4 sm:$0xff]   ;;  %v205_v30 = vld [vmem:[%s6372_s3 + $0x10] sm:$0xff] }
  0x68   : > { %925 = vmatprep.subr.bf16.mxu0 %v4869_v31  ;;  %1031 = vmatprep.subr.bf16.mxu1 %v4872_v32  ;;  %v206_v31 = vld [vmem:[%s6372_s3 + $0x18] sm:$0xff]  ;;  %v4948_v32 = vld [vmem:[%s5407_s22 + $0x440] ss:$16 sps:$4 sm:$0xff]  }
  0x69   : > { %1125 = vperm.xlu1 %4731, %v206_v31   ;;  %v5038_v31 = vld [vmem:[%s5407_s22 + $0x620] ss:$16 sps:$4 sm:$0xff]  }
  0x6b   : > { %926 = vmatpush1.bf16.msra.mxu0 %v4867_v33  ;;  %1032 = vmatpush1.bf16.msra.mxu1 %v4870_v34  ;;  %v4951_v33 = vld [vmem:[%s5407_s22 + $0x448] ss:$16 sps:$4 sm:$0xff]   ;;  %v4956_v34 = vld [vmem:[%s5407_s22 + $0x464] ss:$16 sps:$4 sm:$0xff]  }
  0x6c   : > { %927 = vmatprep.subr.bf16.mxu0 %v4878_v35  ;;  %1033 = vmatprep.subr.bf16.mxu1 %v4881_v36  ;;  %v4959_v35 = vld [vmem:[%s5407_s22 + $0x46c] ss:$16 sps:$4 sm:$0xff]   ;;  %v4954_v36 = vld [vmem:[%s5407_s22 + $0x460] ss:$16 sps:$4 sm:$0xff]  }
  0x6f   : > { %928 = vmatpush1.bf16.msra.mxu0 %v4876_v37  ;;  %1034 = vmatpush1.bf16.msra.mxu1 %v4879_v38  ;;  %v4957_v37 = vld [vmem:[%s5407_s22 + $0x468] ss:$16 sps:$4 sm:$0xff]   ;;  %v4962_v38 = vld [vmem:[%s5407_s22 + $0x484] ss:$16 sps:$4 sm:$0xff]  }
  0x70   : > { %929 = vmatprep.subr.bf16.mxu0 %v4884_v39  ;;  %1035 = vmatprep.subr.bf16.mxu1 %v4887_v40  ;;  %v4965_v39 = vld [vmem:[%s5407_s22 + $0x48c] ss:$16 sps:$4 sm:$0xff]   ;;  %v4960_v40 = vld [vmem:[%s5407_s22 + $0x480] ss:$16 sps:$4 sm:$0xff]  }
  0x73   : > { %930 = vmatpush1.bf16.msra.mxu0 %v4882_v41  ;;  %1036 = vmatpush1.bf16.msra.mxu1 %v4885_v42  ;;  %v4963_v41 = vld [vmem:[%s5407_s22 + $0x488] ss:$16 sps:$4 sm:$0xff]   ;;  %v4968_v42 = vld [vmem:[%s5407_s22 + $0x4a4] ss:$16 sps:$4 sm:$0xff]  }
  0x74   : > { %1761 = vmatprep.subr.bf16.mxu0 %v4893_v43  ;;  %1867 = vmatprep.subr.bf16.mxu1 %v4896_v44  ;;  %v4971_v43 = vld [vmem:[%s5407_s22 + $0x4ac] ss:$16 sps:$4 sm:$0xff]   ;;  %v4966_v44 = vld [vmem:[%s5407_s22 + $0x4a0] ss:$16 sps:$4 sm:$0xff]  }
  0x76   : > { %946 = vmatmul.mubr.bf16.vlgmr.msra.gmra.mrb[0].mxu0 %v5544_v45  ;;  %1052 = vmatmul.mubr.bf16.vlgmr.msra.gmra.mrb[0].mxu1 %v5544_v45 }
  0x77   : > { %1762 = vmatpush1.bf16.msra.mxu0 %v4891_v46  ;;  %1868 = vmatpush1.bf16.msra.mxu1 %v4894_v47  ;;  %v4969_v46 = vld [vmem:[%s5407_s22 + $0x4a8] ss:$16 sps:$4 sm:$0xff]   ;;  %v4974_v47 = vld [vmem:[%s5407_s22 + $0x4c4] ss:$16 sps:$4 sm:$0xff]  }
  0x78   : > { %1763 = vmatprep.subr.bf16.mxu0 %v4899_v48  ;;  %1869 = vmatprep.subr.bf16.mxu1 %v4902_v49  ;;  %v4977_v48 = vld [vmem:[%s5407_s22 + $0x4cc] ss:$16 sps:$4 sm:$0xff]   ;;  %v4972_v49 = vld [vmem:[%s5407_s22 + $0x4c0] ss:$16 sps:$4 sm:$0xff]  }
  0x79   : > { %4022 = vmatprep.mubr.msk.bf16.mxu0 %vm853_vm0, %v5553_v50  ;;  %4024 = vmatprep.mubr.msk.bf16.mxu1 %vm853_vm0, %v5553_v50 }
  0x7b   : > { %1764 = vmatpush1.bf16.msra.mxu0 %v4897_v51  ;;  %1870 = vmatpush1.bf16.msra.mxu1 %v4900_v52  ;;  %v4975_v51 = vld [vmem:[%s5407_s22 + $0x4c8] ss:$16 sps:$4 sm:$0xff]   ;;  %v4980_v52 = vld [vmem:[%s5407_s22 + $0x4e4] ss:$16 sps:$4 sm:$0xff]  }
  0x7c   : > { %1765 = vmatprep.subr.bf16.mxu0 %v4908_v53  ;;  %1871 = vmatprep.subr.bf16.mxu1 %v4911_v54  ;;  %v4983_v53 = vld [vmem:[%s5407_s22 + $0x4ec] ss:$16 sps:$4 sm:$0xff]   ;;  %v4978_v54 = vld [vmem:[%s5407_s22 + $0x4e0] ss:$16 sps:$4 sm:$0xff]  }
  0x7e   : > { %956 = vmatmul.mubr.bf16.gmra.mrb[4].mxu0 %v5568_v55  ;;  %1062 = vmatmul.mubr.bf16.gmra.mrb[4].mxu1 %v5568_v55 }
  0x7f   : > { %1766 = vmatpush1.bf16.msra.mxu0 %v4906_v56  ;;  %1872 = vmatpush1.bf16.msra.mxu1 %v4909_v57  ;;  %v4981_v56 = vld [vmem:[%s5407_s22 + $0x4e8] ss:$16 sps:$4 sm:$0xff]   ;;  %v4986_v57 = vld [vmem:[%s5407_s22 + $0x504] ss:$16 sps:$4 sm:$0xff]  }
  0x80   : > { %1767 = vmatprep.subr.bf16.mxu0 %v4914_v58  ;;  %1873 = vmatprep.subr.bf16.mxu1 %v4917_v59  ;;  %v4989_v58 = vld [vmem:[%s5407_s22 + $0x50c] ss:$16 sps:$4 sm:$0xff]   ;;  %v4984_v59 = vld [vmem:[%s5407_s22 + $0x500] ss:$16 sps:$4 sm:$0xff]  }
  0x81   : > { %1793 = vmatprep.mubr.bf16.mxu0 %v5397_v0  ;;  %1899 = vmatprep.mubr.bf16.mxu1 %v5397_v0  ;;  %v199_v0 = vld [vmem:[%s6371_s2] sm:$0xff] }
  0x82   : > { %1074 = vperm.xlu0 %4730, %v199_v0   ;;  %v5007_v0 = vld [vmem:[%s5407_s22 + $0x56c] ss:$16 sps:$4 sm:$0xff]  }
  0x83   : > { %1768 = vmatpush1.bf16.msra.mxu0 %v4912_v60  ;;  %1874 = vmatpush1.bf16.msra.mxu1 %v4915_v61  ;;  %v4987_v60 = vld [vmem:[%s5407_s22 + $0x508] ss:$16 sps:$4 sm:$0xff]   ;;  %v4992_v61 = vld [vmem:[%s5407_s22 + $0x524] ss:$16 sps:$4 sm:$0xff]  }
  0x84   : > { %1769 = vmatprep.subr.bf16.mxu0 %v4920_v62  ;;  %1875 = vmatprep.subr.bf16.mxu1 %v4923_v63  ;;  %v4995_v62 = vld [vmem:[%s5407_s22 + $0x52c] ss:$16 sps:$4 sm:$0xff]   ;;  %v4990_v63 = vld [vmem:[%s5407_s22 + $0x520] ss:$16 sps:$4 sm:$0xff]  }
  0x86   : > { %1079 = vperm.xlu0 %4730, %v200_v14   ;;  %v5019_v14 = vld [vmem:[%s5407_s22 + $0x5ac] ss:$16 sps:$4 sm:$0xff]  }
  0x87   : > { %1770 = vmatpush1.bf16.msra.mxu0 %v4918_v1  ;;  %1876 = vmatpush1.bf16.msra.mxu1 %v4921_v2  ;;  %v4993_v1 = vld [vmem:[%s5407_s22 + $0x528] ss:$16 sps:$4 sm:$0xff]   ;;  %v4998_v2 = vld [vmem:[%s5407_s22 + $0x544] ss:$16 sps:$4 sm:$0xff]  }
  0x88   : > { %1771 = vmatprep.subr.bf16.mxu0 %v4926_v3  ;;  %1877 = vmatprep.subr.bf16.mxu1 %v4929_v4  ;;  %v5001_v3 = vld [vmem:[%s5407_s22 + $0x54c] ss:$16 sps:$4 sm:$0xff]   ;;  %v4996_v4 = vld [vmem:[%s5407_s22 + $0x540] ss:$16 sps:$4 sm:$0xff]  }
  0x8a   : > { %1110 = vperm.xlu0 %4730, %v203_v19   ;;  %v5020_v19 = vld [vmem:[%s5407_s22 + $0x5c0] ss:$16 sps:$4 sm:$0xff]  }
  0x8b   : > { %1772 = vmatpush1.bf16.msra.mxu0 %v4924_v6  ;;  %1878 = vmatpush1.bf16.msra.mxu1 %v4927_v7  ;;  %v4999_v6 = vld [vmem:[%s5407_s22 + $0x548] ss:$16 sps:$4 sm:$0xff]   ;;  %v5004_v7 = vld [vmem:[%s5407_s22 + $0x564] ss:$16 sps:$4 sm:$0xff]  }
  0x8c   : > { %1773 = vmatprep.subr.bf16.mxu0 %v4932_v9  ;;  %1879 = vmatprep.subr.bf16.mxu1 %v4935_v11  ;;  %v5005_v9 = vld [vmem:[%s5407_s22 + $0x568] ss:$16 sps:$4 sm:$0xff]   ;;  %v5013_v11 = vld [vmem:[%s5407_s22 + $0x58c] ss:$16 sps:$4 sm:$0xff]  }
  0x8e   : > { %1120 = vperm.xlu0 %4730, %v205_v30   ;;  %v5043_v30 = vld [vmem:[%s5407_s22 + $0x62c] ss:$16 sps:$4 sm:$0xff]  }
  0x8f   : > { %1774 = vmatpush1.bf16.msra.mxu0 %v4930_v12  ;;  %1880 = vmatpush1.bf16.msra.mxu1 %v4933_v13  ;;  %v5008_v12 = vld [vmem:[%s5407_s22 + $0x580] ss:$16 sps:$4 sm:$0xff]   ;;  %v5011_v13 = vld [vmem:[%s5407_s22 + $0x588] ss:$16 sps:$4 sm:$0xff]  }
  0x90   : > { %1775 = vmatprep.subr.bf16.mxu0 %v4938_v17  ;;  %1881 = vmatprep.subr.bf16.mxu1 %v4941_v18  ;;  %v5022_v17 = vld [vmem:[%s5407_s22 + $0x5c4] ss:$16 sps:$4 sm:$0xff]   ;;  %v5025_v18 = vld [vmem:[%s5407_s22 + $0x5cc] ss:$16 sps:$4 sm:$0xff]  }
  0x93   : > { %1776 = vmatpush1.bf16.msra.mxu0 %v4936_v22  ;;  %1882 = vmatpush1.bf16.msra.mxu1 %v4939_v23  ;;  %v5031_v22 = vld [vmem:[%s5407_s22 + $0x5ec] ss:$16 sps:$4 sm:$0xff]   ;;  %v5026_v23 = vld [vmem:[%s5407_s22 + $0x5e0] ss:$16 sps:$4 sm:$0xff]  }
  0x94   : > { %1777 = vmatprep.subr.bf16.mxu0 %v4944_v24  ;;  %1883 = vmatprep.subr.bf16.mxu1 %v4947_v25  ;;  %v5029_v24 = vld [vmem:[%s5407_s22 + $0x5e8] ss:$16 sps:$4 sm:$0xff]   ;;  %v5034_v25 = vld [vmem:[%s5407_s22 + $0x604] ss:$16 sps:$4 sm:$0xff]  }
  0x97   : > { %1778 = vmatpush1.bf16.msra.mxu0 %v4942_v26  ;;  %1884 = vmatpush1.bf16.msra.mxu1 %v4945_v27  ;;  %v5037_v26 = vld [vmem:[%s5407_s22 + $0x60c] ss:$16 sps:$4 sm:$0xff]   ;;  %v5032_v27 = vld [vmem:[%s5407_s22 + $0x600] ss:$16 sps:$4 sm:$0xff]  }
  0x98   : > { %1779 = vmatprep.subr.bf16.mxu0 %v4950_v28  ;;  %1885 = vmatprep.subr.bf16.mxu1 %v4953_v29  ;;  %v5035_v28 = vld [vmem:[%s5407_s22 + $0x608] ss:$16 sps:$4 sm:$0xff]   ;;  %v5040_v29 = vld [vmem:[%s5407_s22 + $0x624] ss:$16 sps:$4 sm:$0xff]  }
  0x9b   : > { %1780 = vmatpush1.bf16.msra.mxu0 %v4948_v32  ;;  %1886 = vmatpush1.bf16.msra.mxu1 %v4951_v33  ;;  %v5041_v32 = vld [vmem:[%s5407_s22 + $0x628] ss:$16 sps:$4 sm:$0xff]   ;;  %v5046_v33 = vld [vmem:[%s5407_s22 + $0x644] ss:$16 sps:$4 sm:$0xff]  }
  0x9c   : > { %1781 = vmatprep.subr.bf16.mxu0 %v4956_v34  ;;  %1887 = vmatprep.subr.bf16.mxu1 %v4959_v35  ;;  %v5049_v34 = vld [vmem:[%s5407_s22 + $0x64c] ss:$16 sps:$4 sm:$0xff]   ;;  %v5044_v35 = vld [vmem:[%s5407_s22 + $0x640] ss:$16 sps:$4 sm:$0xff]  }
  0x9f   : > { %1782 = vmatpush1.bf16.msra.mxu0 %v4954_v36  ;;  %1888 = vmatpush1.bf16.msra.mxu1 %v4957_v37  ;;  %v5047_v36 = vld [vmem:[%s5407_s22 + $0x648] ss:$16 sps:$4 sm:$0xff]   ;;  %v5052_v37 = vld [vmem:[%s5407_s22 + $0x664] ss:$16 sps:$4 sm:$0xff]  }
  0xa0   : > { %1783 = vmatprep.subr.bf16.mxu0 %v4962_v38  ;;  %1889 = vmatprep.subr.bf16.mxu1 %v4965_v39  ;;  %v5055_v38 = vld [vmem:[%s5407_s22 + $0x66c] ss:$16 sps:$4 sm:$0xff]   ;;  %v5050_v39 = vld [vmem:[%s5407_s22 + $0x660] ss:$16 sps:$4 sm:$0xff]  }
  0xa3   : > { %1784 = vmatpush1.bf16.msra.mxu0 %v4960_v40  ;;  %1890 = vmatpush1.bf16.msra.mxu1 %v4963_v41  ;;  %v5053_v40 = vld [vmem:[%s5407_s22 + $0x668] ss:$16 sps:$4 sm:$0xff]   ;;  %v5058_v41 = vld [vmem:[%s5407_s22 + $0x684] ss:$16 sps:$4 sm:$0xff]  }
  0xa4   : > { %1785 = vmatprep.subr.bf16.mxu0 %v4968_v42  ;;  %1891 = vmatprep.subr.bf16.mxu1 %v4971_v43  ;;  %v5061_v42 = vld [vmem:[%s5407_s22 + $0x68c] ss:$16 sps:$4 sm:$0xff]   ;;  %v5056_v43 = vld [vmem:[%s5407_s22 + $0x680] ss:$16 sps:$4 sm:$0xff]  }
  0xa7   : > { %1786 = vmatpush1.bf16.msra.mxu0 %v4966_v44  ;;  %1892 = vmatpush1.bf16.msra.mxu1 %v4969_v46  ;;  %v5064_v44 = vld [vmem:[%s5407_s22 + $0x6a4] ss:$16 sps:$4 sm:$0xff]   ;;  %v5067_v46 = vld [vmem:[%s5407_s22 + $0x6ac] ss:$16 sps:$4 sm:$0xff]  }
  0xa8   : > { %1787 = vmatprep.subr.bf16.mxu0 %v4974_v47  ;;  %1893 = vmatprep.subr.bf16.mxu1 %v4977_v48  ;;  %v5062_v47 = vld [vmem:[%s5407_s22 + $0x6a0] ss:$16 sps:$4 sm:$0xff]   ;;  %v5065_v48 = vld [vmem:[%s5407_s22 + $0x6a8] ss:$16 sps:$4 sm:$0xff]  }
  0xab   : > { %1788 = vmatpush1.bf16.msra.mxu0 %v4972_v49  ;;  %1894 = vmatpush1.bf16.msra.mxu1 %v4975_v51  ;;  %v5073_v49 = vld [vmem:[%s5407_s22 + $0x6cc] ss:$16 sps:$4 sm:$0xff]   ;;  %v5727_v51 = vld [vmem:[%s6370_s1 + $0x4] ss:$16 sps:$4 sm:$0xff]  }
  0xac   : > { %1789 = vmatprep.subr.bf16.mxu0 %v4980_v52  ;;  %1895 = vmatprep.subr.bf16.mxu1 %v4983_v53  ;;  %v5071_v52 = vld [vmem:[%s5407_s22 + $0x6c8] ss:$16 sps:$4 sm:$0xff]   ;;  %v5076_v53 = vld [vmem:[%s5407_s22 + $0x6e4] ss:$16 sps:$4 sm:$0xff]  }
  0xaf   : > { %1790 = vmatpush1.bf16.msra.mxu0 %v4978_v54  ;;  %1896 = vmatpush1.bf16.msra.mxu1 %v4981_v56  ;;  %v5079_v54 = vld [vmem:[%s5407_s22 + $0x6ec] ss:$16 sps:$4 sm:$0xff]   ;;  %v5074_v56 = vld [vmem:[%s5407_s22 + $0x6e0] ss:$16 sps:$4 sm:$0xff]  }
  0xb0   : > { %1791 = vmatprep.subr.bf16.mxu0 %v4986_v57  ;;  %1897 = vmatprep.subr.bf16.mxu1 %v4989_v58  ;;  %v5077_v57 = vld [vmem:[%s5407_s22 + $0x6e8] ss:$16 sps:$4 sm:$0xff]   ;;  %v5082_v58 = vld [vmem:[%s5407_s22 + $0x704] ss:$16 sps:$4 sm:$0xff]  }
  0xb3   : > { %1792 = vmatpush1.bf16.msra.mxu0 %v4984_v59  ;;  %1898 = vmatpush1.bf16.msra.mxu1 %v4987_v60  ;;  %v5085_v59 = vld [vmem:[%s5407_s22 + $0x70c] ss:$16 sps:$4 sm:$0xff]   ;;  %v5080_v60 = vld [vmem:[%s5407_s22 + $0x700] ss:$16 sps:$4 sm:$0xff]  }
  0xb4   : > { %1814 = vmatprep.subr.bf16.mxu0 %v4992_v61  ;;  %1920 = vmatprep.subr.bf16.mxu1 %v4995_v62  ;;  %v5083_v61 = vld [vmem:[%s5407_s22 + $0x708] ss:$16 sps:$4 sm:$0xff]   ;;  %v5088_v62 = vld [vmem:[%s5407_s22 + $0x724] ss:$16 sps:$4 sm:$0xff]  }
  0xb6   : > { %1794 = vmatmul.mubr.bf16.vlgmr.msra.gmra.mrb[8].mxu0 %v5478_v5  ;;  %1900 = vmatmul.mubr.bf16.vlgmr.msra.gmra.mrb[8].mxu1 %v5478_v5  ;;  %v5010_v5 = vld [vmem:[%s5407_s22 + $0x584] ss:$16 sps:$4 sm:$0xff]  }
  0xb7   : > { %1815 = vmatpush1.bf16.msra.mxu0 %v4990_v63  ;;  %1921 = vmatpush1.bf16.msra.mxu1 %v4993_v1  ;;  %v5091_v63 = vld [vmem:[%s5407_s22 + $0x72c] ss:$16 sps:$4 sm:$0xff]   ;;  %v5086_v1 = vld [vmem:[%s5407_s22 + $0x720] ss:$16 sps:$4 sm:$0xff]  }
  0xb8   : > { %1816 = vmatprep.subr.bf16.mxu0 %v4998_v2  ;;  %1922 = vmatprep.subr.bf16.mxu1 %v5001_v3  ;;  %v5089_v2 = vld [vmem:[%s5407_s22 + $0x728] ss:$16 sps:$4 sm:$0xff]   ;;  %v5094_v3 = vld [vmem:[%s5407_s22 + $0x744] ss:$16 sps:$4 sm:$0xff]  }
  0xb9   : > { %1803 = vmatprep.mubr.bf16.mxu0 %v5487_v10  ;;  %1909 = vmatprep.mubr.bf16.mxu1 %v5487_v10  ;;  %v5016_v10 = vld [vmem:[%s5407_s22 + $0x5a4] ss:$16 sps:$4 sm:$0xff]  }
  0xbb   : > { %1817 = vmatpush1.bf16.msra.mxu0 %v4996_v4  ;;  %1923 = vmatpush1.bf16.msra.mxu1 %v4999_v6  ;;  %v5097_v4 = vld [vmem:[%s5407_s22 + $0x74c] ss:$16 sps:$4 sm:$0xff]   ;;  %v5092_v6 = vld [vmem:[%s5407_s22 + $0x740] ss:$16 sps:$4 sm:$0xff]  }
  0xbc   : > { %1818 = vmatprep.subr.bf16.mxu0 %v5004_v7  ;;  %1924 = vmatprep.subr.bf16.mxu1 %v5007_v0  ;;  %v5095_v7 = vld [vmem:[%s5407_s22 + $0x748] ss:$16 sps:$4 sm:$0xff]   ;;  %v5100_v0 = vld [vmem:[%s5407_s22 + $0x764] ss:$16 sps:$4 sm:$0xff]  }
  0xbe   : > { %1804 = vmatmul.mubr.bf16.gmra.mrb[12].mxu0 %v5500_v15  ;;  %1910 = vmatmul.mubr.bf16.gmra.mrb[12].mxu1 %v5500_v15  ;;  %v5017_v15 = vld [vmem:[%s5407_s22 + $0x5a8] ss:$16 sps:$4 sm:$0xff]  }
  0xbf   : > { %1819 = vmatpush1.bf16.msra.mxu0 %v5002_v8  ;;  %1925 = vmatpush1.bf16.msra.mxu1 %v5005_v9  ;;  %v5103_v8 = vld [vmem:[%s5407_s22 + $0x76c] ss:$16 sps:$4 sm:$0xff]   ;;  %v5098_v9 = vld [vmem:[%s5407_s22 + $0x760] ss:$16 sps:$4 sm:$0xff]  }
  0xc0   : > { %1820 = vmatprep.subr.bf16.mxu0 %v5010_v5  ;;  %1926 = vmatprep.subr.bf16.mxu1 %v5013_v11  ;;  %v5101_v5 = vld [vmem:[%s5407_s22 + $0x768] ss:$16 sps:$4 sm:$0xff]   ;;  %v5106_v11 = vld [vmem:[%s5407_s22 + $0x784] ss:$16 sps:$4 sm:$0xff]  }
  0xc1   : > { %4225 = vmatprep.mubr.msk.bf16.mxu0 %vm853_vm0, %v5509_v20  ;;  %4227 = vmatprep.mubr.msk.bf16.mxu1 %vm853_vm0, %v5509_v20  ;;  %v5028_v20 = vld [vmem:[%s5407_s22 + $0x5e4] ss:$16 sps:$4 sm:$0xff]  }
  0xc3   : > { %1821 = vmatpush1.bf16.msra.mxu0 %v5008_v12  ;;  %1927 = vmatpush1.bf16.msra.mxu1 %v5011_v13  ;;  %v5109_v12 = vld [vmem:[%s5407_s22 + $0x78c] ss:$16 sps:$4 sm:$0xff]   ;;  %v5104_v13 = vld [vmem:[%s5407_s22 + $0x780] ss:$16 sps:$4 sm:$0xff]  }
  0xc4   : > { %1822 = vmatprep.subr.bf16.mxu0 %v5016_v10  ;;  %1928 = vmatprep.subr.bf16.mxu1 %v5019_v14  ;;  %v5107_v10 = vld [vmem:[%s5407_s22 + $0x788] ss:$16 sps:$4 sm:$0xff]   ;;  %v5112_v14 = vld [vmem:[%s5407_s22 + $0x7a4] ss:$16 sps:$4 sm:$0xff]  }
  0xc7   : > { %1823 = vmatpush1.bf16.msra.mxu0 %v5014_v16  ;;  %1929 = vmatpush1.bf16.msra.mxu1 %v5017_v15  ;;  %v5115_v16 = vld [vmem:[%s5407_s22 + $0x7ac] ss:$16 sps:$4 sm:$0xff]   ;;  %v5110_v15 = vld [vmem:[%s5407_s22 + $0x7a0] ss:$16 sps:$4 sm:$0xff]  }
  0xc8   : > { %1824 = vmatprep.subr.bf16.mxu0 %v5022_v17  ;;  %1930 = vmatprep.subr.bf16.mxu1 %v5025_v18  ;;  %v5113_v17 = vld [vmem:[%s5407_s22 + $0x7a8] ss:$16 sps:$4 sm:$0xff]   ;;  %v5118_v18 = vld [vmem:[%s5407_s22 + $0x7c4] ss:$16 sps:$4 sm:$0xff]  }
  0xcb   : > { %1825 = vmatpush1.bf16.msra.mxu0 %v5020_v19  ;;  %1931 = vmatpush1.bf16.msra.mxu1 %v5023_v21  ;;  %v5121_v19 = vld [vmem:[%s5407_s22 + $0x7cc] ss:$16 sps:$4 sm:$0xff]   ;;  %v5116_v21 = vld [vmem:[%s5407_s22 + $0x7c0] ss:$16 sps:$4 sm:$0xff]  }
  0xcc   : > { %1826 = vmatprep.subr.bf16.mxu0 %v5028_v20  ;;  %1932 = vmatprep.subr.bf16.mxu1 %v5031_v22  ;;  %v5119_v20 = vld [vmem:[%s5407_s22 + $0x7c8] ss:$16 sps:$4 sm:$0xff]   ;;  %v5124_v22 = vld [vmem:[%s5407_s22 + $0x7e4] ss:$16 sps:$4 sm:$0xff]  }
  0xcf   : > { %1827 = vmatpush1.bf16.msra.mxu0 %v5026_v23  ;;  %1933 = vmatpush1.bf16.msra.mxu1 %v5029_v24  ;;  %v5127_v23 = vld [vmem:[%s5407_s22 + $0x7ec] ss:$16 sps:$4 sm:$0xff]   ;;  %v5122_v24 = vld [vmem:[%s5407_s22 + $0x7e0] ss:$16 sps:$4 sm:$0xff]  }
  0xd0   : > { %1828 = vmatprep.subr.bf16.mxu0 %v5034_v25  ;;  %1934 = vmatprep.subr.bf16.mxu1 %v5037_v26  ;;  %v5125_v25 = vld [vmem:[%s5407_s22 + $0x7e8] ss:$16 sps:$4 sm:$0xff]   ;;  %v5130_v26 = vld [vmem:[%s5407_s22 + $0x804] ss:$16 sps:$4 sm:$0xff]  }
  0xd3   : > { %1829 = vmatpush1.bf16.msra.mxu0 %v5032_v27  ;;  %1935 = vmatpush1.bf16.msra.mxu1 %v5035_v28  ;;  %v5133_v27 = vld [vmem:[%s5407_s22 + $0x80c] ss:$16 sps:$4 sm:$0xff]   ;;  %v5128_v28 = vld [vmem:[%s5407_s22 + $0x800] ss:$16 sps:$4 sm:$0xff]  }
  0xd4   : > { %1830 = vmatprep.subr.bf16.mxu0 %v5040_v29  ;;  %1936 = vmatprep.subr.bf16.mxu1 %v5043_v30  ;;  %v5131_v29 = vld [vmem:[%s5407_s22 + $0x808] ss:$16 sps:$4 sm:$0xff]   ;;  %v5136_v30 = vld [vmem:[%s5407_s22 + $0x824] ss:$16 sps:$4 sm:$0xff]  }
  0xd7   : > { %1831 = vmatpush1.bf16.msra.mxu0 %v5038_v31  ;;  %1937 = vmatpush1.bf16.msra.mxu1 %v5041_v32  ;;  %v5139_v31 = vld [vmem:[%s5407_s22 + $0x82c] ss:$16 sps:$4 sm:$0xff]   ;;  %v5134_v32 = vld [vmem:[%s5407_s22 + $0x820] ss:$16 sps:$4 sm:$0xff]  }
  0xd8   : > { %2638 = vmatprep.subr.bf16.mxu0 %v5046_v33  ;;  %2744 = vmatprep.subr.bf16.mxu1 %v5049_v34  ;;  %v5137_v33 = vld [vmem:[%s5407_s22 + $0x828] ss:$16 sps:$4 sm:$0xff]   ;;  %v5142_v34 = vld [vmem:[%s5407_s22 + $0x844] ss:$16 sps:$4 sm:$0xff]  }
  0xda   : > { %1847 = vmatmul.mubr.bf16.vlgmr.msra.gmra.mrb[8].mxu0 %v5544_v45  ;;  %1953 = vmatmul.mubr.bf16.vlgmr.msra.gmra.mrb[8].mxu1 %v5544_v45  ;;  %v5059_v45 = vld [vmem:[%s5407_s22 + $0x688] ss:$16 sps:$4 sm:$0xff]  }
  0xdb   : > { %2639 = vmatpush1.bf16.msra.mxu0 %v5044_v35  ;;  %2745 = vmatpush1.bf16.msra.mxu1 %v5047_v36  ;;  %v5145_v35 = vld [vmem:[%s5407_s22 + $0x84c] ss:$16 sps:$4 sm:$0xff]   ;;  %v5140_v36 = vld [vmem:[%s5407_s22 + $0x840] ss:$16 sps:$4 sm:$0xff]  }
  0xdc   : > { %2640 = vmatprep.subr.bf16.mxu0 %v5052_v37  ;;  %2746 = vmatprep.subr.bf16.mxu1 %v5055_v38  ;;  %v5143_v37 = vld [vmem:[%s5407_s22 + $0x848] ss:$16 sps:$4 sm:$0xff]   ;;  %v5148_v38 = vld [vmem:[%s5407_s22 + $0x864] ss:$16 sps:$4 sm:$0xff]  }
  0xdd   : > { %4226 = vmatprep.mubr.msk.bf16.mxu0 %vm853_vm0, %v5553_v50  ;;  %4228 = vmatprep.mubr.msk.bf16.mxu1 %vm853_vm0, %v5553_v50  ;;  %v5070_v50 = vld [vmem:[%s5407_s22 + $0x6c4] ss:$16 sps:$4 sm:$0xff]  }
  0xdf   : > { %2641 = vmatpush1.bf16.msra.mxu0 %v5050_v39  ;;  %2747 = vmatpush1.bf16.msra.mxu1 %v5053_v40  ;;  %v5151_v39 = vld [vmem:[%s5407_s22 + $0x86c] ss:$16 sps:$4 sm:$0xff]   ;;  %v5786_v40 = vld [vmem:[%s6370_s1] ss:$16 sps:$4 sm:$0xff]  }
  0xe0   : > { %2642 = vmatprep.subr.bf16.mxu0 %v5058_v41  ;;  %2748 = vmatprep.subr.bf16.mxu1 %v5061_v42  ;;  %v5146_v41 = vld [vmem:[%s5407_s22 + $0x860] ss:$16 sps:$4 sm:$0xff]   ;;  %v5149_v42 = vld [vmem:[%s5407_s22 + $0x868] ss:$16 sps:$4 sm:$0xff]  }
  0xe2   : > { %1857 = vmatmul.mubr.bf16.gmra.mrb[12].mxu0 %v5568_v55  ;;  %1963 = vmatmul.mubr.bf16.gmra.mrb[12].mxu1 %v5568_v55  ;;  %v5068_v55 = vld [vmem:[%s5407_s22 + $0x6c0] ss:$16 sps:$4 sm:$0xff]  }
  0xe3   : > { %2643 = vmatpush1.bf16.msra.mxu0 %v5056_v43  ;;  %2749 = vmatpush1.bf16.msra.mxu1 %v5059_v45  ;;  %v5154_v43 = vld [vmem:[%s5407_s22 + $0x884] ss:$16 sps:$4 sm:$0xff]   ;;  %v5157_v45 = vld [vmem:[%s5407_s22 + $0x88c] ss:$16 sps:$4 sm:$0xff]  }
  0xe4   : > { %2644 = vmatprep.subr.bf16.mxu0 %v5064_v44  ;;  %2750 = vmatprep.subr.bf16.mxu1 %v5067_v46  ;;  %v5797_v44 = vld [vmem:[%s6370_s1 + $0x24] ss:$16 sps:$4 sm:$0xff]   ;;  %v5152_v46 = vld [vmem:[%s5407_s22 + $0x880] ss:$16 sps:$4 sm:$0xff]  }
  0xe5   : > { %2670 = vmatprep.mubr.bf16.mxu0 %v5727_v51  ;;  %2776 = vmatprep.mubr.bf16.mxu1 %v5727_v51 }
  0xe7   : > { %2645 = vmatpush1.bf16.msra.mxu0 %v5062_v47  ;;  %2751 = vmatpush1.bf16.msra.mxu1 %v5065_v48  ;;  %v5155_v47 = vld [vmem:[%s5407_s22 + $0x888] ss:$16 sps:$4 sm:$0xff]   ;;  %v5160_v48 = vld [vmem:[%s5407_s22 + $0x8a4] ss:$16 sps:$4 sm:$0xff]  }
  0xe8   : > { %2646 = vmatprep.subr.bf16.mxu0 %v5070_v50  ;;  %2752 = vmatprep.subr.bf16.mxu1 %v5073_v49  ;;  %v5163_v50 = vld [vmem:[%s5407_s22 + $0x8ac] ss:$16 sps:$4 sm:$0xff]   ;;  %v5808_v49 = vld [vmem:[%s6370_s1 + $0x20] ss:$16 sps:$4 sm:$0xff]  }
  0xeb   : > { %2647 = vmatpush1.bf16.msra.mxu0 %v5068_v55  ;;  %2753 = vmatpush1.bf16.msra.mxu1 %v5071_v52  ;;  %v5158_v55 = vld [vmem:[%s5407_s22 + $0x8a0] ss:$16 sps:$4 sm:$0xff]   ;;  %v5161_v52 = vld [vmem:[%s5407_s22 + $0x8a8] ss:$16 sps:$4 sm:$0xff]  }
  0xec   : > { %2648 = vmatprep.subr.bf16.mxu0 %v5076_v53  ;;  %2754 = vmatprep.subr.bf16.mxu1 %v5079_v54  ;;  %v5166_v53 = vld [vmem:[%s5407_s22 + $0x8c4] ss:$16 sps:$4 sm:$0xff]   ;;  %v5169_v54 = vld [vmem:[%s5407_s22 + $0x8cc] ss:$16 sps:$4 sm:$0xff]  }
  0xef   : > { %2649 = vmatpush1.bf16.msra.mxu0 %v5074_v56  ;;  %2755 = vmatpush1.bf16.msra.mxu1 %v5077_v57  ;;  %v5819_v56 = vld [vmem:[%s6370_s1 + $0xc] ss:$16 sps:$4 sm:$0xff]   ;;  %v5164_v57 = vld [vmem:[%s5407_s22 + $0x8c0] ss:$16 sps:$4 sm:$0xff]  }
  0xf0   : > { %2650 = vmatprep.subr.bf16.mxu0 %v5082_v58  ;;  %2756 = vmatprep.subr.bf16.mxu1 %v5085_v59  ;;  %v5167_v58 = vld [vmem:[%s5407_s22 + $0x8c8] ss:$16 sps:$4 sm:$0xff]   ;;  %v5172_v59 = vld [vmem:[%s5407_s22 + $0x8e4] ss:$16 sps:$4 sm:$0xff]  }
  0xf3   : > { %2651 = vmatpush1.bf16.msra.mxu0 %v5080_v60  ;;  %2757 = vmatpush1.bf16.msra.mxu1 %v5083_v61  ;;  %v5175_v60 = vld [vmem:[%s5407_s22 + $0x8ec] ss:$16 sps:$4 sm:$0xff]   ;;  %v5170_v61 = vld [vmem:[%s5407_s22 + $0x8e0] ss:$16 sps:$4 sm:$0xff]  }
  0xf4   : > { %2652 = vmatprep.subr.bf16.mxu0 %v5088_v62  ;;  %2758 = vmatprep.subr.bf16.mxu1 %v5091_v63  ;;  %v5173_v62 = vld [vmem:[%s5407_s22 + $0x8e8] ss:$16 sps:$4 sm:$0xff]   ;;  %v5178_v63 = vld [vmem:[%s5407_s22 + $0x904] ss:$16 sps:$4 sm:$0xff]  }
  0xf7   : > { %2653 = vmatpush1.bf16.msra.mxu0 %v5086_v1  ;;  %2759 = vmatpush1.bf16.msra.mxu1 %v5089_v2  ;;  %v5181_v1 = vld [vmem:[%s5407_s22 + $0x90c] ss:$16 sps:$4 sm:$0xff]   ;;  %v5176_v2 = vld [vmem:[%s5407_s22 + $0x900] ss:$16 sps:$4 sm:$0xff]  }
  0xf8   : > { %2654 = vmatprep.subr.bf16.mxu0 %v5094_v3  ;;  %2760 = vmatprep.subr.bf16.mxu1 %v5097_v4  ;;  %v5179_v3 = vld [vmem:[%s5407_s22 + $0x908] ss:$16 sps:$4 sm:$0xff]   ;;  %v5184_v4 = vld [vmem:[%s5407_s22 + $0x924] ss:$16 sps:$4 sm:$0xff]  }
  0xfb   : > { %2655 = vmatpush1.bf16.msra.mxu0 %v5092_v6  ;;  %2761 = vmatpush1.bf16.msra.mxu1 %v5095_v7  ;;  %v5187_v6 = vld [vmem:[%s5407_s22 + $0x92c] ss:$16 sps:$4 sm:$0xff]   ;;  %v5182_v7 = vld [vmem:[%s5407_s22 + $0x920] ss:$16 sps:$4 sm:$0xff]  }
  0xfc   : > { %2656 = vmatprep.subr.bf16.mxu0 %v5100_v0  ;;  %2762 = vmatprep.subr.bf16.mxu1 %v5103_v8  ;;  %v5185_v0 = vld [vmem:[%s5407_s22 + $0x928] ss:$16 sps:$4 sm:$0xff]   ;;  %v5190_v8 = vld [vmem:[%s5407_s22 + $0x944] ss:$16 sps:$4 sm:$0xff]  }
  0xff   : > { %2657 = vmatpush1.bf16.msra.mxu0 %v5098_v9  ;;  %2763 = vmatpush1.bf16.msra.mxu1 %v5101_v5  ;;  %v5193_v9 = vld [vmem:[%s5407_s22 + $0x94c] ss:$16 sps:$4 sm:$0xff]   ;;  %v5188_v5 = vld [vmem:[%s5407_s22 + $0x940] ss:$16 sps:$4 sm:$0xff]  }
 0x100   : > { %2658 = vmatprep.subr.bf16.mxu0 %v5106_v11  ;;  %2764 = vmatprep.subr.bf16.mxu1 %v5109_v12  ;;  %v5191_v11 = vld [vmem:[%s5407_s22 + $0x948] ss:$16 sps:$4 sm:$0xff]   ;;  %v5196_v12 = vld [vmem:[%s5407_s22 + $0x964] ss:$16 sps:$4 sm:$0xff]  }
 0x103   : > { %2659 = vmatpush1.bf16.msra.mxu0 %v5104_v13  ;;  %2765 = vmatpush1.bf16.msra.mxu1 %v5107_v10  ;;  %v5199_v13 = vld [vmem:[%s5407_s22 + $0x96c] ss:$16 sps:$4 sm:$0xff]   ;;  %v5194_v10 = vld [vmem:[%s5407_s22 + $0x960] ss:$16 sps:$4 sm:$0xff]  }
 0x104   : > { %2660 = vmatprep.subr.bf16.mxu0 %v5112_v14  ;;  %2766 = vmatprep.subr.bf16.mxu1 %v5115_v16  ;;  %v5197_v14 = vld [vmem:[%s5407_s22 + $0x968] ss:$16 sps:$4 sm:$0xff]   ;;  %v5202_v16 = vld [vmem:[%s5407_s22 + $0x984] ss:$16 sps:$4 sm:$0xff]  }
 0x107   : > { %2661 = vmatpush1.bf16.msra.mxu0 %v5110_v15  ;;  %2767 = vmatpush1.bf16.msra.mxu1 %v5113_v17  ;;  %v5205_v15 = vld [vmem:[%s5407_s22 + $0x98c] ss:$16 sps:$4 sm:$0xff]   ;;  %v5852_v17 = vld [vmem:[%s6370_s1 + $0x8] ss:$16 sps:$4 sm:$0xff]  }
 0x108   : > { %2662 = vmatprep.subr.bf16.mxu0 %v5118_v18  ;;  %2768 = vmatprep.subr.bf16.mxu1 %v5121_v19  ;;  %v5200_v18 = vld [vmem:[%s5407_s22 + $0x980] ss:$16 sps:$4 sm:$0xff]   ;;  %v5203_v19 = vld [vmem:[%s5407_s22 + $0x988] ss:$16 sps:$4 sm:$0xff]  }
 0x10b   : > { %2663 = vmatpush1.bf16.msra.mxu0 %v5116_v21  ;;  %2769 = vmatpush1.bf16.msra.mxu1 %v5119_v20  ;;  %v5208_v21 = vld [vmem:[%s5407_s22 + $0x9a4] ss:$16 sps:$4 sm:$0xff]   ;;  %v5211_v20 = vld [vmem:[%s5407_s22 + $0x9ac] ss:$16 sps:$4 sm:$0xff]  }
 0x10c   : > { %2664 = vmatprep.subr.bf16.mxu0 %v5124_v22  ;;  %2770 = vmatprep.subr.bf16.mxu1 %v5127_v23  ;;  %v5863_v22 = vld [vmem:[%s6370_s1 + $0x2c] ss:$16 sps:$4 sm:$0xff]   ;;  %v5206_v23 = vld [vmem:[%s5407_s22 + $0x9a0] ss:$16 sps:$4 sm:$0xff]  }
 0x10f   : > { %2665 = vmatpush1.bf16.msra.mxu0 %v5122_v24  ;;  %2771 = vmatpush1.bf16.msra.mxu1 %v5125_v25  ;;  %v5209_v24 = vld [vmem:[%s5407_s22 + $0x9a8] ss:$16 sps:$4 sm:$0xff]   ;;  %v5214_v25 = vld [vmem:[%s5407_s22 + $0x9c4] ss:$16 sps:$4 sm:$0xff]  }
 0x110   : > { %2666 = vmatprep.subr.bf16.mxu0 %v5130_v26  ;;  %2772 = vmatprep.subr.bf16.mxu1 %v5133_v27  ;;  %v5217_v26 = vld [vmem:[%s5407_s22 + $0x9cc] ss:$16 sps:$4 sm:$0xff]   ;;  %v5876_v27 = vld [vmem:[%s6370_s1 + $0x28] ss:$16 sps:$4 sm:$0xff]  }
 0x113   : > { %2667 = vmatpush1.bf16.msra.mxu0 %v5128_v28  ;;  %2773 = vmatpush1.bf16.msra.mxu1 %v5131_v29  ;;  %v5212_v28 = vld [vmem:[%s5407_s22 + $0x9c0] ss:$16 sps:$4 sm:$0xff]   ;;  %v5215_v29 = vld [vmem:[%s5407_s22 + $0x9c8] ss:$16 sps:$4 sm:$0xff]  }
 0x114   : > { %2668 = vmatprep.subr.bf16.mxu0 %v5136_v30  ;;  %2774 = vmatprep.subr.bf16.mxu1 %v5139_v31  ;;  %v5220_v30 = vld [vmem:[%s5407_s22 + $0x9e4] ss:$16 sps:$4 sm:$0xff]   ;;  %v5223_v31 = vld [vmem:[%s5407_s22 + $0x9ec] ss:$16 sps:$4 sm:$0xff]  }
 0x117   : > { %2669 = vmatpush1.bf16.msra.mxu0 %v5134_v32  ;;  %2775 = vmatpush1.bf16.msra.mxu1 %v5137_v33 }
 0x118   : > { %2691 = vmatprep.subr.bf16.mxu0 %v5142_v34  ;;  %2797 = vmatprep.subr.bf16.mxu1 %v5145_v35 }
 0x11a   : > { %2671 = vmatmul.mubr.bf16.vlgmr.msra.gmra.mrb[16].mxu0 %v5786_v40  ;;  %2777 = vmatmul.mubr.bf16.vlgmr.msra.gmra.mrb[16].mxu1 %v5786_v40 }
 0x11b   : > { %2692 = vmatpush1.bf16.msra.mxu0 %v5140_v36  ;;  %2798 = vmatpush1.bf16.msra.mxu1 %v5143_v37 }
 0x11c   : > { %2693 = vmatprep.subr.bf16.mxu0 %v5148_v38  ;;  %2799 = vmatprep.subr.bf16.mxu1 %v5151_v39  ;;  %v5218_v38 = vld [vmem:[%s5407_s22 + $0x9e0] ss:$16 sps:$4 sm:$0xff]   ;;  %v5221_v39 = vld [vmem:[%s5407_s22 + $0x9e8] ss:$16 sps:$4 sm:$0xff]  }
 0x11d   : > { %2680 = vmatprep.mubr.bf16.mxu0 %v5797_v44  ;;  %2786 = vmatprep.mubr.bf16.mxu1 %v5797_v44 }
 0x11f   : > { %2694 = vmatpush1.bf16.msra.mxu0 %v5146_v41  ;;  %2800 = vmatpush1.bf16.msra.mxu1 %v5149_v42 }
 0x120   : > { %2695 = vmatprep.subr.bf16.mxu0 %v5154_v43  ;;  %2801 = vmatprep.subr.bf16.mxu1 %v5157_v45  ;;  %v5229_v43 = vld [vmem:[%s5407_s22 + $0xa0c] ss:$16 sps:$4 sm:$0xff]   ;;  %v5224_v45 = vld [vmem:[%s5407_s22 + $0xa00] ss:$16 sps:$4 sm:$0xff]  }
 0x122   : > { %2681 = vmatmul.mubr.bf16.gmra.mrb[20].mxu0 %v5808_v49  ;;  %2787 = vmatmul.mubr.bf16.gmra.mrb[20].mxu1 %v5808_v49 }
 0x123   : > { %2696 = vmatpush1.bf16.msra.mxu0 %v5152_v46  ;;  %2802 = vmatpush1.bf16.msra.mxu1 %v5155_v47  ;;  %v5227_v46 = vld [vmem:[%s5407_s22 + $0xa08] ss:$16 sps:$4 sm:$0xff]   ;;  %v5232_v47 = vld [vmem:[%s5407_s22 + $0xa24] ss:$16 sps:$4 sm:$0xff]  }
 0x124   : > { %2697 = vmatprep.subr.bf16.mxu0 %v5160_v48  ;;  %2803 = vmatprep.subr.bf16.mxu1 %v5163_v50  ;;  %v5235_v48 = vld [vmem:[%s5407_s22 + $0xa2c] ss:$16 sps:$4 sm:$0xff]  }
 0x125   : > { %4429 = vmatprep.mubr.msk.bf16.mxu0 %vm853_vm0, %v5819_v56  ;;  %4431 = vmatprep.mubr.msk.bf16.mxu1 %vm853_vm0, %v5819_v56 }
 0x127   : > { %2698 = vmatpush1.bf16.msra.mxu0 %v5158_v55  ;;  %2804 = vmatpush1.bf16.msra.mxu1 %v5161_v52 }
 0x128   : > { %2699 = vmatprep.subr.bf16.mxu0 %v5166_v53  ;;  %2805 = vmatprep.subr.bf16.mxu1 %v5169_v54 }
 0x12b   : > { %2700 = vmatpush1.bf16.msra.mxu0 %v5164_v57  ;;  %2806 = vmatpush1.bf16.msra.mxu1 %v5167_v58  ;;  %v5230_v58 = vld [vmem:[%s5407_s22 + $0xa20] ss:$16 sps:$4 sm:$0xff]  }
 0x12c   : > { %2701 = vmatprep.subr.bf16.mxu0 %v5172_v59  ;;  %2807 = vmatprep.subr.bf16.mxu1 %v5175_v60  ;;  %v5233_v59 = vld [vmem:[%s5407_s22 + $0xa28] ss:$16 sps:$4 sm:$0xff]  }
 0x12f   : > { %2702 = vmatpush1.bf16.msra.mxu0 %v5170_v61  ;;  %2808 = vmatpush1.bf16.msra.mxu1 %v5173_v62  ;;  %v5238_v62 = vld [vmem:[%s5407_s22 + $0xa44] ss:$16 sps:$4 sm:$0xff]  }
 0x130   : > { %2703 = vmatprep.subr.bf16.mxu0 %v5178_v63  ;;  %2809 = vmatprep.subr.bf16.mxu1 %v5181_v1  ;;  %v5241_v63 = vld [vmem:[%s5407_s22 + $0xa4c] ss:$16 sps:$4 sm:$0xff]   ;;  %v5236_v1 = vld [vmem:[%s5407_s22 + $0xa40] ss:$16 sps:$4 sm:$0xff]  }
 0x133   : > { %2704 = vmatpush1.bf16.msra.mxu0 %v5176_v2  ;;  %2810 = vmatpush1.bf16.msra.mxu1 %v5179_v3  ;;  %v5239_v2 = vld [vmem:[%s5407_s22 + $0xa48] ss:$16 sps:$4 sm:$0xff]   ;;  %v5244_v3 = vld [vmem:[%s5407_s22 + $0xa64] ss:$16 sps:$4 sm:$0xff]  }
 0x134   : > { %2705 = vmatprep.subr.bf16.mxu0 %v5184_v4  ;;  %2811 = vmatprep.subr.bf16.mxu1 %v5187_v6  ;;  %v5247_v4 = vld [vmem:[%s5407_s22 + $0xa6c] ss:$16 sps:$4 sm:$0xff]   ;;  %v5242_v6 = vld [vmem:[%s5407_s22 + $0xa60] ss:$16 sps:$4 sm:$0xff]  }
 0x137   : > { %2706 = vmatpush1.bf16.msra.mxu0 %v5182_v7  ;;  %2812 = vmatpush1.bf16.msra.mxu1 %v5185_v0  ;;  %v5245_v7 = vld [vmem:[%s5407_s22 + $0xa68] ss:$16 sps:$4 sm:$0xff]   ;;  %v5250_v0 = vld [vmem:[%s5407_s22 + $0xa84] ss:$16 sps:$4 sm:$0xff]  }
 0x138   : > { %2707 = vmatprep.subr.bf16.mxu0 %v5190_v8  ;;  %2813 = vmatprep.subr.bf16.mxu1 %v5193_v9  ;;  %v5253_v8 = vld [vmem:[%s5407_s22 + $0xa8c] ss:$16 sps:$4 sm:$0xff]   ;;  %v5248_v9 = vld [vmem:[%s5407_s22 + $0xa80] ss:$16 sps:$4 sm:$0xff]  }
 0x13b   : > { %2708 = vmatpush1.bf16.msra.mxu0 %v5188_v5  ;;  %2814 = vmatpush1.bf16.msra.mxu1 %v5191_v11  ;;  %v5251_v5 = vld [vmem:[%s5407_s22 + $0xa88] ss:$16 sps:$4 sm:$0xff]   ;;  %v5256_v11 = vld [vmem:[%s5407_s22 + $0xaa4] ss:$16 sps:$4 sm:$0xff]  }
 0x13c   : > { %3515 = vmatprep.subr.bf16.mxu0 %v5196_v12  ;;  %3621 = vmatprep.subr.bf16.mxu1 %v5199_v13  ;;  %v5259_v12 = vld [vmem:[%s5407_s22 + $0xaac] ss:$16 sps:$4 sm:$0xff]   ;;  %v5254_v13 = vld [vmem:[%s5407_s22 + $0xaa0] ss:$16 sps:$4 sm:$0xff]  }
 0x13e   : > { %2724 = vmatmul.mubr.bf16.vlgmr.msra.gmra.mrb[16].mxu0 %v5852_v17  ;;  %2830 = vmatmul.mubr.bf16.vlgmr.msra.gmra.mrb[16].mxu1 %v5852_v17 }
 0x13f   : > { %3516 = vmatpush1.bf16.msra.mxu0 %v5194_v10  ;;  %3622 = vmatpush1.bf16.msra.mxu1 %v5197_v14  ;;  %v5257_v10 = vld [vmem:[%s5407_s22 + $0xaa8] ss:$16 sps:$4 sm:$0xff]   ;;  %v5262_v14 = vld [vmem:[%s5407_s22 + $0xac4] ss:$16 sps:$4 sm:$0xff]  }
 0x140   : > { %3517 = vmatprep.subr.bf16.mxu0 %v5202_v16  ;;  %3623 = vmatprep.subr.bf16.mxu1 %v5205_v15  ;;  %v5265_v16 = vld [vmem:[%s5407_s22 + $0xacc] ss:$16 sps:$4 sm:$0xff]   ;;  %v5260_v15 = vld [vmem:[%s5407_s22 + $0xac0] ss:$16 sps:$4 sm:$0xff]  }
 0x141   : > { %4430 = vmatprep.mubr.msk.bf16.mxu0 %vm853_vm0, %v5863_v22  ;;  %4432 = vmatprep.mubr.msk.bf16.mxu1 %vm853_vm0, %v5863_v22 }
 0x143   : > { %3518 = vmatpush1.bf16.msra.mxu0 %v5200_v18  ;;  %3624 = vmatpush1.bf16.msra.mxu1 %v5203_v19  ;;  %v5263_v18 = vld [vmem:[%s5407_s22 + $0xac8] ss:$16 sps:$4 sm:$0xff]   ;;  %v5268_v19 = vld [vmem:[%s5407_s22 + $0xae4] ss:$16 sps:$4 sm:$0xff]  }
 0x144   : > { %3519 = vmatprep.subr.bf16.mxu0 %v5208_v21  ;;  %3625 = vmatprep.subr.bf16.mxu1 %v5211_v20  ;;  %v5271_v21 = vld [vmem:[%s5407_s22 + $0xaec] ss:$16 sps:$4 sm:$0xff]   ;;  %v5266_v20 = vld [vmem:[%s5407_s22 + $0xae0] ss:$16 sps:$4 sm:$0xff]  }
 0x146   : > { %2734 = vmatmul.mubr.bf16.gmra.mrb[20].mxu0 %v5876_v27  ;;  %2840 = vmatmul.mubr.bf16.gmra.mrb[20].mxu1 %v5876_v27 }
 0x147   : > { %3520 = vmatpush1.bf16.msra.mxu0 %v5206_v23  ;;  %3626 = vmatpush1.bf16.msra.mxu1 %v5209_v24  ;;  %v5269_v23 = vld [vmem:[%s5407_s22 + $0xae8] ss:$16 sps:$4 sm:$0xff]   ;;  %v5274_v24 = vld [vmem:[%s5407_s22 + $0xb04] ss:$16 sps:$4 sm:$0xff]  }
 0x148   : > { %3521 = vmatprep.subr.bf16.mxu0 %v5214_v25  ;;  %3627 = vmatprep.subr.bf16.mxu1 %v5217_v26  ;;  %v5277_v25 = vld [vmem:[%s5407_s22 + $0xb0c] ss:$16 sps:$4 sm:$0xff]   ;;  %v5272_v26 = vld [vmem:[%s5407_s22 + $0xb00] ss:$16 sps:$4 sm:$0xff]  }
 0x149   : > { %v5884_v32 = vpop.f32.mrb[0].mxu0  ;;  %v5886_v33 = vpop.f32.mrb[0].mxu1  ;;  %3547 = vmatprep.mubr.bf16.mxu0 %v5727_v51  ;;  %3653 = vmatprep.mubr.bf16.mxu1 %v5727_v51  ;;  %v5226_v51 = vld [vmem:[%s5407_s22 + $0xa04] ss:$16 sps:$4 sm:$0xff]  }
 0x14a   : > { %v5890_v34 = vpop.f32.mrb[1].mxu0  ;;  %v5892_v35 = vpop.f32.mrb[1].mxu1 }
 0x14b   : > { %v5894_v36 = vpop.f32.mrb[2].mxu0  ;;  %v5896_v37 = vpop.f32.mrb[2].mxu1  ;;  %3522 = vmatpush1.bf16.msra.mxu0 %v5212_v28  ;;  %3628 = vmatpush1.bf16.msra.mxu1 %v5215_v29  ;;  %v5275_v28 = vld [vmem:[%s5407_s22 + $0xb08] ss:$16 sps:$4 sm:$0xff]   ;;  %v5280_v29 = vld [vmem:[%s5407_s22 + $0xb24] ss:$16 sps:$4 sm:$0xff]  }
 0x14c   : > { %v5900_v41 = vpop.f32.mrb[3].mxu0  ;;  %v5902_v42 = vpop.f32.mrb[3].mxu1  ;;  %3523 = vmatprep.subr.bf16.mxu0 %v5220_v30  ;;  %3629 = vmatprep.subr.bf16.mxu1 %v5223_v31  ;;  %v5283_v30 = vld [vmem:[%s5407_s22 + $0xb2c] ss:$16 sps:$4 sm:$0xff]   ;;  %v5278_v31 = vld [vmem:[%s5407_s22 + $0xb20] ss:$16 sps:$4 sm:$0xff]  }
 0x14f   : > { %3524 = vmatpush1.bf16.msra.mxu0 %v5218_v38  ;;  %3630 = vmatpush1.bf16.msra.mxu1 %v5221_v39  ;;  %v5281_v38 = vld [vmem:[%s5407_s22 + $0xb28] ss:$16 sps:$4 sm:$0xff]   ;;  %v5286_v39 = vld [vmem:[%s5407_s22 + $0xb44] ss:$16 sps:$4 sm:$0xff]  }
 0x150   : > { %3525 = vmatprep.subr.bf16.mxu0 %v5226_v51  ;;  %3631 = vmatprep.subr.bf16.mxu1 %v5229_v43  ;;  %v5289_v51 = vld [vmem:[%s5407_s22 + $0xb4c] ss:$16 sps:$4 sm:$0xff]   ;;  %v5284_v43 = vld [vmem:[%s5407_s22 + $0xb40] ss:$16 sps:$4 sm:$0xff]  }
 0x151   : > { %v5910_v50 = vpop.f32.mrb[4].mxu0  ;;  %v5912_v55 = vpop.f32.mrb[4].mxu1 }
 0x152   : > { %v5914_v52 = vpop.f32.mrb[5].mxu0  ;;  %v5916_v53 = vpop.f32.mrb[5].mxu1 }
 0x153   : > { %v5918_v54 = vpop.f32.mrb[6].mxu0  ;;  %v5920_v57 = vpop.f32.mrb[6].mxu1  ;;  %3526 = vmatpush1.bf16.msra.mxu0 %v5224_v45  ;;  %3632 = vmatpush1.bf16.msra.mxu1 %v5227_v46  ;;  %v5287_v45 = vld [vmem:[%s5407_s22 + $0xb48] ss:$16 sps:$4 sm:$0xff]   ;;  %v5292_v46 = vld [vmem:[%s5407_s22 + $0xb64] ss:$16 sps:$4 sm:$0xff]  }
 0x154   : > { %v5924_v60 = vpop.f32.mrb[7].mxu0  ;;  %v5926_v61 = vpop.f32.mrb[7].mxu1  ;;  %3527 = vmatprep.subr.bf16.mxu0 %v5232_v47  ;;  %3633 = vmatprep.subr.bf16.mxu1 %v5235_v48  ;;  %v5295_v47 = vld [vmem:[%s5407_s22 + $0xb6c] ss:$16 sps:$4 sm:$0xff]   ;;  %v5290_v48 = vld [vmem:[%s5407_s22 + $0xb60] ss:$16 sps:$4 sm:$0xff]  }
 0x157   : > { %3528 = vmatpush1.bf16.msra.mxu0 %v5230_v58  ;;  %3634 = vmatpush1.bf16.msra.mxu1 %v5233_v59  ;;  %v5293_v58 = vld [vmem:[%s5407_s22 + $0xb68] ss:$16 sps:$4 sm:$0xff]   ;;  %v5298_v59 = vld [vmem:[%s5407_s22 + $0xb84] ss:$16 sps:$4 sm:$0xff]  }
 0x158   : > { %3529 = vmatprep.subr.bf16.mxu0 %v5238_v62  ;;  %3635 = vmatprep.subr.bf16.mxu1 %v5241_v63  ;;  %v5301_v62 = vld [vmem:[%s5407_s22 + $0xb8c] ss:$16 sps:$4 sm:$0xff]   ;;  %v5296_v63 = vld [vmem:[%s5407_s22 + $0xb80] ss:$16 sps:$4 sm:$0xff]  }
 0x15b   : > { %3530 = vmatpush1.bf16.msra.mxu0 %v5236_v1  ;;  %3636 = vmatpush1.bf16.msra.mxu1 %v5239_v2  ;;  %v5299_v1 = vld [vmem:[%s5407_s22 + $0xb88] ss:$16 sps:$4 sm:$0xff]   ;;  %v5304_v2 = vld [vmem:[%s5407_s22 + $0xba4] ss:$16 sps:$4 sm:$0xff]  }
 0x15c   : > { %3531 = vmatprep.subr.bf16.mxu0 %v5244_v3  ;;  %3637 = vmatprep.subr.bf16.mxu1 %v5247_v4  ;;  %v5307_v3 = vld [vmem:[%s5407_s22 + $0xbac] ss:$16 sps:$4 sm:$0xff]   ;;  %v5305_v4 = vld [vmem:[%s5407_s22 + $0xba8] ss:$16 sps:$4 sm:$0xff]  }
 0x15f   : > { %3532 = vmatpush1.bf16.msra.mxu0 %v5242_v6  ;;  %3638 = vmatpush1.bf16.msra.mxu1 %v5245_v7  ;;  %v5310_v6 = vld [vmem:[%s5407_s22 + $0xbc4] ss:$16 sps:$4 sm:$0xff]   ;;  %v5313_v7 = vld [vmem:[%s5407_s22 + $0xbcc] ss:$16 sps:$4 sm:$0xff]  }
 0x160   : > { %3533 = vmatprep.subr.bf16.mxu0 %v5250_v0  ;;  %3639 = vmatprep.subr.bf16.mxu1 %v5253_v8  ;;  %v5311_v0 = vld [vmem:[%s5407_s22 + $0xbc8] ss:$16 sps:$4 sm:$0xff]   ;;  %v5316_v8 = vld [vmem:[%s5407_s22 + $0xbe4] ss:$16 sps:$4 sm:$0xff]  }
 0x163   : > { %3534 = vmatpush1.bf16.msra.mxu0 %v5248_v9  ;;  %3640 = vmatpush1.bf16.msra.mxu1 %v5251_v5  ;;  %v5319_v9 = vld [vmem:[%s5407_s22 + $0xbec] ss:$16 sps:$4 sm:$0xff]   ;;  %v5317_v5 = vld [vmem:[%s5407_s22 + $0xbe8] ss:$16 sps:$4 sm:$0xff]  }
 0x164   : > { %3535 = vmatprep.subr.bf16.mxu0 %v5256_v11  ;;  %3641 = vmatprep.subr.bf16.mxu1 %v5259_v12  ;;  %v5322_v11 = vld [vmem:[%s5407_s22 + $0xc04] ss:$16 sps:$4 sm:$0xff]   ;;  %v5325_v12 = vld [vmem:[%s5407_s22 + $0xc0c] ss:$16 sps:$4 sm:$0xff]  }
 0x167   : > { %3536 = vmatpush1.bf16.msra.mxu0 %v5254_v13  ;;  %3642 = vmatpush1.bf16.msra.mxu1 %v5257_v10  ;;  %v5320_v13 = vld [vmem:[%s5407_s22 + $0xc00] ss:$16 sps:$4 sm:$0xff]   ;;  %v5323_v10 = vld [vmem:[%s5407_s22 + $0xc08] ss:$16 sps:$4 sm:$0xff]  }
 0x168   : > { %3537 = vmatprep.subr.bf16.mxu0 %v5262_v14  ;;  %3643 = vmatprep.subr.bf16.mxu1 %v5265_v16  ;;  %v5331_v14 = vld [vmem:[%s5407_s22 + $0xc2c] ss:$16 sps:$4 sm:$0xff]   ;;  %v5326_v16 = vld [vmem:[%s5407_s22 + $0xc20] ss:$16 sps:$4 sm:$0xff]  }
 0x16b   : > { %3538 = vmatpush1.bf16.msra.mxu0 %v5260_v15  ;;  %3644 = vmatpush1.bf16.msra.mxu1 %v5263_v18  ;;  %v5329_v15 = vld [vmem:[%s5407_s22 + $0xc28] ss:$16 sps:$4 sm:$0xff]   ;;  %v5334_v18 = vld [vmem:[%s5407_s22 + $0xc44] ss:$16 sps:$4 sm:$0xff]  }
 0x16c   : > { %3539 = vmatprep.subr.bf16.mxu0 %v5268_v19  ;;  %3645 = vmatprep.subr.bf16.mxu1 %v5271_v21  ;;  %v5337_v19 = vld [vmem:[%s5407_s22 + $0xc4c] ss:$16 sps:$4 sm:$0xff]   ;;  %v6004_v21 = vpop.permute.xlu0 %1074 }
 0x16f   : > { %3540 = vmatpush1.bf16.msra.mxu0 %v5266_v20  ;;  %3646 = vmatpush1.bf16.msra.mxu1 %v5269_v23  ;;  %v6006_v20 = vpop.permute.xlu1 %1084  ;;  %v5332_v23 = vld [vmem:[%s5407_s22 + $0xc40] ss:$16 sps:$4 sm:$0xff]  }
 0x170   : > { %3541 = vmatprep.subr.bf16.mxu0 %v5274_v24  ;;  %3647 = vmatprep.subr.bf16.mxu1 %v5277_v25  ;;  %v5335_v24 = vld [vmem:[%s5407_s22 + $0xc48] ss:$16 sps:$4 sm:$0xff]   ;;  %v5340_v25 = vld [vmem:[%s5407_s22 + $0xc64] ss:$16 sps:$4 sm:$0xff]  }
 0x173   : > { %3542 = vmatpush1.bf16.msra.mxu0 %v5272_v26  ;;  %3648 = vmatpush1.bf16.msra.mxu1 %v5275_v28  ;;  %v5343_v26 = vld [vmem:[%s5407_s22 + $0xc6c] ss:$16 sps:$4 sm:$0xff]   ;;  %v5338_v28 = vld [vmem:[%s5407_s22 + $0xc60] ss:$16 sps:$4 sm:$0xff]  }
 0x174   : > { %3543 = vmatprep.subr.bf16.mxu0 %v5280_v29  ;;  %3649 = vmatprep.subr.bf16.mxu1 %v5283_v30  ;;  %v5341_v29 = vld [vmem:[%s5407_s22 + $0xc68] ss:$16 sps:$4 sm:$0xff]   ;;  %v6014_v30 = vpop.permute.xlu0 %1079 }
 0x177   : > { %3544 = vmatpush1.bf16.msra.mxu0 %v5278_v31  ;;  %3650 = vmatpush1.bf16.msra.mxu1 %v5281_v38  ;;  %v6016_v31 = vpop.permute.xlu1 %1089  ;;  %v1092_v38 = vmul.f32 %v6004_v21, %v5884_v32  ;;  %v1096_v32 = vmul.f32 %v6014_v30, %v5894_v36  ;;  %v1103_v36 = vmul.f32 %v6006_v20, %v5916_v53 }
 0x178   : > { %3545 = vmatprep.subr.bf16.mxu0 %v5286_v39  ;;  %3651 = vmatprep.subr.bf16.mxu1 %v5289_v51  ;;  %v1094_v39 = vmul.f32 %v6004_v21, %v5886_v33  ;;  %v6022_v51 = vpop.permute.xlu0 %1110  ;;  %v1097_v33 = vmul.f32 %v6014_v30, %v5900_v41  ;;  %v1106_v41 = vmul.f32 %v6016_v31, %v5920_v57 }
 0x17b   : > { %3546 = vmatpush1.bf16.msra.mxu0 %v5284_v43  ;;  %3652 = vmatpush1.bf16.msra.mxu1 %v5287_v45  ;;  %v1093_v43 = vmul.f32 %v6004_v21, %v5890_v34  ;;  %v1095_v45 = vmul.f32 %v6004_v21, %v5892_v35  ;;  %v1099_v34 = vmul.f32 %v6014_v30, %v5902_v42 }
 0x17c   : > { %3568 = vmatprep.subr.bf16.mxu0 %v5292_v46  ;;  %3674 = vmatprep.subr.bf16.mxu1 %v5295_v47  ;;  %v6030_v46 = vpop.permute.xlu1 %1115  ;;  %v1100_v35 = vmul.f32 %v6006_v20, %v5910_v50  ;;  %v1102_v47 = vmul.f32 %v6006_v20, %v5912_v55  ;;  %v6059_v42 = vadd.f32 %v6022_v51, %v1092_v38 }
 0x17d   : > { %v6062_v50 = vadd.f32 %v6022_v51, %v1094_v39  ;;  %v1105_v55 = vmul.f32 %v6016_v31, %v5924_v60  ;;  %v6077_v57 = vadd.f32 %v6030_v46, %v1096_v32  ;;  %v6086_v60 = vadd.f32 %v6030_v46, %v1099_v34 }
 0x17e   : > { %3548 = vmatmul.mubr.bf16.vlgmr.msra.gmra.mrb[24].mxu0 %v5786_v40  ;;  %3654 = vmatmul.mubr.bf16.vlgmr.msra.gmra.mrb[24].mxu1 %v5786_v40  ;;  %v5302_v40 = vld [vmem:[%s5407_s22 + $0xba0] ss:$16 sps:$4 sm:$0xff]  }
 0x17f   : > { %3569 = vmatpush1.bf16.msra.mxu0 %v5290_v48  ;;  %3675 = vmatpush1.bf16.msra.mxu1 %v5293_v58  ;;  %v6052_v48 = vpop.permute.xlu0 %1120  ;;  %v6071_v58 = vadd.f32 %v6022_v51, %v1093_v43 }
 0x180   : > { %3570 = vmatprep.subr.bf16.mxu0 %v5298_v59  ;;  %3676 = vmatprep.subr.bf16.mxu1 %v5301_v62  ;;  %v6068_v53 = vpop.permute.xlu1 %1125  ;;  %v6083_v62 = vadd.f32 %v6030_v46, %v1097_v33 }
 0x181   : > { %3557 = vmatprep.mubr.bf16.mxu0 %v5797_v44  ;;  %3663 = vmatprep.mubr.bf16.mxu1 %v5797_v44  ;;  %v5308_v44 = vld [vmem:[%s5407_s22 + $0xbc0] ss:$16 sps:$4 sm:$0xff]  }
 0x183   : > { %3571 = vmatpush1.bf16.msra.mxu0 %v5296_v63  ;;  %3677 = vmatpush1.bf16.msra.mxu1 %v5299_v1  ;;  %v6092_v63 = vadd.f32 %v6052_v48, %v1102_v47 }
 0x184   : > { %3572 = vmatprep.subr.bf16.mxu0 %v5304_v2  ;;  %3678 = vmatprep.subr.bf16.mxu1 %v5307_v3  ;;  %v6098_v2 = vadd.f32 %v6052_v48, %v1103_v36  ;;  %v1144_v3 = vmax.f32 %v6059_v42, 0.0 }
 0x186   : > { %3558 = vmatmul.mubr.bf16.gmra.mrb[28].mxu0 %v5808_v49  ;;  %3664 = vmatmul.mubr.bf16.gmra.mrb[28].mxu1 %v5808_v49  ;;  %v5314_v49 = vld [vmem:[%s5407_s22 + $0xbe0] ss:$16 sps:$4 sm:$0xff]  }
 0x187   : > { %3573 = vmatpush1.bf16.msra.mxu0 %v5302_v40  ;;  %3679 = vmatpush1.bf16.msra.mxu1 %v5305_v4  ;;  %v1146_v40 = vmax.f32 %v6062_v50, 0.0 }
 0x188   : > { %3574 = vmatprep.subr.bf16.mxu0 %v5310_v6  ;;  %3680 = vmatprep.subr.bf16.mxu1 %v5313_v7  ;;  %v6108_v6 = vadd.f32 %v6068_v53, %v1106_v41  ;;  %v1145_v7 = vmax.f32 %v6071_v58, 0.0 }
 0x189   : > { %4633 = vmatprep.mubr.msk.bf16.mxu0 %vm853_vm0, %v5819_v56  ;;  %4635 = vmatprep.mubr.msk.bf16.mxu1 %vm853_vm0, %v5819_v56  ;;  %v5328_v56 = vld [vmem:[%s5407_s22 + $0xc24] ss:$16 sps:$4 sm:$0xff]   ;;  %s4647_s22 = sshll.u32 %s6377_s16, 6 }
 0x18a   : > { %s6314_s24 = scalar_lea.vmem %s6373_s4, %s4647_s22 }
 0x18b   : > { %3575 = vmatpush1.bf16.msra.mxu0 %v5308_v44  ;;  %3681 = vmatpush1.bf16.msra.mxu1 %v5311_v0  ;;  %v6113_v0 = vadd.f32 %v6068_v53, %v1105_v55 }
 0x18c   : > { %3576 = vmatprep.subr.bf16.mxu0 %v5316_v8  ;;  %3682 = vmatprep.subr.bf16.mxu1 %v5319_v9 }
 0x18d   : > { %v1157_v38 = vmax.f32 %v6113_v0, 0.0 }
 0x18f   : > { %3577 = vmatpush1.bf16.msra.mxu0 %v5314_v49  ;;  %3683 = vmatpush1.bf16.msra.mxu1 %v5317_v5  ;;  %v1149_v49 = vmax.f32 %v6083_v62, 0.0  ;;  %v1151_v5 = vmax.f32 %v6086_v60, 0.0 }
 0x190   : > { %3578 = vmatprep.subr.bf16.mxu0 %v5322_v11  ;;  %3684 = vmatprep.subr.bf16.mxu1 %v5325_v12 }
 0x193   : > { %3579 = vmatpush1.bf16.msra.mxu0 %v5320_v13  ;;  %3685 = vmatpush1.bf16.msra.mxu1 %v5323_v10  ;;  %v1154_v10 = vmax.f32 %v6092_v63, 0.0 }
 0x194   : > { %3580 = vmatprep.subr.bf16.mxu0 %v5328_v56  ;;  %3686 = vmatprep.subr.bf16.mxu1 %v5331_v14  ;;  %v1155_v14 = vmax.f32 %v6098_v2, 0.0 }
 0x197   : > { %3581 = vmatpush1.bf16.msra.mxu0 %v5326_v16  ;;  %3687 = vmatpush1.bf16.msra.mxu1 %v5329_v15 }
 0x198   : > { %3582 = vmatprep.subr.bf16.mxu0 %v5334_v18  ;;  %3688 = vmatprep.subr.bf16.mxu1 %v5337_v19 }
 0x19b   : > { %3583 = vmatpush1.bf16.msra.mxu0 %v5332_v23  ;;  %3689 = vmatpush1.bf16.msra.mxu1 %v5335_v24  ;;  %v1158_v24 = vmax.f32 %v6108_v6, 0.0 }
 0x19c   : > { %3584 = vmatprep.subr.bf16.mxu0 %v5340_v25  ;;  %3690 = vmatprep.subr.bf16.mxu1 %v5343_v26 }
 0x19f   : > { %3585 = vmatpush1.bf16.msra.mxu0 %v5338_v28  ;;  %3691 = vmatpush1.bf16.msra.mxu1 %v5341_v29 }
 0x1a2   : > { %3601 = vmatmul.mubr.bf16.vlgmr.msra.gmra.mrb[24].mxu0 %v5852_v17  ;;  %3707 = vmatmul.mubr.bf16.vlgmr.msra.gmra.mrb[24].mxu1 %v5852_v17  ;;  %v1098_v17 = vmul.f32 %v6014_v30, %v5896_v37  ;;  %v1104_v37 = vmul.f32 %v6016_v31, %v5918_v54  ;;  %v6074_v54 = vadd.f32 %v6022_v51, %v1095_v45 }
 0x1a3   : > { %4634 = vmatprep.mubr.msk.bf16.mxu0 %vm853_vm0, %v5863_v22  ;;  %4636 = vmatprep.mubr.msk.bf16.mxu1 %vm853_vm0, %v5863_v22  ;;  %v1101_v22 = vmul.f32 %v6006_v20, %v5914_v52  ;;  %v1107_v52 = vmul.f32 %v6016_v31, %v5926_v61  ;;  %v6089_v61 = vadd.f32 %v6052_v48, %v1100_v35 }
 0x1a4   : > { %v6080_v59 = vadd.f32 %v6030_v46, %v1098_v17  ;;  %v6105_v4 = vadd.f32 %v6068_v53, %v1104_v37  ;;  %v1147_v44 = vmax.f32 %v6074_v54, 0.0 }
 0x1a5   : > { %v6095_v1 = vadd.f32 %v6052_v48, %v1101_v22  ;;  %v6116_v8 = vadd.f32 %v6068_v53, %v1107_v52  ;;  %v1152_v13 = vmax.f32 %v6089_v61, 0.0 }
 0x1a6   : > { %v1150_v9 = vmax.f32 %v6080_v59, 0.0  ;;  %v1156_v23 = vmax.f32 %v6105_v4, 0.0 }
 0x1a7   : > { %v1153_v56 = vmax.f32 %v6095_v1, 0.0  ;;  %v1159_v39 = vmax.f32 %v6116_v8, 0.0 }
 0x1aa   : > { %3611 = vmatmul.mubr.bf16.gmra.mrb[28].mxu0 %v5876_v27  ;;  %3717 = vmatmul.mubr.bf16.gmra.mrb[28].mxu1 %v5876_v27  ;;  %v1148_v27 = vmax.f32 %v6077_v57, 0.0 }
 0x1ad   : > { %v1848_v11 = vpop.f32.mrb[8].mxu0  ;;  %v1954_v12 = vpop.f32.mrb[8].mxu1 }
 0x1ae   : > { %v1973_v16 = vmul.f32 %v1848_v11, %v6004_v21  ;;  %v1975_v15 = vmul.f32 %v1954_v12, %v6004_v21  ;;  %v1850_v18 = vpop.f32.mrb[9].mxu0  ;;  %v1956_v19 = vpop.f32.mrb[9].mxu1 }
 0x1af   : > { %v1974_v25 = vmul.f32 %v1850_v18, %v6004_v21  ;;  %v1976_v26 = vmul.f32 %v1956_v19, %v6004_v21  ;;  %v1852_v28 = vpop.f32.mrb[10].mxu0  ;;  %v1958_v29 = vpop.f32.mrb[10].mxu1 }
 0x1b0   : > { %v1989_v43 = vadd.f32 %v1973_v16, %v6022_v51  ;;  %v1991_v45 = vadd.f32 %v1975_v15, %v6022_v51  ;;  %v1977_v32 = vmul.f32 %v1852_v28, %v6014_v30  ;;  %v1979_v17 = vmul.f32 %v1958_v29, %v6014_v30  ;;  %v1854_v33 = vpop.f32.mrb[11].mxu0  ;;  %v1960_v34 = vpop.f32.mrb[11].mxu1 }
 0x1b1   : > { %v1990_v35 = vadd.f32 %v1974_v25, %v6022_v51  ;;  %v1992_v47 = vadd.f32 %v1976_v26, %v6022_v51  ;;  %v1978_v22 = vmul.f32 %v1854_v33, %v6014_v30  ;;  %v1980_v36 = vmul.f32 %v1960_v34, %v6014_v30 }
 0x1b2   : > { %v2005_v37 = vmax.f32 %v1989_v43, 0.0  ;;  %v2007_v41 = vmax.f32 %v1991_v45, 0.0  ;;  %v1993_v42 = vadd.f32 %v1977_v32, %v6030_v46  ;;  %v1995_v50 = vadd.f32 %v1979_v17, %v6030_v46 }
 0x1b3   : > { %v2006_v55 = vmax.f32 %v1990_v35, 0.0  ;;  %v2008_v52 = vmax.f32 %v1992_v47, 0.0  ;;  %v1994_v58 = vadd.f32 %v1978_v22, %v6030_v46  ;;  %v1996_v54 = vadd.f32 %v1980_v36, %v6030_v46 }
 0x1b4   : > { %v6146_v57 = vmax.f32 %v1144_v3, %v2005_v37  ;;  %v6148_v59 = vmax.f32 %v1146_v40, %v2007_v41  ;;  %v2009_v62 = vmax.f32 %v1993_v42, 0.0  ;;  %v2011_v60 = vmax.f32 %v1995_v50, 0.0 }
 0x1b5   : > { %v6150_v11 = vmax.f32 %v1145_v7, %v2006_v55  ;;  %v6152_v12 = vmax.f32 %v1147_v44, %v2008_v52  ;;  %v2010_v16 = vmax.f32 %v1994_v58, 0.0  ;;  %v2012_v15 = vmax.f32 %v1996_v54, 0.0  ;;  %v1858_v18 = vpop.f32.mrb[12].mxu0  ;;  %v1964_v19 = vpop.f32.mrb[12].mxu1 }
 0x1b6   : > { %v6154_v25 = vmax.f32 %v1148_v27, %v2009_v62  ;;  %v6156_v26 = vmax.f32 %v1150_v9, %v2011_v60  ;;  %v1981_v28 = vmul.f32 %v1858_v18, %v6006_v20  ;;  %v1983_v3 = vmul.f32 %v1964_v19, %v6006_v20  ;;  %v1860_v40 = vpop.f32.mrb[13].mxu0  ;;  %v1966_v29 = vpop.f32.mrb[13].mxu1 }
 0x1b7   : > { %v6160_v43 = vmax.f32 %v1149_v49, %v2010_v16  ;;  %v6162_v7 = vmax.f32 %v1151_v5, %v2012_v15  ;;  %v1982_v44 = vmul.f32 %v1860_v40, %v6006_v20  ;;  %v1984_v45 = vmul.f32 %v1966_v29, %v6006_v20  ;;  %v1862_v32 = vpop.f32.mrb[14].mxu0  ;;  %v1968_v17 = vpop.f32.mrb[14].mxu1 }
 0x1b8   : > { %v1997_v27 = vadd.f32 %v1981_v28, %v6052_v48  ;;  %v1999_v9 = vadd.f32 %v1983_v3, %v6052_v48  ;;  %v1985_v33 = vmul.f32 %v1862_v32, %v6016_v31  ;;  %v1987_v34 = vmul.f32 %v1968_v17, %v6016_v31  ;;  %v1864_v35 = vpop.f32.mrb[15].mxu0  ;;  %v1970_v47 = vpop.f32.mrb[15].mxu1 }
 0x1b9   : > { %v1998_v49 = vadd.f32 %v1982_v44, %v6052_v48  ;;  %v2000_v5 = vadd.f32 %v1984_v45, %v6052_v48  ;;  %v1986_v22 = vmul.f32 %v1864_v35, %v6016_v31  ;;  %v1988_v36 = vmul.f32 %v1970_v47, %v6016_v31 }
 0x1ba   : > { %v2013_v37 = vmax.f32 %v1997_v27, 0.0  ;;  %v2015_v41 = vmax.f32 %v1999_v9, 0.0  ;;  %v2001_v42 = vadd.f32 %v1985_v33, %v6068_v53  ;;  %v2003_v50 = vadd.f32 %v1987_v34, %v6068_v53 }
 0x1bb   : > { %v2014_v55 = vmax.f32 %v1998_v49, 0.0  ;;  %v2016_v52 = vmax.f32 %v2000_v5, 0.0  ;;  %v2002_v58 = vadd.f32 %v1986_v22, %v6068_v53  ;;  %v2004_v54 = vadd.f32 %v1988_v36, %v6068_v53 }
 0x1bc   : > { %v6180_v62 = vmax.f32 %v1152_v13, %v2013_v37  ;;  %v6184_v60 = vmax.f32 %v1154_v10, %v2015_v41  ;;  %v2017_v16 = vmax.f32 %v2001_v42, 0.0  ;;  %v2019_v15 = vmax.f32 %v2003_v50, 0.0 }
 0x1bd   : > { %v6188_v18 = vmax.f32 %v1153_v56, %v2014_v55  ;;  %v6192_v19 = vmax.f32 %v1155_v14, %v2016_v52  ;;  %v2018_v28 = vmax.f32 %v2002_v58, 0.0  ;;  %v2020_v3 = vmax.f32 %v2004_v54, 0.0 }
 0x1be   : > { %v6196_v61 = vmax.f32 %v1156_v23, %v2017_v16  ;;  %v6200_v63 = vmax.f32 %v1158_v24, %v2019_v15 }
 0x1bf   : > { %v6204_v13 = vmax.f32 %v1157_v38, %v2018_v28  ;;  %v6208_v1 = vmax.f32 %v1159_v39, %v2020_v3 }
 0x211   : > { %v2725_v2 = vpop.f32.mrb[16].mxu0  ;;  %v2831_v10 = vpop.f32.mrb[16].mxu1 }
 0x212   : > { %v2850_v56 = vmul.f32 %v2725_v2, %v6004_v21  ;;  %v2852_v4 = vmul.f32 %v2831_v10, %v6004_v21  ;;  %v2727_v14 = vpop.f32.mrb[17].mxu0  ;;  %v2833_v23 = vpop.f32.mrb[17].mxu1 }
 0x213   : > { %v2851_v6 = vmul.f32 %v2727_v14, %v6004_v21  ;;  %v2853_v24 = vmul.f32 %v2833_v23, %v6004_v21  ;;  %v2729_v40 = vpop.f32.mrb[18].mxu0  ;;  %v2835_v0 = vpop.f32.mrb[18].mxu1 }
 0x214   : > { %v2866_v38 = vadd.f32 %v2850_v56, %v6022_v51  ;;  %v2868_v8 = vadd.f32 %v2852_v4, %v6022_v51  ;;  %v2854_v39 = vmul.f32 %v2729_v40, %v6014_v30  ;;  %v2856_v29 = vmul.f32 %v2835_v0, %v6014_v30  ;;  %v2731_v44 = vpop.f32.mrb[19].mxu0  ;;  %v2837_v45 = vpop.f32.mrb[19].mxu1 }
 0x215   : > { %v2867_v32 = vadd.f32 %v2851_v6, %v6022_v51  ;;  %v2869_v17 = vadd.f32 %v2853_v24, %v6022_v51  ;;  %v2855_v27 = vmul.f32 %v2731_v44, %v6014_v30  ;;  %v2857_v9 = vmul.f32 %v2837_v45, %v6014_v30 }
 0x216   : > { %v2882_v33 = vmax.f32 %v2866_v38, 0.0  ;;  %v2884_v34 = vmax.f32 %v2868_v8, 0.0  ;;  %v2870_v35 = vadd.f32 %v2854_v39, %v6030_v46  ;;  %v2872_v47 = vadd.f32 %v2856_v29, %v6030_v46 }
 0x217   : > { %v2883_v49 = vmax.f32 %v2867_v32, 0.0  ;;  %v2885_v5 = vmax.f32 %v2869_v17, 0.0  ;;  %v2871_v22 = vadd.f32 %v2855_v27, %v6030_v46  ;;  %v2873_v36 = vadd.f32 %v2857_v9, %v6030_v46 }
 0x218   : > { %v6227_v37 = vmax.f32 %v6146_v57, %v2882_v33  ;;  %v6230_v41 = vmax.f32 %v6148_v59, %v2884_v34  ;;  %v2886_v42 = vmax.f32 %v2870_v35, 0.0  ;;  %v2888_v50 = vmax.f32 %v2872_v47, 0.0 }
 0x219   : > { %v6233_v55 = vmax.f32 %v6150_v11, %v2883_v49  ;;  %v6236_v52 = vmax.f32 %v6152_v12, %v2885_v5  ;;  %v2887_v58 = vmax.f32 %v2871_v22, 0.0  ;;  %v2889_v54 = vmax.f32 %v2873_v36, 0.0  ;;  %v2735_v16 = vpop.f32.mrb[20].mxu0  ;;  %v2841_v15 = vpop.f32.mrb[20].mxu1 }
 0x21a   : > { %v6239_v28 = vmax.f32 %v6154_v25, %v2886_v42  ;;  %v6242_v57 = vmax.f32 %v6156_v26, %v2888_v50  ;;  %v2858_v59 = vmul.f32 %v2735_v16, %v6006_v20  ;;  %v2860_v3 = vmul.f32 %v2841_v15, %v6006_v20  ;;  %v2737_v2 = vpop.f32.mrb[21].mxu0  ;;  %v2843_v11 = vpop.f32.mrb[21].mxu1 }
 0x21b   : > { %v6247_v10 = vmax.f32 %v6160_v43, %v2887_v58  ;;  %v6250_v12 = vmax.f32 %v6162_v7, %v2889_v54  ;;  %v2859_v56 = vmul.f32 %v2737_v2, %v6006_v20  ;;  %v2861_v25 = vmul.f32 %v2843_v11, %v6006_v20  ;;  %v2739_v4 = vpop.f32.mrb[22].mxu0  ;;  %v2845_v14 = vpop.f32.mrb[22].mxu1 }
 0x21c   : > { %v2874_v26 = vadd.f32 %v2858_v59, %v6052_v48  ;;  %v2876_v23 = vadd.f32 %v2860_v3, %v6052_v48  ;;  %v2862_v6 = vmul.f32 %v2739_v4, %v6016_v31  ;;  %v2864_v24 = vmul.f32 %v2845_v14, %v6016_v31  ;;  %v2741_v40 = vpop.f32.mrb[23].mxu0  ;;  %v2847_v43 = vpop.f32.mrb[23].mxu1 }
 0x21d   : > { %v2875_v0 = vadd.f32 %v2859_v56, %v6052_v48  ;;  %v2877_v7 = vadd.f32 %v2861_v25, %v6052_v48  ;;  %v2863_v38 = vmul.f32 %v2741_v40, %v6016_v31  ;;  %v2865_v8 = vmul.f32 %v2847_v43, %v6016_v31 }
 0x21e   : > { %v2890_v39 = vmax.f32 %v2874_v26, 0.0  ;;  %v2892_v29 = vmax.f32 %v2876_v23, 0.0  ;;  %v2878_v44 = vadd.f32 %v2862_v6, %v6068_v53  ;;  %v2880_v45 = vadd.f32 %v2864_v24, %v6068_v53 }
 0x21f   : > { %v2891_v32 = vmax.f32 %v2875_v0, 0.0  ;;  %v2893_v17 = vmax.f32 %v2877_v7, 0.0  ;;  %v2879_v27 = vadd.f32 %v2863_v38, %v6068_v53  ;;  %v2881_v9 = vadd.f32 %v2865_v8, %v6068_v53 }
 0x220   : > { %v6267_v33 = vmax.f32 %v6180_v62, %v2890_v39  ;;  %v6270_v34 = vmax.f32 %v6184_v60, %v2892_v29  ;;  %v2894_v35 = vmax.f32 %v2878_v44, 0.0  ;;  %v2896_v47 = vmax.f32 %v2880_v45, 0.0 }
 0x221   : > { %v6273_v49 = vmax.f32 %v6188_v18, %v2891_v32  ;;  %v6276_v5 = vmax.f32 %v6192_v19, %v2893_v17  ;;  %v2895_v22 = vmax.f32 %v2879_v27, 0.0  ;;  %v2897_v36 = vmax.f32 %v2881_v9, 0.0 }
 0x222   : > { %v6279_v42 = vmax.f32 %v6196_v61, %v2894_v35  ;;  %v6282_v50 = vmax.f32 %v6200_v63, %v2896_v47 }
 0x223   : > { %v6285_v62 = vmax.f32 %v6204_v13, %v2895_v22  ;;  %v6288_v60 = vmax.f32 %v6208_v1, %v2897_v36 }
 0x275   : > { %v3602_v58 = vpop.f32.mrb[24].mxu0  ;;  %v3708_v18 = vpop.f32.mrb[24].mxu1 }
 0x276   : > { %v3727_v54 = vmul.f32 %v3602_v58, %v6004_v21  ;;  %v3729_v19 = vmul.f32 %v3708_v18, %v6004_v21  ;;  %v3604_v16 = vpop.f32.mrb[25].mxu0  ;;  %v3710_v15 = vpop.f32.mrb[25].mxu1 }
 0x277   : > { %v3728_v61 = vmul.f32 %v3604_v16, %v6004_v21  ;;  %v3730_v59 = vmul.f32 %v3710_v15, %v6004_v21  ;;  %v3606_v63 = vpop.f32.mrb[26].mxu0  ;;  %v3712_v13 = vpop.f32.mrb[26].mxu1 }
 0x278   : > { %v3743_v1 = vadd.f32 %v3727_v54, %v6022_v51  ;;  %v3745_v3 = vadd.f32 %v3729_v19, %v6022_v51  ;;  %v3731_v2 = vmul.f32 %v3606_v63, %v6014_v30  ;;  %v3733_v11 = vmul.f32 %v3712_v13, %v6014_v30  ;;  %v3608_v56 = vpop.f32.mrb[27].mxu0  ;;  %v3714_v25 = vpop.f32.mrb[27].mxu1 }
 0x279   : > { %v3744_v4 = vadd.f32 %v3728_v61, %v6022_v51  ;;  %v3746_v14 = vadd.f32 %v3730_v59, %v6022_v51  ;;  %v3732_v21 = vmul.f32 %v3608_v56, %v6014_v30  ;;  %v3734_v26 = vmul.f32 %v3714_v25, %v6014_v30 }
 0x27a   : > { %v3759_v23 = vmax.f32 %v3743_v1, 0.0  ;;  %v3761_v6 = vmax.f32 %v3745_v3, 0.0  ;;  %v3747_v24 = vadd.f32 %v3731_v2, %v6030_v46  ;;  %v3749_v40 = vadd.f32 %v3733_v11, %v6030_v46 }
 0x27b   : > { %v3760_v43 = vmax.f32 %v3744_v4, 0.0  ;;  %v3762_v0 = vmax.f32 %v3746_v14, 0.0  ;;  %v3748_v7 = vadd.f32 %v3732_v21, %v6030_v46  ;;  %v3750_v38 = vadd.f32 %v3734_v26, %v6030_v46 }
 0x27c   : > { %v3775_v8 = vmax.f32 %v6227_v37, %v3759_v23  ;;  %v3777_v51 = vmax.f32 %v6230_v41, %v3761_v6  ;;  %v3763_v39 = vmax.f32 %v3747_v24, 0.0  ;;  %v3765_v29 = vmax.f32 %v3749_v40, 0.0 }
 0x27d   : > { %v3776_v30 = vmax.f32 %v6233_v55, %v3760_v43  ;;  %v3778_v44 = vmax.f32 %v6236_v52, %v3762_v0  ;;  %v3764_v45 = vmax.f32 %v3748_v7, 0.0  ;;  %v3766_v32 = vmax.f32 %v3750_v38, 0.0  ;;  %v3612_v17 = vpop.f32.mrb[28].mxu0  ;;  %v3718_v27 = vpop.f32.mrb[28].mxu1 }
 0x27e   : > { %v3779_v37 = vmax.f32 %v6239_v28, %v3763_v39  ;;  %v3781_v41 = vmax.f32 %v6242_v57, %v3765_v29  ;;  %v3735_v55 = vmul.f32 %v3612_v17, %v6006_v20  ;;  %v3737_v52 = vmul.f32 %v3718_v27, %v6006_v20  ;;  %v3614_v9 = vpop.f32.mrb[29].mxu0  ;;  %v3720_v35 = vpop.f32.mrb[29].mxu1 }
 0x27f   : > { %v4648_v47 = vpack.c.bf16 %v3776_v30, %v3775_v8  ;;  %v4649_v22 = vpack.c.bf16 %v3778_v44, %v3777_v51  ;;  %v3780_v36 = vmax.f32 %v6247_v10, %v3764_v45  ;;  %v3782_v58 = vmax.f32 %v6250_v12, %v3766_v32  ;;  %v3616_v18 = vpop.f32.mrb[30].mxu0  ;;  %v3722_v54 = vpop.f32.mrb[30].mxu1 }
 0x280   : > { %v3751_v28 = vadd.f32 %v3735_v55, %v6052_v48  ;;  %v3753_v57 = vadd.f32 %v3737_v52, %v6052_v48  ;;  %v3736_v19 = vmul.f32 %v3614_v9, %v6006_v20  ;;  %v3738_v16 = vmul.f32 %v3720_v35, %v6006_v20  ;;  %v3618_v15 = vpop.f32.mrb[31].mxu0  ;;  %v3724_v61 = vpop.f32.mrb[31].mxu1 }
 0x281   : > { %3839 = vst [vmem:[%s6314_s24] sm:$0xff] %v4648_v47  ;;  %3843 = vst.msk [vmem:[%s6314_s24 + $0x8] sm:$0xff] %vm6318_vm3, %v4649_v22  ;;  %v4650_v10 = vpack.c.bf16 %v3780_v36, %v3779_v37  ;;  %v4651_v12 = vpack.c.bf16 %v3782_v58, %v3781_v41  ;;  %v3739_v59 = vmul.f32 %v3616_v18, %v6016_v31 }
 0x282   : > { %v3741_v63 = vmul.f32 %v3722_v54, %v6016_v31  ;;  %v3767_v13 = vmax.f32 %v3751_v28, 0.0  ;;  %v3769_v1 = vmax.f32 %v3753_v57, 0.0  ;;  %v3752_v3 = vadd.f32 %v3736_v19, %v6052_v48 }
 0x283   : > { %v3754_v2 = vadd.f32 %v3738_v16, %v6052_v48  ;;  %3844 = vst [vmem:[%s6314_s24 + $0x10] sm:$0xff] %v4650_v10  ;;  %3845 = vst.msk [vmem:[%s6314_s24 + $0x18] sm:$0xff] %vm6318_vm3, %v4651_v12  ;;  %v3755_v20 = vadd.f32 %v3739_v59, %v6068_v53  ;;  %v3740_v56 = vmul.f32 %v3618_v15, %v6016_v31 }
 0x284   : > { %v3757_v11 = vadd.f32 %v3741_v63, %v6068_v53  ;;  %v3742_v25 = vmul.f32 %v3724_v61, %v6016_v31  ;;  %v3783_v4 = vmax.f32 %v6267_v33, %v3767_v13  ;;  %v3785_v14 = vmax.f32 %v6270_v34, %v3769_v1 }
 0x285   : > { %v3768_v21 = vmax.f32 %v3752_v3, 0.0  ;;  %v3770_v26 = vmax.f32 %v3754_v2, 0.0  ;;  %v3771_v48 = vmax.f32 %v3755_v20, 0.0  ;;  %v3756_v6 = vadd.f32 %v3740_v56, %v6068_v53 }
 0x286   : > { %v3773_v23 = vmax.f32 %v3757_v11, 0.0  ;;  %v3758_v24 = vadd.f32 %v3742_v25, %v6068_v53 }
 0x287   : > { %v3784_v40 = vmax.f32 %v6273_v49, %v3768_v21  ;;  %v3786_v31 = vmax.f32 %v6276_v5, %v3770_v26  ;;  %v3787_v33 = vmax.f32 %v6279_v42, %v3771_v48  ;;  %v3772_v43 = vmax.f32 %v3756_v6, 0.0 }
 0x288   : > { %v3789_v34 = vmax.f32 %v6282_v50, %v3773_v23  ;;  %v3774_v0 = vmax.f32 %v3758_v24, 0.0 }
 0x289   : > { %v4652_v7 = vpack.c.bf16 %v3784_v40, %v3783_v4  ;;  %v4653_v38 = vpack.c.bf16 %v3786_v31, %v3785_v14  ;;  %v3788_v8 = vmax.f32 %v6285_v62, %v3772_v43 }
 0x28a   : > { %v3790_v51 = vmax.f32 %v6288_v60, %v3774_v0 }
 0x28b   : > { %3846 = vst [vmem:[%s6314_s24 + $0x20] sm:$0xff] %v4652_v7  ;;  %3847 = vst.msk [vmem:[%s6314_s24 + $0x28] sm:$0xff] %vm6318_vm3, %v4653_v38  ;;  %v4654_v53 = vpack.c.bf16 %v3788_v8, %v3787_v33 }
 0x28c   : > { %v4655_v49 = vpack.c.bf16 %v3790_v51, %v3789_v34 }
 0x28d   : > { %3848 = vst [vmem:[%s6314_s24 + $0x30] sm:$0xff] %v4654_v53 }
 0x28e   : > { %3849 = vst.msk [vmem:[%s6314_s24 + $0x38] sm:$0xff] %vm6318_vm3, %v4655_v49 }
 0x28f PF: > { %s14_s15 = sadd.s32 1, %s5358_s15  }
 0x290   : > { %p11_p4 = scmp.ge.s32.totalorder %s14_s15, 4  }
 0x292   :  { %13 = sbr.rel (!%p11_p4) target bundleno = 1 (0x1), region = 69 }

// kernel: siamese_forward.6
= control target key start
LH: loop header
LB: loop body
LE: loop exit
PB: predicated region body
PF: predicated region fallthrough
CT: control target
= control target key end

     0   :  { %s4792_s15 = smov 0   ;;  %s5708_s0 = inlined_call_operand.vmem [shape: bf16[2,4,800,81], index: 0, kind: input, shape index: {}]   ;;  %s5709_s1 = inlined_call_operand.vmem [shape: bf16[64,800], index: 1, kind: input, shape index: {}]   ;;  %s5710_s2 = inlined_call_operand.vmem [shape: f32[64,1], index: 2, kind: input, shape index: {}]   ;;  %s5711_s3 = inlined_call_operand.vmem [shape: f32[64,1], index: 3, kind: input, shape index: {}]   ;;  %s5712_s4 = inlined_call_operand.vmem [shape: bf16[2,64,81], index: 4, kind: output, shape index: {}]  }
   0x1 LB: > { %s3339_s16 = sadd.s32 4294967295, %s4764_s15   ;;  %p3343_p0 = scmp.ge.s32.totalorder %s4764_s15, 1  ;;  %s4764_s15 = sphi %s4792_s15, %s14_s15  }
   0x2   : > { %p162_p1 = scmp.lt.s32.totalorder %s4764_s15, 3 }
   0x4   : > { %p163_p2 = pnand %p3343_p0, %p162_p1 }
   0x5   : > { %p188_p3 = scmp.lt.s32.totalorder (!%p163_p2), %s3339_s16, 1  ;;  %v4803_v0 = vld [vmem:[%s5709_s1 + $0x4] ss:$28 sps:$4 sm:$0xff] (!%p163_p2)   ;;  %v4808_v1 = vld [vmem:[%s5709_s1 + $0xc] ss:$28 sps:$4 sm:$0xff] (!%p163_p2)   ;;  %v4766_v21 = vmov (!%p163_p2), 0  }
   0x6   : > { %166 = sbr.rel (%p163_p2) target bundleno = 524 (0x20c), region = 36  ;;  %832 = vmatprep.mubr.bf16.mxu0 (!%p163_p2), %v4803_v0  ;;  %897 = vmatprep.mubr.bf16.mxu1 (!%p163_p2), %v4808_v1  ;;  %v4853_v33 = vld [vmem:[%s5709_s1] ss:$28 sps:$4 sm:$0xff] (!%p163_p2)   ;;  %v4859_v35 = vld [vmem:[%s5709_s1 + $0x8] ss:$28 sps:$4 sm:$0xff] (!%p163_p2)   ;;  %vm787_vm0 = vcmask (!%p163_p2), 261120  }
   0x7   : > { %4488 = vset.pattern.permute.xlu0 (!%p163_p2), %v4766_v21  ;;  %4489 = vset.pattern.permute.xlu1 (!%p163_p2), %v4766_v21  ;;  %v4865_v37 = vld [vmem:[%s5709_s1 + $0x3c] ss:$28 sps:$4 sm:$0xff] (!%p163_p2)   ;;  %v4871_v39 = vld [vmem:[%s5709_s1 + $0x44] ss:$28 sps:$4 sm:$0xff] (!%p163_p2)   ;;  %v4897_v49 = vld [vmem:[%s5709_s1 + $0x74] ss:$28 sps:$4 sm:$0xff] (!%p163_p2)  }
   0x8   : > { %v4885_v45 = vld [vmem:[%s5709_s1 + $0x38] ss:$28 sps:$4 sm:$0xff] (!%p163_p2)   ;;  %v4890_v46 = vld [vmem:[%s5709_s1 + $0x40] ss:$28 sps:$4 sm:$0xff] (!%p163_p2)   ;;  %v4911_v52 = vld [vmem:[%s5709_s1 + $0x70] ss:$28 sps:$4 sm:$0xff] (!%p163_p2)  }
   0x9   : > { %v4902_v50 = vld [vmem:[%s5709_s1 + $0x7c] ss:$28 sps:$4 sm:$0xff] (!%p163_p2)   ;;  %v4926_v58 = vld [vmem:[%s5709_s1 + $0xac] ss:$28 sps:$4 sm:$0xff] (!%p163_p2)   ;;  %v4931_v59 = vld [vmem:[%s5709_s1 + $0xb4] ss:$28 sps:$4 sm:$0xff] (!%p163_p2)  }
   0xa   : > { %v4918_v54 = vld [vmem:[%s5709_s1 + $0x78] ss:$28 sps:$4 sm:$0xff] (!%p163_p2)   ;;  %v4940_v61 = vld [vmem:[%s5709_s1 + $0xa8] ss:$28 sps:$4 sm:$0xff] (!%p163_p2)   ;;  %v4947_v63 = vld [vmem:[%s5709_s1 + $0xb0] ss:$28 sps:$4 sm:$0xff] (!%p163_p2)  }
   0xb   : > { %vm3275_vm1 = vcmask (!%p163_p2), 658432  }
   0xd   : > { %s5714_s16 = smov (!%p188_p3, %s3339_s16), 1 }
   0xe   : > { %s4478_s21 = smul.u32 1600, %s5714_s16  ;;  %s3901_s26 = sshll.u32 %s5714_s16, 5 }
   0xf   : > { %s5669_s28 = scalar_lea.vmem %s5712_s4, %s3901_s26 }
  0x10   : > { %s4818_s24 = scalar_lea.vmem %s5708_s0, %s4478_s21 }
  0x11   : > { %v4490_v2 = vld [vmem:[%s4818_s24 + $0x40] sm:$0xff]   ;;  %v4494_v6 = vld [vmem:[%s4818_s24 + $0x48] sm:$0xff]   ;;  %v4498_v10 = vld [vmem:[%s4818_s24 + $0x50] sm:$0xff]  }
  0x12   : > { %v4491_v3 = vld [vmem:[%s4818_s24 + $0xc0] sm:$0xff]   ;;  %3910 = vmatprep.subr.bf16.mxu0 %v4490_v2  ;;  %v4495_v7 = vld [vmem:[%s4818_s24 + $0xc8] sm:$0xff]   ;;  %v4499_v11 = vld [vmem:[%s4818_s24 + $0xd0] sm:$0xff]  }
  0x13   : > { %v4492_v4 = vld [vmem:[%s4818_s24] sm:$0xff]   ;;  %3950 = vmatprep.subr.bf16.mxu1 %v4491_v3  ;;  %v4496_v8 = vld [vmem:[%s4818_s24 + $0x8] sm:$0xff]   ;;  %v4500_v12 = vld [vmem:[%s4818_s24 + $0x10] sm:$0xff]  }
  0x14   : > { %v4493_v5 = vld [vmem:[%s4818_s24 + $0x80] sm:$0xff]   ;;  %3911 = vmatpush3.bf16.msra.mxu0 %v4492_v4  ;;  %v4497_v9 = vld [vmem:[%s4818_s24 + $0x88] sm:$0xff]   ;;  %v4501_v13 = vld [vmem:[%s4818_s24 + $0x90] sm:$0xff]  }
  0x15   : > { %3951 = vmatpush3.bf16.msra.mxu1 %v4493_v5  ;;  %3912 = vmatprep.subr.bf16.mxu0 %v4494_v6  ;;  %v4502_v14 = vld [vmem:[%s4818_s24 + $0x58] sm:$0xff]   ;;  %v4506_v18 = vld [vmem:[%s4818_s24 + $0x60] sm:$0xff]   ;;  %v4510_v23 = vld [vmem:[%s4818_s24 + $0x68] sm:$0xff]  }
  0x16   : > { %3952 = vmatprep.subr.bf16.mxu1 %v4495_v7  ;;  %v4503_v15 = vld [vmem:[%s4818_s24 + $0xd8] sm:$0xff]   ;;  %v4507_v19 = vld [vmem:[%s4818_s24 + $0xe0] sm:$0xff]   ;;  %v4511_v24 = vld [vmem:[%s4818_s24 + $0xe8] sm:$0xff]  }
  0x17   : > { %v4504_v16 = vld [vmem:[%s4818_s24 + $0x18] sm:$0xff]   ;;  %v4508_v20 = vld [vmem:[%s4818_s24 + $0x20] sm:$0xff]   ;;  %v4512_v25 = vld [vmem:[%s4818_s24 + $0x28] sm:$0xff]  }
  0x18   : > { %3913 = vmatpush3.bf16.msra.mxu0 %v4496_v8  ;;  %v4505_v17 = vld [vmem:[%s4818_s24 + $0x98] sm:$0xff]   ;;  %v4509_v22 = vld [vmem:[%s4818_s24 + $0xa0] sm:$0xff]   ;;  %v4513_v26 = vld [vmem:[%s4818_s24 + $0xa8] sm:$0xff]  }
  0x19   : > { %3953 = vmatpush3.bf16.msra.mxu1 %v4497_v9  ;;  %3914 = vmatprep.subr.bf16.mxu0 %v4498_v10  ;;  %v4514_v27 = vld [vmem:[%s4818_s24 + $0x70] sm:$0xff]   ;;  %v4518_v31 = vld [vmem:[%s4818_s24 + $0x78] sm:$0xff]   ;;  %v4528_v38 = vld [vmem:[%s4818_s24 + $0x140] sm:$0xff]  }
  0x1a   : > { %3954 = vmatprep.subr.bf16.mxu1 %v4499_v11  ;;  %v4515_v28 = vld [vmem:[%s4818_s24 + $0xf0] sm:$0xff]   ;;  %v4519_v32 = vld [vmem:[%s4818_s24 + $0xf8] sm:$0xff]   ;;  %v4529_v40 = vld [vmem:[%s4818_s24 + $0x100] sm:$0xff]  }
  0x1b   : > { %v4516_v29 = vld [vmem:[%s4818_s24 + $0x30] sm:$0xff]   ;;  %v4520_v34 = vld [vmem:[%s4818_s24 + $0x38] sm:$0xff]   ;;  %v4530_v41 = vld [vmem:[%s4818_s24 + $0x148] sm:$0xff]  }
  0x1c   : > { %3915 = vmatpush3.bf16.msra.mxu0 %v4500_v12  ;;  %v4517_v30 = vld [vmem:[%s4818_s24 + $0xb0] sm:$0xff]   ;;  %v4521_v36 = vld [vmem:[%s4818_s24 + $0xb8] sm:$0xff]   ;;  %v4531_v42 = vld [vmem:[%s4818_s24 + $0x108] sm:$0xff]  }
  0x1d   : > { %3955 = vmatpush3.bf16.msra.mxu1 %v4501_v13  ;;  %3916 = vmatprep.subr.bf16.mxu0 %v4502_v14  ;;  %v4536_v43 = vld [vmem:[%s4818_s24 + $0x180] sm:$0xff]   ;;  %v4539_v44 = vld [vmem:[%s4818_s24 + $0x150] sm:$0xff]   ;;  %v4541_v48 = vld [vmem:[%s4818_s24 + $0x158] sm:$0xff]  }
  0x1e   : > { %3956 = vmatprep.subr.bf16.mxu1 %v4503_v15  ;;  %v4540_v47 = vld [vmem:[%s4818_s24 + $0x110] sm:$0xff]   ;;  %v4542_v51 = vld [vmem:[%s4818_s24 + $0x118] sm:$0xff]   ;;  %v4549_v53 = vld [vmem:[%s4818_s24 + $0x160] sm:$0xff]  }
  0x1f   : > { %v4550_v55 = vld [vmem:[%s4818_s24 + $0x120] sm:$0xff]   ;;  %v4557_v56 = vld [vmem:[%s4818_s24 + $0x188] sm:$0xff]   ;;  %v4560_v62 = vld [vmem:[%s4818_s24 + $0x170] sm:$0xff]  }
  0x20   : > { %3917 = vmatpush3.bf16.msra.mxu0 %v4504_v16  ;;  %v4551_v57 = vld [vmem:[%s4818_s24 + $0x168] sm:$0xff]   ;;  %v4561_v2 = vld [vmem:[%s4818_s24 + $0x130] sm:$0xff]   ;;  %v4562_v3 = vld [vmem:[%s4818_s24 + $0x178] sm:$0xff]  }
  0x21   : > { %3957 = vmatpush3.bf16.msra.mxu1 %v4505_v17  ;;  %3918 = vmatprep.subr.bf16.mxu0 %v4506_v18  ;;  %v4552_v60 = vld [vmem:[%s4818_s24 + $0x128] sm:$0xff]   ;;  %v4568_v4 = vld [vmem:[%s4818_s24 + $0x250] sm:$0xff]   ;;  %v4563_v7 = vld [vmem:[%s4818_s24 + $0x138] sm:$0xff]  }
  0x22   : > { %3958 = vmatprep.subr.bf16.mxu1 %v4507_v19  ;;  %v4955_v5 = vld [vmem:[%s5709_s1 + $0x14] ss:$28 sps:$4 sm:$0xff]   ;;  %v4573_v13 = vld [vmem:[%s4818_s24 + $0x258] sm:$0xff]   ;;  %v4986_v15 = vld [vmem:[%s5709_s1 + $0x4c] ss:$28 sps:$4 sm:$0xff]  }
  0x23   : > { %v4960_v6 = vld [vmem:[%s5709_s1 + $0x18] ss:$28 sps:$4 sm:$0xff]   ;;  %v4968_v8 = vld [vmem:[%s5709_s1 + $0x10] ss:$28 sps:$4 sm:$0xff]   ;;  %v4579_v18 = vld [vmem:[%s4818_s24 + $0x260] sm:$0xff]  }
  0x24   : > { %3919 = vmatpush3.bf16.msra.mxu0 %v4508_v20  ;;  %v4570_v9 = vld [vmem:[%s4818_s24 + $0x1d0] sm:$0xff]   ;;  %v4574_v14 = vld [vmem:[%s4818_s24 + $0x1d8] sm:$0xff]   ;;  %v4581_v19 = vld [vmem:[%s4818_s24 + $0x1e0] sm:$0xff]  }
  0x25   : > { %3959 = vmatpush3.bf16.msra.mxu1 %v4509_v22  ;;  %3920 = vmatprep.subr.bf16.mxu0 %v4510_v23  ;;  %v4977_v10 = vld [vmem:[%s5709_s1 + $0x50] ss:$28 sps:$4 sm:$0xff]   ;;  %v4575_v16 = vld [vmem:[%s4818_s24 + $0x218] sm:$0xff]   ;;  %v4999_v20 = vld [vmem:[%s5709_s1 + $0x48] ss:$28 sps:$4 sm:$0xff]  }
  0x26   : > { %3960 = vmatprep.subr.bf16.mxu1 %v4511_v24  ;;  %v4571_v11 = vld [vmem:[%s4818_s24 + $0x210] sm:$0xff]   ;;  %v4576_v17 = vld [vmem:[%s4818_s24 + $0x198] sm:$0xff]   ;;  %v4582_v21 = vld [vmem:[%s4818_s24 + $0x220] sm:$0xff]  }
  0x27   : > { %v4572_v12 = vld [vmem:[%s4818_s24 + $0x190] sm:$0xff]   ;;  %v4583_v22 = vld [vmem:[%s4818_s24 + $0x1a0] sm:$0xff]   ;;  %v4585_v23 = vld [vmem:[%s4818_s24 + $0x1e8] sm:$0xff]  }
  0x28   : > { %3921 = vmatpush3.bf16.msra.mxu0 %v4512_v25  ;;  %v4584_v24 = vld [vmem:[%s4818_s24 + $0x268] sm:$0xff]  }
  0x29   : > { %3961 = vmatpush3.bf16.msra.mxu1 %v4513_v26  ;;  %3922 = vmatprep.subr.bf16.mxu0 %v4514_v27  ;;  %v4586_v25 = vld [vmem:[%s4818_s24 + $0x228] sm:$0xff]   ;;  %v5010_v26 = vld [vmem:[%s5709_s1 + $0x84] ss:$28 sps:$4 sm:$0xff]  }
  0x2a   : > { %3962 = vmatprep.subr.bf16.mxu1 %v4515_v28  ;;  %v4587_v27 = vld [vmem:[%s4818_s24 + $0x1a8] sm:$0xff]   ;;  %v4590_v28 = vld [vmem:[%s4818_s24 + $0x270] sm:$0xff]  }
  0x2c   : > { %3923 = vmatpush3.bf16.msra.mxu0 %v4516_v29  ;;  %v4592_v29 = vld [vmem:[%s4818_s24 + $0x1f0] sm:$0xff]  }
  0x2d   : > { %3963 = vmatpush3.bf16.msra.mxu1 %v4517_v30  ;;  %3924 = vmatprep.subr.bf16.mxu0 %v4518_v31  ;;  %v5019_v30 = vld [vmem:[%s5709_s1 + $0x80] ss:$28 sps:$4 sm:$0xff]   ;;  %v4593_v31 = vld [vmem:[%s4818_s24 + $0x230] sm:$0xff]  }
  0x2e   : > { %3964 = vmatprep.subr.bf16.mxu1 %v4519_v32  ;;  %v4594_v32 = vld [vmem:[%s4818_s24 + $0x1b0] sm:$0xff]  }
  0x30   : > { %3925 = vmatpush3.bf16.msra.mxu0 %v4520_v34  ;;  %v5026_v34 = vld [vmem:[%s5709_s1 + $0x88] ss:$28 sps:$4 sm:$0xff]  }
  0x31   : > { %3965 = vmatpush3.bf16.msra.mxu1 %v4521_v36  ;;  %3990 = vmatprep.subr.bf16.mxu0 %v4528_v38  ;;  %v4596_v36 = vld [vmem:[%s4818_s24 + $0x278] sm:$0xff]  }
  0x32   : > { %4414 = vmatprep.subr.bf16.mxu1 %v4536_v43  ;;  %v5034_v38 = vld [vmem:[%s5709_s1 + $0xc0] ss:$28 sps:$4 sm:$0xff]  }
  0x33   : > { %833 = vmatmul.mubr.bf16.vlgmr.msra.gmra.mrb[0].mxu0 %v4853_v33 }
  0x34   : > { %898 = vmatmul.mubr.bf16.vlgmr.msra.gmra.mrb[0].mxu1 %v4859_v35  ;;  %3991 = vmatpush3.bf16.msra.mxu0 %v4529_v40  ;;  %v4598_v40 = vld [vmem:[%s4818_s24 + $0x1f8] sm:$0xff]  }
  0x35   : > { %3992 = vmatprep.subr.bf16.mxu0 %v4530_v41  ;;  %840 = vmatprep.mubr.bf16.mxu0 %v4865_v37  ;;  %v4599_v41 = vld [vmem:[%s4818_s24 + $0x238] sm:$0xff]  }
  0x36   : > { %905 = vmatprep.mubr.bf16.mxu1 %v4871_v39  ;;  %4415 = vmatpush3.bf16.msra.mxu1 %v4536_v43  ;;  %v5045_v43 = vld [vmem:[%s5709_s1 + $0xbc] ss:$28 sps:$4 sm:$0xff]  }
  0x37   : > { %4416 = vmatprep.subr.bf16.mxu1 %v4557_v56 }
  0x38   : > { %3993 = vmatpush3.bf16.msra.mxu0 %v4531_v42  ;;  %v4600_v42 = vld [vmem:[%s4818_s24 + $0x1b8] sm:$0xff]  }
  0x39   : > { %3994 = vmatprep.subr.bf16.mxu0 %v4539_v44  ;;  %v4603_v44 = vld [vmem:[%s4818_s24 + $0x280] sm:$0xff]  }
  0x3a   : > { %4417 = vmatpush3.bf16.msra.mxu1 %v4557_v56  ;;  %v4610_v56 = vld [vmem:[%s4818_s24 + $0x248] sm:$0xff]  }
  0x3b   : > { %841 = vmatmul.mubr.bf16.gmra.mrb[4].mxu0 %v4885_v45  ;;  %4076 = vmatprep.subr.bf16.mxu1 %v4568_v4  ;;  %v4617_v4 = vld [vmem:[%s4818_s24 + $0x2e0] sm:$0xff]  }
  0x3c   : > { %906 = vmatmul.mubr.bf16.gmra.mrb[4].mxu1 %v4890_v46  ;;  %3995 = vmatpush3.bf16.msra.mxu0 %v4540_v47  ;;  %v5052_v47 = vld [vmem:[%s5709_s1 + $0xb8] ss:$28 sps:$4 sm:$0xff]  }
  0x3d   : > { %3996 = vmatprep.subr.bf16.mxu0 %v4541_v48  ;;  %848 = vmatprep.mubr.bf16.mxu0 %v4897_v49  ;;  %v4605_v48 = vld [vmem:[%s4818_s24 + $0x200] sm:$0xff]  }
  0x3e   : > { %913 = vmatprep.mubr.bf16.mxu1 %v4902_v50 }
  0x40   : > { %3997 = vmatpush3.bf16.msra.mxu0 %v4542_v51  ;;  %v4606_v51 = vld [vmem:[%s4818_s24 + $0x240] sm:$0xff]  }
  0x41   : > { %3998 = vmatprep.subr.bf16.mxu0 %v4549_v53  ;;  %v4607_v53 = vld [vmem:[%s4818_s24 + $0x1c0] sm:$0xff]  }
  0x43   : > { %849 = vmatmul.mubr.bf16.gmra.mrb[8].mxu0 %v4911_v52 }
  0x44   : > { %914 = vmatmul.mubr.bf16.gmra.mrb[8].mxu1 %v4918_v54  ;;  %3999 = vmatpush3.bf16.msra.mxu0 %v4550_v55  ;;  %v4609_v55 = vld [vmem:[%s4818_s24 + $0x208] sm:$0xff]  }
  0x45   : > { %4000 = vmatprep.subr.bf16.mxu0 %v4551_v57  ;;  %856 = vmatprep.mubr.bf16.mxu0 %v4926_v58  ;;  %v4611_v57 = vld [vmem:[%s4818_s24 + $0x1c8] sm:$0xff]  }
  0x46   : > { %921 = vmatprep.mubr.bf16.mxu1 %v4931_v59 }
  0x48   : > { %4001 = vmatpush3.bf16.msra.mxu0 %v4552_v60  ;;  %v4612_v60 = vld [vmem:[%s4818_s24 + $0x2d0] sm:$0xff]  }
  0x49   : > { %4002 = vmatprep.subr.bf16.mxu0 %v4560_v62  ;;  %v4613_v62 = vld [vmem:[%s4818_s24 + $0x290] sm:$0xff]  }
  0x4b   : > { %857 = vmatmul.mubr.bf16.gmra.mrb[12].mxu0 %v4940_v61 }
  0x4c   : > { %922 = vmatmul.mubr.bf16.gmra.mrb[12].mxu1 %v4947_v63  ;;  %4003 = vmatpush3.bf16.msra.mxu0 %v4561_v2  ;;  %v4614_v2 = vld [vmem:[%s4818_s24 + $0x2d8] sm:$0xff]  }
  0x4d   : > { %4004 = vmatprep.subr.bf16.mxu0 %v4562_v3  ;;  %962 = vmatprep.mubr.bf16.mxu0 %v4955_v5  ;;  %v4616_v3 = vld [vmem:[%s4818_s24 + $0x310] sm:$0xff]  }
  0x4e   : > { %4418 = vmatprep.mubr.msk.bf16.mxu1 %vm787_vm0, %v4960_v6 }
  0x50   : > { %4005 = vmatpush3.bf16.msra.mxu0 %v4563_v7  ;;  %v4618_v7 = vld [vmem:[%s4818_s24 + $0x2a0] sm:$0xff]  }
  0x51   : > { %4036 = vmatprep.subr.bf16.mxu0 %v4570_v9  ;;  %v4622_v9 = vld [vmem:[%s4818_s24 + $0x2b0] sm:$0xff]  }
  0x53   : > { %963 = vmatmul.mubr.bf16.vlgmr.msra.gmra.mrb[16].mxu0 %v4968_v8 }
  0x54   : > { %4419 = vmatmul.mubr.msk.bf16.vlgmr.msra.gmra.mrb[16].mxu1 %vm787_vm0, %v4977_v10  ;;  %4037 = vmatpush3.bf16.msra.mxu0 %v4572_v12  ;;  %v4633_v12 = vld [vmem:[%s4818_s24 + $0x320] sm:$0xff]  }
  0x55   : > { %4077 = vmatpush3.bf16.msra.mxu1 %v4571_v11  ;;  %4038 = vmatprep.subr.bf16.mxu0 %v4574_v14  ;;  %v4630_v11 = vld [vmem:[%s4818_s24 + $0x3e0] sm:$0xff]   ;;  %v4637_v14 = vld [vmem:[%s4818_s24 + $0x328] sm:$0xff]  }
  0x56   : > { %4078 = vmatprep.subr.bf16.mxu1 %v4573_v13  ;;  %970 = vmatprep.mubr.bf16.mxu0 %v4986_v15  ;;  %v4634_v13 = vld [vmem:[%s4818_s24 + $0x3e8] sm:$0xff]  }
  0x57   : > { %4422 = vmatprep.mubr.msk.bf16.mxu1 %vm787_vm0, %v5026_v34 }
  0x58   : > { %4039 = vmatpush3.bf16.msra.mxu0 %v4576_v17  ;;  %v4640_v17 = vld [vmem:[%s4818_s24 + $0x370] sm:$0xff]  }
  0x59   : > { %4079 = vmatpush3.bf16.msra.mxu1 %v4575_v16  ;;  %4040 = vmatprep.subr.bf16.mxu0 %v4581_v19  ;;  %v200_v16 = vld [vmem:[%s5710_s2 + $0x8] sm:$0xff]  ;;  %v4641_v19 = vld [vmem:[%s4818_s24 + $0x330] sm:$0xff]  }
  0x5a   : > { %4080 = vmatprep.subr.bf16.mxu1 %v4579_v18  ;;  %v4638_v18 = vld [vmem:[%s4818_s24 + $0x3f0] sm:$0xff]  }
  0x5b   : > { %971 = vmatmul.mubr.bf16.gmra.mrb[20].mxu0 %v4999_v20 }
  0x5c   : > { %4041 = vmatpush3.bf16.msra.mxu0 %v4583_v22  ;;  %978 = vmatprep.mubr.bf16.mxu0 %v5010_v26  ;;  %v4642_v22 = vld [vmem:[%s4818_s24 + $0x3f8] sm:$0xff]  }
  0x5d   : > { %4081 = vmatpush3.bf16.msra.mxu1 %v4582_v21  ;;  %4042 = vmatprep.subr.bf16.mxu0 %v4585_v23  ;;  %v4644_v21 = vld [vmem:[%s4818_s24 + $0x378] sm:$0xff]  }
  0x5e   : > { %4082 = vmatprep.subr.bf16.mxu1 %v4584_v24  ;;  %4423 = vmatmul.mubr.msk.bf16.gmra.mrb[20].mxu1 %vm787_vm0, %v5034_v38  ;;  %v4643_v23 = vld [vmem:[%s4818_s24 + $0x3b8] sm:$0xff]  }
  0x5f   : > { %1662 = vmatprep.mubr.bf16.mxu1 %v4808_v1  ;;  %v4608_v1 = vld [vmem:[%s4818_s24 + $0x288] sm:$0xff]   ;;  %v4645_v24 = vld [vmem:[%s4818_s24 + $0x338] sm:$0xff]  }
  0x60   : > { %4043 = vmatpush3.bf16.msra.mxu0 %v4587_v27  ;;  %v204_v27 = vld [vmem:[%s5710_s2 + $0x28] sm:$0xff] }
  0x61   : > { %4083 = vmatpush3.bf16.msra.mxu1 %v4586_v25  ;;  %4044 = vmatprep.subr.bf16.mxu0 %v4592_v29  ;;  %v4646_v25 = vld [vmem:[%s4818_s24 + $0x400] sm:$0xff]  }
  0x62   : > { %4084 = vmatprep.subr.bf16.mxu1 %v4590_v28  ;;  %v4648_v28 = vld [vmem:[%s4818_s24 + $0x380] sm:$0xff]  }
  0x63   : > { %979 = vmatmul.mubr.bf16.gmra.mrb[24].mxu0 %v5019_v30  ;;  %v4649_v29 = vld [vmem:[%s4818_s24 + $0x340] sm:$0xff]  }
  0x64   : > { %4045 = vmatpush3.bf16.msra.mxu0 %v4594_v32  ;;  %986 = vmatprep.mubr.bf16.mxu0 %v5045_v43  ;;  %v5156_v32 = vld [vmem:[%s5709_s1 + $0xc] ss:$28 sps:$4 sm:$0xff]  }
  0x65   : > { %4085 = vmatpush3.bf16.msra.mxu1 %v4593_v31  ;;  %4046 = vmatprep.subr.bf16.mxu0 %v4598_v40  ;;  %v206_v31 = vld [vmem:[%s5710_s2 + $0x38] sm:$0xff]  ;;  %v4653_v40 = vld [vmem:[%s4818_s24 + $0x348] sm:$0xff]  }
  0x66   : > { %4086 = vmatprep.subr.bf16.mxu1 %v4596_v36  ;;  %v4652_v36 = vld [vmem:[%s4818_s24 + $0x388] sm:$0xff]  }
  0x68   : > { %4047 = vmatpush3.bf16.msra.mxu0 %v4600_v42  ;;  %v207_v42 = vld [vmem:[%s5711_s3] sm:$0xff] }
  0x69   : > { %4087 = vmatpush3.bf16.msra.mxu1 %v4599_v41  ;;  %4048 = vmatprep.subr.bf16.mxu0 %v4605_v48  ;;  %v4651_v41 = vld [vmem:[%s4818_s24 + $0x3c8] sm:$0xff]   ;;  %v4656_v48 = vld [vmem:[%s4818_s24 + $0x390] sm:$0xff]  }
  0x6a   : > { %4088 = vmatprep.subr.bf16.mxu1 %v4603_v44  ;;  %v208_v44 = vld [vmem:[%s5711_s3 + $0x8] sm:$0xff] }
  0x6b   : > { %987 = vmatmul.mubr.bf16.gmra.mrb[28].mxu0 %v5052_v47 }
  0x6c   : > { %4049 = vmatpush3.bf16.msra.mxu0 %v4607_v53  ;;  %1597 = vmatprep.mubr.bf16.mxu0 %v4803_v0  ;;  %v4615_v0 = vld [vmem:[%s4818_s24 + $0x298] sm:$0xff]   ;;  %v209_v53 = vld [vmem:[%s5711_s3 + $0x10] sm:$0xff] }
  0x6d   : > { %4089 = vmatpush3.bf16.msra.mxu1 %v4606_v51  ;;  %4050 = vmatprep.subr.bf16.mxu0 %v4609_v55  ;;  %v4655_v51 = vld [vmem:[%s4818_s24 + $0x3d0] sm:$0xff]   ;;  %v210_v55 = vld [vmem:[%s5711_s3 + $0x18] sm:$0xff] }
  0x6e   : > { %4090 = vmatprep.subr.bf16.mxu1 %v4608_v1  ;;  %v4660_v1 = vld [vmem:[%s4818_s24 + $0x398] sm:$0xff]  }
  0x70   : > { %4051 = vmatpush3.bf16.msra.mxu0 %v4611_v57  ;;  %v4659_v57 = vld [vmem:[%s4818_s24 + $0x3d8] sm:$0xff]  }
  0x71   : > { %4091 = vmatpush3.bf16.msra.mxu1 %v4610_v56  ;;  %4116 = vmatprep.subr.bf16.mxu0 %v4612_v60  ;;  %v4658_v56 = vld [vmem:[%s4818_s24 + $0x418] sm:$0xff]  }
  0x72   : > { %4426 = vmatprep.subr.bf16.mxu1 %v4616_v3  ;;  %v4661_v60 = vld [vmem:[%s4818_s24 + $0x358] sm:$0xff]  }
  0x73   : > { %1598 = vmatmul.mubr.bf16.vlgmr.msra.gmra.mrb[32].mxu0 %v4853_v33  ;;  %v4619_v33 = vld [vmem:[%s4818_s24 + $0x2e8] sm:$0xff]  }
  0x74   : > { %1663 = vmatmul.mubr.bf16.vlgmr.msra.gmra.mrb[24].mxu1 %v4859_v35  ;;  %4117 = vmatpush3.bf16.msra.mxu0 %v4613_v62  ;;  %v4620_v35 = vld [vmem:[%s4818_s24 + $0x2a8] sm:$0xff]   ;;  %v5189_v62 = vld [vmem:[%s5709_s1 + $0x4] ss:$28 sps:$4 sm:$0xff]  }
  0x75   : > { %4118 = vmatprep.subr.bf16.mxu0 %v4614_v2  ;;  %1670 = vmatprep.mubr.bf16.mxu1 %v4871_v39  ;;  %v4625_v39 = vld [vmem:[%s4818_s24 + $0x318] sm:$0xff]   ;;  %v4662_v2 = vld [vmem:[%s4818_s24 + $0x460] sm:$0xff]  }
  0x76   : > { %1605 = vmatprep.mubr.bf16.mxu0 %v4865_v37  ;;  %4427 = vmatpush3.bf16.msra.mxu1 %v4616_v3  ;;  %v4621_v37 = vld [vmem:[%s4818_s24 + $0x2f0] sm:$0xff]   ;;  %v4666_v3 = vld [vmem:[%s4818_s24 + $0x4a0] sm:$0xff]  }
  0x77   : > { %4428 = vmatprep.subr.bf16.mxu1 %v4625_v39 }
  0x78   : > { %4119 = vmatpush3.bf16.msra.mxu0 %v4615_v0  ;;  %v212_v0 = vld [vmem:[%s5711_s3 + $0x28] sm:$0xff] }
  0x79   : > { %4120 = vmatprep.subr.bf16.mxu0 %v4617_v4  ;;  %v4663_v4 = vld [vmem:[%s4818_s24 + $0x420] sm:$0xff]  }
  0x7a   : > { %4429 = vmatpush3.bf16.msra.mxu1 %v4625_v39  ;;  %v5209_v39 = vld [vmem:[%s5709_s1] ss:$28 sps:$4 sm:$0xff]  }
  0x7b   : > { %1606 = vmatmul.mubr.bf16.gmra.mrb[36].mxu0 %v4885_v45  ;;  %v4623_v45 = vld [vmem:[%s4818_s24 + $0x2f8] sm:$0xff]   ;;  %4202 = vmatprep.subr.bf16.mxu1 %v4630_v11  ;;  %v5225_v11 = vld [vmem:[%s5709_s1 + $0x44] ss:$28 sps:$4 sm:$0xff]  }
  0x7c   : > { %1671 = vmatmul.mubr.bf16.gmra.mrb[28].mxu1 %v4890_v46  ;;  %4121 = vmatpush3.bf16.msra.mxu0 %v4618_v7  ;;  %v4624_v46 = vld [vmem:[%s4818_s24 + $0x2b8] sm:$0xff]   ;;  %v4664_v7 = vld [vmem:[%s4818_s24 + $0x468] sm:$0xff]  }
  0x7d   : > { %4122 = vmatprep.subr.bf16.mxu0 %v4619_v33  ;;  %1678 = vmatprep.mubr.bf16.mxu1 %v4902_v50  ;;  %v4627_v50 = vld [vmem:[%s4818_s24 + $0x2c0] sm:$0xff]   ;;  %v213_v33 = vld [vmem:[%s5711_s3 + $0x30] sm:$0xff] }
  0x7e   : > { %1613 = vmatprep.mubr.bf16.mxu0 %v4897_v49  ;;  %v4626_v49 = vld [vmem:[%s4818_s24 + $0x300] sm:$0xff]  }
  0x80   : > { %4123 = vmatpush3.bf16.msra.mxu0 %v4620_v35  ;;  %v4665_v35 = vld [vmem:[%s4818_s24 + $0x428] sm:$0xff]  }
  0x81   : > { %4124 = vmatprep.subr.bf16.mxu0 %v4621_v37  ;;  %v4675_v37 = vld [vmem:[%s4818_s24 + $0x4a8] sm:$0xff]  }
  0x83   : > { %1614 = vmatmul.mubr.bf16.gmra.mrb[40].mxu0 %v4911_v52  ;;  %v4628_v52 = vld [vmem:[%s4818_s24 + $0x308] sm:$0xff]  }
  0x84   : > { %1679 = vmatmul.mubr.bf16.gmra.mrb[32].mxu1 %v4918_v54  ;;  %4125 = vmatpush3.bf16.msra.mxu0 %v4622_v9  ;;  %v4629_v54 = vld [vmem:[%s4818_s24 + $0x2c8] sm:$0xff]  }
  0x85   : > { %4126 = vmatprep.subr.bf16.mxu0 %v4623_v45  ;;  %1686 = vmatprep.mubr.bf16.mxu1 %v4931_v59  ;;  %v4632_v59 = vld [vmem:[%s4818_s24 + $0x360] sm:$0xff]   ;;  %v214_v45 = vld [vmem:[%s5711_s3 + $0x38] sm:$0xff] }
  0x86   : > { %1621 = vmatprep.mubr.bf16.mxu0 %v4926_v58  ;;  %v4631_v58 = vld [vmem:[%s4818_s24 + $0x3a0] sm:$0xff]  }
  0x87   : > { %v5216_v9 = vld [vmem:[%s5709_s1 + $0x8] ss:$28 sps:$4 sm:$0xff]  }
  0x88   : > { %4127 = vmatpush3.bf16.msra.mxu0 %v4624_v46  ;;  %v4667_v46 = vld [vmem:[%s4818_s24 + $0x470] sm:$0xff]  }
  0x89   : > { %4128 = vmatprep.subr.bf16.mxu0 %v4626_v49  ;;  %v5232_v49 = vld [vmem:[%s5709_s1 + $0x3c] ss:$28 sps:$4 sm:$0xff]  }
  0x8b   : > { %1622 = vmatmul.mubr.bf16.gmra.mrb[44].mxu0 %v4940_v61  ;;  %v199_v61 = vld [vmem:[%s5710_s2] sm:$0xff] }
  0x8c   : > { %1687 = vmatmul.mubr.bf16.gmra.mrb[36].mxu1 %v4947_v63  ;;  %4129 = vmatpush3.bf16.msra.mxu0 %v4627_v50  ;;  %v4636_v63 = vld [vmem:[%s4818_s24 + $0x368] sm:$0xff]   ;;  %v4668_v50 = vld [vmem:[%s4818_s24 + $0x430] sm:$0xff]  }
  0x8d   : > { %4130 = vmatprep.subr.bf16.mxu0 %v4628_v52  ;;  %4430 = vmatprep.mubr.msk.bf16.mxu1 %vm787_vm0, %v4960_v6  ;;  %v201_v6 = vld [vmem:[%s5710_s2 + $0x10] sm:$0xff]  ;;  %v4669_v52 = vld [vmem:[%s4818_s24 + $0x478] sm:$0xff]  }
  0x8e   : > { %1727 = vmatprep.mubr.bf16.mxu0 %v4955_v5  ;;  %1062 = vperm.xlu0 %4488, %v199_v61   ;;  %v4635_v5 = vld [vmem:[%s4818_s24 + $0x3a8] sm:$0xff]   ;;  %v5254_v61 = vld [vmem:[%s5709_s1 + $0x7c] ss:$28 sps:$4 sm:$0xff]  }
  0x8f   : > { %1072 = vperm.xlu1 %4489, %v201_v6   ;;  %v4672_v6 = vld [vmem:[%s4818_s24 + $0x440] sm:$0xff]  }
  0x90   : > { %4131 = vmatpush3.bf16.msra.mxu0 %v4629_v54  ;;  %v4680_v54 = vld [vmem:[%s4818_s24 + $0x570] sm:$0xff]  }
  0x91   : > { %4162 = vmatprep.subr.bf16.mxu0 %v4632_v59  ;;  %v5241_v59 = vld [vmem:[%s5709_s1 + $0x38] ss:$28 sps:$4 sm:$0xff]  }
  0x92   : > { %1067 = vperm.xlu0 %4488, %v200_v16   ;;  %v5275_v16 = vld [vmem:[%s5709_s1 + $0x78] ss:$28 sps:$4 sm:$0xff]  }
  0x93   : > { %1728 = vmatmul.mubr.bf16.vlgmr.msra.gmra.mrb[48].mxu0 %v4968_v8  ;;  %v4639_v8 = vld [vmem:[%s4818_s24 + $0x3b0] sm:$0xff]  }
  0x94   : > { %4431 = vmatmul.mubr.msk.bf16.vlgmr.msra.gmra.mrb[40].mxu1 %vm787_vm0, %v4977_v10  ;;  %4163 = vmatpush3.bf16.msra.mxu0 %v4633_v12  ;;  %v202_v10 = vld [vmem:[%s5710_s2 + $0x18] sm:$0xff] }
  0x95   : > { %4203 = vmatpush3.bf16.msra.mxu1 %v4631_v58  ;;  %4164 = vmatprep.subr.bf16.mxu0 %v4636_v63  ;;  %v5247_v58 = vld [vmem:[%s5709_s1 + $0x40] ss:$28 sps:$4 sm:$0xff]  }
  0x96   : > { %4204 = vmatprep.subr.bf16.mxu1 %v4634_v13  ;;  %1735 = vmatprep.mubr.bf16.mxu0 %v4986_v15  ;;  %v203_v15 = vld [vmem:[%s5710_s2 + $0x20] sm:$0xff]  ;;  %v4670_v12 = vld [vmem:[%s4818_s24 + $0x438] sm:$0xff]   ;;  %v5261_v13 = vld [vmem:[%s5709_s1 + $0x74] ss:$28 sps:$4 sm:$0xff]  }
  0x97   : > { %4434 = vmatprep.mubr.msk.bf16.mxu1 %vm787_vm0, %v5026_v34  ;;  %1077 = vperm.xlu1 %4489, %v202_v10   ;;  %v4671_v63 = vld [vmem:[%s4818_s24 + $0x480] sm:$0xff]   ;;  %v5289_v10 = vld [vmem:[%s5709_s1 + $0xac] ss:$28 sps:$4 sm:$0xff]  }
  0x98   : > { %4165 = vmatpush3.bf16.msra.mxu0 %v4637_v14  ;;  %1082 = vperm.xlu0 %4488, %v203_v15   ;;  %v5269_v14 = vld [vmem:[%s5709_s1 + $0x70] ss:$28 sps:$4 sm:$0xff]   ;;  %v5297_v15 = vld [vmem:[%s5709_s1 + $0xa8] ss:$28 sps:$4 sm:$0xff]  }
  0x99   : > { %4205 = vmatpush3.bf16.msra.mxu1 %v4635_v5  ;;  %4166 = vmatprep.subr.bf16.mxu0 %v4640_v17  ;;  %v4673_v5 = vld [vmem:[%s4818_s24 + $0x488] sm:$0xff]  }
  0x9a   : > { %4206 = vmatprep.subr.bf16.mxu1 %v4638_v18  ;;  %v4674_v17 = vld [vmem:[%s4818_s24 + $0x448] sm:$0xff]   ;;  %v5282_v18 = vld [vmem:[%s5709_s1 + $0xb4] ss:$28 sps:$4 sm:$0xff]  }
  0x9b   : > { %1736 = vmatmul.mubr.bf16.gmra.mrb[52].mxu0 %v4999_v20  ;;  %v205_v20 = vld [vmem:[%s5710_s2 + $0x30] sm:$0xff]  ;;  %1087 = vperm.xlu1 %4489, %v204_v27  }
  0x9c   : > { %4167 = vmatpush3.bf16.msra.mxu0 %v4641_v19  ;;  %1743 = vmatprep.mubr.bf16.mxu0 %v5010_v26  ;;  %v4647_v26 = vld [vmem:[%s4818_s24 + $0x3c0] sm:$0xff]   ;;  %v4677_v19 = vld [vmem:[%s4818_s24 + $0x450] sm:$0xff]  }
  0x9d   : > { %4207 = vmatpush3.bf16.msra.mxu1 %v4639_v8  ;;  %4168 = vmatprep.subr.bf16.mxu0 %v4644_v21  ;;  %v4676_v8 = vld [vmem:[%s4818_s24 + $0x490] sm:$0xff]   ;;  %v4678_v21 = vld [vmem:[%s4818_s24 + $0x498] sm:$0xff]  }
  0x9e   : > { %4208 = vmatprep.subr.bf16.mxu1 %v4642_v22  ;;  %4435 = vmatmul.mubr.msk.bf16.gmra.mrb[44].mxu1 %vm787_vm0, %v5034_v38  ;;  %v4650_v38 = vld [vmem:[%s4818_s24 + $0x408] sm:$0xff]   ;;  %v5318_v27 = vld [vmem:[%s5709_s1 + $0x14] ss:$28 sps:$4 sm:$0xff]  }
  0x9f   : > { %1092 = vperm.xlu0 %4488, %v205_v20   ;;  %2355 = vmatprep.mubr.bf16.mxu1 %v5156_v32  ;;  %v5303_v22 = vld [vmem:[%s5709_s1 + $0xb0] ss:$28 sps:$4 sm:$0xff]  }
  0xa0   : > { %4169 = vmatpush3.bf16.msra.mxu0 %v4645_v24  ;;  %1097 = vperm.xlu1 %4489, %v206_v31   ;;  %v5310_v24 = vld [vmem:[%s5709_s1 + $0x18] ss:$28 sps:$4 sm:$0xff]   ;;  %v5328_v31 = vld [vmem:[%s5709_s1 + $0x10] ss:$28 sps:$4 sm:$0xff]  }
  0xa1   : > { %4209 = vmatpush3.bf16.msra.mxu1 %v4643_v23  ;;  %4170 = vmatprep.subr.bf16.mxu0 %v4648_v28  ;;  %v4679_v23 = vld [vmem:[%s4818_s24 + $0x458] sm:$0xff]   ;;  %v4681_v28 = vld [vmem:[%s4818_s24 + $0x530] sm:$0xff]  }
  0xa2   : > { %4210 = vmatprep.subr.bf16.mxu1 %v4646_v25  ;;  %v4682_v25 = vld [vmem:[%s4818_s24 + $0x4f0] sm:$0xff]  }
  0xa3   : > { %1744 = vmatmul.mubr.bf16.gmra.mrb[56].mxu0 %v5019_v30  ;;  %v4654_v30 = vld [vmem:[%s4818_s24 + $0x410] sm:$0xff]   ;;  %1110 = vperm.xlu0 %4488, %v207_v42   ;;  %v4688_v42 = vld [vmem:[%s4818_s24 + $0x580] sm:$0xff]  }
  0xa4   : > { %4171 = vmatpush3.bf16.msra.mxu0 %v4649_v29  ;;  %1751 = vmatprep.mubr.bf16.mxu0 %v5045_v43  ;;  %v4657_v43 = vld [vmem:[%s4818_s24 + $0x350] sm:$0xff]   ;;  %v4684_v29 = vld [vmem:[%s4818_s24 + $0x578] sm:$0xff]  }
  0xa5   : > { %4211 = vmatpush3.bf16.msra.mxu1 %v4647_v26  ;;  %4172 = vmatprep.subr.bf16.mxu0 %v4652_v36  ;;  %v4683_v20 = vld [vmem:[%s4818_s24 + $0x4b0] sm:$0xff]   ;;  %v4686_v26 = vld [vmem:[%s4818_s24 + $0x4f8] sm:$0xff]  }
  0xa6   : > { %4212 = vmatprep.subr.bf16.mxu1 %v4650_v38  ;;  %1115 = vperm.xlu1 %4489, %v208_v44   ;;  %v4685_v36 = vld [vmem:[%s4818_s24 + $0x538] sm:$0xff]   ;;  %v5335_v38 = vld [vmem:[%s5709_s1 + $0x50] ss:$28 sps:$4 sm:$0xff]  }
  0xa7   : > { %1120 = vperm.xlu0 %4488, %v209_v53   ;;  %v5345_v44 = vld [vmem:[%s5709_s1 + $0x4c] ss:$28 sps:$4 sm:$0xff]  }
  0xa8   : > { %4173 = vmatpush3.bf16.msra.mxu0 %v4653_v40  ;;  %v4687_v40 = vld [vmem:[%s4818_s24 + $0x4b8] sm:$0xff]   ;;  %v4692_v53 = vld [vmem:[%s4818_s24 + $0x588] sm:$0xff]  }
  0xa9   : > { %4213 = vmatpush3.bf16.msra.mxu1 %v4651_v41  ;;  %4174 = vmatprep.subr.bf16.mxu0 %v4656_v48  ;;  %v4690_v41 = vld [vmem:[%s4818_s24 + $0x500] sm:$0xff]  }
  0xaa   : > { %4214 = vmatprep.subr.bf16.mxu1 %v4654_v30  ;;  %1125 = vperm.xlu1 %4489, %v210_v55   ;;  %v4689_v48 = vld [vmem:[%s4818_s24 + $0x540] sm:$0xff]  }
  0xab   : > { %1752 = vmatmul.mubr.bf16.gmra.mrb[60].mxu0 %v5052_v47  ;;  %v211_v47 = vld [vmem:[%s5711_s3 + $0x20] sm:$0xff] }
  0xac   : > { %4175 = vmatpush3.bf16.msra.mxu0 %v4657_v43  ;;  %2290 = vmatprep.mubr.bf16.mxu0 %v5189_v62  ;;  %v4691_v30 = vld [vmem:[%s4818_s24 + $0x4c0] sm:$0xff]  }
  0xad   : > { %4215 = vmatpush3.bf16.msra.mxu1 %v4655_v51  ;;  %4176 = vmatprep.subr.bf16.mxu0 %v4660_v1  ;;  %v4694_v51 = vld [vmem:[%s4818_s24 + $0x508] sm:$0xff]   ;;  %v5365_v55 = vld [vmem:[%s5709_s1 + $0x84] ss:$28 sps:$4 sm:$0xff]  }
  0xae   : > { %4216 = vmatprep.subr.bf16.mxu1 %v4658_v56  ;;  %1130 = vperm.xlu0 %4488, %v211_v47   ;;  %v5357_v43 = vld [vmem:[%s5709_s1 + $0x48] ss:$28 sps:$4 sm:$0xff]   ;;  %v4698_v56 = vld [vmem:[%s4818_s24 + $0x510] sm:$0xff]  }
  0xaf   : > { %1135 = vperm.xlu1 %4489, %v212_v0   ;;  %v4693_v1 = vld [vmem:[%s4818_s24 + $0x548] sm:$0xff]   ;;  %v4699_v47 = vld [vmem:[%s4818_s24 + $0x4d0] sm:$0xff]   ;;  %v4700_v0 = vld [vmem:[%s4818_s24 + $0x598] sm:$0xff]  }
  0xb0   : > { %4177 = vmatpush3.bf16.msra.mxu0 %v4661_v60  ;;  %v5373_v60 = vld [vmem:[%s5709_s1 + $0xc0] ss:$28 sps:$4 sm:$0xff]  }
  0xb1   : > { %4217 = vmatpush3.bf16.msra.mxu1 %v4659_v57  ;;  %4242 = vmatprep.subr.bf16.mxu0 %v4662_v2  ;;  %v4696_v57 = vld [vmem:[%s4818_s24 + $0x590] sm:$0xff]  }
  0xb2   : > { %4438 = vmatprep.subr.bf16.mxu1 %v4666_v3  ;;  %1140 = vperm.xlu0 %4488, %v213_v33   ;;  %v4697_v2 = vld [vmem:[%s4818_s24 + $0x550] sm:$0xff]   ;;  %v5393_v33 = vld [vmem:[%s5709_s1 + $0xbc] ss:$28 sps:$4 sm:$0xff]  }
  0xb3   : > { %2291 = vmatmul.mubr.bf16.vlgmr.msra.gmra.mrb[64].mxu0 %v5209_v39  ;;  %1145 = vperm.xlu1 %4489, %v214_v45   ;;  %v4705_v45 = vld [vmem:[%s4818_s24 + $0x560] sm:$0xff]  }
  0xb4   : > { %2356 = vmatmul.mubr.bf16.vlgmr.msra.gmra.mrb[48].mxu1 %v5216_v9  ;;  %4243 = vmatpush3.bf16.msra.mxu0 %v4663_v4  ;;  %v5385_v4 = vld [vmem:[%s5709_s1 + $0x80] ss:$28 sps:$4 sm:$0xff]  }
  0xb5   : > { %4244 = vmatprep.subr.bf16.mxu0 %v4664_v7  ;;  %2363 = vmatprep.mubr.bf16.mxu1 %v5225_v11  ;;  %v4703_v7 = vld [vmem:[%s4818_s24 + $0x4d8] sm:$0xff]  }
  0xb6   : > { %4439 = vmatpush3.bf16.msra.mxu1 %v4666_v3  ;;  %2298 = vmatprep.mubr.bf16.mxu0 %v5232_v49  ;;  %v4702_v3 = vld [vmem:[%s4818_s24 + $0x518] sm:$0xff]  }
  0xb7   : > { %4440 = vmatprep.subr.bf16.mxu1 %v4675_v37 }
  0xb8   : > { %4245 = vmatpush3.bf16.msra.mxu0 %v4665_v35  ;;  %v4706_v35 = vld [vmem:[%s4818_s24 + $0x520] sm:$0xff]  }
  0xb9   : > { %4246 = vmatprep.subr.bf16.mxu0 %v4667_v46  ;;  %v4707_v46 = vld [vmem:[%s4818_s24 + $0x4e0] sm:$0xff]  }
  0xba   : > { %4441 = vmatpush3.bf16.msra.mxu1 %v4675_v37  ;;  %v4704_v37 = vld [vmem:[%s4818_s24 + $0x5a0] sm:$0xff]  }
  0xbb   : > { %2299 = vmatmul.mubr.bf16.gmra.mrb[68].mxu0 %v5241_v59  ;;  %4328 = vmatprep.subr.bf16.mxu1 %v4680_v54  ;;  %v5405_v54 = vld [vmem:[%s5709_s1 + $0xb8] ss:$28 sps:$4 sm:$0xff]  }
  0xbc   : > { %2364 = vmatmul.mubr.bf16.gmra.mrb[52].mxu1 %v5247_v58  ;;  %4247 = vmatpush3.bf16.msra.mxu0 %v4668_v50  ;;  %v4710_v50 = vld [vmem:[%s4818_s24 + $0x528] sm:$0xff]  }
  0xbd   : > { %4248 = vmatprep.subr.bf16.mxu0 %v4669_v52  ;;  %2371 = vmatprep.mubr.bf16.mxu1 %v5254_v61  ;;  %v4708_v52 = vld [vmem:[%s4818_s24 + $0x5a8] sm:$0xff]  }
  0xbe   : > { %2306 = vmatprep.mubr.bf16.mxu0 %v5261_v13 }
  0xc0   : > { %4249 = vmatpush3.bf16.msra.mxu0 %v4670_v12  ;;  %v4711_v12 = vld [vmem:[%s4818_s24 + $0x4e8] sm:$0xff]  }
  0xc1   : > { %4250 = vmatprep.subr.bf16.mxu0 %v4671_v63  ;;  %v4709_v63 = vld [vmem:[%s4818_s24 + $0x568] sm:$0xff]  }
  0xc3   : > { %2307 = vmatmul.mubr.bf16.gmra.mrb[72].mxu0 %v5269_v14 }
  0xc4   : > { %2372 = vmatmul.mubr.bf16.gmra.mrb[56].mxu1 %v5275_v16  ;;  %4251 = vmatpush3.bf16.msra.mxu0 %v4672_v6  ;;  %v4712_v6 = vld [vmem:[%s4818_s24 + $0x5f0] sm:$0xff]  }
  0xc5   : > { %4252 = vmatprep.subr.bf16.mxu0 %v4673_v5  ;;  %2379 = vmatprep.mubr.bf16.mxu1 %v5282_v18  ;;  %v4713_v5 = vld [vmem:[%s4818_s24 + $0x5b0] sm:$0xff]  }
  0xc6   : > { %2314 = vmatprep.mubr.bf16.mxu0 %v5289_v10 }
  0xc8   : > { %4253 = vmatpush3.bf16.msra.mxu0 %v4674_v17  ;;  %v4714_v17 = vld [vmem:[%s4818_s24 + $0x5f8] sm:$0xff]  }
  0xc9   : > { %4254 = vmatprep.subr.bf16.mxu0 %v4676_v8  ;;  %v4716_v8 = vld [vmem:[%s4818_s24 + $0x600] sm:$0xff]  }
  0xcb   : > { %2315 = vmatmul.mubr.bf16.gmra.mrb[76].mxu0 %v5297_v15 }
  0xcc   : > { %2380 = vmatmul.mubr.bf16.gmra.mrb[60].mxu1 %v5303_v22  ;;  %4255 = vmatpush3.bf16.msra.mxu0 %v4677_v19  ;;  %v4717_v19 = vld [vmem:[%s4818_s24 + $0x5c0] sm:$0xff]  }
  0xcd   : > { %4256 = vmatprep.subr.bf16.mxu0 %v4678_v21  ;;  %4442 = vmatprep.mubr.msk.bf16.mxu1 %vm787_vm0, %v5310_v24 }
  0xce   : > { %2420 = vmatprep.mubr.bf16.mxu0 %v5318_v27 }
  0xd0   : > { %4257 = vmatpush3.bf16.msra.mxu0 %v4679_v23 }
  0xd1   : > { %4288 = vmatprep.subr.bf16.mxu0 %v4682_v25 }
  0xd3   : > { %2421 = vmatmul.mubr.bf16.vlgmr.msra.gmra.mrb[80].mxu0 %v5328_v31 }
  0xd4   : > { %4443 = vmatmul.mubr.msk.bf16.vlgmr.msra.gmra.mrb[64].mxu1 %vm787_vm0, %v5335_v38  ;;  %4289 = vmatpush3.bf16.msra.mxu0 %v4683_v20 }
  0xd5   : > { %4329 = vmatpush3.bf16.msra.mxu1 %v4681_v28  ;;  %4290 = vmatprep.subr.bf16.mxu0 %v4686_v26 }
  0xd6   : > { %4330 = vmatprep.subr.bf16.mxu1 %v4684_v29  ;;  %2428 = vmatprep.mubr.bf16.mxu0 %v5345_v44 }
  0xd7   : > { %4446 = vmatprep.mubr.msk.bf16.mxu1 %vm787_vm0, %v5026_v34  ;;  %v4695_v34 = vld [vmem:[%s4818_s24 + $0x4c8] sm:$0xff]  }
  0xd8   : > { %4291 = vmatpush3.bf16.msra.mxu0 %v4687_v40  ;;  %v4726_v40 = vld [vmem:[%s4818_s24 + $0x628] sm:$0xff]  }
  0xd9   : > { %4331 = vmatpush3.bf16.msra.mxu1 %v4685_v36  ;;  %4292 = vmatprep.subr.bf16.mxu0 %v4690_v41 }
  0xda   : > { %4332 = vmatprep.subr.bf16.mxu1 %v4688_v42 }
  0xdb   : > { %2429 = vmatmul.mubr.bf16.gmra.mrb[84].mxu0 %v5357_v43 }
  0xdc   : > { %4293 = vmatpush3.bf16.msra.mxu0 %v4691_v30  ;;  %2436 = vmatprep.mubr.bf16.mxu0 %v5365_v55 }
  0xdd   : > { %4333 = vmatpush3.bf16.msra.mxu1 %v4689_v48  ;;  %4294 = vmatprep.subr.bf16.mxu0 %v4694_v51  ;;  %v4727_v48 = vld [vmem:[%s4818_s24 + $0x5e8] sm:$0xff]   ;;  %v4728_v51 = vld [vmem:[%s4818_s24 + $0x630] sm:$0xff]  }
  0xde   : > { %4334 = vmatprep.subr.bf16.mxu1 %v4692_v53  ;;  %4447 = vmatmul.mubr.msk.bf16.gmra.mrb[68].mxu1 %vm787_vm0, %v5373_v60 }
  0xdf   : > { %3048 = vmatprep.mubr.bf16.mxu1 %v5156_v32  ;;  %v4701_v32 = vld [vmem:[%s4818_s24 + $0x558] sm:$0xff]  }
  0xe0   : > { %4295 = vmatpush3.bf16.msra.mxu0 %v4695_v34 }
  0xe1   : > { %4335 = vmatpush3.bf16.msra.mxu1 %v4693_v1  ;;  %4296 = vmatprep.subr.bf16.mxu0 %v4698_v56 }
  0xe2   : > { %4336 = vmatprep.subr.bf16.mxu1 %v4696_v57 }
  0xe3   : > { %2437 = vmatmul.mubr.bf16.gmra.mrb[88].mxu0 %v5385_v4 }
  0xe4   : > { %4297 = vmatpush3.bf16.msra.mxu0 %v4699_v47  ;;  %2444 = vmatprep.mubr.bf16.mxu0 %v5393_v33 }
  0xe5   : > { %4337 = vmatpush3.bf16.msra.mxu1 %v4697_v2  ;;  %4298 = vmatprep.subr.bf16.mxu0 %v4702_v3 }
  0xe6   : > { %4338 = vmatprep.subr.bf16.mxu1 %v4700_v0  ;;  %v4729_v0 = vld [vmem:[%s4818_s24 + $0x638] sm:$0xff]  }
  0xe8   : > { %4299 = vmatpush3.bf16.msra.mxu0 %v4703_v7 }
  0xe9   : > { %4339 = vmatpush3.bf16.msra.mxu1 %v4701_v32  ;;  %4300 = vmatprep.subr.bf16.mxu0 %v4706_v35 }
  0xea   : > { %4340 = vmatprep.subr.bf16.mxu1 %v4704_v37 }
  0xeb   : > { %2445 = vmatmul.mubr.bf16.gmra.mrb[92].mxu0 %v5405_v54 }
  0xec   : > { %4301 = vmatpush3.bf16.msra.mxu0 %v4707_v46  ;;  %2983 = vmatprep.mubr.bf16.mxu0 %v5189_v62  ;;  %v4715_v62 = vld [vmem:[%s4818_s24 + $0x5b8] sm:$0xff]  }
  0xed   : > { %4341 = vmatpush3.bf16.msra.mxu1 %v4705_v45  ;;  %4302 = vmatprep.subr.bf16.mxu0 %v4710_v50 }
  0xee   : > { %4342 = vmatprep.subr.bf16.mxu1 %v4708_v52 }
  0xf0   : > { %4303 = vmatpush3.bf16.msra.mxu0 %v4711_v12 }
  0xf1   : > { %4343 = vmatpush3.bf16.msra.mxu1 %v4709_v63  ;;  %4368 = vmatprep.subr.bf16.mxu0 %v4712_v6 }
  0xf2   : > { %4462 = vmatprep.subr.bf16.mxu1 %v4712_v6 }
  0xf3   : > { %2984 = vmatmul.mubr.bf16.vlgmr.msra.gmra.mrb[96].mxu0 %v5209_v39  ;;  %v4718_v39 = vld [vmem:[%s4818_s24 + $0x608] sm:$0xff]  }
  0xf4   : > { %3049 = vmatmul.mubr.bf16.vlgmr.msra.gmra.mrb[72].mxu1 %v5216_v9  ;;  %4369 = vmatpush3.bf16.msra.mxu0 %v4713_v5  ;;  %v4719_v9 = vld [vmem:[%s4818_s24 + $0x5c8] sm:$0xff]  }
  0xf5   : > { %4470 = vmatpush3.bf16.msra.mxu1 %v4713_v5  ;;  %3056 = vmatprep.mubr.bf16.mxu1 %v5225_v11  ;;  %v4720_v11 = vld [vmem:[%s4818_s24 + $0x610] sm:$0xff]   ;;  %v4757_v5 = vld [vmem:[%s5709_s1 + $0x88] ss:$28 sps:$4 sm:$0xff]  }
  0xf6   : > { %4463 = vmatprep.subr.bf16.mxu1 %v4714_v17  ;;  %4370 = vmatprep.subr.bf16.mxu0 %v4714_v17 }
  0xf7   : > { %2991 = vmatprep.mubr.bf16.mxu0 %v5232_v49  ;;  %v4721_v49 = vld [vmem:[%s4818_s24 + $0x5d0] sm:$0xff]  }
  0xf8   : > { %4371 = vmatpush3.bf16.msra.mxu0 %v4715_v62 }
  0xf9   : > { %4471 = vmatpush3.bf16.msra.mxu1 %v4715_v62  ;;  %4372 = vmatprep.subr.bf16.mxu0 %v4716_v8 }
  0xfa   : > { %4464 = vmatprep.subr.bf16.mxu1 %v4716_v8 }
  0xfb   : > { %2992 = vmatmul.mubr.bf16.gmra.mrb[100].mxu0 %v5241_v59  ;;  %v4722_v59 = vld [vmem:[%s4818_s24 + $0x618] sm:$0xff]  }
  0xfc   : > { %3057 = vmatmul.mubr.bf16.gmra.mrb[76].mxu1 %v5247_v58  ;;  %4373 = vmatpush3.bf16.msra.mxu0 %v4717_v19  ;;  %v4723_v58 = vld [vmem:[%s4818_s24 + $0x5d8] sm:$0xff]  }
  0xfd   : > { %4472 = vmatpush3.bf16.msra.mxu1 %v4717_v19  ;;  %3064 = vmatprep.mubr.bf16.mxu1 %v5254_v61 }
  0xfe   : > { %4465 = vmatprep.subr.bf16.mxu1 %v4718_v39  ;;  %4374 = vmatprep.subr.bf16.mxu0 %v4718_v39 }
  0xff   : > { %2999 = vmatprep.mubr.bf16.mxu0 %v5261_v13  ;;  %v4724_v13 = vld [vmem:[%s4818_s24 + $0x620] sm:$0xff]  }
 0x100   : > { %4375 = vmatpush3.bf16.msra.mxu0 %v4719_v9 }
 0x101   : > { %4473 = vmatpush3.bf16.msra.mxu1 %v4719_v9  ;;  %4376 = vmatprep.subr.bf16.mxu0 %v4720_v11 }
 0x102   : > { %4466 = vmatprep.subr.bf16.mxu1 %v4720_v11 }
 0x103   : > { %3000 = vmatmul.mubr.bf16.gmra.mrb[104].mxu0 %v5269_v14 }
 0x104   : > { %3065 = vmatmul.mubr.bf16.gmra.mrb[80].mxu1 %v5275_v16  ;;  %4377 = vmatpush3.bf16.msra.mxu0 %v4721_v49 }
 0x105   : > { %4474 = vmatpush3.bf16.msra.mxu1 %v4721_v49  ;;  %3072 = vmatprep.mubr.bf16.mxu1 %v5282_v18  ;;  %v4725_v18 = vld [vmem:[%s4818_s24 + $0x5e0] sm:$0xff]  }
 0x106   : > { %4467 = vmatprep.subr.bf16.mxu1 %v4722_v59  ;;  %v3926_v61 = vpop.f32.mrb[0].mxu0  ;;  %4378 = vmatprep.subr.bf16.mxu0 %v4722_v59 }
 0x107   : > { %v3966_v21 = vpop.f32.mrb[0].mxu1  ;;  %v3927_v23 = vpop.f32.mrb[1].mxu0  ;;  %3007 = vmatprep.mubr.bf16.mxu0 %v5289_v10 }
 0x108   : > { %v3928_v25 = vadd.f32 %v3927_v23, %v3926_v61  ;;  %v3967_v28 = vpop.f32.mrb[1].mxu1  ;;  %v3929_v14 = vpop.f32.mrb[2].mxu0  ;;  %4379 = vmatpush3.bf16.msra.mxu0 %v4723_v58 }
 0x109   : > { %4475 = vmatpush3.bf16.msra.mxu1 %v4723_v58  ;;  %v3968_v16 = vadd.f32 %v3967_v28, %v3966_v21  ;;  %v3969_v20 = vpop.f32.mrb[2].mxu1  ;;  %v3930_v26 = vpop.f32.mrb[3].mxu0  ;;  %4380 = vmatprep.subr.bf16.mxu0 %v4724_v13 }
 0x10a   : > { %4468 = vmatprep.subr.bf16.mxu1 %v4724_v13  ;;  %v3931_v29 = vadd.f32 %v3930_v26, %v3929_v14  ;;  %v3970_v36 = vpop.f32.mrb[3].mxu1 }
 0x10b   : > { %v5438_v41 = vadd.f32 %v3968_v16, %v3928_v25  ;;  %v3971_v42 = vadd.f32 %v3970_v36, %v3969_v20  ;;  %3008 = vmatmul.mubr.bf16.gmra.mrb[108].mxu0 %v5297_v15 }
 0x10c   : > { %3073 = vmatmul.mubr.bf16.gmra.mrb[84].mxu1 %v5303_v22  ;;  %4381 = vmatpush3.bf16.msra.mxu0 %v4725_v18 }
 0x10d   : > { %v5442_v10 = vadd.f32 %v3971_v42, %v3931_v29  ;;  %4476 = vmatpush3.bf16.msra.mxu1 %v4725_v18  ;;  %4382 = vmatprep.subr.bf16.mxu0 %v4726_v40 }
 0x10e   : > { %4469 = vmatprep.subr.bf16.mxu1 %v4726_v40  ;;  %v3932_v30 = vpop.f32.mrb[4].mxu0  ;;  %3137 = vmatprep.mubr.bf16.mxu1 %v5393_v33 }
 0x10f   : > { %v3972_v53 = vpop.f32.mrb[4].mxu1  ;;  %v3933_v1 = vpop.f32.mrb[5].mxu0  ;;  %3113 = vmatprep.mubr.bf16.mxu0 %v5318_v27 }
 0x110   : > { %v3934_v34 = vadd.f32 %v3933_v1, %v3932_v30  ;;  %v3973_v15 = vpop.f32.mrb[5].mxu1  ;;  %v3935_v56 = vpop.f32.mrb[6].mxu0  ;;  %4383 = vmatpush3.bf16.msra.mxu0 %v4727_v48 }
 0x111   : > { %4477 = vmatpush3.bf16.msra.mxu1 %v4727_v48  ;;  %v3974_v22 = vadd.f32 %v3973_v15, %v3972_v53  ;;  %v3975_v57 = vpop.f32.mrb[6].mxu1  ;;  %v3936_v2 = vpop.f32.mrb[7].mxu0 }
 0x112   : > { %4450 = vmatprep.subr.bf16.mxu1 %v4728_v51  ;;  %v3937_v47 = vadd.f32 %v3936_v2, %v3935_v56  ;;  %v3976_v3 = vpop.f32.mrb[7].mxu1 }
 0x113   : > { %v5449_v32 = vadd.f32 %v3974_v22, %v3934_v34  ;;  %v3977_v7 = vadd.f32 %v3976_v3, %v3975_v57  ;;  %3114 = vmatmul.mubr.bf16.vlgmr.msra.gmra.mrb[112].mxu0 %v5328_v31 }
 0x114   : > { %3138 = vmatmul.mubr.bf16.vlgmr.msra.gmra.mrb[88].mxu1 %v5405_v54  ;;  %3121 = vmatprep.mubr.bf16.mxu0 %v5345_v44 }
 0x115   : > { %v911_v27 = vadd.f32 %v3977_v7, %v3937_v47  ;;  %4451 = vmatpush3.bf16.msra.mxu1 %v4728_v51  ;;  %4454 = vmatprep.mubr.msk.bf16.mxu1 %vm787_vm0, %v5310_v24 }
 0x116   : > { %4452 = vmatprep.subr.bf16.mxu1 %v4729_v0  ;;  %v3938_v33 = vpop.f32.mrb[8].mxu0 }
 0x117   : > { %v3978_v35 = vpop.f32.mrb[8].mxu1  ;;  %v3939_v37 = vpop.f32.mrb[9].mxu0 }
 0x118   : > { %v3940_v45 = vadd.f32 %v3939_v37, %v3938_v33  ;;  %v3979_v46 = vpop.f32.mrb[9].mxu1  ;;  %v3941_v50 = vpop.f32.mrb[10].mxu0 }
 0x119   : > { %4453 = vmatpush3.bf16.msra.mxu1 %v4729_v0  ;;  %v3980_v52 = vadd.f32 %v3979_v46, %v3978_v35  ;;  %v3981_v12 = vpop.f32.mrb[10].mxu1  ;;  %v3942_v31 = vpop.f32.mrb[11].mxu0 }
 0x11a   : > { %v3943_v63 = vadd.f32 %v3942_v31, %v3941_v50  ;;  %v3982_v54 = vpop.f32.mrb[11].mxu1 }
 0x11b   : > { %v916_v6 = vadd.f32 %v3980_v52, %v3940_v45  ;;  %v3983_v44 = vadd.f32 %v3982_v54, %v3981_v12  ;;  %3122 = vmatmul.mubr.bf16.gmra.mrb[116].mxu0 %v5357_v43 }
 0x11c   : > { %4455 = vmatmul.mubr.msk.bf16.vlgmr.msra.gmra.mrb[92].mxu1 %vm787_vm0, %v5335_v38  ;;  %3129 = vmatprep.mubr.bf16.mxu0 %v5365_v55 }
 0x11d   : > { %v919_v24 = vadd.f32 %v3983_v44, %v3943_v63  ;;  %4458 = vmatprep.mubr.msk.bf16.mxu1 %vm787_vm0, %v4757_v5 }
 0x11e   : > { %v3944_v17 = vpop.f32.mrb[12].mxu0 }
 0x11f   : > { %v3984_v62 = vpop.f32.mrb[12].mxu1  ;;  %v3945_v8 = vpop.f32.mrb[13].mxu0 }
 0x120   : > { %v3946_v19 = vadd.f32 %v3945_v8, %v3944_v17  ;;  %v3985_v39 = vpop.f32.mrb[13].mxu1  ;;  %v3947_v9 = vpop.f32.mrb[14].mxu0 }
 0x121   : > { %v3986_v11 = vadd.f32 %v3985_v39, %v3984_v62  ;;  %v3987_v43 = vpop.f32.mrb[14].mxu1  ;;  %v3948_v49 = vpop.f32.mrb[15].mxu0 }
 0x122   : > { %v3949_v59 = vadd.f32 %v3948_v49, %v3947_v9  ;;  %v3988_v38 = vpop.f32.mrb[15].mxu1 }
 0x123   : > { %v924_v58 = vadd.f32 %v3986_v11, %v3946_v19  ;;  %v3989_v55 = vadd.f32 %v3988_v38, %v3987_v43  ;;  %3130 = vmatmul.mubr.bf16.gmra.mrb[120].mxu0 %v5385_v4 }
 0x124   : > { %4459 = vmatmul.mubr.msk.bf16.gmra.mrb[96].mxu1 %vm787_vm0, %v5373_v60 }
 0x125   : > { %v927_v61 = vadd.f32 %v3989_v55, %v3949_v59 }
 0x126   : > { %v4006_v13 = vpop.f32.mrb[16].mxu0 }
 0x127   : > { %v4007_v21 = vpop.f32.mrb[17].mxu0  ;;  %v4420_v23 = vpop.f32.mrb[16].mxu1 }
 0x128   : > { %v4008_v25 = vadd.f32 %v4007_v21, %v4006_v13  ;;  %v4009_v28 = vpop.f32.mrb[18].mxu0  ;;  %v1029_v14 = vpop.f32.mrb[17].mxu1 }
 0x129   : > { %v4010_v16 = vpop.f32.mrb[19].mxu0  ;;  %v4421_v20 = vpop.f32.mrb[18].mxu1 }
 0x12a   : > { %v4011_v26 = vadd.f32 %v4010_v16, %v4009_v28  ;;  %v965_v18 = vadd.f32 %v4008_v25, %v5438_v41  ;;  %v1032_v29 = vpop.f32.mrb[19].mxu1 }
 0x12c   : > { %v5468_v36 = vadd.f32 %v1029_v14, %v965_v18  ;;  %v968_v4 = vadd.f32 %v4011_v26, %v5442_v10 }
 0x12e   : > { %v5471_v40 = vadd.f32 %v1032_v29, %v968_v4  ;;  %v4012_v60 = vpop.f32.mrb[20].mxu0 }
 0x12f   : > { %v4013_v42 = vpop.f32.mrb[21].mxu0 }
 0x130   : > { %v4014_v48 = vadd.f32 %v4013_v42, %v4012_v60  ;;  %v4015_v30 = vpop.f32.mrb[22].mxu0 }
 0x131   : > { %v4016_v51 = vpop.f32.mrb[23].mxu0  ;;  %v4424_v57 = vpop.f32.mrb[20].mxu1 }
 0x132   : > { %v973_v53 = vadd.f32 %v4014_v48, %v5449_v32  ;;  %v4017_v1 = vadd.f32 %v4016_v51, %v4015_v30  ;;  %v1045_v47 = vpop.f32.mrb[21].mxu1 }
 0x133   : > { %v4425_v0 = vpop.f32.mrb[22].mxu1 }
 0x134   : > { %v5474_v34 = vadd.f32 %v4420_v23, %v973_v53  ;;  %v976_v15 = vadd.f32 %v4017_v1, %v911_v27  ;;  %v1048_v35 = vpop.f32.mrb[23].mxu1 }
 0x136   : > { %v5476_v56 = vadd.f32 %v4421_v20, %v976_v15  ;;  %v4018_v41 = vpop.f32.mrb[24].mxu0 }
 0x137   : > { %v4019_v22 = vpop.f32.mrb[25].mxu0 }
 0x138   : > { %v4020_v2 = vadd.f32 %v4019_v22, %v4018_v41  ;;  %v4021_v10 = vpop.f32.mrb[26].mxu0 }
 0x139   : > { %v4022_v3 = vpop.f32.mrb[27].mxu0 }
 0x13a   : > { %v4023_v7 = vadd.f32 %v4022_v3, %v4021_v10  ;;  %v981_v33 = vadd.f32 %v4020_v2, %v916_v6 }
 0x13c   : > { %v5478_v37 = vadd.f32 %v1045_v47, %v981_v33  ;;  %v984_v32 = vadd.f32 %v4023_v7, %v919_v24 }
 0x13e   : > { %v5480_v45 = vadd.f32 %v1048_v35, %v984_v32  ;;  %v4024_v46 = vpop.f32.mrb[28].mxu0 }
 0x13f   : > { %v4025_v27 = vpop.f32.mrb[29].mxu0 }
 0x140   : > { %v4026_v50 = vadd.f32 %v4025_v27, %v4024_v46  ;;  %v4027_v52 = vpop.f32.mrb[30].mxu0 }
 0x141   : > { %v4028_v12 = vpop.f32.mrb[31].mxu0 }
 0x142   : > { %v989_v31 = vadd.f32 %v4026_v50, %v924_v58  ;;  %v4029_v63 = vadd.f32 %v4028_v12, %v4027_v52  ;;  %v5488_v58 = vpop.permute.xlu0 %1062 }
 0x144   : > { %v5482_v54 = vadd.f32 %v4424_v57, %v989_v31  ;;  %v992_v44 = vadd.f32 %v4029_v63, %v927_v61  ;;  %v5492_v61 = vpop.permute.xlu1 %1072 }
 0x146   : > { %v5484_v5 = vadd.f32 %v4425_v0, %v992_v44  ;;  %v4052_v17 = vpop.f32.mrb[32].mxu0  ;;  %v5496_v42 = vpop.permute.xlu0 %1067 }
 0x147   : > { %v4092_v6 = vpop.f32.mrb[24].mxu1  ;;  %v4053_v62 = vpop.f32.mrb[33].mxu0 }
 0x148   : > { %v4054_v8 = vadd.f32 %v4053_v62, %v4052_v17  ;;  %v4093_v19 = vpop.f32.mrb[25].mxu1  ;;  %v4055_v24 = vpop.f32.mrb[34].mxu0 }
 0x149   : > { %v4094_v39 = vadd.f32 %v4093_v19, %v4092_v6  ;;  %v4095_v9 = vpop.f32.mrb[26].mxu1  ;;  %v4056_v11 = vpop.f32.mrb[35].mxu0 }
 0x14a   : > { %v4057_v43 = vadd.f32 %v4056_v11, %v4055_v24  ;;  %v4096_v49 = vpop.f32.mrb[27].mxu1  ;;  %v5500_v30 = vpop.permute.xlu1 %1077 }
 0x14b   : > { %v5486_v59 = vadd.f32 %v4094_v39, %v4054_v8  ;;  %v4097_v38 = vadd.f32 %v4096_v49, %v4095_v9  ;;  %v5504_v33 = vpop.permute.xlu0 %1082 }
 0x14d   : > { %v5490_v55 = vadd.f32 %v4097_v38, %v4057_v43 }
 0x14e   : > { %v4058_v13 = vpop.f32.mrb[36].mxu0  ;;  %v5508_v32 = vpop.permute.xlu1 %1087 }
 0x14f   : > { %v4098_v21 = vpop.f32.mrb[28].mxu1  ;;  %v4059_v23 = vpop.f32.mrb[37].mxu0 }
 0x150   : > { %v4060_v25 = vadd.f32 %v4059_v23, %v4058_v13  ;;  %v4099_v28 = vpop.f32.mrb[29].mxu1  ;;  %v4061_v14 = vpop.f32.mrb[38].mxu0  ;;  %v1100_v23 = vmul.f32 %v5488_v58, %v5468_v36 }
 0x151   : > { %v4100_v16 = vadd.f32 %v4099_v28, %v4098_v21  ;;  %v4101_v20 = vpop.f32.mrb[30].mxu1  ;;  %v4062_v26 = vpop.f32.mrb[39].mxu0 }
 0x152   : > { %v4063_v18 = vadd.f32 %v4062_v26, %v4061_v14  ;;  %v4102_v29 = vpop.f32.mrb[31].mxu1  ;;  %v5512_v24 = vpop.permute.xlu0 %1092 }
 0x153   : > { %v5494_v4 = vadd.f32 %v4100_v16, %v4060_v25  ;;  %v4103_v60 = vadd.f32 %v4102_v29, %v4101_v20  ;;  %v5516_v9 = vpop.permute.xlu1 %1097 }
 0x155   : > { %v5498_v48 = vadd.f32 %v4103_v60, %v4063_v18  ;;  %v1101_v18 = vmul.f32 %v5496_v42, %v5471_v40 }
 0x156   : > { %v4064_v51 = vpop.f32.mrb[40].mxu0  ;;  %v5520_v14 = vpop.permute.xlu0 %1110 }
 0x157   : > { %v4104_v53 = vpop.f32.mrb[32].mxu1  ;;  %v4065_v1 = vpop.f32.mrb[41].mxu0 }
 0x158   : > { %v4066_v15 = vadd.f32 %v4065_v1, %v4064_v51  ;;  %v4105_v41 = vpop.f32.mrb[33].mxu1  ;;  %v4067_v22 = vpop.f32.mrb[42].mxu0 }
 0x159   : > { %v4106_v57 = vadd.f32 %v4105_v41, %v4104_v53  ;;  %v4107_v2 = vpop.f32.mrb[34].mxu1  ;;  %v4068_v10 = vpop.f32.mrb[43].mxu0  ;;  %v1148_v53 = vadd.f32 %v5520_v14, %v1100_v23 }
 0x15a   : > { %v4069_v47 = vadd.f32 %v4068_v10, %v4067_v22  ;;  %v4108_v3 = vpop.f32.mrb[35].mxu1  ;;  %v5525_v29 = vpop.permute.xlu1 %1115 }
 0x15b   : > { %v5502_v0 = vadd.f32 %v4106_v57, %v4066_v15  ;;  %v4109_v7 = vadd.f32 %v4108_v3, %v4107_v2  ;;  %v1149_v41 = vadd.f32 %v5525_v29, %v1101_v18  ;;  %v1156_v10 = vmax.f32 %v1148_v53, 0.0 }
 0x15d   : > { %v5506_v35 = vadd.f32 %v4109_v7, %v4069_v47  ;;  %v1102_v47 = vmul.f32 %v5492_v61, %v5474_v34  ;;  %v5537_v7 = vpop.permute.xlu0 %1120 }
 0x15e   : > { %v4070_v46 = vpop.f32.mrb[44].mxu0 }
 0x15f   : > { %v4110_v27 = vpop.f32.mrb[36].mxu1  ;;  %v4071_v50 = vpop.f32.mrb[45].mxu0 }
 0x160   : > { %v4072_v52 = vadd.f32 %v4071_v50, %v4070_v46  ;;  %v4111_v12 = vpop.f32.mrb[37].mxu1  ;;  %v4073_v31 = vpop.f32.mrb[46].mxu0 }
 0x161   : > { %v4112_v63 = vadd.f32 %v4111_v12, %v4110_v27  ;;  %v4113_v44 = vpop.f32.mrb[38].mxu1  ;;  %v4074_v17 = vpop.f32.mrb[47].mxu0 }
 0x162   : > { %v4075_v6 = vadd.f32 %v4074_v17, %v4073_v31  ;;  %v4114_v62 = vpop.f32.mrb[39].mxu1  ;;  %v1157_v31 = vmax.f32 %v1149_v41, 0.0  ;;  %v5543_v17 = vpop.permute.xlu1 %1125 }
 0x163   : > { %v5510_v8 = vadd.f32 %v4112_v63, %v4072_v52  ;;  %v4115_v19 = vadd.f32 %v4114_v62, %v4113_v44  ;;  %v1103_v63 = vmul.f32 %v5500_v30, %v5476_v56 }
 0x165   : > { %v5514_v39 = vadd.f32 %v4115_v19, %v4075_v6  ;;  %v1151_v56 = vadd.f32 %v5543_v17, %v1103_v63 }
 0x166   : > { %v4132_v11 = vpop.f32.mrb[48].mxu0  ;;  %v5563_v41 = vpop.permute.xlu1 %1135 }
 0x167   : > { %v4133_v43 = vpop.f32.mrb[49].mxu0  ;;  %v4432_v49 = vpop.f32.mrb[40].mxu1 }
 0x168   : > { %v4134_v38 = vadd.f32 %v4133_v43, %v4132_v11  ;;  %v4135_v13 = vpop.f32.mrb[50].mxu0  ;;  %v1794_v21 = vpop.f32.mrb[41].mxu1  ;;  %v1150_v43 = vadd.f32 %v5537_v7, %v1102_v47 }
 0x169   : > { %v4136_v25 = vpop.f32.mrb[51].mxu0  ;;  %v4433_v28 = vpop.f32.mrb[42].mxu1 }
 0x16a   : > { %v4137_v16 = vadd.f32 %v4136_v25, %v4135_v13  ;;  %v1730_v20 = vadd.f32 %v4134_v38, %v5486_v59  ;;  %v1797_v26 = vpop.f32.mrb[43].mxu1 }
 0x16c   : > { %v1795_v60 = vadd.f32 %v1794_v21, %v1730_v20  ;;  %v1733_v51 = vadd.f32 %v4137_v16, %v5490_v55 }
 0x16e   : > { %v1825_v36 = vmul.f32 %v1795_v60, %v5488_v58  ;;  %v1798_v1 = vadd.f32 %v1797_v26, %v1733_v51  ;;  %v4138_v15 = vpop.f32.mrb[52].mxu0  ;;  %v1158_v26 = vmax.f32 %v1150_v43, 0.0  ;;  %v5557_v60 = vpop.permute.xlu0 %1130 }
 0x16f   : > { %v4139_v22 = vpop.f32.mrb[53].mxu0 }
 0x170   : > { %v1833_v59 = vadd.f32 %v1825_v36, %v5520_v14  ;;  %v1826_v57 = vmul.f32 %v1798_v1, %v5496_v42  ;;  %v4140_v2 = vadd.f32 %v4139_v22, %v4138_v15  ;;  %v4141_v40 = vpop.f32.mrb[54].mxu0  ;;  %v1159_v1 = vmax.f32 %v1151_v56, 0.0 }
 0x171   : > { %v4142_v55 = vpop.f32.mrb[55].mxu0  ;;  %v5535_v3 = vpop.f32.mrb[44].mxu1  ;;  %v1105_v15 = vmul.f32 %v5508_v32, %v5480_v45 }
 0x172   : > { %v1841_v46 = vmax.f32 %v1833_v59, 0.0  ;;  %v1834_v27 = vadd.f32 %v1826_v57, %v5525_v29  ;;  %v1738_v50 = vadd.f32 %v4140_v2, %v5494_v4  ;;  %v4143_v52 = vadd.f32 %v4142_v55, %v4141_v40  ;;  %v1810_v12 = vpop.f32.mrb[45].mxu1  ;;  %v5579_v43 = vpop.permute.xlu0 %1140 }
 0x173   : > { %v4437_v44 = vpop.f32.mrb[46].mxu1  ;;  %v1153_v55 = vadd.f32 %v5563_v41, %v1105_v15 }
 0x174   : > { %v5545_v34 = vmax.f32 %v1156_v10, %v1841_v46  ;;  %v1842_v6 = vmax.f32 %v1834_v27, 0.0  ;;  %v1803_v62 = vadd.f32 %v4432_v49, %v1738_v50  ;;  %v1741_v19 = vadd.f32 %v4143_v52, %v5498_v48  ;;  %v1813_v11 = vpop.f32.mrb[47].mxu1 }
 0x175   : > { %v1104_v48 = vmul.f32 %v5504_v33, %v5478_v37 }
 0x176   : > { %v5549_v38 = vmax.f32 %v1157_v31, %v1842_v6  ;;  %v1827_v4 = vmul.f32 %v1803_v62, %v5492_v61  ;;  %v1806_v13 = vadd.f32 %v4433_v28, %v1741_v19  ;;  %v4144_v21 = vpop.f32.mrb[56].mxu0 }
 0x177   : > { %v4145_v23 = vpop.f32.mrb[57].mxu0  ;;  %v1152_v2 = vadd.f32 %v5557_v60, %v1104_v48 }
 0x178   : > { %v1835_v25 = vadd.f32 %v1827_v4, %v5537_v7  ;;  %v1828_v16 = vmul.f32 %v1806_v13, %v5500_v30  ;;  %v4146_v20 = vadd.f32 %v4145_v23, %v4144_v21  ;;  %v4147_v49 = vpop.f32.mrb[58].mxu0  ;;  %v1107_v4 = vmul.f32 %v5516_v9, %v5484_v5  ;;  %v5587_v23 = vpop.permute.xlu1 %1145 }
 0x179   : > { %v4148_v18 = vpop.f32.mrb[59].mxu0 }
 0x17a   : > { %v1843_v51 = vmax.f32 %v1835_v25, 0.0  ;;  %v1836_v28 = vadd.f32 %v1828_v16, %v5543_v17  ;;  %v4149_v53 = vadd.f32 %v4148_v18, %v4147_v49  ;;  %v1746_v36 = vadd.f32 %v4146_v20, %v5502_v0 }
 0x17b   : > { %v1155_v5 = vadd.f32 %v5587_v23, %v1107_v4 }
 0x17c   : > { %v5565_v22 = vmax.f32 %v1158_v26, %v1843_v51  ;;  %v1844_v59 = vmax.f32 %v1836_v28, 0.0  ;;  %v1811_v57 = vadd.f32 %v1810_v12, %v1746_v36  ;;  %v1749_v37 = vadd.f32 %v4149_v53, %v5506_v35 }
 0x17d   : > { %v1160_v12 = vmax.f32 %v1152_v2, 0.0  ;;  %v1106_v35 = vmul.f32 %v5512_v24, %v5482_v54 }
 0x17e   : > { %v5569_v40 = vmax.f32 %v1159_v1, %v1844_v59  ;;  %v1829_v10 = vmul.f32 %v1811_v57, %v5504_v33  ;;  %v1814_v47 = vadd.f32 %v1813_v11, %v1749_v37  ;;  %v4150_v0 = vpop.f32.mrb[60].mxu0  ;;  %v1161_v11 = vmax.f32 %v1153_v55, 0.0 }
 0x17f   : > { %v4151_v46 = vpop.f32.mrb[61].mxu0  ;;  %v1154_v25 = vadd.f32 %v5579_v43, %v1106_v35 }
 0x180   : > { %v1837_v45 = vadd.f32 %v1829_v10, %v5557_v60  ;;  %v1830_v27 = vmul.f32 %v1814_v47, %v5508_v32  ;;  %v4152_v50 = vadd.f32 %v4151_v46, %v4150_v0  ;;  %v4153_v52 = vpop.f32.mrb[62].mxu0  ;;  %v1163_v47 = vmax.f32 %v1155_v5, 0.0 }
 0x181   : > { %v4154_v31 = vpop.f32.mrb[63].mxu0  ;;  %v1162_v15 = vmax.f32 %v1154_v25, 0.0 }
 0x182   : > { %v1845_v63 = vmax.f32 %v1837_v45, 0.0  ;;  %v1838_v6 = vadd.f32 %v1830_v27, %v5563_v41  ;;  %v1754_v62 = vadd.f32 %v4152_v50, %v5510_v8  ;;  %v4155_v19 = vadd.f32 %v4154_v31, %v4153_v52 }
 0x184   : > { %v5583_v13 = vmax.f32 %v1160_v12, %v1845_v63  ;;  %v1846_v21 = vmax.f32 %v1838_v6, 0.0  ;;  %v1819_v56 = vadd.f32 %v5535_v3, %v1754_v62  ;;  %v1757_v54 = vadd.f32 %v4155_v19, %v5514_v39 }
 0x186   : > { %v5590_v16 = vmax.f32 %v1161_v11, %v1846_v21  ;;  %v1831_v8 = vmul.f32 %v1819_v56, %v5512_v24  ;;  %v1822_v20 = vadd.f32 %v4437_v44, %v1757_v54  ;;  %v4178_v49 = vpop.f32.mrb[64].mxu0 }
 0x187   : > { %v4218_v26 = vpop.f32.mrb[48].mxu1  ;;  %v4179_v48 = vpop.f32.mrb[65].mxu0 }
 0x188   : > { %v1839_v18 = vadd.f32 %v1831_v8, %v5579_v43  ;;  %v1832_v3 = vmul.f32 %v1822_v20, %v5516_v9  ;;  %v4180_v51 = vadd.f32 %v4179_v48, %v4178_v49  ;;  %v4219_v39 = vpop.f32.mrb[49].mxu1  ;;  %v4181_v28 = vpop.f32.mrb[66].mxu0 }
 0x189   : > { %v4220_v53 = vadd.f32 %v4219_v39, %v4218_v26  ;;  %v4221_v36 = vpop.f32.mrb[50].mxu1  ;;  %v4182_v1 = vpop.f32.mrb[67].mxu0 }
 0x18a   : > { %v1847_v59 = vmax.f32 %v1839_v18, 0.0  ;;  %v1840_v57 = vadd.f32 %v1832_v3, %v5587_v23  ;;  %v4183_v44 = vadd.f32 %v4182_v1, %v4181_v28  ;;  %v4222_v37 = vpop.f32.mrb[51].mxu1 }
 0x18b   : > { %v2358_v2 = vadd.f32 %v4220_v53, %v4180_v51  ;;  %v4223_v10 = vadd.f32 %v4222_v37, %v4221_v36 }
 0x18c   : > { %v1848_v0 = vmax.f32 %v1840_v57, 0.0  ;;  %v5597_v55 = vmax.f32 %v1162_v15, %v1847_v59 }
 0x18d   : > { %v2361_v46 = vadd.f32 %v4223_v10, %v4183_v44 }
 0x18e   : > { %v4184_v45 = vpop.f32.mrb[68].mxu0  ;;  %v5599_v27 = vmax.f32 %v1163_v47, %v1848_v0 }
 0x18f   : > { %v4224_v50 = vpop.f32.mrb[52].mxu1  ;;  %v4185_v52 = vpop.f32.mrb[69].mxu0 }
 0x190   : > { %v4186_v12 = vadd.f32 %v4185_v52, %v4184_v45  ;;  %v4225_v35 = vpop.f32.mrb[53].mxu1  ;;  %v4187_v31 = vpop.f32.mrb[70].mxu0 }
 0x191   : > { %v4226_v63 = vadd.f32 %v4225_v35, %v4224_v50  ;;  %v4227_v6 = vpop.f32.mrb[54].mxu1  ;;  %v4188_v62 = vpop.f32.mrb[71].mxu0 }
 0x192   : > { %v4189_v19 = vadd.f32 %v4188_v62, %v4187_v31  ;;  %v4228_v11 = vpop.f32.mrb[55].mxu1 }
 0x193   : > { %v2366_v4 = vadd.f32 %v4226_v63, %v4186_v12  ;;  %v4229_v21 = vadd.f32 %v4228_v11, %v4227_v6 }
 0x195   : > { %v2369_v56 = vadd.f32 %v4229_v21, %v4189_v19 }
 0x196   : > { %v4190_v54 = vpop.f32.mrb[72].mxu0 }
 0x197   : > { %v4230_v25 = vpop.f32.mrb[56].mxu1  ;;  %v4191_v8 = vpop.f32.mrb[73].mxu0 }
 0x198   : > { %v4192_v20 = vadd.f32 %v4191_v8, %v4190_v54  ;;  %v4231_v49 = vpop.f32.mrb[57].mxu1  ;;  %v4193_v26 = vpop.f32.mrb[74].mxu0 }
 0x199   : > { %v4232_v48 = vadd.f32 %v4231_v49, %v4230_v25  ;;  %v4233_v5 = vpop.f32.mrb[58].mxu1  ;;  %v4194_v18 = vpop.f32.mrb[75].mxu0 }
 0x19a   : > { %v4195_v3 = vadd.f32 %v4194_v18, %v4193_v26  ;;  %v4234_v51 = vpop.f32.mrb[59].mxu1 }
 0x19b   : > { %v5601_v39 = vadd.f32 %v4232_v48, %v4192_v20  ;;  %v4235_v28 = vadd.f32 %v4234_v51, %v4233_v5 }
 0x19d   : > { %v5603_v53 = vadd.f32 %v4235_v28, %v4195_v3 }
 0x19e   : > { %v4196_v36 = vpop.f32.mrb[76].mxu0 }
 0x19f   : > { %v4236_v1 = vpop.f32.mrb[60].mxu1  ;;  %v4197_v15 = vpop.f32.mrb[77].mxu0 }
 0x1a0   : > { %v4198_v59 = vadd.f32 %v4197_v15, %v4196_v36  ;;  %v4237_v57 = vpop.f32.mrb[61].mxu1  ;;  %v4199_v44 = vpop.f32.mrb[78].mxu0 }
 0x1a1   : > { %v4238_v37 = vadd.f32 %v4237_v57, %v4236_v1  ;;  %v4239_v10 = vpop.f32.mrb[62].mxu1  ;;  %v4200_v47 = vpop.f32.mrb[79].mxu0 }
 0x1a2   : > { %v4201_v0 = vadd.f32 %v4200_v47, %v4199_v44  ;;  %v4240_v45 = vpop.f32.mrb[63].mxu1 }
 0x1a3   : > { %v5605_v50 = vadd.f32 %v4238_v37, %v4198_v59  ;;  %v4241_v52 = vadd.f32 %v4240_v45, %v4239_v10 }
 0x1a5   : > { %v5607_v12 = vadd.f32 %v4241_v52, %v4201_v0 }
 0x1a6   : > { %v4258_v35 = vpop.f32.mrb[80].mxu0 }
 0x1a7   : > { %v4259_v31 = vpop.f32.mrb[81].mxu0  ;;  %v4444_v63 = vpop.f32.mrb[64].mxu1 }
 0x1a8   : > { %v4260_v6 = vadd.f32 %v4259_v31, %v4258_v35  ;;  %v4261_v62 = vpop.f32.mrb[82].mxu0  ;;  %v2487_v19 = vpop.f32.mrb[65].mxu1 }
 0x1a9   : > { %v4262_v11 = vpop.f32.mrb[83].mxu0  ;;  %v4445_v21 = vpop.f32.mrb[66].mxu1 }
 0x1aa   : > { %v4263_v54 = vadd.f32 %v4262_v11, %v4261_v62  ;;  %v2423_v25 = vadd.f32 %v4260_v6, %v2358_v2  ;;  %v2490_v8 = vpop.f32.mrb[67].mxu1 }
 0x1ac   : > { %v2488_v20 = vadd.f32 %v2487_v19, %v2423_v25  ;;  %v2426_v49 = vadd.f32 %v4263_v54, %v2361_v46 }
 0x1ae   : > { %v2518_v26 = vmul.f32 %v2488_v20, %v5488_v58  ;;  %v2491_v48 = vadd.f32 %v2490_v8, %v2426_v49  ;;  %v4264_v5 = vpop.f32.mrb[84].mxu0 }
 0x1af   : > { %v4265_v18 = vpop.f32.mrb[85].mxu0 }
 0x1b0   : > { %v2526_v3 = vadd.f32 %v2518_v26, %v5520_v14  ;;  %v2519_v51 = vmul.f32 %v2491_v48, %v5496_v42  ;;  %v4266_v28 = vadd.f32 %v4265_v18, %v4264_v5  ;;  %v4267_v36 = vpop.f32.mrb[86].mxu0 }
 0x1b1   : > { %v4268_v1 = vpop.f32.mrb[87].mxu0  ;;  %v4448_v15 = vpop.f32.mrb[68].mxu1 }
 0x1b2   : > { %v2534_v59 = vmax.f32 %v2526_v3, 0.0  ;;  %v2527_v57 = vadd.f32 %v2519_v51, %v5525_v29  ;;  %v2431_v2 = vadd.f32 %v4266_v28, %v2366_v4  ;;  %v4269_v44 = vadd.f32 %v4268_v1, %v4267_v36  ;;  %v2503_v37 = vpop.f32.mrb[69].mxu1 }
 0x1b3   : > { %v4449_v46 = vpop.f32.mrb[70].mxu1 }
 0x1b4   : > { %v5614_v10 = vmax.f32 %v5545_v34, %v2534_v59  ;;  %v2535_v47 = vmax.f32 %v2527_v57, 0.0  ;;  %v2496_v0 = vadd.f32 %v4444_v63, %v2431_v2  ;;  %v2434_v45 = vadd.f32 %v4269_v44, %v2369_v56  ;;  %v2506_v52 = vpop.f32.mrb[71].mxu1 }
 0x1b6   : > { %v5617_v35 = vmax.f32 %v5549_v38, %v2535_v47  ;;  %v2520_v31 = vmul.f32 %v2496_v0, %v5492_v61  ;;  %v2499_v6 = vadd.f32 %v4445_v21, %v2434_v45  ;;  %v4270_v62 = vpop.f32.mrb[88].mxu0 }
 0x1b7   : > { %v4271_v19 = vpop.f32.mrb[89].mxu0 }
 0x1b8   : > { %v2528_v4 = vadd.f32 %v2520_v31, %v5537_v7  ;;  %v2521_v11 = vmul.f32 %v2499_v6, %v5500_v30  ;;  %v4272_v54 = vadd.f32 %v4271_v19, %v4270_v62  ;;  %v4273_v25 = vpop.f32.mrb[90].mxu0 }
 0x1b9   : > { %v4274_v34 = vpop.f32.mrb[91].mxu0 }
 0x1ba   : > { %v2536_v8 = vmax.f32 %v2528_v4, 0.0  ;;  %v2529_v63 = vadd.f32 %v2521_v11, %v5543_v17  ;;  %v4275_v56 = vadd.f32 %v4274_v34, %v4273_v25  ;;  %v2439_v20 = vadd.f32 %v4272_v54, %v5601_v39 }
 0x1bc   : > { %v5625_v38 = vmax.f32 %v5565_v22, %v2536_v8  ;;  %v2537_v49 = vmax.f32 %v2529_v63, 0.0  ;;  %v2504_v21 = vadd.f32 %v2503_v37, %v2439_v20  ;;  %v2442_v26 = vadd.f32 %v4275_v56, %v5603_v53 }
 0x1be   : > { %v5629_v48 = vmax.f32 %v5569_v40, %v2537_v49  ;;  %v2522_v5 = vmul.f32 %v2504_v21, %v5504_v33  ;;  %v2507_v18 = vadd.f32 %v2506_v52, %v2442_v26  ;;  %v4276_v3 = vpop.f32.mrb[92].mxu0 }
 0x1bf   : > { %v4277_v51 = vpop.f32.mrb[93].mxu0 }
 0x1c0   : > { %v2530_v28 = vadd.f32 %v2522_v5, %v5557_v60  ;;  %v2523_v36 = vmul.f32 %v2507_v18, %v5508_v32  ;;  %v4278_v39 = vadd.f32 %v4277_v51, %v4276_v3  ;;  %v4279_v1 = vpop.f32.mrb[94].mxu0 }
 0x1c1   : > { %v4280_v22 = vpop.f32.mrb[95].mxu0 }
 0x1c2   : > { %v2538_v59 = vmax.f32 %v2530_v28, 0.0  ;;  %v2531_v57 = vadd.f32 %v2523_v36, %v5563_v41  ;;  %v2447_v53 = vadd.f32 %v4278_v39, %v5605_v50  ;;  %v4281_v2 = vadd.f32 %v4280_v22, %v4279_v1 }
 0x1c4   : > { %v5637_v40 = vmax.f32 %v5583_v13, %v2538_v59  ;;  %v2539_v44 = vmax.f32 %v2531_v57, 0.0  ;;  %v2512_v37 = vadd.f32 %v4448_v15, %v2447_v53  ;;  %v2450_v47 = vadd.f32 %v4281_v2, %v5607_v12 }
 0x1c6   : > { %v5641_v0 = vmax.f32 %v5590_v16, %v2539_v44  ;;  %v2524_v45 = vmul.f32 %v2512_v37, %v5512_v24  ;;  %v2515_v52 = vadd.f32 %v4449_v46, %v2450_v47  ;;  %v4304_v31 = vpop.f32.mrb[96].mxu0 }
 0x1c7   : > { %v4344_v6 = vpop.f32.mrb[72].mxu1  ;;  %v4305_v62 = vpop.f32.mrb[97].mxu0 }
 0x1c8   : > { %v2532_v19 = vadd.f32 %v2524_v45, %v5579_v43  ;;  %v2525_v50 = vmul.f32 %v2515_v52, %v5516_v9  ;;  %v4306_v4 = vadd.f32 %v4305_v62, %v4304_v31  ;;  %v4345_v13 = vpop.f32.mrb[73].mxu1  ;;  %v4307_v11 = vpop.f32.mrb[98].mxu0 }
 0x1c9   : > { %v4346_v54 = vadd.f32 %v4345_v13, %v4344_v6  ;;  %v4347_v15 = vpop.f32.mrb[74].mxu1  ;;  %v4308_v25 = vpop.f32.mrb[99].mxu0 }
 0x1ca   : > { %v2540_v12 = vmax.f32 %v2532_v19, 0.0  ;;  %v2533_v16 = vadd.f32 %v2525_v50, %v5587_v23  ;;  %v4309_v34 = vadd.f32 %v4308_v25, %v4307_v11  ;;  %v4348_v8 = vpop.f32.mrb[75].mxu1 }
 0x1cb   : > { %v3051_v63 = vadd.f32 %v4346_v54, %v4306_v4  ;;  %v4349_v46 = vadd.f32 %v4348_v8, %v4347_v15 }
 0x1cc   : > { %v2541_v56 = vmax.f32 %v2533_v16, 0.0  ;;  %v5648_v20 = vmax.f32 %v5597_v55, %v2540_v12 }
 0x1cd   : > { %v3054_v49 = vadd.f32 %v4349_v46, %v4309_v34 }
 0x1ce   : > { %v4310_v21 = vpop.f32.mrb[100].mxu0  ;;  %v5651_v26 = vmax.f32 %v5599_v27, %v2541_v56 }
 0x1cf   : > { %v4350_v5 = vpop.f32.mrb[76].mxu1  ;;  %v4311_v18 = vpop.f32.mrb[101].mxu0 }
 0x1d0   : > { %v4312_v3 = vadd.f32 %v4311_v18, %v4310_v21  ;;  %v4351_v51 = vpop.f32.mrb[77].mxu1  ;;  %v4313_v28 = vpop.f32.mrb[102].mxu0 }
 0x1d1   : > { %v4352_v36 = vadd.f32 %v4351_v51, %v4350_v5  ;;  %v4353_v39 = vpop.f32.mrb[78].mxu1  ;;  %v4314_v1 = vpop.f32.mrb[103].mxu0 }
 0x1d2   : > { %v4315_v22 = vadd.f32 %v4314_v1, %v4313_v28  ;;  %v4354_v59 = vpop.f32.mrb[79].mxu1 }
 0x1d3   : > { %v3059_v57 = vadd.f32 %v4352_v36, %v4312_v3  ;;  %v4355_v53 = vadd.f32 %v4354_v59, %v4353_v39 }
 0x1d5   : > { %v3062_v2 = vadd.f32 %v4355_v53, %v4315_v22 }
 0x1d6   : > { %v4316_v55 = vpop.f32.mrb[104].mxu0 }
 0x1d7   : > { %v4356_v44 = vpop.f32.mrb[80].mxu1  ;;  %v4317_v37 = vpop.f32.mrb[105].mxu0 }
 0x1d8   : > { %v4318_v47 = vadd.f32 %v4317_v37, %v4316_v55  ;;  %v4357_v45 = vpop.f32.mrb[81].mxu1  ;;  %v4319_v27 = vpop.f32.mrb[106].mxu0 }
 0x1d9   : > { %v4358_v52 = vadd.f32 %v4357_v45, %v4356_v44  ;;  %v4359_v31 = vpop.f32.mrb[82].mxu1  ;;  %v4320_v6 = vpop.f32.mrb[107].mxu0 }
 0x1da   : > { %v4321_v62 = vadd.f32 %v4320_v6, %v4319_v27  ;;  %v4360_v19 = vpop.f32.mrb[83].mxu1 }
 0x1db   : > { %v5653_v50 = vadd.f32 %v4358_v52, %v4318_v47  ;;  %v4361_v4 = vadd.f32 %v4360_v19, %v4359_v31 }
 0x1dd   : > { %v5655_v13 = vadd.f32 %v4361_v4, %v4321_v62 }
 0x1de   : > { %v4322_v11 = vpop.f32.mrb[108].mxu0 }
 0x1df   : > { %v4362_v54 = vpop.f32.mrb[84].mxu1  ;;  %v4323_v15 = vpop.f32.mrb[109].mxu0 }
 0x1e0   : > { %v4324_v25 = vadd.f32 %v4323_v15, %v4322_v11  ;;  %v4363_v12 = vpop.f32.mrb[85].mxu1  ;;  %v4325_v16 = vpop.f32.mrb[110].mxu0 }
 0x1e1   : > { %v4364_v34 = vadd.f32 %v4363_v12, %v4362_v54  ;;  %v4365_v8 = vpop.f32.mrb[86].mxu1  ;;  %v4326_v46 = vpop.f32.mrb[111].mxu0 }
 0x1e2   : > { %v4327_v56 = vadd.f32 %v4326_v46, %v4325_v16  ;;  %v4366_v21 = vpop.f32.mrb[87].mxu1 }
 0x1e3   : > { %v3075_v5 = vadd.f32 %v4364_v34, %v4324_v25  ;;  %v4367_v18 = vadd.f32 %v4366_v21, %v4365_v8 }
 0x1e5   : > { %v3078_v3 = vadd.f32 %v4367_v18, %v4327_v56 }
 0x1e6   : > { %v4384_v51 = vpop.f32.mrb[112].mxu0 }
 0x1e7   : > { %v4402_v28 = vpop.f32.mrb[88].mxu1  ;;  %v4385_v36 = vpop.f32.mrb[113].mxu0 }
 0x1e8   : > { %v4403_v39 = vpop.f32.mrb[89].mxu1  ;;  %v4386_v1 = vadd.f32 %v4385_v36, %v4384_v51  ;;  %v4387_v22 = vpop.f32.mrb[114].mxu0 }
 0x1e9   : > { %v4404_v59 = vadd.f32 %v4403_v39, %v4402_v28  ;;  %v4405_v53 = vpop.f32.mrb[90].mxu1  ;;  %v4388_v55 = vpop.f32.mrb[115].mxu0 }
 0x1ea   : > { %v4406_v44 = vpop.f32.mrb[91].mxu1  ;;  %v4389_v37 = vadd.f32 %v4388_v55, %v4387_v22  ;;  %v3116_v47 = vadd.f32 %v4386_v1, %v3051_v63 }
 0x1eb   : > { %v4407_v45 = vadd.f32 %v4406_v44, %v4405_v53  ;;  %v3140_v27 = vadd.f32 %v4404_v59, %v3075_v5 }
 0x1ec   : > { %v3119_v52 = vadd.f32 %v4389_v37, %v3054_v49 }
 0x1ed   : > { %v3143_v31 = vadd.f32 %v4407_v45, %v3078_v3 }
 0x1ee   : > { %v4390_v6 = vpop.f32.mrb[116].mxu0 }
 0x1ef   : > { %v4456_v62 = vpop.f32.mrb[92].mxu1  ;;  %v4391_v19 = vpop.f32.mrb[117].mxu0 }
 0x1f0   : > { %v3180_v4 = vpop.f32.mrb[93].mxu1  ;;  %v4392_v11 = vadd.f32 %v4391_v19, %v4390_v6  ;;  %v4393_v54 = vpop.f32.mrb[118].mxu0 }
 0x1f1   : > { %v3181_v15 = vadd.f32 %v3180_v4, %v3116_v47  ;;  %v4457_v25 = vpop.f32.mrb[94].mxu1  ;;  %v4394_v12 = vpop.f32.mrb[119].mxu0 }
 0x1f2   : > { %v3183_v16 = vpop.f32.mrb[95].mxu1  ;;  %v3124_v34 = vadd.f32 %v4392_v11, %v3059_v57  ;;  %v4395_v8 = vadd.f32 %v4394_v12, %v4393_v54 }
 0x1f3   : > { %v3211_v46 = vmul.f32 %v3181_v15, %v5488_v58  ;;  %v3184_v63 = vadd.f32 %v3183_v16, %v3119_v52 }
 0x1f4   : > { %v3189_v56 = vadd.f32 %v4456_v62, %v3124_v34  ;;  %v3127_v21 = vadd.f32 %v4395_v8, %v3062_v2 }
 0x1f5   : > { %v3219_v49 = vadd.f32 %v3211_v46, %v5520_v14  ;;  %v3212_v5 = vmul.f32 %v3184_v63, %v5496_v42 }
 0x1f6   : > { %v3213_v18 = vmul.f32 %v3189_v56, %v5492_v61  ;;  %v3192_v3 = vadd.f32 %v4457_v25, %v3127_v21  ;;  %v4396_v51 = vpop.f32.mrb[120].mxu0 }
 0x1f7   : > { %v3227_v28 = vmax.f32 %v3219_v49, 0.0  ;;  %v3220_v36 = vadd.f32 %v3212_v5, %v5525_v29  ;;  %v4460_v39 = vpop.f32.mrb[96].mxu1  ;;  %v4397_v57 = vpop.f32.mrb[121].mxu0 }
 0x1f8   : > { %v3221_v1 = vadd.f32 %v3213_v18, %v5537_v7  ;;  %v3214_v58 = vmul.f32 %v3192_v3, %v5500_v30  ;;  %v3205_v22 = vadd.f32 %v4460_v39, %v3140_v27  ;;  %v3196_v2 = vpop.f32.mrb[97].mxu1  ;;  %v4398_v59 = vadd.f32 %v4397_v57, %v4396_v51  ;;  %v4399_v14 = vpop.f32.mrb[122].mxu0 }
 0x1f9   : > { %v3235_v42 = vmax.f32 %v5614_v10, %v3227_v28  ;;  %v3228_v61 = vmax.f32 %v3220_v36, 0.0  ;;  %v4461_v53 = vpop.f32.mrb[98].mxu1  ;;  %v4400_v55 = vpop.f32.mrb[123].mxu0 }
 0x1fa   : > { %v3229_v29 = vmax.f32 %v3221_v1, 0.0  ;;  %v3222_v7 = vadd.f32 %v3214_v58, %v5543_v17  ;;  %v3217_v30 = vmul.f32 %v3205_v22, %v5512_v24  ;;  %v3208_v44 = vadd.f32 %v4461_v53, %v3143_v31  ;;  %v3199_v37 = vpop.f32.mrb[99].mxu1 }
 0x1fb   : > { %v3902_v47 = vpack.c.bf16 %v3235_v42, %v3235_v42  ;;  %v3236_v10 = vmax.f32 %v5617_v35, %v3228_v61  ;;  %v3132_v45 = vadd.f32 %v4398_v59, %v5653_v50  ;;  %v4401_v27 = vadd.f32 %v4400_v55, %v4399_v14 }
 0x1fc   : > { %v3237_v52 = vmax.f32 %v5625_v38, %v3229_v29  ;;  %v3230_v6 = vmax.f32 %v3222_v7, 0.0  ;;  %v3225_v62 = vadd.f32 %v3217_v30, %v5579_v43  ;;  %v3218_v19 = vmul.f32 %v3208_v44, %v5516_v9 }
 0x1fd   : > { %3276 = vst.msk [vmem:[%s5669_s28] sm:$0xf] %vm3275_vm1, %v3902_v47  ;;  %v3903_v24 = vpack.c.bf16 %v3236_v10, %v3236_v10  ;;  %v3197_v17 = vadd.f32 %v3196_v2, %v3132_v45  ;;  %v3135_v31 = vadd.f32 %v4401_v27, %v5655_v13 }
 0x1fe   : > { %v3904_v4 = vpack.c.bf16 %v3237_v52, %v3237_v52  ;;  %v3238_v35 = vmax.f32 %v5629_v48, %v3230_v6  ;;  %v3233_v50 = vmax.f32 %v3225_v62, 0.0  ;;  %v3226_v11 = vadd.f32 %v3218_v19, %v5587_v23 }
 0x1ff   : > { %3277 = vst.msk [vmem:[%s5669_s28 + $0x4] sm:$0xf] %vm3275_vm1, %v3903_v24  ;;  %v3215_v43 = vmul.f32 %v3197_v17, %v5504_v33  ;;  %v3200_v38 = vadd.f32 %v3199_v37, %v3135_v31 }
 0x200   : > { %3278 = vst.msk [vmem:[%s5669_s28 + $0x8] sm:$0xf] %vm3275_vm1, %v3904_v4  ;;  %v3905_v9 = vpack.c.bf16 %v3238_v35, %v3238_v35  ;;  %v3241_v54 = vmax.f32 %v5648_v20, %v3233_v50  ;;  %v3234_v13 = vmax.f32 %v3226_v11, 0.0 }
 0x201   : > { %v3223_v15 = vadd.f32 %v3215_v43, %v5557_v60  ;;  %v3216_v48 = vmul.f32 %v3200_v38, %v5508_v32 }
 0x202   : > { %3279 = vst.msk [vmem:[%s5669_s28 + $0xc] sm:$0xf] %vm3275_vm1, %v3905_v9  ;;  %v3908_v23 = vpack.c.bf16 %v3241_v54, %v3241_v54  ;;  %v3242_v25 = vmax.f32 %v5651_v26, %v3234_v13 }
 0x203   : > { %v3231_v33 = vmax.f32 %v3223_v15, 0.0  ;;  %v3224_v12 = vadd.f32 %v3216_v48, %v5563_v41 }
 0x204   : > { %3282 = vst.msk [vmem:[%s5669_s28 + $0x18] sm:$0xf] %vm3275_vm1, %v3908_v23  ;;  %v3909_v16 = vpack.c.bf16 %v3242_v25, %v3242_v25 }
 0x205   : > { %v3239_v20 = vmax.f32 %v5637_v40, %v3231_v33  ;;  %v3232_v34 = vmax.f32 %v3224_v12, 0.0 }
 0x206   : > { %3283 = vst.msk [vmem:[%s5669_s28 + $0x1c] sm:$0xf] %vm3275_vm1, %v3909_v16 }
 0x207   : > { %v3906_v60 = vpack.c.bf16 %v3239_v20, %v3239_v20  ;;  %v3240_v8 = vmax.f32 %v5641_v0, %v3232_v34 }
 0x209   : > { %3280 = vst.msk [vmem:[%s5669_s28 + $0x10] sm:$0xf] %vm3275_vm1, %v3906_v60  ;;  %v3907_v32 = vpack.c.bf16 %v3240_v8, %v3240_v8 }
 0x20b   : > { %3281 = vst.msk [vmem:[%s5669_s28 + $0x14] sm:$0xf] %vm3275_vm1, %v3907_v32 }
 0x20c PF: > { %s14_s15 = sadd.s32 1, %s4764_s15  }
 0x20d   : > { %p11_p4 = scmp.ge.s32.totalorder %s14_s15, 4  }
 0x20f   :  { %13 = sbr.rel (!%p11_p4) target bundleno = 1 (0x1), region = 69 }

// kernel: siamese_forward.7
= control target key start
LH: loop header
LB: loop body
LE: loop exit
PB: predicated region body
PF: predicated region fallthrough
CT: control target
= control target key end

     0   :  { %v689_v29 = vlaneseq  ;;  %v5104_v35 = vmov 1966171168   ;;  %s6256_s0 = inlined_call_operand.vmem [shape: bf16[2,5184], index: 0, kind: input, shape index: {}]   ;;  %s6257_s1 = inlined_call_operand.vmem [shape: bf16[5184,128], index: 1, kind: input, shape index: {}]   ;;  %s6258_s2 = inlined_call_operand.vmem [shape: f32[1,128], index: 2, kind: input, shape index: {}]   ;;  %s6259_s3 = inlined_call_operand.vmem [shape: f32[1,128], index: 3, kind: input, shape index: {}]   ;;  %s6260_s4 = inlined_call_operand.vmem [shape: bf16[128,128], index: 4, kind: input, shape index: {}]   ;;  %s6261_s5 = inlined_call_operand.vmem [shape: f32[1,128], index: 5, kind: input, shape index: {}]   ;;  %s6262_s6 = inlined_call_operand.hbm [shape: f32[2,128], index: 6, kind: output, shape index: {}]  }
   0x1   :  { %v4743_v0 = vld [vmem:[%s6257_s1 + $0x40] sm:$0xff]   ;;  %v4747_v4 = vld [vmem:[%s6257_s1 + $0x48] sm:$0xff]   ;;  %v4751_v8 = vld [vmem:[%s6257_s1 + $0x50] sm:$0xff]   ;;  %v687_v36 = vunpack.c.l.s4 %v5104_v35 }
   0x2   :  { %v4744_v1 = vld [vmem:[%s6257_s1 + $0xc0] sm:$0xff]   ;;  %4253 = vmatprep.subr.bf16.mxu0 %v4743_v0  ;;  %v4748_v5 = vld [vmem:[%s6257_s1 + $0xc8] sm:$0xff]   ;;  %v4752_v9 = vld [vmem:[%s6257_s1 + $0xd0] sm:$0xff]   ;;  %v690_v33 = vshrl.u32 %v689_v29, 7 }
   0x3   :  { %v4745_v2 = vld [vmem:[%s6257_s1] sm:$0xff]   ;;  %4275 = vmatprep.subr.bf16.mxu1 %v4744_v1  ;;  %v4749_v6 = vld [vmem:[%s6257_s1 + $0x8] sm:$0xff]   ;;  %v4753_v10 = vld [vmem:[%s6257_s1 + $0x10] sm:$0xff]   ;;  %v688_v39 = vunpack.c.0.s8 %v687_v36 }
   0x4   :  { %v4746_v3 = vld [vmem:[%s6257_s1 + $0x80] sm:$0xff]   ;;  %4254 = vmatpush3.bf16.msra.mxu0 %v4745_v2  ;;  %v4750_v7 = vld [vmem:[%s6257_s1 + $0x88] sm:$0xff]   ;;  %v4754_v11 = vld [vmem:[%s6257_s1 + $0x90] sm:$0xff]  }
   0x5   :  { %4276 = vmatpush3.bf16.msra.mxu1 %v4746_v3  ;;  %4255 = vmatprep.subr.bf16.mxu0 %v4747_v4  ;;  %v4755_v12 = vld [vmem:[%s6257_s1 + $0x58] sm:$0xff]   ;;  %v4759_v16 = vld [vmem:[%s6257_s1 + $0x60] sm:$0xff]   ;;  %v4763_v20 = vld [vmem:[%s6257_s1 + $0x68] sm:$0xff]   ;;  %v5248_v41 = vsub.s32 %v688_v39, %v690_v33 }
   0x6   :  { %4277 = vmatprep.subr.bf16.mxu1 %v4748_v5  ;;  %v4756_v13 = vld [vmem:[%s6257_s1 + $0xd8] sm:$0xff]   ;;  %v4760_v17 = vld [vmem:[%s6257_s1 + $0xe0] sm:$0xff]   ;;  %v4764_v21 = vld [vmem:[%s6257_s1 + $0xe8] sm:$0xff]  }
   0x7   :  { %v4757_v14 = vld [vmem:[%s6257_s1 + $0x18] sm:$0xff]   ;;  %v4761_v18 = vld [vmem:[%s6257_s1 + $0x20] sm:$0xff]   ;;  %v4765_v22 = vld [vmem:[%s6257_s1 + $0x28] sm:$0xff]  }
   0x8   :  { %4256 = vmatpush3.bf16.msra.mxu0 %v4749_v6  ;;  %v4758_v15 = vld [vmem:[%s6257_s1 + $0x98] sm:$0xff]   ;;  %v4762_v19 = vld [vmem:[%s6257_s1 + $0xa0] sm:$0xff]   ;;  %v4766_v23 = vld [vmem:[%s6257_s1 + $0xa8] sm:$0xff]  }
   0x9   :  { %4278 = vmatpush3.bf16.msra.mxu1 %v4750_v7  ;;  %4257 = vmatprep.subr.bf16.mxu0 %v4751_v8  ;;  %v4767_v24 = vld [vmem:[%s6257_s1 + $0x70] sm:$0xff]   ;;  %v4771_v28 = vld [vmem:[%s6257_s1 + $0x78] sm:$0xff]   ;;  %v4776_v34 = vld [vmem:[%s6257_s1 + $0x140] sm:$0xff]  }
   0xa   :  { %4279 = vmatprep.subr.bf16.mxu1 %v4752_v9  ;;  %v4768_v25 = vld [vmem:[%s6257_s1 + $0xf0] sm:$0xff]   ;;  %v4772_v30 = vld [vmem:[%s6257_s1 + $0xf8] sm:$0xff]   ;;  %v25_v37 = vld [vmem:[%s6256_s0] sm:$0xff] }
   0xb   :  { %v4769_v26 = vld [vmem:[%s6257_s1 + $0x30] sm:$0xff]   ;;  %v4773_v31 = vld [vmem:[%s6257_s1 + $0x38] sm:$0xff]   ;;  %v685_v38 = vcombine.high %v25_v37, %v25_v37  ;;  %v4778_v40 = vld [vmem:[%s6257_s1 + $0x1c0] sm:$0xff]   ;;  %v692_v42 = vrot.slane %v25_v37, %v5248_v41 }
   0xc   :  { %4258 = vmatpush3.bf16.msra.mxu0 %v4753_v10  ;;  %v4770_v27 = vld [vmem:[%s6257_s1 + $0xb0] sm:$0xff]   ;;  %v4774_v32 = vld [vmem:[%s6257_s1 + $0xb8] sm:$0xff]   ;;  %v4777_v47 = vld [vmem:[%s6257_s1 + $0x100] sm:$0xff]  }
   0xd   :  { %4280 = vmatpush3.bf16.msra.mxu1 %v4754_v11  ;;  %4259 = vmatprep.subr.bf16.mxu0 %v4755_v12  ;;  %v5252_v43 = vrot.slane %v685_v38, %v5248_v41  ;;  %v700_v44 = vcombine.high %v692_v42, %v692_v42  ;;  %v708_v45 = vrot.slane %v692_v42, %v5248_v41  ;;  %v4779_v49 = vld [vmem:[%s6257_s1 + $0x180] sm:$0xff]   ;;  %v4780_v52 = vld [vmem:[%s6257_s1 + $0x148] sm:$0xff]   ;;  %v4784_v58 = vld [vmem:[%s6257_s1 + $0x150] sm:$0xff]  }
   0xe   :  { %4281 = vmatprep.subr.bf16.mxu1 %v4756_v13  ;;  %v4781_v54 = vld [vmem:[%s6257_s1 + $0x108] sm:$0xff]   ;;  %v4785_v59 = vld [vmem:[%s6257_s1 + $0x110] sm:$0xff]   ;;  %v4788_v62 = vld [vmem:[%s6257_s1 + $0x158] sm:$0xff]  }
   0xf   :  { %v701_v46 = vcombine.high %v5252_v43, %v5252_v43  ;;  %v722_v48 = vrot.slane %v700_v44, %v5248_v41  ;;  %v730_v51 = vcombine.high %v708_v45, %v708_v45  ;;  %v4782_v55 = vld [vmem:[%s6257_s1 + $0x1c8] sm:$0xff]   ;;  %v4786_v60 = vld [vmem:[%s6257_s1 + $0x1d0] sm:$0xff]   ;;  %v4789_v63 = vld [vmem:[%s6257_s1 + $0x118] sm:$0xff]  }
  0x10   :  { %4260 = vmatpush3.bf16.msra.mxu0 %v4757_v14  ;;  %v4783_v57 = vld [vmem:[%s6257_s1 + $0x188] sm:$0xff]   ;;  %v4787_v61 = vld [vmem:[%s6257_s1 + $0x190] sm:$0xff]   ;;  %v4790_v0 = vld [vmem:[%s6257_s1 + $0x1d8] sm:$0xff]  }
  0x11   :  { %4282 = vmatpush3.bf16.msra.mxu1 %v4758_v15  ;;  %4261 = vmatprep.subr.bf16.mxu0 %v4759_v16  ;;  %v729_v50 = vrot.slane %v701_v46, %v5248_v41  ;;  %v732_v53 = vcombine.high %v722_v48, %v722_v48  ;;  %v4791_v1 = vld [vmem:[%s6257_s1 + $0x198] sm:$0xff]   ;;  %v4792_v2 = vld [vmem:[%s6257_s1 + $0x160] sm:$0xff]   ;;  %v4796_v6 = vld [vmem:[%s6257_s1 + $0x168] sm:$0xff]  }
  0x12   :  { %4283 = vmatprep.subr.bf16.mxu1 %v4760_v17  ;;  %2964 = vmatprep.mubr.bf16.mxu0 %v722_v48  ;;  %v4793_v3 = vld [vmem:[%s6257_s1 + $0x120] sm:$0xff]   ;;  %v4797_v7 = vld [vmem:[%s6257_s1 + $0x128] sm:$0xff]   ;;  %v4800_v10 = vld [vmem:[%s6257_s1 + $0x170] sm:$0xff]  }
  0x13   :  { %v733_v56 = vcombine.high %v729_v50, %v729_v50  ;;  %3004 = vmatprep.mubr.bf16.mxu1 %v732_v53  ;;  %v4794_v4 = vld [vmem:[%s6257_s1 + $0x1e0] sm:$0xff]   ;;  %v4798_v8 = vld [vmem:[%s6257_s1 + $0x1e8] sm:$0xff]   ;;  %v4801_v11 = vld [vmem:[%s6257_s1 + $0x130] sm:$0xff]  }
  0x14   :  { %4262 = vmatpush3.bf16.msra.mxu0 %v4761_v18  ;;  %v4795_v5 = vld [vmem:[%s6257_s1 + $0x1a0] sm:$0xff]   ;;  %v4799_v9 = vld [vmem:[%s6257_s1 + $0x1a8] sm:$0xff]   ;;  %v4802_v12 = vld [vmem:[%s6257_s1 + $0x1f0] sm:$0xff]   ;;  %v715_v18 = vrot.slane %v5252_v43, %v5248_v41 }
  0x15   :  { %4284 = vmatpush3.bf16.msra.mxu1 %v4762_v19  ;;  %4263 = vmatprep.subr.bf16.mxu0 %v4763_v20  ;;  %v4803_v13 = vld [vmem:[%s6257_s1 + $0x1b0] sm:$0xff]   ;;  %v4804_v14 = vld [vmem:[%s6257_s1 + $0x178] sm:$0xff]   ;;  %v4808_v19 = vld [vmem:[%s6257_s1 + $0x240] sm:$0xff]  }
  0x16   :  { %4285 = vmatprep.subr.bf16.mxu1 %v4764_v21  ;;  %v4805_v15 = vld [vmem:[%s6257_s1 + $0x138] sm:$0xff]   ;;  %v4809_v20 = vld [vmem:[%s6257_s1 + $0x200] sm:$0xff]   ;;  %v4817_v29 = vld [vmem:[%s6257_s1 + $0x210] sm:$0xff]  }
  0x17   :  { %v4806_v16 = vld [vmem:[%s6257_s1 + $0x1f8] sm:$0xff]   ;;  %v4810_v21 = vld [vmem:[%s6257_s1 + $0x2c0] sm:$0xff]   ;;  %v4829_v42 = vld [vmem:[%s6257_s1 + $0x228] sm:$0xff]  }
  0x18   :  { %4264 = vmatpush3.bf16.msra.mxu0 %v4765_v22  ;;  %v4807_v17 = vld [vmem:[%s6257_s1 + $0x1b8] sm:$0xff]   ;;  %v4811_v22 = vld [vmem:[%s6257_s1 + $0x280] sm:$0xff]   ;;  %v4830_v43 = vld [vmem:[%s6257_s1 + $0x2e8] sm:$0xff]  }
  0x19   :  { %4286 = vmatpush3.bf16.msra.mxu1 %v4766_v23  ;;  %4265 = vmatprep.subr.bf16.mxu0 %v4767_v24  ;;  %v731_v23 = vcombine.high %v715_v18, %v715_v18  ;;  %v4812_v24 = vld [vmem:[%s6257_s1 + $0x248] sm:$0xff]   ;;  %v4821_v33 = vld [vmem:[%s6257_s1 + $0x218] sm:$0xff]   ;;  %v4824_v36 = vld [vmem:[%s6257_s1 + $0x260] sm:$0xff]  }
  0x1a   :  { %4287 = vmatprep.subr.bf16.mxu1 %v4768_v25  ;;  %v4813_v25 = vld [vmem:[%s6257_s1 + $0x208] sm:$0xff]   ;;  %v4823_v35 = vld [vmem:[%s6257_s1 + $0x298] sm:$0xff]   ;;  %v4825_v37 = vld [vmem:[%s6257_s1 + $0x220] sm:$0xff]  }
  0x1b   :  { %v4826_v38 = vld [vmem:[%s6257_s1 + $0x2e0] sm:$0xff]   ;;  %v4831_v44 = vld [vmem:[%s6257_s1 + $0x2a8] sm:$0xff]   ;;  %v4832_v46 = vld [vmem:[%s6257_s1 + $0x270] sm:$0xff]  }
  0x1c   :  { %4266 = vmatpush3.bf16.msra.mxu0 %v4769_v26  ;;  %v4814_v26 = vld [vmem:[%s6257_s1 + $0x2c8] sm:$0xff]   ;;  %v4827_v39 = vld [vmem:[%s6257_s1 + $0x2a0] sm:$0xff]   ;;  %v4835_v53 = vld [vmem:[%s6257_s1 + $0x2b0] sm:$0xff]  }
  0x1d   :  { %4288 = vmatpush3.bf16.msra.mxu1 %v4770_v27  ;;  %4267 = vmatprep.subr.bf16.mxu0 %v4771_v28  ;;  %v4815_v27 = vld [vmem:[%s6257_s1 + $0x288] sm:$0xff]   ;;  %v4816_v28 = vld [vmem:[%s6257_s1 + $0x250] sm:$0xff]  }
  0x1e   :  { %4289 = vmatprep.subr.bf16.mxu1 %v4772_v30  ;;  %v4818_v30 = vld [vmem:[%s6257_s1 + $0x2d0] sm:$0xff]  }
  0x20   :  { %4268 = vmatpush3.bf16.msra.mxu0 %v4773_v31  ;;  %v4819_v31 = vld [vmem:[%s6257_s1 + $0x290] sm:$0xff]  }
  0x21   :  { %4290 = vmatpush3.bf16.msra.mxu1 %v4774_v32  ;;  %4297 = vmatprep.subr.bf16.mxu0 %v4776_v34  ;;  %v4820_v32 = vld [vmem:[%s6257_s1 + $0x258] sm:$0xff]  }
  0x22   :  { %4319 = vmatprep.subr.bf16.mxu1 %v4778_v40  ;;  %v4822_v34 = vld [vmem:[%s6257_s1 + $0x2d8] sm:$0xff]   ;;  %v4828_v40 = vld [vmem:[%s6257_s1 + $0x268] sm:$0xff]  }
  0x23   :  { %2965 = vmatmul.mubr.bf16.vlgmr.msra.gmra.mrb[0].mxu0 %v708_v45  ;;  %v26_v45 = vld [vmem:[%s6256_s0 + $0x8] sm:$0xff] }
  0x24   :  { %4298 = vmatpush3.bf16.msra.mxu0 %v4777_v47  ;;  %3005 = vmatmul.mubr.bf16.vlgmr.msra.gmra.mrb[0].mxu1 %v730_v51  ;;  %v741_v47 = vrot.slane %v26_v45, %v5248_v41  ;;  %v734_v48 = vcombine.high %v26_v45, %v26_v45  ;;  %v4882_v45 = vld [vmem:[%s6257_s1 + $0x410] sm:$0xff]  }
  0x25   :  { %4299 = vmatprep.subr.bf16.mxu0 %v4780_v52  ;;  %4320 = vmatpush3.bf16.msra.mxu1 %v4779_v49  ;;  %v4833_v49 = vld [vmem:[%s6257_s1 + $0x230] sm:$0xff]  }
  0x26   :  { %3044 = vmatprep.mubr.bf16.mxu0 %v729_v50  ;;  %4321 = vmatprep.subr.bf16.mxu1 %v4782_v55  ;;  %v4834_v50 = vld [vmem:[%s6257_s1 + $0x2f0] sm:$0xff]   ;;  %v749_v51 = vcombine.high %v741_v47, %v741_v47  ;;  %v5437_v52 = vrot.slane %v734_v48, %v5248_v41  ;;  %v4885_v48 = vld [vmem:[%s6257_s1 + $0x458] sm:$0xff]  }
  0x27   :  { %3084 = vmatprep.mubr.bf16.mxu1 %v733_v56  ;;  %v4837_v56 = vld [vmem:[%s6257_s1 + $0x238] sm:$0xff]  }
  0x28   :  { %4300 = vmatpush3.bf16.msra.mxu0 %v4781_v54  ;;  %v4836_v54 = vld [vmem:[%s6257_s1 + $0x278] sm:$0xff]   ;;  %v771_v55 = vrot.slane %v749_v51, %v5248_v41 }
  0x29   :  { %4301 = vmatprep.subr.bf16.mxu0 %v4784_v58  ;;  %4322 = vmatpush3.bf16.msra.mxu1 %v4783_v57  ;;  %v750_v57 = vcombine.high %v5437_v52, %v5437_v52  ;;  %v4838_v58 = vld [vmem:[%s6257_s1 + $0x2f8] sm:$0xff]  }
  0x2a   :  { %4323 = vmatprep.subr.bf16.mxu1 %v4786_v60  ;;  %v4839_v60 = vld [vmem:[%s6257_s1 + $0x2b8] sm:$0xff]  }
  0x2b   :  { %v4888_v51 = vld [vmem:[%s6257_s1 + $0x498] sm:$0xff]  }
  0x2c   :  { %4302 = vmatpush3.bf16.msra.mxu0 %v4785_v59  ;;  %v781_v59 = vcombine.high %v771_v55, %v771_v55 }
  0x2d   :  { %4303 = vmatprep.subr.bf16.mxu0 %v4788_v62  ;;  %4324 = vmatpush3.bf16.msra.mxu1 %v4787_v61  ;;  %v757_v61 = vrot.slane %v741_v47, %v5248_v41  ;;  %v4840_v62 = vld [vmem:[%s6257_s1 + $0x340] sm:$0xff]   ;;  %v4884_v47 = vld [vmem:[%s6257_s1 + $0x490] sm:$0xff]  }
  0x2e   :  { %4325 = vmatprep.subr.bf16.mxu1 %v4790_v0  ;;  %v778_v0 = vrot.slane %v750_v57, %v5248_v41  ;;  %v4894_v57 = vld [vmem:[%s6257_s1 + $0x428] sm:$0xff]  }
  0x30   :  { %4304 = vmatpush3.bf16.msra.mxu0 %v4789_v63  ;;  %v4841_v63 = vld [vmem:[%s6257_s1 + $0x300] sm:$0xff]  }
  0x31   :  { %4305 = vmatprep.subr.bf16.mxu0 %v4792_v2  ;;  %4326 = vmatpush3.bf16.msra.mxu1 %v4791_v1  ;;  %v4842_v1 = vld [vmem:[%s6257_s1 + $0x3c0] sm:$0xff]  }
  0x32   :  { %4327 = vmatprep.subr.bf16.mxu1 %v4794_v4  ;;  %v4843_v2 = vld [vmem:[%s6257_s1 + $0x380] sm:$0xff]   ;;  %v4844_v4 = vld [vmem:[%s6257_s1 + $0x348] sm:$0xff]  }
  0x34   :  { %4306 = vmatpush3.bf16.msra.mxu0 %v4793_v3  ;;  %v779_v3 = vcombine.high %v757_v61, %v757_v61 }
  0x35   :  { %4307 = vmatprep.subr.bf16.mxu0 %v4796_v6  ;;  %4328 = vmatpush3.bf16.msra.mxu1 %v4795_v5  ;;  %v4845_v5 = vld [vmem:[%s6257_s1 + $0x308] sm:$0xff]   ;;  %v782_v6 = vcombine.high %v778_v0, %v778_v0 }
  0x36   :  { %4329 = vmatprep.subr.bf16.mxu1 %v4798_v8  ;;  %v4847_v8 = vld [vmem:[%s6257_s1 + $0x388] sm:$0xff]  }
  0x38   :  { %4308 = vmatpush3.bf16.msra.mxu0 %v4797_v7  ;;  %v4846_v7 = vld [vmem:[%s6257_s1 + $0x3c8] sm:$0xff]  }
  0x39   :  { %4309 = vmatprep.subr.bf16.mxu0 %v4800_v10  ;;  %4330 = vmatpush3.bf16.msra.mxu1 %v4799_v9  ;;  %v4848_v9 = vld [vmem:[%s6257_s1 + $0x350] sm:$0xff]  }
  0x3a   :  { %4331 = vmatprep.subr.bf16.mxu1 %v4802_v12  ;;  %v4849_v10 = vld [vmem:[%s6257_s1 + $0x310] sm:$0xff]  }
  0x3b   :  { %v4851_v12 = vld [vmem:[%s6257_s1 + $0x390] sm:$0xff]  }
  0x3c   :  { %4310 = vmatpush3.bf16.msra.mxu0 %v4801_v11  ;;  %v4850_v11 = vld [vmem:[%s6257_s1 + $0x3d0] sm:$0xff]  }
  0x3d   :  { %4311 = vmatprep.subr.bf16.mxu0 %v4804_v14  ;;  %4332 = vmatpush3.bf16.msra.mxu1 %v4803_v13  ;;  %v4852_v13 = vld [vmem:[%s6257_s1 + $0x358] sm:$0xff]  }
  0x3e   :  { %4333 = vmatprep.subr.bf16.mxu1 %v4806_v16  ;;  %v4853_v14 = vld [vmem:[%s6257_s1 + $0x318] sm:$0xff]  }
  0x3f   :  { %v4855_v16 = vld [vmem:[%s6257_s1 + $0x398] sm:$0xff]  }
  0x40   :  { %4312 = vmatpush3.bf16.msra.mxu0 %v4805_v15  ;;  %v4854_v15 = vld [vmem:[%s6257_s1 + $0x3d8] sm:$0xff]  }
  0x41   :  { %4341 = vmatprep.subr.bf16.mxu0 %v4808_v19  ;;  %4334 = vmatpush3.bf16.msra.mxu1 %v4807_v17  ;;  %v4856_v17 = vld [vmem:[%s6257_s1 + $0x360] sm:$0xff]  }
  0x42   :  { %4363 = vmatprep.subr.bf16.mxu1 %v4810_v21  ;;  %v4858_v19 = vld [vmem:[%s6257_s1 + $0x3e0] sm:$0xff]   ;;  %v4860_v21 = vld [vmem:[%s6257_s1 + $0x368] sm:$0xff]  }
  0x43   :  { %3045 = vmatmul.mubr.bf16.vlgmr.msra.gmra.mrb[4].mxu0 %v715_v18  ;;  %v4857_v18 = vld [vmem:[%s6257_s1 + $0x320] sm:$0xff]  }
  0x44   :  { %4342 = vmatpush3.bf16.msra.mxu0 %v4809_v20  ;;  %3085 = vmatmul.mubr.bf16.vlgmr.msra.gmra.mrb[4].mxu1 %v731_v23  ;;  %v4859_v20 = vld [vmem:[%s6257_s1 + $0x3a0] sm:$0xff]   ;;  %v4862_v23 = vld [vmem:[%s6257_s1 + $0x3e8] sm:$0xff]  }
  0x45   :  { %4343 = vmatprep.subr.bf16.mxu0 %v4812_v24  ;;  %4364 = vmatpush3.bf16.msra.mxu1 %v4811_v22  ;;  %v4861_v22 = vld [vmem:[%s6257_s1 + $0x328] sm:$0xff]  }
  0x46   :  { %4365 = vmatprep.subr.bf16.mxu1 %v4814_v26  ;;  %3124 = vmatprep.mubr.bf16.mxu0 %v771_v55  ;;  %v4863_v24 = vld [vmem:[%s6257_s1 + $0x3a8] sm:$0xff]   ;;  %v4865_v26 = vld [vmem:[%s6257_s1 + $0x330] sm:$0xff]   ;;  %v4892_v55 = vld [vmem:[%s6257_s1 + $0x4a0] sm:$0xff]  }
  0x47   :  { %3164 = vmatprep.mubr.bf16.mxu1 %v781_v59  ;;  %v4896_v59 = vld [vmem:[%s6257_s1 + $0x4a8] sm:$0xff]  }
  0x48   :  { %4344 = vmatpush3.bf16.msra.mxu0 %v4813_v25  ;;  %v4864_v25 = vld [vmem:[%s6257_s1 + $0x370] sm:$0xff]  }
  0x49   :  { %4345 = vmatprep.subr.bf16.mxu0 %v4816_v28  ;;  %4366 = vmatpush3.bf16.msra.mxu1 %v4815_v27  ;;  %v4866_v27 = vld [vmem:[%s6257_s1 + $0x3f0] sm:$0xff]  }
  0x4a   :  { %4367 = vmatprep.subr.bf16.mxu1 %v4818_v30  ;;  %v4867_v28 = vld [vmem:[%s6257_s1 + $0x3b0] sm:$0xff]   ;;  %v4869_v30 = vld [vmem:[%s6257_s1 + $0x338] sm:$0xff]  }
  0x4c   :  { %4346 = vmatpush3.bf16.msra.mxu0 %v4817_v29  ;;  %v4868_v29 = vld [vmem:[%s6257_s1 + $0x378] sm:$0xff]  }
  0x4d   :  { %4347 = vmatprep.subr.bf16.mxu0 %v4820_v32  ;;  %4368 = vmatpush3.bf16.msra.mxu1 %v4819_v31  ;;  %v4870_v31 = vld [vmem:[%s6257_s1 + $0x3f8] sm:$0xff]  }
  0x4e   :  { %4369 = vmatprep.subr.bf16.mxu1 %v4822_v34  ;;  %v4872_v32 = vld [vmem:[%s6257_s1 + $0x3b8] sm:$0xff]   ;;  %v4873_v34 = vld [vmem:[%s6257_s1 + $0x440] sm:$0xff]  }
  0x50   :  { %4348 = vmatpush3.bf16.msra.mxu0 %v4821_v33  ;;  %v764_v33 = vrot.slane %v5437_v52, %v5248_v41  ;;  %v4889_v52 = vld [vmem:[%s6257_s1 + $0x460] sm:$0xff]  }
  0x51   :  { %4349 = vmatprep.subr.bf16.mxu0 %v4824_v36  ;;  %4370 = vmatpush3.bf16.msra.mxu1 %v4823_v35  ;;  %v4874_v35 = vld [vmem:[%s6257_s1 + $0x400] sm:$0xff]  }
  0x52   :  { %4371 = vmatprep.subr.bf16.mxu1 %v4826_v38  ;;  %v4875_v36 = vld [vmem:[%s6257_s1 + $0x4c0] sm:$0xff]   ;;  %v780_v38 = vcombine.high %v764_v33, %v764_v33 }
  0x54   :  { %4350 = vmatpush3.bf16.msra.mxu0 %v4825_v37  ;;  %v4876_v37 = vld [vmem:[%s6257_s1 + $0x480] sm:$0xff]  }
  0x55   :  { %4351 = vmatprep.subr.bf16.mxu0 %v4828_v40  ;;  %4372 = vmatpush3.bf16.msra.mxu1 %v4827_v39  ;;  %v4877_v39 = vld [vmem:[%s6257_s1 + $0x448] sm:$0xff]  }
  0x56   :  { %4373 = vmatprep.subr.bf16.mxu1 %v4830_v43  ;;  %v4878_v40 = vld [vmem:[%s6257_s1 + $0x408] sm:$0xff]  }
  0x57   :  { %v4880_v43 = vld [vmem:[%s6257_s1 + $0x488] sm:$0xff]  }
  0x58   :  { %4352 = vmatpush3.bf16.msra.mxu0 %v4829_v42  ;;  %v4879_v42 = vld [vmem:[%s6257_s1 + $0x4c8] sm:$0xff]  }
  0x59   :  { %4353 = vmatprep.subr.bf16.mxu0 %v4832_v46  ;;  %4374 = vmatpush3.bf16.msra.mxu1 %v4831_v44  ;;  %v4881_v44 = vld [vmem:[%s6257_s1 + $0x450] sm:$0xff]  }
  0x5a   :  { %4375 = vmatprep.subr.bf16.mxu1 %v4834_v50  ;;  %v4883_v46 = vld [vmem:[%s6257_s1 + $0x4d0] sm:$0xff]   ;;  %v4887_v50 = vld [vmem:[%s6257_s1 + $0x4d8] sm:$0xff]  }
  0x5c   :  { %4354 = vmatpush3.bf16.msra.mxu0 %v4833_v49  ;;  %v4886_v49 = vld [vmem:[%s6257_s1 + $0x418] sm:$0xff]  }
  0x5d   :  { %4355 = vmatprep.subr.bf16.mxu0 %v4836_v54  ;;  %4376 = vmatpush3.bf16.msra.mxu1 %v4835_v53  ;;  %v4890_v53 = vld [vmem:[%s6257_s1 + $0x420] sm:$0xff]  }
  0x5e   :  { %4377 = vmatprep.subr.bf16.mxu1 %v4838_v58  ;;  %v4891_v54 = vld [vmem:[%s6257_s1 + $0x4e0] sm:$0xff]   ;;  %v4895_v58 = vld [vmem:[%s6257_s1 + $0x4e8] sm:$0xff]  }
  0x60   :  { %4356 = vmatpush3.bf16.msra.mxu0 %v4837_v56  ;;  %v4893_v56 = vld [vmem:[%s6257_s1 + $0x468] sm:$0xff]  }
  0x61   :  { %4385 = vmatprep.subr.bf16.mxu0 %v4840_v62  ;;  %4378 = vmatpush3.bf16.msra.mxu1 %v4839_v60  ;;  %v27_v60 = vld [vmem:[%s6256_s0 + $0x10] sm:$0xff] }
  0x62   :  { %4407 = vmatprep.subr.bf16.mxu1 %v4842_v1  ;;  %v790_v62 = vrot.slane %v27_v60, %v5248_v41  ;;  %v4899_v1 = vld [vmem:[%s6257_s1 + $0x4f0] sm:$0xff]  }
  0x63   :  { %3125 = vmatmul.mubr.bf16.vlgmr.msra.gmra.mrb[8].mxu0 %v757_v61  ;;  %v4897_v61 = vld [vmem:[%s6257_s1 + $0x470] sm:$0xff]  }
  0x64   :  { %4386 = vmatpush3.bf16.msra.mxu0 %v4841_v63  ;;  %3204 = vmatprep.mubr.bf16.mxu0 %v778_v0  ;;  %v783_v63 = vcombine.high %v27_v60, %v27_v60  ;;  %v4898_v0 = vld [vmem:[%s6257_s1 + $0x430] sm:$0xff]  }
  0x65   :  { %3165 = vmatmul.mubr.bf16.vlgmr.msra.gmra.mrb[8].mxu1 %v779_v3  ;;  %4387 = vmatprep.subr.bf16.mxu0 %v4844_v4  ;;  %v4900_v4 = vld [vmem:[%s6257_s1 + $0x4b0] sm:$0xff]  }
  0x66   :  { %4408 = vmatpush3.bf16.msra.mxu1 %v4843_v2  ;;  %3244 = vmatprep.mubr.bf16.mxu1 %v782_v6  ;;  %v798_v2 = vcombine.high %v790_v62, %v790_v62  ;;  %v5643_v3 = vrot.slane %v783_v63, %v5248_v41  ;;  %v4947_v60 = vld [vmem:[%s6257_s1 + $0x610] sm:$0xff]   ;;  %v4950_v63 = vld [vmem:[%s6257_s1 + $0x658] sm:$0xff]  }
  0x67   :  { %4409 = vmatprep.subr.bf16.mxu1 %v4846_v7  ;;  %v4902_v7 = vld [vmem:[%s6257_s1 + $0x438] sm:$0xff]  }
  0x68   :  { %4388 = vmatpush3.bf16.msra.mxu0 %v4845_v5  ;;  %v4901_v5 = vld [vmem:[%s6257_s1 + $0x478] sm:$0xff]   ;;  %v820_v6 = vrot.slane %v798_v2, %v5248_v41 }
  0x69   :  { %4389 = vmatprep.subr.bf16.mxu0 %v4848_v9  ;;  %v4903_v9 = vld [vmem:[%s6257_s1 + $0x4f8] sm:$0xff]  }
  0x6a   :  { %4410 = vmatpush3.bf16.msra.mxu1 %v4847_v8  ;;  %v799_v8 = vcombine.high %v5643_v3, %v5643_v3  ;;  %v4953_v2 = vld [vmem:[%s6257_s1 + $0x698] sm:$0xff]  }
  0x6b   :  { %4411 = vmatprep.subr.bf16.mxu1 %v4850_v11  ;;  %v4904_v11 = vld [vmem:[%s6257_s1 + $0x4b8] sm:$0xff]  }
  0x6c   :  { %4390 = vmatpush3.bf16.msra.mxu0 %v4849_v10  ;;  %v830_v10 = vcombine.high %v820_v6, %v820_v6 }
  0x6d   :  { %4391 = vmatprep.subr.bf16.mxu0 %v4852_v13  ;;  %v4905_v13 = vld [vmem:[%s6257_s1 + $0x540] sm:$0xff]  }
  0x6e   :  { %4412 = vmatpush3.bf16.msra.mxu1 %v4851_v12  ;;  %v806_v12 = vrot.slane %v790_v62, %v5248_v41  ;;  %v4949_v62 = vld [vmem:[%s6257_s1 + $0x690] sm:$0xff]  }
  0x6f   :  { %4413 = vmatprep.subr.bf16.mxu1 %v4854_v15  ;;  %v827_v15 = vrot.slane %v799_v8, %v5248_v41  ;;  %v4959_v8 = vld [vmem:[%s6257_s1 + $0x628] sm:$0xff]  }
  0x70   :  { %4392 = vmatpush3.bf16.msra.mxu0 %v4853_v14  ;;  %v4906_v14 = vld [vmem:[%s6257_s1 + $0x500] sm:$0xff]  }
  0x71   :  { %4393 = vmatprep.subr.bf16.mxu0 %v4856_v17  ;;  %v4908_v17 = vld [vmem:[%s6257_s1 + $0x580] sm:$0xff]  }
  0x72   :  { %4414 = vmatpush3.bf16.msra.mxu1 %v4855_v16  ;;  %v4907_v16 = vld [vmem:[%s6257_s1 + $0x5c0] sm:$0xff]  }
  0x73   :  { %4415 = vmatprep.subr.bf16.mxu1 %v4858_v19  ;;  %v4909_v19 = vld [vmem:[%s6257_s1 + $0x548] sm:$0xff]  }
  0x74   :  { %4394 = vmatpush3.bf16.msra.mxu0 %v4857_v18  ;;  %v828_v18 = vcombine.high %v806_v12, %v806_v12 }
  0x75   :  { %4395 = vmatprep.subr.bf16.mxu0 %v4860_v21  ;;  %v831_v21 = vcombine.high %v827_v15, %v827_v15 }
  0x76   :  { %4416 = vmatpush3.bf16.msra.mxu1 %v4859_v20  ;;  %v4910_v20 = vld [vmem:[%s6257_s1 + $0x508] sm:$0xff]  }
  0x77   :  { %4417 = vmatprep.subr.bf16.mxu1 %v4862_v23  ;;  %v4912_v23 = vld [vmem:[%s6257_s1 + $0x588] sm:$0xff]  }
  0x78   :  { %4396 = vmatpush3.bf16.msra.mxu0 %v4861_v22  ;;  %v4911_v22 = vld [vmem:[%s6257_s1 + $0x5c8] sm:$0xff]  }
  0x79   :  { %4397 = vmatprep.subr.bf16.mxu0 %v4864_v25  ;;  %v4914_v25 = vld [vmem:[%s6257_s1 + $0x510] sm:$0xff]  }
  0x7a   :  { %4418 = vmatpush3.bf16.msra.mxu1 %v4863_v24  ;;  %v4913_v24 = vld [vmem:[%s6257_s1 + $0x550] sm:$0xff]  }
  0x7b   :  { %4419 = vmatprep.subr.bf16.mxu1 %v4866_v27  ;;  %v4916_v27 = vld [vmem:[%s6257_s1 + $0x590] sm:$0xff]  }
  0x7c   :  { %4398 = vmatpush3.bf16.msra.mxu0 %v4865_v26  ;;  %v4915_v26 = vld [vmem:[%s6257_s1 + $0x5d0] sm:$0xff]  }
  0x7d   :  { %4399 = vmatprep.subr.bf16.mxu0 %v4868_v29  ;;  %v4918_v29 = vld [vmem:[%s6257_s1 + $0x518] sm:$0xff]  }
  0x7e   :  { %4420 = vmatpush3.bf16.msra.mxu1 %v4867_v28  ;;  %v4917_v28 = vld [vmem:[%s6257_s1 + $0x558] sm:$0xff]  }
  0x7f   :  { %4421 = vmatprep.subr.bf16.mxu1 %v4870_v31  ;;  %v4920_v31 = vld [vmem:[%s6257_s1 + $0x598] sm:$0xff]  }
  0x80   :  { %4400 = vmatpush3.bf16.msra.mxu0 %v4869_v30  ;;  %v4919_v30 = vld [vmem:[%s6257_s1 + $0x5d8] sm:$0xff]  }
  0x81   :  { %4429 = vmatprep.subr.bf16.mxu0 %v4873_v34  ;;  %v4923_v34 = vld [vmem:[%s6257_s1 + $0x5e0] sm:$0xff]  }
  0x82   :  { %4422 = vmatpush3.bf16.msra.mxu1 %v4872_v32  ;;  %v4921_v32 = vld [vmem:[%s6257_s1 + $0x560] sm:$0xff]  }
  0x83   :  { %3205 = vmatmul.mubr.bf16.vlgmr.msra.gmra.mrb[12].mxu0 %v764_v33  ;;  %4451 = vmatprep.subr.bf16.mxu1 %v4875_v36  ;;  %v4922_v33 = vld [vmem:[%s6257_s1 + $0x520] sm:$0xff]   ;;  %v4925_v36 = vld [vmem:[%s6257_s1 + $0x568] sm:$0xff]  }
  0x84   :  { %4430 = vmatpush3.bf16.msra.mxu0 %v4874_v35  ;;  %3284 = vmatprep.mubr.bf16.mxu0 %v820_v6  ;;  %v4924_v35 = vld [vmem:[%s6257_s1 + $0x5a0] sm:$0xff]  }
  0x85   :  { %3245 = vmatmul.mubr.bf16.vlgmr.msra.gmra.mrb[12].mxu1 %v780_v38  ;;  %4431 = vmatprep.subr.bf16.mxu0 %v4877_v39  ;;  %v4927_v38 = vld [vmem:[%s6257_s1 + $0x5e8] sm:$0xff]   ;;  %v4957_v6 = vld [vmem:[%s6257_s1 + $0x6a0] sm:$0xff]  }
  0x86   :  { %4452 = vmatpush3.bf16.msra.mxu1 %v4876_v37  ;;  %3324 = vmatprep.mubr.bf16.mxu1 %v830_v10  ;;  %v4926_v37 = vld [vmem:[%s6257_s1 + $0x528] sm:$0xff]  }
  0x87   :  { %4453 = vmatprep.subr.bf16.mxu1 %v4879_v42  ;;  %v4928_v39 = vld [vmem:[%s6257_s1 + $0x5a8] sm:$0xff]   ;;  %v4930_v42 = vld [vmem:[%s6257_s1 + $0x530] sm:$0xff]  }
  0x88   :  { %4432 = vmatpush3.bf16.msra.mxu0 %v4878_v40  ;;  %v4929_v40 = vld [vmem:[%s6257_s1 + $0x570] sm:$0xff]   ;;  %v4961_v10 = vld [vmem:[%s6257_s1 + $0x6a8] sm:$0xff]  }
  0x89   :  { %4433 = vmatprep.subr.bf16.mxu0 %v4881_v44  ;;  %v4932_v44 = vld [vmem:[%s6257_s1 + $0x5b0] sm:$0xff]  }
  0x8a   :  { %4454 = vmatpush3.bf16.msra.mxu1 %v4880_v43  ;;  %v4931_v43 = vld [vmem:[%s6257_s1 + $0x5f0] sm:$0xff]  }
  0x8b   :  { %4455 = vmatprep.subr.bf16.mxu1 %v4883_v46  ;;  %v4934_v46 = vld [vmem:[%s6257_s1 + $0x538] sm:$0xff]  }
  0x8c   :  { %4434 = vmatpush3.bf16.msra.mxu0 %v4882_v45  ;;  %v4933_v45 = vld [vmem:[%s6257_s1 + $0x578] sm:$0xff]  }
  0x8d   :  { %4435 = vmatprep.subr.bf16.mxu0 %v4885_v48  ;;  %v4937_v48 = vld [vmem:[%s6257_s1 + $0x5b8] sm:$0xff]  }
  0x8e   :  { %4456 = vmatpush3.bf16.msra.mxu1 %v4884_v47  ;;  %v4935_v47 = vld [vmem:[%s6257_s1 + $0x5f8] sm:$0xff]  }
  0x8f   :  { %4457 = vmatprep.subr.bf16.mxu1 %v4887_v50  ;;  %v4938_v50 = vld [vmem:[%s6257_s1 + $0x640] sm:$0xff]  }
  0x90   :  { %4436 = vmatpush3.bf16.msra.mxu0 %v4886_v49  ;;  %v813_v49 = vrot.slane %v5643_v3, %v5248_v41  ;;  %v4954_v3 = vld [vmem:[%s6257_s1 + $0x660] sm:$0xff]  }
  0x91   :  { %4437 = vmatprep.subr.bf16.mxu0 %v4889_v52  ;;  %v4940_v52 = vld [vmem:[%s6257_s1 + $0x6c0] sm:$0xff]  }
  0x92   :  { %4458 = vmatpush3.bf16.msra.mxu1 %v4888_v51  ;;  %v4939_v51 = vld [vmem:[%s6257_s1 + $0x600] sm:$0xff]  }
  0x93   :  { %4459 = vmatprep.subr.bf16.mxu1 %v4891_v54  ;;  %v829_v54 = vcombine.high %v813_v49, %v813_v49 }
  0x94   :  { %4438 = vmatpush3.bf16.msra.mxu0 %v4890_v53  ;;  %v4941_v53 = vld [vmem:[%s6257_s1 + $0x680] sm:$0xff]  }
  0x95   :  { %4439 = vmatprep.subr.bf16.mxu0 %v4893_v56  ;;  %v4943_v56 = vld [vmem:[%s6257_s1 + $0x608] sm:$0xff]  }
  0x96   :  { %4460 = vmatpush3.bf16.msra.mxu1 %v4892_v55  ;;  %v4942_v55 = vld [vmem:[%s6257_s1 + $0x648] sm:$0xff]  }
  0x97   :  { %4461 = vmatprep.subr.bf16.mxu1 %v4895_v58  ;;  %v4945_v58 = vld [vmem:[%s6257_s1 + $0x688] sm:$0xff]  }
  0x98   :  { %4440 = vmatpush3.bf16.msra.mxu0 %v4894_v57  ;;  %v4944_v57 = vld [vmem:[%s6257_s1 + $0x6c8] sm:$0xff]  }
  0x99   :  { %4441 = vmatprep.subr.bf16.mxu0 %v4897_v61  ;;  %v4948_v61 = vld [vmem:[%s6257_s1 + $0x6d0] sm:$0xff]  }
  0x9a   :  { %4462 = vmatpush3.bf16.msra.mxu1 %v4896_v59  ;;  %v4946_v59 = vld [vmem:[%s6257_s1 + $0x650] sm:$0xff]  }
  0x9b   :  { %4463 = vmatprep.subr.bf16.mxu1 %v4899_v1  ;;  %v4952_v1 = vld [vmem:[%s6257_s1 + $0x6d8] sm:$0xff]  }
  0x9c   :  { %4442 = vmatpush3.bf16.msra.mxu0 %v4898_v0  ;;  %v4951_v0 = vld [vmem:[%s6257_s1 + $0x618] sm:$0xff]  }
  0x9d   :  { %4443 = vmatprep.subr.bf16.mxu0 %v4901_v5  ;;  %v4956_v5 = vld [vmem:[%s6257_s1 + $0x6e0] sm:$0xff]  }
  0x9e   :  { %4464 = vmatpush3.bf16.msra.mxu1 %v4900_v4  ;;  %v4955_v4 = vld [vmem:[%s6257_s1 + $0x620] sm:$0xff]  }
  0x9f   :  { %4465 = vmatprep.subr.bf16.mxu1 %v4903_v9  ;;  %v4960_v9 = vld [vmem:[%s6257_s1 + $0x6e8] sm:$0xff]  }
  0xa0   :  { %4444 = vmatpush3.bf16.msra.mxu0 %v4902_v7  ;;  %v4958_v7 = vld [vmem:[%s6257_s1 + $0x668] sm:$0xff]  }
  0xa1   :  { %4473 = vmatprep.subr.bf16.mxu0 %v4905_v13  ;;  %v4963_v13 = vld [vmem:[%s6257_s1 + $0x630] sm:$0xff]  }
  0xa2   :  { %4466 = vmatpush3.bf16.msra.mxu1 %v4904_v11  ;;  %v4962_v11 = vld [vmem:[%s6257_s1 + $0x670] sm:$0xff]  }
  0xa3   :  { %3285 = vmatmul.mubr.bf16.vlgmr.msra.gmra.mrb[16].mxu0 %v806_v12  ;;  %4495 = vmatprep.subr.bf16.mxu1 %v4907_v16  ;;  %v28_v12 = vld [vmem:[%s6256_s0 + $0x18] sm:$0xff]  ;;  %v4964_v16 = vld [vmem:[%s6257_s1 + $0x6f0] sm:$0xff]  }
  0xa4   :  { %4474 = vmatpush3.bf16.msra.mxu0 %v4906_v14  ;;  %3364 = vmatprep.mubr.bf16.mxu0 %v827_v15  ;;  %v839_v14 = vrot.slane %v28_v12, %v5248_v41  ;;  %v832_v15 = vcombine.high %v28_v12, %v28_v12  ;;  %v5003_v12 = vld [vmem:[%s6257_s1 + $0x840] sm:$0xff]  }
  0xa5   :  { %3325 = vmatmul.mubr.bf16.vlgmr.msra.gmra.mrb[16].mxu1 %v828_v18  ;;  %4475 = vmatprep.subr.bf16.mxu0 %v4909_v19 }
  0xa6   :  { %4496 = vmatpush3.bf16.msra.mxu1 %v4908_v17  ;;  %3404 = vmatprep.mubr.bf16.mxu1 %v831_v21  ;;  %v4965_v17 = vld [vmem:[%s6257_s1 + $0x6b0] sm:$0xff]   ;;  %v847_v18 = vcombine.high %v839_v14, %v839_v14  ;;  %v5852_v19 = vrot.slane %v832_v15, %v5248_v41  ;;  %v4967_v21 = vld [vmem:[%s6257_s1 + $0x638] sm:$0xff]   ;;  %v5006_v15 = vld [vmem:[%s6257_s1 + $0x880] sm:$0xff]  }
  0xa7   :  { %4497 = vmatprep.subr.bf16.mxu1 %v4911_v22 }
  0xa8   :  { %4476 = vmatpush3.bf16.msra.mxu0 %v4910_v20  ;;  %v4966_v20 = vld [vmem:[%s6257_s1 + $0x678] sm:$0xff]   ;;  %v869_v22 = vrot.slane %v847_v18, %v5248_v41  ;;  %v5008_v18 = vld [vmem:[%s6257_s1 + $0x808] sm:$0xff]  }
  0xa9   :  { %4477 = vmatprep.subr.bf16.mxu0 %v4913_v24  ;;  %v4968_v24 = vld [vmem:[%s6257_s1 + $0x6f8] sm:$0xff]  }
  0xaa   :  { %4498 = vmatpush3.bf16.msra.mxu1 %v4912_v23  ;;  %v848_v23 = vcombine.high %v5852_v19, %v5852_v19 }
  0xab   :  { %4499 = vmatprep.subr.bf16.mxu1 %v4915_v26  ;;  %v879_v26 = vcombine.high %v869_v22, %v869_v22 }
  0xac   :  { %4478 = vmatpush3.bf16.msra.mxu0 %v4914_v25  ;;  %v4969_v25 = vld [vmem:[%s6257_s1 + $0x6b8] sm:$0xff]  }
  0xad   :  { %4479 = vmatprep.subr.bf16.mxu0 %v4917_v28  ;;  %v4970_v28 = vld [vmem:[%s6257_s1 + $0x740] sm:$0xff]  }
  0xae   :  { %4500 = vmatpush3.bf16.msra.mxu1 %v4916_v27  ;;  %v855_v27 = vrot.slane %v839_v14, %v5248_v41  ;;  %v5005_v14 = vld [vmem:[%s6257_s1 + $0x8c0] sm:$0xff]  }
  0xaf   :  { %4501 = vmatprep.subr.bf16.mxu1 %v4919_v30  ;;  %v876_v30 = vrot.slane %v848_v23, %v5248_v41  ;;  %v5013_v23 = vld [vmem:[%s6257_s1 + $0x8d0] sm:$0xff]  }
  0xb0   :  { %4480 = vmatpush3.bf16.msra.mxu0 %v4918_v29  ;;  %v4971_v29 = vld [vmem:[%s6257_s1 + $0x700] sm:$0xff]  }
  0xb1   :  { %4481 = vmatprep.subr.bf16.mxu0 %v4921_v32  ;;  %v4973_v32 = vld [vmem:[%s6257_s1 + $0x780] sm:$0xff]  }
  0xb2   :  { %4502 = vmatpush3.bf16.msra.mxu1 %v4920_v31  ;;  %v4972_v31 = vld [vmem:[%s6257_s1 + $0x7c0] sm:$0xff]  }
  0xb3   :  { %4503 = vmatprep.subr.bf16.mxu1 %v4923_v34  ;;  %v4974_v34 = vld [vmem:[%s6257_s1 + $0x748] sm:$0xff]  }
  0xb4   :  { %4482 = vmatpush3.bf16.msra.mxu0 %v4922_v33  ;;  %v877_v33 = vcombine.high %v855_v27, %v855_v27 }
  0xb5   :  { %4483 = vmatprep.subr.bf16.mxu0 %v4925_v36  ;;  %v880_v36 = vcombine.high %v876_v30, %v876_v30 }
  0xb6   :  { %4504 = vmatpush3.bf16.msra.mxu1 %v4924_v35  ;;  %v4975_v35 = vld [vmem:[%s6257_s1 + $0x708] sm:$0xff]  }
  0xb7   :  { %4505 = vmatprep.subr.bf16.mxu1 %v4927_v38  ;;  %v4977_v38 = vld [vmem:[%s6257_s1 + $0x788] sm:$0xff]  }
  0xb8   :  { %4484 = vmatpush3.bf16.msra.mxu0 %v4926_v37  ;;  %v4976_v37 = vld [vmem:[%s6257_s1 + $0x7c8] sm:$0xff]  }
  0xb9   :  { %4485 = vmatprep.subr.bf16.mxu0 %v4929_v40  ;;  %v4979_v40 = vld [vmem:[%s6257_s1 + $0x710] sm:$0xff]  }
  0xba   :  { %4506 = vmatpush3.bf16.msra.mxu1 %v4928_v39  ;;  %v4978_v39 = vld [vmem:[%s6257_s1 + $0x750] sm:$0xff]  }
  0xbb   :  { %4507 = vmatprep.subr.bf16.mxu1 %v4931_v43  ;;  %v4981_v43 = vld [vmem:[%s6257_s1 + $0x790] sm:$0xff]  }
  0xbc   :  { %4486 = vmatpush3.bf16.msra.mxu0 %v4930_v42  ;;  %v4980_v42 = vld [vmem:[%s6257_s1 + $0x7d0] sm:$0xff]  }
  0xbd   :  { %4487 = vmatprep.subr.bf16.mxu0 %v4933_v45  ;;  %v4983_v45 = vld [vmem:[%s6257_s1 + $0x718] sm:$0xff]  }
  0xbe   :  { %4508 = vmatpush3.bf16.msra.mxu1 %v4932_v44  ;;  %v4982_v44 = vld [vmem:[%s6257_s1 + $0x758] sm:$0xff]  }
  0xbf   :  { %4509 = vmatprep.subr.bf16.mxu1 %v4935_v47  ;;  %v4985_v47 = vld [vmem:[%s6257_s1 + $0x798] sm:$0xff]  }
  0xc0   :  { %4488 = vmatpush3.bf16.msra.mxu0 %v4934_v46  ;;  %v4984_v46 = vld [vmem:[%s6257_s1 + $0x7d8] sm:$0xff]  }
  0xc1   :  { %4517 = vmatprep.subr.bf16.mxu0 %v4938_v50  ;;  %v4988_v50 = vld [vmem:[%s6257_s1 + $0x7e0] sm:$0xff]  }
  0xc2   :  { %4510 = vmatpush3.bf16.msra.mxu1 %v4937_v48  ;;  %v4986_v48 = vld [vmem:[%s6257_s1 + $0x760] sm:$0xff]  }
  0xc3   :  { %3365 = vmatmul.mubr.bf16.vlgmr.msra.gmra.mrb[20].mxu0 %v813_v49  ;;  %4539 = vmatprep.subr.bf16.mxu1 %v4940_v52  ;;  %v4987_v49 = vld [vmem:[%s6257_s1 + $0x720] sm:$0xff]   ;;  %v4990_v52 = vld [vmem:[%s6257_s1 + $0x768] sm:$0xff]  }
  0xc4   :  { %4518 = vmatpush3.bf16.msra.mxu0 %v4939_v51  ;;  %3444 = vmatprep.mubr.bf16.mxu0 %v869_v22  ;;  %v4989_v51 = vld [vmem:[%s6257_s1 + $0x7a0] sm:$0xff]   ;;  %v5012_v22 = vld [vmem:[%s6257_s1 + $0x810] sm:$0xff]  }
  0xc5   :  { %3405 = vmatmul.mubr.bf16.vlgmr.msra.gmra.mrb[20].mxu1 %v829_v54  ;;  %4519 = vmatprep.subr.bf16.mxu0 %v4942_v55  ;;  %v4992_v54 = vld [vmem:[%s6257_s1 + $0x7e8] sm:$0xff]  }
  0xc6   :  { %4540 = vmatpush3.bf16.msra.mxu1 %v4941_v53  ;;  %3484 = vmatprep.mubr.bf16.mxu1 %v879_v26  ;;  %v4991_v53 = vld [vmem:[%s6257_s1 + $0x728] sm:$0xff]   ;;  %v5016_v26 = vld [vmem:[%s6257_s1 + $0x818] sm:$0xff]  }
  0xc7   :  { %4541 = vmatprep.subr.bf16.mxu1 %v4944_v57  ;;  %v4993_v55 = vld [vmem:[%s6257_s1 + $0x7a8] sm:$0xff]  }
  0xc8   :  { %4520 = vmatpush3.bf16.msra.mxu0 %v4943_v56  ;;  %v4994_v56 = vld [vmem:[%s6257_s1 + $0x770] sm:$0xff]  }
  0xc9   :  { %4521 = vmatprep.subr.bf16.mxu0 %v4946_v59 }
  0xca   :  { %4542 = vmatpush3.bf16.msra.mxu1 %v4945_v58  ;;  %v4995_v58 = vld [vmem:[%s6257_s1 + $0x730] sm:$0xff]  }
  0xcb   :  { %4543 = vmatprep.subr.bf16.mxu1 %v4948_v61 }
  0xcc   :  { %4522 = vmatpush3.bf16.msra.mxu0 %v4947_v60  ;;  %v4996_v60 = vld [vmem:[%s6257_s1 + $0x7f0] sm:$0xff]  }
  0xcd   :  { %4523 = vmatprep.subr.bf16.mxu0 %v4950_v63 }
  0xce   :  { %4544 = vmatpush3.bf16.msra.mxu1 %v4949_v62 }
  0xcf   :  { %4545 = vmatprep.subr.bf16.mxu1 %v4952_v1  ;;  %v4998_v1 = vld [vmem:[%s6257_s1 + $0x778] sm:$0xff]  }
  0xd0   :  { %4524 = vmatpush3.bf16.msra.mxu0 %v4951_v0  ;;  %v4997_v0 = vld [vmem:[%s6257_s1 + $0x7b0] sm:$0xff]  }
  0xd1   :  { %4525 = vmatprep.subr.bf16.mxu0 %v4954_v3 }
  0xd2   :  { %4546 = vmatpush3.bf16.msra.mxu1 %v4953_v2 }
  0xd3   :  { %4547 = vmatprep.subr.bf16.mxu1 %v4956_v5  ;;  %v4999_v5 = vld [vmem:[%s6257_s1 + $0x738] sm:$0xff]  }
  0xd4   :  { %4526 = vmatpush3.bf16.msra.mxu0 %v4955_v4 }
  0xd5   :  { %4527 = vmatprep.subr.bf16.mxu0 %v4958_v7  ;;  %v5000_v7 = vld [vmem:[%s6257_s1 + $0x7f8] sm:$0xff]  }
  0xd6   :  { %4548 = vmatpush3.bf16.msra.mxu1 %v4957_v6 }
  0xd7   :  { %4549 = vmatprep.subr.bf16.mxu1 %v4960_v9 }
  0xd8   :  { %4528 = vmatpush3.bf16.msra.mxu0 %v4959_v8 }
  0xd9   :  { %4529 = vmatprep.subr.bf16.mxu0 %v4962_v11  ;;  %v862_v11 = vrot.slane %v5852_v19, %v5248_v41  ;;  %v5009_v19 = vld [vmem:[%s6257_s1 + $0x8c8] sm:$0xff]  }
  0xda   :  { %4550 = vmatpush3.bf16.msra.mxu1 %v4961_v10  ;;  %v5002_v10 = vld [vmem:[%s6257_s1 + $0x7b8] sm:$0xff]  }
  0xdb   :  { %4551 = vmatprep.subr.bf16.mxu1 %v4964_v16  ;;  %v878_v16 = vcombine.high %v862_v11, %v862_v11 }
  0xdc   :  { %4530 = vmatpush3.bf16.msra.mxu0 %v4963_v13  ;;  %v5004_v13 = vld [vmem:[%s6257_s1 + $0x800] sm:$0xff]  }
  0xdd   :  { %4531 = vmatprep.subr.bf16.mxu0 %v4966_v20  ;;  %v5010_v20 = vld [vmem:[%s6257_s1 + $0x888] sm:$0xff]  }
  0xde   :  { %4552 = vmatpush3.bf16.msra.mxu1 %v4965_v17  ;;  %v5007_v17 = vld [vmem:[%s6257_s1 + $0x848] sm:$0xff]  }
  0xdf   :  { %4553 = vmatprep.subr.bf16.mxu1 %v4968_v24  ;;  %v5014_v24 = vld [vmem:[%s6257_s1 + $0x890] sm:$0xff]  }
  0xe0   :  { %4532 = vmatpush3.bf16.msra.mxu0 %v4967_v21  ;;  %v5011_v21 = vld [vmem:[%s6257_s1 + $0x850] sm:$0xff]  }
  0xe1   :  { %4561 = vmatprep.subr.bf16.mxu0 %v4970_v28  ;;  %v5018_v28 = vld [vmem:[%s6257_s1 + $0x898] sm:$0xff]  }
  0xe2   :  { %4554 = vmatpush3.bf16.msra.mxu1 %v4969_v25  ;;  %v5015_v25 = vld [vmem:[%s6257_s1 + $0x858] sm:$0xff]  }
  0xe3   :  { %3445 = vmatmul.mubr.bf16.vlgmr.msra.gmra.mrb[24].mxu0 %v855_v27  ;;  %4583 = vmatprep.subr.bf16.mxu1 %v4972_v31  ;;  %v5017_v27 = vld [vmem:[%s6257_s1 + $0x8d8] sm:$0xff]   ;;  %v5021_v31 = vld [vmem:[%s6257_s1 + $0x8e0] sm:$0xff]  }
  0xe4   :  { %4562 = vmatpush3.bf16.msra.mxu0 %v4971_v29  ;;  %3524 = vmatprep.mubr.bf16.mxu0 %v876_v30  ;;  %v5019_v29 = vld [vmem:[%s6257_s1 + $0x860] sm:$0xff]  }
  0xe5   :  { %3485 = vmatmul.mubr.bf16.vlgmr.msra.gmra.mrb[24].mxu1 %v877_v33  ;;  %4563 = vmatprep.subr.bf16.mxu0 %v4974_v34  ;;  %v5020_v30 = vld [vmem:[%s6257_s1 + $0x820] sm:$0xff]   ;;  %v5023_v33 = vld [vmem:[%s6257_s1 + $0x868] sm:$0xff]  }
  0xe6   :  { %4584 = vmatpush3.bf16.msra.mxu1 %v4973_v32  ;;  %3564 = vmatprep.mubr.bf16.mxu1 %v880_v36  ;;  %v5022_v32 = vld [vmem:[%s6257_s1 + $0x8a0] sm:$0xff]   ;;  %v5024_v34 = vld [vmem:[%s6257_s1 + $0x828] sm:$0xff]  }
  0xe7   :  { %4585 = vmatprep.subr.bf16.mxu1 %v4976_v37  ;;  %v5026_v36 = vld [vmem:[%s6257_s1 + $0x8a8] sm:$0xff]   ;;  %v5027_v37 = vld [vmem:[%s6257_s1 + $0x870] sm:$0xff]  }
  0xe8   :  { %4564 = vmatpush3.bf16.msra.mxu0 %v4975_v35  ;;  %v5025_v35 = vld [vmem:[%s6257_s1 + $0x8e8] sm:$0xff]  }
  0xe9   :  { %4565 = vmatprep.subr.bf16.mxu0 %v4978_v39 }
  0xea   :  { %4586 = vmatpush3.bf16.msra.mxu1 %v4977_v38  ;;  %v29_v38 = vld [vmem:[%s6256_s0 + $0x20] sm:$0xff] }
  0xeb   :  { %4587 = vmatprep.subr.bf16.mxu1 %v4980_v42  ;;  %v888_v42 = vrot.slane %v29_v38, %v5248_v41 }
  0xec   :  { %4566 = vmatpush3.bf16.msra.mxu0 %v4979_v40  ;;  %v5028_v40 = vld [vmem:[%s6257_s1 + $0x830] sm:$0xff]  }
  0xed   :  { %4567 = vmatprep.subr.bf16.mxu0 %v4982_v44 }
  0xee   :  { %4588 = vmatpush3.bf16.msra.mxu1 %v4981_v43  ;;  %v881_v43 = vcombine.high %v29_v38, %v29_v38  ;;  %v5063_v38 = vld [vmem:[%s6257_s1 + $0x978] sm:$0xff]  }
  0xef   :  { %4589 = vmatprep.subr.bf16.mxu1 %v4984_v46 }
  0xf0   :  { %4568 = vmatpush3.bf16.msra.mxu0 %v4983_v45  ;;  %v5029_v45 = vld [vmem:[%s6257_s1 + $0x8f0] sm:$0xff]  }
  0xf1   :  { %4569 = vmatprep.subr.bf16.mxu0 %v4986_v48 }
  0xf2   :  { %4590 = vmatpush3.bf16.msra.mxu1 %v4985_v47 }
  0xf3   :  { %4591 = vmatprep.subr.bf16.mxu1 %v4988_v50  ;;  %v6057_v50 = vrot.slane %v881_v43, %v5248_v41 }
  0xf4   :  { %4570 = vmatpush3.bf16.msra.mxu0 %v4987_v49  ;;  %v896_v49 = vcombine.high %v888_v42, %v888_v42 }
  0xf5   :  { %4571 = vmatprep.subr.bf16.mxu0 %v4990_v52 }
  0xf6   :  { %v4269_v57 = vpop.f32.mrb[0].mxu0  ;;  %4592 = vmatpush3.bf16.msra.mxu1 %v4989_v51 }
  0xf7   :  { %v4270_v59 = vpop.f32.mrb[1].mxu0  ;;  %4593 = vmatprep.subr.bf16.mxu1 %v4992_v54  ;;  %v4291_v61 = vpop.f32.mrb[0].mxu1  ;;  %v5031_v54 = vld [vmem:[%s6257_s1 + $0x878] sm:$0xff]  }
  0xf8   :  { %v4271_v62 = vadd.f32 %v4270_v59, %v4269_v57  ;;  %v4272_v63 = vpop.f32.mrb[2].mxu0  ;;  %4572 = vmatpush3.bf16.msra.mxu0 %v4991_v53  ;;  %v4292_v2 = vpop.f32.mrb[1].mxu1  ;;  %v5030_v53 = vld [vmem:[%s6257_s1 + $0x8b0] sm:$0xff]   ;;  %v5032_v57 = vld [vmem:[%s6257_s1 + $0x838] sm:$0xff]   ;;  %v918_v59 = vrot.slane %v896_v49, %v5248_v41 }
  0xf9   :  { %v4273_v3 = vpop.f32.mrb[3].mxu0  ;;  %4573 = vmatprep.subr.bf16.mxu0 %v4994_v56  ;;  %v4293_v4 = vadd.f32 %v4292_v2, %v4291_v61  ;;  %v4294_v6 = vpop.f32.mrb[2].mxu1  ;;  %v5035_v2 = vld [vmem:[%s6257_s1 + $0x940] sm:$0xff]   ;;  %v5064_v49 = vld [vmem:[%s6257_s1 + $0x938] sm:$0xff]  }
  0xfa   :  { %4594 = vmatpush3.bf16.msra.mxu1 %v4993_v55  ;;  %v4295_v8 = vpop.f32.mrb[3].mxu1  ;;  %v5034_v3 = vld [vmem:[%s6257_s1 + $0x8b8] sm:$0xff]   ;;  %v5036_v6 = vld [vmem:[%s6257_s1 + $0x900] sm:$0xff]  }
  0xfb   :  { %4595 = vmatprep.subr.bf16.mxu1 %v4996_v60  ;;  %v5964_v9 = vadd.f32 %v4293_v4, %v4271_v62  ;;  %v5033_v60 = vld [vmem:[%s6257_s1 + $0x8f8] sm:$0xff]   ;;  %v897_v62 = vcombine.high %v6057_v50, %v6057_v50  ;;  %v5039_v8 = vld [vmem:[%s6257_s1 + $0x948] sm:$0xff]  }
  0xfc   :  { %4574 = vmatpush3.bf16.msra.mxu0 %v4995_v58 }
  0xfd   :  { %4575 = vmatprep.subr.bf16.mxu0 %v4998_v1  ;;  %v904_v1 = vrot.slane %v888_v42, %v5248_v41  ;;  %v925_v4 = vrot.slane %v897_v62, %v5248_v41 }
  0xfe   :  { %4596 = vmatpush3.bf16.msra.mxu1 %v4997_v0  ;;  %v928_v0 = vcombine.high %v918_v59, %v918_v59 }
  0xff   :  { %4597 = vmatprep.subr.bf16.mxu1 %v5000_v7  ;;  %v926_v7 = vcombine.high %v904_v1, %v904_v1 }
 0x100   :  { %4576 = vmatpush3.bf16.msra.mxu0 %v4999_v5  ;;  %v5037_v5 = vld [vmem:[%s6257_s1 + $0x9c0] sm:$0xff]  }
 0x101   :  { %4605 = vmatprep.subr.bf16.mxu0 %v5003_v12  ;;  %v5040_v12 = vld [vmem:[%s6257_s1 + $0x908] sm:$0xff]  }
 0x102   :  { %4598 = vmatpush3.bf16.msra.mxu1 %v5002_v10  ;;  %v929_v10 = vcombine.high %v925_v4, %v925_v4 }
 0x103   :  { %3525 = vmatmul.mubr.bf16.vlgmr.msra.gmra.mrb[28].mxu0 %v862_v11  ;;  %4627 = vmatprep.subr.bf16.mxu1 %v5005_v14  ;;  %v5041_v11 = vld [vmem:[%s6257_s1 + $0x9c8] sm:$0xff]  }
 0x104   :  { %4606 = vmatpush3.bf16.msra.mxu0 %v5004_v13  ;;  %3604 = vmatprep.mubr.bf16.mxu0 %v918_v59  ;;  %v5043_v13 = vld [vmem:[%s6257_s1 + $0x950] sm:$0xff]   ;;  %v5042_v14 = vld [vmem:[%s6257_s1 + $0x988] sm:$0xff]  }
 0x105   :  { %3565 = vmatmul.mubr.bf16.vlgmr.msra.gmra.mrb[28].mxu1 %v878_v16  ;;  %4607 = vmatprep.subr.bf16.mxu0 %v5007_v17  ;;  %v5044_v16 = vld [vmem:[%s6257_s1 + $0x910] sm:$0xff]   ;;  %v5047_v17 = vld [vmem:[%s6257_s1 + $0x958] sm:$0xff]  }
 0x106   :  { %4628 = vmatpush3.bf16.msra.mxu1 %v5006_v15  ;;  %3644 = vmatprep.mubr.bf16.mxu1 %v928_v0  ;;  %v5045_v15 = vld [vmem:[%s6257_s1 + $0x9d0] sm:$0xff]  }
 0x107   :  { %4629 = vmatprep.subr.bf16.mxu1 %v5009_v19  ;;  %v5049_v19 = vld [vmem:[%s6257_s1 + $0x9d8] sm:$0xff]  }
 0x108   :  { %4608 = vmatpush3.bf16.msra.mxu0 %v5008_v18  ;;  %v5046_v18 = vld [vmem:[%s6257_s1 + $0x990] sm:$0xff]  }
 0x109   :  { %4609 = vmatprep.subr.bf16.mxu0 %v5011_v21  ;;  %v5051_v21 = vld [vmem:[%s6257_s1 + $0x960] sm:$0xff]  }
 0x10a   :  { %4630 = vmatpush3.bf16.msra.mxu1 %v5010_v20  ;;  %v5048_v20 = vld [vmem:[%s6257_s1 + $0x918] sm:$0xff]  }
 0x10b   :  { %4631 = vmatprep.subr.bf16.mxu1 %v5013_v23  ;;  %v5053_v23 = vld [vmem:[%s6257_s1 + $0x9e0] sm:$0xff]  }
 0x10c   :  { %4610 = vmatpush3.bf16.msra.mxu0 %v5012_v22  ;;  %v5050_v22 = vld [vmem:[%s6257_s1 + $0x998] sm:$0xff]  }
 0x10d   :  { %4611 = vmatprep.subr.bf16.mxu0 %v5015_v25  ;;  %v5055_v25 = vld [vmem:[%s6257_s1 + $0x968] sm:$0xff]  }
 0x10e   :  { %4632 = vmatpush3.bf16.msra.mxu1 %v5014_v24  ;;  %v5052_v24 = vld [vmem:[%s6257_s1 + $0x920] sm:$0xff]  }
 0x10f   :  { %4633 = vmatprep.subr.bf16.mxu1 %v5017_v27  ;;  %v5057_v27 = vld [vmem:[%s6257_s1 + $0x9e8] sm:$0xff]  }
 0x110   :  { %4612 = vmatpush3.bf16.msra.mxu0 %v5016_v26  ;;  %v5054_v26 = vld [vmem:[%s6257_s1 + $0x9a0] sm:$0xff]  }
 0x111   :  { %4613 = vmatprep.subr.bf16.mxu0 %v5019_v29  ;;  %v5059_v29 = vld [vmem:[%s6257_s1 + $0x970] sm:$0xff]  }
 0x112   :  { %4634 = vmatpush3.bf16.msra.mxu1 %v5018_v28  ;;  %v5056_v28 = vld [vmem:[%s6257_s1 + $0x928] sm:$0xff]  }
 0x113   :  { %4635 = vmatprep.subr.bf16.mxu1 %v5021_v31  ;;  %v5058_v31 = vld [vmem:[%s6257_s1 + $0x9a8] sm:$0xff]  }
 0x114   :  { %4614 = vmatpush3.bf16.msra.mxu0 %v5020_v30 }
 0x115   :  { %4615 = vmatprep.subr.bf16.mxu0 %v5023_v33  ;;  %v5061_v33 = vld [vmem:[%s6257_s1 + $0x9f0] sm:$0xff]  }
 0x116   :  { %v4313_v39 = vpop.f32.mrb[4].mxu0  ;;  %4636 = vmatpush3.bf16.msra.mxu1 %v5022_v32 }
 0x117   :  { %v4314_v44 = vpop.f32.mrb[5].mxu0  ;;  %4637 = vmatprep.subr.bf16.mxu1 %v5025_v35  ;;  %v4335_v48 = vpop.f32.mrb[4].mxu1 }
 0x118   :  { %v4315_v46 = vadd.f32 %v4314_v44, %v4313_v39  ;;  %v4316_v47 = vpop.f32.mrb[6].mxu0  ;;  %4616 = vmatpush3.bf16.msra.mxu0 %v5024_v34  ;;  %v4336_v52 = vpop.f32.mrb[5].mxu1  ;;  %v5062_v44 = vld [vmem:[%s6257_s1 + $0x9b0] sm:$0xff]  }
 0x119   :  { %v4317_v51 = vpop.f32.mrb[7].mxu0  ;;  %4617 = vmatprep.subr.bf16.mxu0 %v5027_v37  ;;  %v4337_v56 = vadd.f32 %v4336_v52, %v4335_v48  ;;  %v4338_v58 = vpop.f32.mrb[6].mxu1  ;;  %v5060_v37 = vld [vmem:[%s6257_s1 + $0x930] sm:$0xff]   ;;  %v911_v52 = vrot.slane %v6057_v50, %v5248_v41 }
 0x11a   :  { %v3047_v55 = vadd.f32 %v4315_v46, %v5964_v9  ;;  %4638 = vmatpush3.bf16.msra.mxu1 %v5026_v36  ;;  %v4339_v61 = vpop.f32.mrb[7].mxu1  ;;  %v5038_v9 = vld [vmem:[%s6257_s1 + $0x980] sm:$0xff]   ;;  %v5065_v46 = vld [vmem:[%s6257_s1 + $0x9f8] sm:$0xff]  }
 0x11b   :  { %4639 = vmatprep.subr.bf16.mxu1 %v5029_v45  ;;  %v5067_v51 = vld [vmem:[%s6257_s1 + $0x9b8] sm:$0xff]  }
 0x11c   :  { %v6075_v63 = vadd.f32 %v4337_v56, %v3047_v55  ;;  %4618 = vmatpush3.bf16.msra.mxu0 %v5028_v40  ;;  %v927_v55 = vcombine.high %v911_v52, %v911_v52 }
 0x11d   :  { %4619 = vmatprep.subr.bf16.mxu0 %v5031_v54  ;;  %v5105_v54 = vmov 0.0  }
 0x11e   :  { %4640 = vmatpush3.bf16.msra.mxu1 %v5030_v53  ;;  %v5068_v53 = vld [vmem:[%s6257_s1 + $0xa00] sm:$0xff]  }
 0x11f   :  { %4641 = vmatprep.subr.bf16.mxu1 %v5033_v60 }
 0x120   :  { %4620 = vmatpush3.bf16.msra.mxu0 %v5032_v57 }
 0x121   :  { %4649 = vmatprep.subr.bf16.mxu0 %v5035_v2 }
 0x122   :  { %4642 = vmatpush3.bf16.msra.mxu1 %v5034_v3 }
 0x123   :  { %3605 = vmatmul.mubr.bf16.vlgmr.msra.gmra.mrb[32].mxu0 %v904_v1  ;;  %4671 = vmatprep.subr.bf16.mxu1 %v5037_v5 }
 0x124   :  { %4650 = vmatpush3.bf16.msra.mxu0 %v5036_v6  ;;  %3684 = vmatprep.mubr.bf16.mxu0 %v925_v4 }
 0x125   :  { %3645 = vmatmul.mubr.bf16.vlgmr.msra.gmra.mrb[32].mxu1 %v926_v7  ;;  %4651 = vmatprep.subr.bf16.mxu0 %v5039_v8 }
 0x126   :  { %4672 = vmatpush3.bf16.msra.mxu1 %v5038_v9  ;;  %3724 = vmatprep.mubr.bf16.mxu1 %v929_v10 }
 0x127   :  { %4673 = vmatprep.subr.bf16.mxu1 %v5041_v11 }
 0x128   :  { %4652 = vmatpush3.bf16.msra.mxu0 %v5040_v12 }
 0x129   :  { %4653 = vmatprep.subr.bf16.mxu0 %v5043_v13 }
 0x12a   :  { %4674 = vmatpush3.bf16.msra.mxu1 %v5042_v14 }
 0x12b   :  { %4675 = vmatprep.subr.bf16.mxu1 %v5045_v15 }
 0x12c   :  { %4654 = vmatpush3.bf16.msra.mxu0 %v5044_v16 }
 0x12d   :  { %4655 = vmatprep.subr.bf16.mxu0 %v5047_v17 }
 0x12e   :  { %4676 = vmatpush3.bf16.msra.mxu1 %v5046_v18 }
 0x12f   :  { %4677 = vmatprep.subr.bf16.mxu1 %v5049_v19 }
 0x130   :  { %4656 = vmatpush3.bf16.msra.mxu0 %v5048_v20 }
 0x131   :  { %4657 = vmatprep.subr.bf16.mxu0 %v5051_v21 }
 0x132   :  { %4678 = vmatpush3.bf16.msra.mxu1 %v5050_v22 }
 0x133   :  { %4679 = vmatprep.subr.bf16.mxu1 %v5053_v23 }
 0x134   :  { %4658 = vmatpush3.bf16.msra.mxu0 %v5052_v24 }
 0x135   :  { %4659 = vmatprep.subr.bf16.mxu0 %v5055_v25 }
 0x136   :  { %v4357_v30 = vpop.f32.mrb[8].mxu0  ;;  %4680 = vmatpush3.bf16.msra.mxu1 %v5054_v26 }
 0x137   :  { %v4358_v32 = vpop.f32.mrb[9].mxu0  ;;  %4681 = vmatprep.subr.bf16.mxu1 %v5057_v27 }
 0x138   :  { %v4359_v34 = vadd.f32 %v4358_v32, %v4357_v30  ;;  %v4360_v35 = vpop.f32.mrb[10].mxu0  ;;  %v4379_v36 = vpop.f32.mrb[8].mxu1  ;;  %4660 = vmatpush3.bf16.msra.mxu0 %v5056_v28 }
 0x139   :  { %v4361_v39 = vpop.f32.mrb[11].mxu0  ;;  %v4380_v40 = vpop.f32.mrb[9].mxu1  ;;  %4661 = vmatprep.subr.bf16.mxu0 %v5059_v29 }
 0x13a   :  { %v3127_v42 = vadd.f32 %v4359_v34, %v6075_v63  ;;  %v4381_v43 = vadd.f32 %v4380_v40, %v4379_v36  ;;  %4682 = vmatpush3.bf16.msra.mxu1 %v5058_v31  ;;  %v4382_v45 = vpop.f32.mrb[10].mxu1 }
 0x13b   :  { %4683 = vmatprep.subr.bf16.mxu1 %v5061_v33  ;;  %v4383_v47 = vpop.f32.mrb[11].mxu1 }
 0x13c   :  { %v3167_v48 = vadd.f32 %v4381_v43, %v3127_v42  ;;  %4662 = vmatpush3.bf16.msra.mxu0 %v5060_v37 }
 0x13d   :  { %4663 = vmatprep.subr.bf16.mxu0 %v5063_v38 }
 0x13e   :  { %4684 = vmatpush3.bf16.msra.mxu1 %v5062_v44 }
 0x13f   :  { %4685 = vmatprep.subr.bf16.mxu1 %v5065_v46 }
 0x140   :  { %4664 = vmatpush3.bf16.msra.mxu0 %v5064_v49 }
 0x141   :  { %4707 = vmatprep.subr.bf16.mxu0 %v5105_v54 }
 0x142   :  { %11 = vsyncpa [#allocation3], 0  ;;  %4686 = vmatpush3.bf16.msra.mxu1 %v5067_v51  ;;  %v5069_v50 = vld [vmem:[%s6257_s1 + $0xa08] sm:$0xff]   ;;  %vm5106_vm0 = vmmov 0   ;;  %v5070_v56 = vld [vmem:[%s6257_s1 + $0xa10] sm:$0xff]   ;;  %vm2928_vm1 = vcmask 523264  }
 0x143   :  { %3685 = vmatmul.mubr.bf16.vlgmr.msra.gmra.mrb[36].mxu0 %v911_v52  ;;  %4719 = vmatprep.subr.bf16.mxu1 %v5105_v54  ;;  %v5071_v57 = vld [vmem:[%s6257_s1 + $0xa18] sm:$0xff]   ;;  %v3916_v58 = vld.sshfl [vmem:[%s6256_s0 + $0x28] sm:$0x1 pattern:$0x75316420]  ;;  %v5072_v19 = vld [vmem:[%s6260_s4] sm:$0xff]  }
 0x144   :  { %4708 = vmatpush3.bf16.msra.mxu0 %v5068_v53  ;;  %4715 = vmatprep.mubr.msk.bf16.mxu0 %vm5106_vm0, %v5105_v54  ;;  %v943_v59 = vrot.slane %v3916_v58, %v5248_v41  ;;  %v5073_v21 = vld [vmem:[%s6260_s4 + $0x8] sm:$0xff]   ;;  %v5074_v31 = vld [vmem:[%s6260_s4 + $0x10] sm:$0xff]   ;;  %v5075_v34 = vld [vmem:[%s6260_s4 + $0x18] sm:$0xff]   ;;  %s5107_s28 = smov [#allocation2]  }
 0x145   :  { %3725 = vmatmul.mubr.bf16.vlgmr.msra.gmra.mrb[36].mxu1 %v927_v55  ;;  %4709 = vmatprep.subr.bf16.mxu0 %v5105_v54  ;;  %v5076_v35 = vld [vmem:[%s6260_s4 + $0x20] sm:$0xff]   ;;  %v5077_v36 = vld [vmem:[%s6260_s4 + $0x28] sm:$0xff]   ;;  %v5078_v37 = vld [vmem:[%s6260_s4 + $0x30] sm:$0xff]   ;;  %s3908_s29 = sshll.u32 %s5107_s28, 4  ;;  %s3909_s29 = int_to_ptr.vmem [resolvable:$true] %s3908_s29 }
 0x146   :  { %4735 = vmatprep.mubr.msk.bf16.mxu1 %vm5106_vm0, %v5105_v54  ;;  %4720 = vmatpush3.bf16.msra.mxu1 %v5072_v19  ;;  %v5079_v38 = vld [vmem:[%s6260_s4 + $0x38] sm:$0xff]   ;;  %p5085_p1 = scmp.lt.s32.totalorder %s3909_s29, %s3909_s29 }
 0x147   :  { %4721 = vmatprep.subr.bf16.mxu1 %v5105_v54 }
 0x148   :  { %4710 = vmatpush3.bf16.msra.mxu0 %v5069_v50 }
 0x149   :  { %4711 = vmatprep.subr.bf16.mxu0 %v5105_v54 }
 0x14a   :  { %4722 = vmatpush3.bf16.msra.mxu1 %v5073_v21 }
 0x14b   :  { %4723 = vmatprep.subr.bf16.mxu1 %v5105_v54 }
 0x14c   :  { %4712 = vmatpush3.bf16.msra.mxu0 %v5070_v56 }
 0x14d   :  { %4713 = vmatprep.subr.bf16.mxu0 %v5105_v54 }
 0x14e   :  { %4724 = vmatpush3.bf16.msra.mxu1 %v5074_v31 }
 0x14f   :  { %4725 = vmatprep.subr.bf16.mxu1 %v5105_v54 }
 0x150   :  { %4714 = vmatpush3.bf16.msra.mxu0 %v5071_v57 }
 0x152   :  { %4726 = vmatpush3.bf16.msra.mxu1 %v5075_v34  ;;  %v4244_v34 = vld [vmem:[%s6261_s5] ss:$0 sm:$0xff] }
 0x153   :  { %4716 = vmatmul.mubr.msk.bf16.vlgmr.msra.gmra.mrb[40].mxu0 %vm2928_vm1, %v943_v59  ;;  %4727 = vmatprep.subr.bf16.mxu1 %v5105_v54 }
 0x156   :  { %v4401_v60 = vpop.f32.mrb[12].mxu0  ;;  %4728 = vmatpush3.bf16.msra.mxu1 %v5076_v35 }
 0x157   :  { %v4402_v61 = vpop.f32.mrb[13].mxu0  ;;  %4729 = vmatprep.subr.bf16.mxu1 %v5105_v54 }
 0x158   :  { %v4403_v62 = vadd.f32 %v4402_v61, %v4401_v60  ;;  %v4404_v63 = vpop.f32.mrb[14].mxu0  ;;  %v4423_v0 = vpop.f32.mrb[12].mxu1 }
 0x159   :  { %v4405_v1 = vpop.f32.mrb[15].mxu0  ;;  %v4424_v2 = vpop.f32.mrb[13].mxu1 }
 0x15a   :  { %v3207_v3 = vadd.f32 %v4403_v62, %v3167_v48  ;;  %v4425_v4 = vadd.f32 %v4424_v2, %v4423_v0  ;;  %v4426_v5 = vpop.f32.mrb[14].mxu1  ;;  %4730 = vmatpush3.bf16.msra.mxu1 %v5077_v36 }
 0x15b   :  { %v4427_v6 = vpop.f32.mrb[15].mxu1  ;;  %4731 = vmatprep.subr.bf16.mxu1 %v5105_v54 }
 0x15c   :  { %v3247_v7 = vadd.f32 %v4425_v4, %v3207_v3 }
 0x15e   :  { %4732 = vmatpush3.bf16.msra.mxu1 %v5078_v37 }
 0x15f   :  { %4733 = vmatprep.subr.bf16.mxu1 %v5105_v54 }
 0x162   :  { %4734 = vmatpush3.bf16.msra.mxu1 %v5079_v38 }
 0x176   :  { %v4445_v8 = vpop.f32.mrb[16].mxu0 }
 0x177   :  { %v4446_v9 = vpop.f32.mrb[17].mxu0 }
 0x178   :  { %v4447_v10 = vadd.f32 %v4446_v9, %v4445_v8  ;;  %v4448_v11 = vpop.f32.mrb[18].mxu0  ;;  %v4467_v41 = vpop.f32.mrb[16].mxu1 }
 0x179   :  { %v4449_v12 = vpop.f32.mrb[19].mxu0  ;;  %v4468_v13 = vpop.f32.mrb[17].mxu1 }
 0x17a   :  { %v3287_v14 = vadd.f32 %v4447_v10, %v3247_v7  ;;  %v4469_v15 = vadd.f32 %v4468_v13, %v4467_v41  ;;  %v4470_v16 = vpop.f32.mrb[18].mxu1 }
 0x17b   :  { %v4471_v17 = vpop.f32.mrb[19].mxu1 }
 0x17c   :  { %v3327_v18 = vadd.f32 %v4469_v15, %v3287_v14 }
 0x196   :  { %v4489_v20 = vpop.f32.mrb[20].mxu0 }
 0x197   :  { %v4490_v22 = vpop.f32.mrb[21].mxu0 }
 0x198   :  { %v4491_v23 = vadd.f32 %v4490_v22, %v4489_v20  ;;  %v4492_v24 = vpop.f32.mrb[22].mxu0  ;;  %v4511_v25 = vpop.f32.mrb[20].mxu1 }
 0x199   :  { %v4493_v26 = vpop.f32.mrb[23].mxu0  ;;  %v4512_v27 = vpop.f32.mrb[21].mxu1  ;;  %v4242_v24 = vld [vmem:[%s6258_s2] ss:$0 sm:$0xff]  ;;  %s5080_s2 = scalar_lea.vmem %s3909_s29, 32 }
 0x19a   :  { %v3367_v28 = vadd.f32 %v4491_v23, %v3327_v18  ;;  %v4513_v29 = vadd.f32 %v4512_v27, %v4511_v25  ;;  %v4514_v30 = vpop.f32.mrb[22].mxu1  ;;  %v4243_v27 = vld [vmem:[%s6259_s3] ss:$0 sm:$0xff]  ;;  %p5081_p0 = scmp.ne.s32.totalorder %s3909_s29, %s5080_s2  ;;  %p5086_p2 = scmp.lt.s32.totalorder %s5080_s2, %s5080_s2 }
 0x19b   :  { %v4515_v32 = vpop.f32.mrb[23].mxu1 }
 0x19c   :  { %v3407_v33 = vadd.f32 %v4513_v29, %v3367_v28  ;;  %p5087_p3 = por %p5086_p2, %p5085_p1 }
 0x19e   :  { %p5088_p4 = pnand %p5087_p3, %p5081_p0 }
 0x1b6   :  { %v4533_v39 = vpop.f32.mrb[24].mxu0 }
 0x1b7   :  { %v4534_v40 = vpop.f32.mrb[25].mxu0 }
 0x1b8   :  { %v4535_v42 = vadd.f32 %v4534_v40, %v4533_v39  ;;  %v4536_v43 = vpop.f32.mrb[26].mxu0  ;;  %v4555_v44 = vpop.f32.mrb[24].mxu1 }
 0x1b9   :  { %v4537_v45 = vpop.f32.mrb[27].mxu0  ;;  %v4556_v46 = vpop.f32.mrb[25].mxu1 }
 0x1ba   :  { %v3447_v47 = vadd.f32 %v4535_v42, %v3407_v33  ;;  %v4557_v48 = vadd.f32 %v4556_v46, %v4555_v44  ;;  %v4558_v49 = vpop.f32.mrb[26].mxu1 }
 0x1bb   :  { %v4559_v51 = vpop.f32.mrb[27].mxu1 }
 0x1bc   :  { %v3487_v52 = vadd.f32 %v4557_v48, %v3447_v47 }
 0x1d6   :  { %v4577_v53 = vpop.f32.mrb[28].mxu0 }
 0x1d7   :  { %v4578_v55 = vpop.f32.mrb[29].mxu0 }
 0x1d8   :  { %v4579_v54 = vadd.f32 %v4578_v55, %v4577_v53  ;;  %v4580_v50 = vpop.f32.mrb[30].mxu0  ;;  %v4599_v56 = vpop.f32.mrb[28].mxu1 }
 0x1d9   :  { %v4581_v57 = vpop.f32.mrb[31].mxu0  ;;  %v4600_v58 = vpop.f32.mrb[29].mxu1 }
 0x1da   :  { %v3527_v59 = vadd.f32 %v4579_v54, %v3487_v52  ;;  %v4601_v60 = vadd.f32 %v4600_v58, %v4599_v56  ;;  %v4602_v61 = vpop.f32.mrb[30].mxu1 }
 0x1db   :  { %v4603_v62 = vpop.f32.mrb[31].mxu1 }
 0x1dc   :  { %v3567_v63 = vadd.f32 %v4601_v60, %v3527_v59 }
 0x1f6   :  { %v4621_v0 = vpop.f32.mrb[32].mxu0 }
 0x1f7   :  { %v4622_v1 = vpop.f32.mrb[33].mxu0 }
 0x1f8   :  { %v4623_v2 = vadd.f32 %v4622_v1, %v4621_v0  ;;  %v4624_v3 = vpop.f32.mrb[34].mxu0  ;;  %v4643_v4 = vpop.f32.mrb[32].mxu1 }
 0x1f9   :  { %v4625_v5 = vpop.f32.mrb[35].mxu0  ;;  %v4644_v6 = vpop.f32.mrb[33].mxu1 }
 0x1fa   :  { %v3607_v7 = vadd.f32 %v4623_v2, %v3567_v63  ;;  %v4645_v8 = vadd.f32 %v4644_v6, %v4643_v4  ;;  %v4646_v9 = vpop.f32.mrb[34].mxu1 }
 0x1fb   :  { %v4647_v10 = vpop.f32.mrb[35].mxu1 }
 0x1fc   :  { %v3647_v11 = vadd.f32 %v4645_v8, %v3607_v7 }
 0x216   :  { %v4665_v41 = vpop.f32.mrb[36].mxu0 }
 0x217   :  { %v4666_v12 = vpop.f32.mrb[37].mxu0 }
 0x218   :  { %v4667_v13 = vadd.f32 %v4666_v12, %v4665_v41  ;;  %v4668_v14 = vpop.f32.mrb[38].mxu0  ;;  %v4687_v15 = vpop.f32.mrb[36].mxu1 }
 0x219   :  { %v4669_v16 = vpop.f32.mrb[39].mxu0  ;;  %v4688_v17 = vpop.f32.mrb[37].mxu1 }
 0x21a   :  { %v3687_v18 = vadd.f32 %v4667_v13, %v3647_v11  ;;  %v4689_v19 = vadd.f32 %v4688_v17, %v4687_v15  ;;  %v4690_v20 = vpop.f32.mrb[38].mxu1 }
 0x21b   :  { %v4691_v21 = vpop.f32.mrb[39].mxu1 }
 0x21c   :  { %v3727_v22 = vadd.f32 %v4689_v19, %v3687_v18 }
 0x226   :  { %v3766_v23 = vpop.f32.mrb[40].mxu0 }
 0x227   :  { %v3767_v25 = vadd.f32 %v3766_v23, %v3727_v22  ;;  %v4717_v26 = vpop.f32.mrb[41].mxu0 }
 0x228   :  { %v3769_v28 = vpop.f32.mrb[42].mxu0 }
 0x229   :  { %v3779_v29 = vmul.f32 %v4242_v24, %v3767_v25  ;;  %v4718_v30 = vpop.f32.mrb[43].mxu0 }
 0x22b   :  { %v3787_v31 = vadd.f32 %v4243_v27, %v3779_v29 }
 0x22d   :  { %v3788_v32 = vmax.f32 %v3787_v31, 0.0 }
 0x22f   :  { %v3789_v33 = vpack.c.bf16 %v3788_v32, %v3788_v32 }
 0x231   :  { %4736 = vmatmul.mubr.bf16.vlgmr.msra.gmra.mrb[40].mxu1 %v3789_v33 }
 0x304   :  { %v3895_v35 = vpop.f32.mrb[40].mxu1 }
 0x305   :  { %v3896_v36 = vadd.f32 %v4244_v34, %v3895_v35  ;;  %v4737_v37 = vpop.f32.mrb[41].mxu1 }
 0x306   :  { %v3898_v38 = vpop.f32.mrb[42].mxu1 }
 0x307   :  { %3901 = vst [vmem:[#allocation2] sm:$0x3] %v3896_v36  ;;  %v4738_v39 = vpop.f32.mrb[43].mxu1 }
 0x308   :  { %5091 = shalt.err (!%p5088_p4)
}
 0x309   :  { %s5092_s5 = scalar_lea.hbm %s6262_s6, 32 }
 0x30a   :  { %p5093_p5 = scmp.ne.s32.totalorder %s6262_s6, %s5092_s5  ;;  %p5096_p6 = scmp.lt.u32.totalorder %s5092_s5, %s6262_s6 }
 0x30c   :  { %p5098_p7 = pnand %p5096_p6, %p5093_p5 }
 0x30e   :  { %5101 = shalt.err (!%p5098_p7)
}
 0x30f   :  { %3911 = dma.vmem_to_hbm [thread:$0]  %s3909_s29, 32, %s6262_s6, [#allocation3]  }
 0x310   :  { %5102 = dma.done.wait [#allocation3], 32  }
 0x311   :  { %5103 = vsyncadd [#allocation3], 4294967264 }
 0x312   :  { %3915 = vsyncpa [#allocation3], 1 }

</bundles_post_ra>
